<compile_context>
chip_gen: v6e
topology: v6e:2x2x1
jax: 0.10.0
libtpu: 0.0.40
codegen_flags: <defaults>
</compile_context>

<pallas_src>
import functools

import jax
import jax.numpy as jnp
from jax.experimental import pallas as pl
from jax.experimental.pallas import tpu as pltpu

NEG_SLOPE = 0.2
VMEM_LIMIT = 32 * 1024 * 1024  # explicit (v5e default scoped VMEM is only 16 MiB)


def _round_up(x, m):
    return (x + m - 1) // m * m


def _tile_m(m):
    # Largest row tile (multiple of 8, capped at 2048) that divides m.
    for tm in (2048, 1024, 512, 256, 128, 64, 32, 16, 8):
        if m % tm == 0:
            return tm
    return m


# ----------------------------- Pallas kernels -----------------------------

def _conv_bias_act_kernel(a_ref, b_ref, bias_ref, o_ref, *, act):
    """(tm, K) @ (K, C) on the MXU (bf16 operands, f32 accumulate) with a fused
    bias + activation epilogue in f32."""
    acc = jnp.dot(a_ref[...], b_ref[...], preferred_element_type=jnp.float32)
    y = acc + bias_ref[...]
    if act == "leaky":
        y = jnp.where(y > 0, y, NEG_SLOPE * y)
    else:  # sigmoid
        y = pl.reciprocal(1.0 + jnp.exp(-y), approx=True)  # exp + rcp on EUP
    o_ref[...] = y.astype(o_ref.dtype)


def _conv_bn_leaky_kernel(a_ref, b_ref, g_ref, bt_ref, o_ref, sum_ref, ssq_ref,
                          *, m_total, eps):
    """Conv matmul + BatchNorm(training stats) + LeakyReLU, M-tiled.

    grid = (2, M // tm):
      pass 0: matmul per tile, accumulate per-channel sum / sum-of-squares
              into small VMEM scratch (bounded footprint, pipelined).
      pass 1: matmul recomputed per tile, folded BN affine + LeakyReLU applied,
              single final HBM write per element.
    """
    p = pl.program_id(0)
    i = pl.program_id(1)
    acc = jnp.dot(a_ref[...], b_ref[...], preferred_element_type=jnp.float32)

    @pl.when((p == 0) & (i == 0))
    def _():
        sum_ref[...] = jnp.zeros_like(sum_ref)
        ssq_ref[...] = jnp.zeros_like(ssq_ref)

    @pl.when(p == 0)
    def _():
        sum_ref[...] += jnp.sum(acc, axis=0, keepdims=True)
        ssq_ref[...] += jnp.sum(acc * acc, axis=0, keepdims=True)
        o_ref[...] = acc.astype(o_ref.dtype)  # placeholder; overwritten in pass 1

    @pl.when(p == 1)
    def _():
        inv_m = 1.0 / m_total
        mean = sum_ref[...] * inv_m
        var = jnp.maximum(ssq_ref[...] * inv_m - mean * mean, 0.0)  # biased var
        scale = g_ref[...] * jax.lax.rsqrt(var + eps)
        shift = bt_ref[...] - mean * scale
        y = acc * scale + shift
        o_ref[...] = jnp.where(y > 0, y, NEG_SLOPE * y).astype(o_ref.dtype)


# ----------------------------- pallas_call wrappers -----------------------------

def _conv_bias_act_call(patches, wmat, bias, act, out_dtype):
    M, K = patches.shape
    C = wmat.shape[1]
    tm = _tile_m(M)
    return pl.pallas_call(
        functools.partial(_conv_bias_act_kernel, act=act),
        out_shape=jax.ShapeDtypeStruct((M, C), out_dtype),
        grid_spec=pltpu.PrefetchScalarGridSpec(
            num_scalar_prefetch=0,
            grid=(M // tm,),
            in_specs=[
                pl.BlockSpec((tm, K), lambda i: (i, 0)),
                pl.BlockSpec((K, C), lambda i: (0, 0)),
                pl.BlockSpec((1, C), lambda i: (0, 0)),
            ],
            out_specs=pl.BlockSpec((tm, C), lambda i: (i, 0)),
        ),
        compiler_params=pltpu.CompilerParams(
            dimension_semantics=("parallel",),
            vmem_limit_bytes=VMEM_LIMIT,
        ),
    )(patches, wmat, bias)


def _conv_bn_leaky_call(patches, wmat, gamma, beta, eps, out_dtype):
    M, K = patches.shape
    C = wmat.shape[1]
    tm = _tile_m(M)
    return pl.pallas_call(
        functools.partial(_conv_bn_leaky_kernel, m_total=float(M), eps=eps),
        out_shape=jax.ShapeDtypeStruct((M, C), out_dtype),
        grid_spec=pltpu.PrefetchScalarGridSpec(
            num_scalar_prefetch=0,
            grid=(2, M // tm),                       # (pass, M tile)
            in_specs=[
                pl.BlockSpec((tm, K), lambda p, i: (i, 0)),
                pl.BlockSpec((K, C), lambda p, i: (0, 0)),
                pl.BlockSpec((1, C), lambda p, i: (0, 0)),
                pl.BlockSpec((1, C), lambda p, i: (0, 0)),
            ],
            out_specs=pl.BlockSpec((tm, C), lambda p, i: (i, 0)),
            scratch_shapes=[
                pltpu.VMEM((1, C), jnp.float32),     # per-channel sum
                pltpu.VMEM((1, C), jnp.float32),     # per-channel sum of squares
            ],
        ),
        compiler_params=pltpu.CompilerParams(
            dimension_semantics=("arbitrary", "arbitrary"),
            vmem_limit_bytes=VMEM_LIMIT,
        ),
    )(patches, wmat, gamma, beta)


# ----------------------------- JAX-side glue -----------------------------

def _im2col(x_nhwc, kh, kw, stride, padding):
    """NHWC -> bf16 [M, Kp] patch matrix, K ordered (kh, kw, cin), Kp = 128-mult.
    TODO(synk): XLA glue; stride-2 windows are not rectangular BlockSpec tiles."""
    N, H, W, C = x_nhwc.shape
    Ho = (H + 2 * padding - kh) // stride + 1
    Wo = (W + 2 * padding - kw) // stride + 1
    xp = jnp.pad(x_nhwc, ((0, 0), (padding, padding), (padding, padding), (0, 0)))
    taps = []
    for i in range(kh):
        for j in range(kw):
            taps.append(xp[:, i:i + stride * (Ho - 1) + 1:stride,
                              j:j + stride * (Wo - 1) + 1:stride, :])
    patches = jnp.stack(taps, axis=3).reshape(N * Ho * Wo, kh * kw * C)
    K = kh * kw * C
    Kp = _round_up(K, 128)
    if Kp != K:  # only layer 1 (K=48); zero K-pad keeps the matmul exact
        patches = jnp.pad(patches, ((0, 0), (0, Kp - K)))
    return patches.astype(jnp.bfloat16), Ho, Wo


def pack_params(p):
    """One-time packing of PyTorch-layout parameters into kernel operands.
    Hoisted out of the per-forward path (pure dispatch overhead otherwise)."""
    def wmat(w, cout_pad=None):
        cout, cin, kh, kw = w.shape
        k = kh * kw * cin
        m = jnp.transpose(w, (2, 3, 1, 0)).reshape(k, cout)
        kp = _round_up(k, 128)
        cp = cout if cout_pad is None else cout_pad
        m = jnp.pad(m, ((0, kp - k), (0, cp - cout)))
        return m.astype(jnp.bfloat16)

    def vec(v, pad=None):
        c = v.shape[0]
        cp = c if pad is None else pad
        return jnp.zeros((1, cp), jnp.float32).at[0, :c].set(v.astype(jnp.float32))

    return dict(
        w1=wmat(p["w1"]), b1=vec(p["b1"]),
        w2=wmat(p["w2"]), g2=vec(p["g2"]), be2=vec(p["be2"]),
        w3=wmat(p["w3"]), g3=vec(p["g3"]), be3=vec(p["be3"]),
        w4=wmat(p["w4"]), g4=vec(p["g4"]), be4=vec(p["be4"]),
        # final layer: keep fully (8,128)-aligned shapes (negligible bytes)
        w5=wmat(p["w5"], cout_pad=128), b5=vec(p["b5"], pad=128),
    )


def conv_layer(x_nhwc, wmat, bias, stride, padding, act, out_dtype):
    """Conv2d(+bias) + activation; output NHWC with the real Cout channels."""
    N = x_nhwc.shape[0]
    patches, Ho, Wo = _im2col(x_nhwc, 4, 4, stride, padding)
    M = patches.shape[0]
    Mp = _round_up(M, 8)
    if Mp != M:  # only the final 1x1 layer (M = batch)
        patches = jnp.pad(patches, ((0, Mp - M), (0, 0)))
    out = _conv_bias_act_call(patches, wmat, bias, act, out_dtype)
    return out[:M].reshape(N, Ho, Wo, -1)


def conv_bn_leaky_layer(x_nhwc, wmat, gamma, beta, stride, padding, out_dtype,
                        eps=1e-5):
    """Conv2d(no bias) + BatchNorm2d(training stats) + LeakyReLU(0.2), fused."""
    N = x_nhwc.shape[0]
    patches, Ho, Wo = _im2col(x_nhwc, 4, 4, stride, padding)
    assert patches.shape[0] % 8 == 0  # M = N*Ho*Wo, always a multiple of 16 here
    out = _conv_bn_leaky_call(patches, wmat, gamma, beta, eps, out_dtype)
    return out.reshape(N, Ho, Wo, -1)


def discriminator_forward(x_nchw, pp):
    """Forward pass; `pp` are the pre-packed parameters from pack_params()."""
    x = jnp.transpose(x_nchw, (0, 2, 3, 1)).astype(jnp.float32)  # NCHW -> NHWC
    x = conv_layer(x, pp["w1"], pp["b1"], 2, 1, "leaky", jnp.bfloat16)
    x = conv_bn_leaky_layer(x, pp["w2"], pp["g2"], pp["be2"], 2, 1, jnp.bfloat16)
    x = conv_bn_leaky_layer(x, pp["w3"], pp["g3"], pp["be3"], 2, 1, jnp.bfloat16)
    x = conv_bn_leaky_layer(x, pp["w4"], pp["g4"], pp["be4"], 2, 1, jnp.bfloat16)
    x = conv_layer(x, pp["w5"], pp["b5"], 2, 0, "sigmoid", jnp.float32)
    y = x[..., :1]                                  # real single output channel
    return jnp.transpose(y, (0, 3, 1, 2))           # NCHW, shape [N, 1, 1, 1]


# ----------------------------- reference (check) -----------------------------

def reference_forward(x, p):
    hp = jax.lax.Precision.HIGHEST

    def conv(v, w, s, pad):
        return jax.lax.conv_general_dilated(
            v, w, (s, s), [(pad, pad), (pad, pad)],
            dimension_numbers=("NCHW", "OIHW", "NCHW"), precision=hp)

    leaky = lambda v: jnp.where(v > 0, v, 0.2 * v)

    def bn(v, g, b, eps=1e-5):
        m = jnp.mean(v, axis=(0, 2, 3), keepdims=True)
        va = jnp.var(v, axis=(0, 2, 3), keepdims=True)
        return (v - m) / jnp.sqrt(va + eps) * g[None, :, None, None] + b[None, :, None, None]

    y = leaky(conv(x, p["w1"], 2, 1) + p["b1"][None, :, None, None])
    y = leaky(bn(conv(y, p["w2"], 2, 1), p["g2"], p["be2"]))
    y = leaky(bn(conv(y, p["w3"], 2, 1), p["g3"], p["be3"]))
    y = leaky(bn(conv(y, p["w4"], 2, 1), p["g4"], p["be4"]))
    y = jax.nn.sigmoid(conv(y, p["w5"], 2, 0) + p["b5"][None, :, None, None])
    return y


if __name__ == "__main__":
    batch, channels_img, features_d, img = 2, 3, 8, 64  # DCGAN: 64x64 -> 1x1
    fd = features_d
    key = jax.random.PRNGKey(0)
    ks = jax.random.split(key, 14)

    def nrm(k, shape, s=0.05):
        return (s * jax.random.normal(k, shape)).astype(jnp.float32)

    params = dict(
        w1=nrm(ks[0], (fd, channels_img, 4, 4)), b1=nrm(ks[1], (fd,)),
        w2=nrm(ks[2], (2 * fd, fd, 4, 4)),
        g2=(1.0 + 0.1 * jax.random.normal(ks[3], (2 * fd,))).astype(jnp.float32),
        be2=nrm(ks[4], (2 * fd,), 0.1),
        w3=nrm(ks[5], (4 * fd, 2 * fd, 4, 4)),
        g3=(1.0 + 0.1 * jax.random.normal(ks[6], (4 * fd,))).astype(jnp.float32),
        be3=nrm(ks[7], (4 * fd,), 0.1),
        w4=nrm(ks[8], (8 * fd, 4 * fd, 4, 4)),
        g4=(1.0 + 0.1 * jax.random.normal(ks[9], (8 * fd,))).astype(jnp.float32),
        be4=nrm(ks[10], (8 * fd,), 0.1),
        w5=nrm(ks[11], (1, 8 * fd, 4, 4)), b5=nrm(ks[12], (1,)),
    )
    x = jax.random.normal(ks[13], (batch, channels_img, img, img), jnp.float32)

    packed = jax.tree_util.tree_map(jax.block_until_ready, pack_params(params))

    fwd = jax.jit(discriminator_forward)
    out = jax.block_until_ready(fwd(x, packed))
    assert out.shape == (batch, 1, 1, 1), out.shape

    ref = reference_forward(x, params)
    # bf16 MXU operands / bf16 intermediate activations (f32 accumulation and
    # f32 BN/affine epilogues, approx EUP reciprocal in the sigmoid) -> compare
    # to the f32 HIGHEST reference with a bf16-appropriate tolerance.
    assert jnp.allclose(out, ref, rtol=0.0, atol=3e-2), (out, ref)
    print("KERNEL_OK")
</pallas_src>

<mosaic_0001>
module attributes {stable_mosaic.version = 11 : i64} {
  func.func @_conv_bias_act_kernel(%arg0: i32, %arg1: memref<2048x128xbf16, #tpu.memory_space<vmem>>, %arg2: memref<128x8xbf16, #tpu.memory_space<vmem>>, %arg3: memref<1x8xf32, #tpu.memory_space<vmem>>, %arg4: memref<2048x8xbf16, #tpu.memory_space<vmem>>) attributes {dimension_semantics = [#tpu.dimension_semantics<parallel>], iteration_bounds = array<i64: 1>, scalar_prefetch = 0 : i64, scratch_operands = 0 : i64, tpu.core_type = #tpu.core_type<tc>, window_params = [{transform_indices = @transform_0, window_bounds = array<i64: 2048, 128>}, {pipeline_mode = #tpu.pipeline_mode<synchronous>, transform_indices = @transform_1, window_bounds = array<i64: 128, 8>}, {pipeline_mode = #tpu.pipeline_mode<synchronous>, transform_indices = @transform_2, window_bounds = array<i64: 1, 8>}, {transform_indices = @transform_3, window_bounds = array<i64: 2048, 8>}]} {
    %c0 = arith.constant 0 : index
    %c0_0 = arith.constant 0 : index
    %0 = vector.load %arg1[%c0, %c0_0] : memref<2048x128xbf16, #tpu.memory_space<vmem>>, vector<2048x128xbf16>
    %c0_1 = arith.constant 0 : index
    %c0_2 = arith.constant 0 : index
    %1 = vector.load %arg2[%c0_1, %c0_2] : memref<128x8xbf16, #tpu.memory_space<vmem>>, vector<128x8xbf16>
    %cst = arith.constant dense<0.000000e+00> : vector<2048x8xf32>
    %2 = tpu.matmul %0, %1, %cst {dimension_numbers = #tpu.dot_dimension_numbers<[1], [0], [0], [1], [0, 0, 1, 1], [], []>} : vector<2048x128xbf16>, vector<128x8xbf16>, vector<2048x8xf32> -> vector<2048x8xf32>
    %c0_3 = arith.constant 0 : index
    %c0_4 = arith.constant 0 : index
    %3 = vector.load %arg3[%c0_3, %c0_4] : memref<1x8xf32, #tpu.memory_space<vmem>>, vector<1x8xf32>
    %4 = vector.broadcast %3 : vector<1x8xf32> to vector<2048x8xf32>
    %5 = arith.addf %2, %4 : vector<2048x8xf32>
    %cst_5 = arith.constant 0.000000e+00 : f32
    %6 = vector.broadcast %cst_5 : f32 to vector<2048x8xf32>
    %7 = arith.cmpf ogt, %5, %6 : vector<2048x8xf32>
    %cst_6 = arith.constant 2.000000e-01 : f32
    %8 = vector.broadcast %cst_6 : f32 to vector<2048x8xf32>
    %9 = arith.mulf %8, %5 : vector<2048x8xf32>
    %10 = arith.select %7, %5, %9 : vector<2048x8xi1>, vector<2048x8xf32>
    %11 = arith.truncf %10 : vector<2048x8xf32> to vector<2048x8xbf16>
    %c0_7 = arith.constant 0 : index
    %c0_8 = arith.constant 0 : index
    %12 = vector.load %arg4[%c0_7, %c0_8] : memref<2048x8xbf16, #tpu.memory_space<vmem>>, vector<2048x8xbf16>
    tpu.vector_store %arg4[%c0_7, %c0_8], %11 {strides = array<i32>} : memref<2048x8xbf16, #tpu.memory_space<vmem>>, vector<2048x8xbf16>,
    return
  }
  func.func @transform_0(%arg0: i32) -> (i32, i32) {
    %c0_i32 = arith.constant 0 : i32
    %c0_i32_0 = arith.constant 0 : i32
    return %arg0, %c0_i32 : i32, i32
  }
  func.func @transform_1(%arg0: i32) -> (i32, i32) {
    %c0_i32 = arith.constant 0 : i32
    %c0_i32_0 = arith.constant 0 : i32
    %c0_i32_1 = arith.constant 0 : i32
    return %c0_i32, %c0_i32_0 : i32, i32
  }
  func.func @transform_2(%arg0: i32) -> (i32, i32) {
    %c0_i32 = arith.constant 0 : i32
    %c0_i32_0 = arith.constant 0 : i32
    %c0_i32_1 = arith.constant 0 : i32
    return %c0_i32, %c0_i32_0 : i32, i32
  }
  func.func @transform_3(%arg0: i32) -> (i32, i32) {
    %c0_i32 = arith.constant 0 : i32
    %c0_i32_0 = arith.constant 0 : i32
    return %arg0, %c0_i32 : i32, i32
  }
}

module attributes {stable_mosaic.version = 11 : i64} {
  func.func @_conv_bn_leaky_kernel(%arg0: i32, %arg1: i32, %arg2: memref<512x128xbf16, #tpu.memory_space<vmem>>, %arg3: memref<128x16xbf16, #tpu.memory_space<vmem>>, %arg4: memref<1x16xf32, #tpu.memory_space<vmem>>, %arg5: memref<1x16xf32, #tpu.memory_space<vmem>>, %arg6: memref<512x16xbf16, #tpu.memory_space<vmem>>, %arg7: memref<1x16xf32, #tpu.memory_space<vmem>>, %arg8: memref<1x16xf32, #tpu.memory_space<vmem>>) attributes {dimension_semantics = [#tpu.dimension_semantics<arbitrary>, #tpu.dimension_semantics<arbitrary>], iteration_bounds = array<i64: 2, 1>, scalar_prefetch = 0 : i64, scratch_operands = 2 : i64, tpu.core_type = #tpu.core_type<tc>, window_params = [{transform_indices = @transform_0, window_bounds = array<i64: 512, 128>}, {pipeline_mode = #tpu.pipeline_mode<synchronous>, transform_indices = @transform_1, window_bounds = array<i64: 128, 16>}, {pipeline_mode = #tpu.pipeline_mode<synchronous>, transform_indices = @transform_2, window_bounds = array<i64: 1, 16>}, {pipeline_mode = #tpu.pipeline_mode<synchronous>, transform_indices = @transform_3, window_bounds = array<i64: 1, 16>}, {transform_indices = @transform_4, window_bounds = array<i64: 512, 16>}]} {
    %c0 = arith.constant 0 : index
    %c0_0 = arith.constant 0 : index
    %0 = vector.load %arg2[%c0, %c0_0] : memref<512x128xbf16, #tpu.memory_space<vmem>>, vector<512x128xbf16>
    %c0_1 = arith.constant 0 : index
    %c0_2 = arith.constant 0 : index
    %1 = vector.load %arg3[%c0_1, %c0_2] : memref<128x16xbf16, #tpu.memory_space<vmem>>, vector<128x16xbf16>
    %cst = arith.constant dense<0.000000e+00> : vector<512x16xf32>
    %2 = tpu.matmul %0, %1, %cst {dimension_numbers = #tpu.dot_dimension_numbers<[1], [0], [0], [1], [0, 0, 1, 1], [], []>} : vector<512x128xbf16>, vector<128x16xbf16>, vector<512x16xf32> -> vector<512x16xf32>
    %c0_i32 = arith.constant 0 : i32
    %3 = arith.cmpi eq, %arg0, %c0_i32 : i32
    %c0_i32_3 = arith.constant 0 : i32
    %4 = arith.cmpi eq, %arg1, %c0_i32_3 : i32
    %5 = arith.andi %3, %4 : i1
    %6 = arith.extui %5 : i1 to i32
    %c0_i32_4 = arith.constant 0 : i32
    %7 = arith.cmpi ne, %6, %c0_i32_4 : i32
    scf.if %7 {
      %cst_8 = arith.constant 0.000000e+00 : f32
      %14 = vector.broadcast %cst_8 : f32 to vector<1x16xf32>
      %c0_9 = arith.constant 0 : index
      %c0_10 = arith.constant 0 : index
      %15 = vector.load %arg7[%c0_9, %c0_10] : memref<1x16xf32, #tpu.memory_space<vmem>>, vector<1x16xf32>
      tpu.vector_store %arg7[%c0_9, %c0_10], %14 {strides = array<i32>} : memref<1x16xf32, #tpu.memory_space<vmem>>, vector<1x16xf32>,
      %cst_11 = arith.constant 0.000000e+00 : f32
      %16 = vector.broadcast %cst_11 : f32 to vector<1x16xf32>
      %c0_12 = arith.constant 0 : index
      %c0_13 = arith.constant 0 : index
      %17 = vector.load %arg8[%c0_12, %c0_13] : memref<1x16xf32, #tpu.memory_space<vmem>>, vector<1x16xf32>
      tpu.vector_store %arg8[%c0_12, %c0_13], %16 {strides = array<i32>} : memref<1x16xf32, #tpu.memory_space<vmem>>, vector<1x16xf32>,
    } else {
    }
    %c0_i32_5 = arith.constant 0 : i32
    %8 = arith.cmpi eq, %arg0, %c0_i32_5 : i32
    %9 = arith.extui %8 : i1 to i32
    %c0_i32_6 = arith.constant 0 : i32
    %10 = arith.cmpi ne, %9, %c0_i32_6 : i32
    scf.if %10 {
      %c0_8 = arith.constant 0 : index
      %c0_9 = arith.constant 0 : index
      %14 = vector.load %arg7[%c0_8, %c0_9] : memref<1x16xf32, #tpu.memory_space<vmem>>, vector<1x16xf32>
      %cst_10 = arith.constant dense<0.000000e+00> : vector<16xf32>
      %15 = vector.multi_reduction <add>, %2, %cst_10 [0] : vector<512x16xf32> to vector<16xf32>
      %16 = vector.shape_cast %15 : vector<16xf32> to vector<1x16xf32>
      %17 = arith.addf %14, %16 : vector<1x16xf32>
      %c0_11 = arith.constant 0 : index
      %c0_12 = arith.constant 0 : index
      %18 = vector.load %arg7[%c0_11, %c0_12] : memref<1x16xf32, #tpu.memory_space<vmem>>, vector<1x16xf32>
      tpu.vector_store %arg7[%c0_11, %c0_12], %17 {strides = array<i32>} : memref<1x16xf32, #tpu.memory_space<vmem>>, vector<1x16xf32>,
      %c0_13 = arith.constant 0 : index
      %c0_14 = arith.constant 0 : index
      %19 = vector.load %arg8[%c0_13, %c0_14] : memref<1x16xf32, #tpu.memory_space<vmem>>, vector<1x16xf32>
      %20 = arith.mulf %2, %2 : vector<512x16xf32>
      %cst_15 = arith.constant dense<0.000000e+00> : vector<16xf32>
      %21 = vector.multi_reduction <add>, %20, %cst_15 [0] : vector<512x16xf32> to vector<16xf32>
      %22 = vector.shape_cast %21 : vector<16xf32> to vector<1x16xf32>
      %23 = arith.addf %19, %22 : vector<1x16xf32>
      %c0_16 = arith.constant 0 : index
      %c0_17 = arith.constant 0 : index
      %24 = vector.load %arg8[%c0_16, %c0_17] : memref<1x16xf32, #tpu.memory_space<vmem>>, vector<1x16xf32>
      tpu.vector_store %arg8[%c0_16, %c0_17], %23 {strides = array<i32>} : memref<1x16xf32, #tpu.memory_space<vmem>>, vector<1x16xf32>,
      %25 = arith.truncf %2 : vector<512x16xf32> to vector<512x16xbf16>
      %c0_18 = arith.constant 0 : index
      %c0_19 = arith.constant 0 : index
      %26 = vector.load %arg6[%c0_18, %c0_19] : memref<512x16xbf16, #tpu.memory_space<vmem>>, vector<512x16xbf16>
      tpu.vector_store %arg6[%c0_18, %c0_19], %25 {strides = array<i32>} : memref<512x16xbf16, #tpu.memory_space<vmem>>, vector<512x16xbf16>,
    } else {
    }
    %c1_i32 = arith.constant 1 : i32
    %11 = arith.cmpi eq, %arg0, %c1_i32 : i32
    %12 = arith.extui %11 : i1 to i32
    %c0_i32_7 = arith.constant 0 : i32
    %13 = arith.cmpi ne, %12, %c0_i32_7 : i32
    scf.if %13 {
      %c0_8 = arith.constant 0 : index
      %c0_9 = arith.constant 0 : index
      %14 = vector.load %arg7[%c0_8, %c0_9] : memref<1x16xf32, #tpu.memory_space<vmem>>, vector<1x16xf32>
      %cst_10 = arith.constant 0.001953125 : f32
      %15 = vector.broadcast %cst_10 : f32 to vector<1x16xf32>
      %16 = arith.mulf %14, %15 : vector<1x16xf32>
      %c0_11 = arith.constant 0 : index
      %c0_12 = arith.constant 0 : index
      %17 = vector.load %arg8[%c0_11, %c0_12] : memref<1x16xf32, #tpu.memory_space<vmem>>, vector<1x16xf32>
      %cst_13 = arith.constant 0.001953125 : f32
      %18 = vector.broadcast %cst_13 : f32 to vector<1x16xf32>
      %19 = arith.mulf %17, %18 : vector<1x16xf32>
      %20 = arith.mulf %16, %16 : vector<1x16xf32>
      %21 = arith.subf %19, %20 : vector<1x16xf32>
      %cst_14 = arith.constant 0.000000e+00 : f32
      %22 = vector.broadcast %cst_14 : f32 to vector<1x16xf32>
      %23 = arith.maximumf %21, %22 : vector<1x16xf32>
      %c0_15 = arith.constant 0 : index
      %c0_16 = arith.constant 0 : index
      %24 = vector.load %arg4[%c0_15, %c0_16] : memref<1x16xf32, #tpu.memory_space<vmem>>, vector<1x16xf32>
      %cst_17 = arith.constant 9.99999974E-6 : f32
      %25 = vector.broadcast %cst_17 : f32 to vector<1x16xf32>
      %26 = arith.addf %23, %25 : vector<1x16xf32>
      %27 = math.rsqrt %26 : vector<1x16xf32>
      %28 = arith.mulf %24, %27 : vector<1x16xf32>
      %c0_18 = arith.constant 0 : index
      %c0_19 = arith.constant 0 : index
      %29 = vector.load %arg5[%c0_18, %c0_19] : memref<1x16xf32, #tpu.memory_space<vmem>>, vector<1x16xf32>
      %30 = arith.mulf %16, %28 : vector<1x16xf32>
      %31 = arith.subf %29, %30 : vector<1x16xf32>
      %32 = vector.broadcast %28 : vector<1x16xf32> to vector<512x16xf32>
      %33 = arith.mulf %2, %32 : vector<512x16xf32>
      %34 = vector.broadcast %31 : vector<1x16xf32> to vector<512x16xf32>
      %35 = arith.addf %33, %34 : vector<512x16xf32>
      %cst_20 = arith.constant 0.000000e+00 : f32
      %36 = vector.broadcast %cst_20 : f32 to vector<512x16xf32>
      %37 = arith.cmpf ogt, %35, %36 : vector<512x16xf32>
      %cst_21 = arith.constant 2.000000e-01 : f32
      %38 = vector.broadcast %cst_21 : f32 to vector<512x16xf32>
      %39 = arith.mulf %38, %35 : vector<512x16xf32>
      %40 = arith.select %37, %35, %39 : vector<512x16xi1>, vector<512x16xf32>
      %41 = arith.truncf %40 : vector<512x16xf32> to vector<512x16xbf16>
      %c0_22 = arith.constant 0 : index
      %c0_23 = arith.constant 0 : index
      %42 = vector.load %arg6[%c0_22, %c0_23] : memref<512x16xbf16, #tpu.memory_space<vmem>>, vector<512x16xbf16>
      tpu.vector_store %arg6[%c0_22, %c0_23], %41 {strides = array<i32>} : memref<512x16xbf16, #tpu.memory_space<vmem>>, vector<512x16xbf16>,
    } else {
    }
    return
  }
  func.func @transform_0(%arg0: i32, %arg1: i32) -> (i32, i32) {
    %c0_i32 = arith.constant 0 : i32
    %c0_i32_0 = arith.constant 0 : i32
    return %arg1, %c0_i32 : i32, i32
  }
  func.func @transform_1(%arg0: i32, %arg1: i32) -> (i32, i32) {
    %c0_i32 = arith.constant 0 : i32
    %c0_i32_0 = arith.constant 0 : i32
    %c0_i32_1 = arith.constant 0 : i32
    return %c0_i32, %c0_i32_0 : i32, i32
  }
  func.func @transform_2(%arg0: i32, %arg1: i32) -> (i32, i32) {
    %c0_i32 = arith.constant 0 : i32
    %c0_i32_0 = arith.constant 0 : i32
    %c0_i32_1 = arith.constant 0 : i32
    return %c0_i32, %c0_i32_0 : i32, i32
  }
  func.func @transform_3(%arg0: i32, %arg1: i32) -> (i32, i32) {
    %c0_i32 = arith.constant 0 : i32
    %c0_i32_0 = arith.constant 0 : i32
    %c0_i32_1 = arith.constant 0 : i32
    return %c0_i32, %c0_i32_0 : i32, i32
  }
  func.func @transform_4(%arg0: i32, %arg1: i32) -> (i32, i32) {
    %c0_i32 = arith.constant 0 : i32
    %c0_i32_0 = arith.constant 0 : i32
    return %arg1, %c0_i32 : i32, i32
  }
}

module attributes {stable_mosaic.version = 11 : i64} {
  func.func @_conv_bn_leaky_kernel(%arg0: i32, %arg1: i32, %arg2: memref<128x256xbf16, #tpu.memory_space<vmem>>, %arg3: memref<256x32xbf16, #tpu.memory_space<vmem>>, %arg4: memref<1x32xf32, #tpu.memory_space<vmem>>, %arg5: memref<1x32xf32, #tpu.memory_space<vmem>>, %arg6: memref<128x32xbf16, #tpu.memory_space<vmem>>, %arg7: memref<1x32xf32, #tpu.memory_space<vmem>>, %arg8: memref<1x32xf32, #tpu.memory_space<vmem>>) attributes {dimension_semantics = [#tpu.dimension_semantics<arbitrary>, #tpu.dimension_semantics<arbitrary>], iteration_bounds = array<i64: 2, 1>, scalar_prefetch = 0 : i64, scratch_operands = 2 : i64, tpu.core_type = #tpu.core_type<tc>, window_params = [{transform_indices = @transform_0, window_bounds = array<i64: 128, 256>}, {pipeline_mode = #tpu.pipeline_mode<synchronous>, transform_indices = @transform_1, window_bounds = array<i64: 256, 32>}, {pipeline_mode = #tpu.pipeline_mode<synchronous>, transform_indices = @transform_2, window_bounds = array<i64: 1, 32>}, {pipeline_mode = #tpu.pipeline_mode<synchronous>, transform_indices = @transform_3, window_bounds = array<i64: 1, 32>}, {transform_indices = @transform_4, window_bounds = array<i64: 128, 32>}]} {
    %c0 = arith.constant 0 : index
    %c0_0 = arith.constant 0 : index
    %0 = vector.load %arg2[%c0, %c0_0] : memref<128x256xbf16, #tpu.memory_space<vmem>>, vector<128x256xbf16>
    %c0_1 = arith.constant 0 : index
    %c0_2 = arith.constant 0 : index
    %1 = vector.load %arg3[%c0_1, %c0_2] : memref<256x32xbf16, #tpu.memory_space<vmem>>, vector<256x32xbf16>
    %cst = arith.constant dense<0.000000e+00> : vector<128x32xf32>
    %2 = tpu.matmul %0, %1, %cst {dimension_numbers = #tpu.dot_dimension_numbers<[1], [0], [0], [1], [0, 0, 1, 1], [], []>} : vector<128x256xbf16>, vector<256x32xbf16>, vector<128x32xf32> -> vector<128x32xf32>
    %c0_i32 = arith.constant 0 : i32
    %3 = arith.cmpi eq, %arg0, %c0_i32 : i32
    %c0_i32_3 = arith.constant 0 : i32
    %4 = arith.cmpi eq, %arg1, %c0_i32_3 : i32
    %5 = arith.andi %3, %4 : i1
    %6 = arith.extui %5 : i1 to i32
    %c0_i32_4 = arith.constant 0 : i32
    %7 = arith.cmpi ne, %6, %c0_i32_4 : i32
    scf.if %7 {
      %cst_8 = arith.constant 0.000000e+00 : f32
      %14 = vector.broadcast %cst_8 : f32 to vector<1x32xf32>
      %c0_9 = arith.constant 0 : index
      %c0_10 = arith.constant 0 : index
      %15 = vector.load %arg7[%c0_9, %c0_10] : memref<1x32xf32, #tpu.memory_space<vmem>>, vector<1x32xf32>
      tpu.vector_store %arg7[%c0_9, %c0_10], %14 {strides = array<i32>} : memref<1x32xf32, #tpu.memory_space<vmem>>, vector<1x32xf32>,
      %cst_11 = arith.constant 0.000000e+00 : f32
      %16 = vector.broadcast %cst_11 : f32 to vector<1x32xf32>
      %c0_12 = arith.constant 0 : index
      %c0_13 = arith.constant 0 : index
      %17 = vector.load %arg8[%c0_12, %c0_13] : memref<1x32xf32, #tpu.memory_space<vmem>>, vector<1x32xf32>
      tpu.vector_store %arg8[%c0_12, %c0_13], %16 {strides = array<i32>} : memref<1x32xf32, #tpu.memory_space<vmem>>, vector<1x32xf32>,
    } else {
    }
    %c0_i32_5 = arith.constant 0 : i32
    %8 = arith.cmpi eq, %arg0, %c0_i32_5 : i32
    %9 = arith.extui %8 : i1 to i32
    %c0_i32_6 = arith.constant 0 : i32
    %10 = arith.cmpi ne, %9, %c0_i32_6 : i32
    scf.if %10 {
      %c0_8 = arith.constant 0 : index
      %c0_9 = arith.constant 0 : index
      %14 = vector.load %arg7[%c0_8, %c0_9] : memref<1x32xf32, #tpu.memory_space<vmem>>, vector<1x32xf32>
      %cst_10 = arith.constant dense<0.000000e+00> : vector<32xf32>
      %15 = vector.multi_reduction <add>, %2, %cst_10 [0] : vector<128x32xf32> to vector<32xf32>
      %16 = vector.shape_cast %15 : vector<32xf32> to vector<1x32xf32>
      %17 = arith.addf %14, %16 : vector<1x32xf32>
      %c0_11 = arith.constant 0 : index
      %c0_12 = arith.constant 0 : index
      %18 = vector.load %arg7[%c0_11, %c0_12] : memref<1x32xf32, #tpu.memory_space<vmem>>, vector<1x32xf32>
      tpu.vector_store %arg7[%c0_11, %c0_12], %17 {strides = array<i32>} : memref<1x32xf32, #tpu.memory_space<vmem>>, vector<1x32xf32>,
      %c0_13 = arith.constant 0 : index
      %c0_14 = arith.constant 0 : index
      %19 = vector.load %arg8[%c0_13, %c0_14] : memref<1x32xf32, #tpu.memory_space<vmem>>, vector<1x32xf32>
      %20 = arith.mulf %2, %2 : vector<128x32xf32>
      %cst_15 = arith.constant dense<0.000000e+00> : vector<32xf32>
      %21 = vector.multi_reduction <add>, %20, %cst_15 [0] : vector<128x32xf32> to vector<32xf32>
      %22 = vector.shape_cast %21 : vector<32xf32> to vector<1x32xf32>
      %23 = arith.addf %19, %22 : vector<1x32xf32>
      %c0_16 = arith.constant 0 : index
      %c0_17 = arith.constant 0 : index
      %24 = vector.load %arg8[%c0_16, %c0_17] : memref<1x32xf32, #tpu.memory_space<vmem>>, vector<1x32xf32>
      tpu.vector_store %arg8[%c0_16, %c0_17], %23 {strides = array<i32>} : memref<1x32xf32, #tpu.memory_space<vmem>>, vector<1x32xf32>,
      %25 = arith.truncf %2 : vector<128x32xf32> to vector<128x32xbf16>
      %c0_18 = arith.constant 0 : index
      %c0_19 = arith.constant 0 : index
      %26 = vector.load %arg6[%c0_18, %c0_19] : memref<128x32xbf16, #tpu.memory_space<vmem>>, vector<128x32xbf16>
      tpu.vector_store %arg6[%c0_18, %c0_19], %25 {strides = array<i32>} : memref<128x32xbf16, #tpu.memory_space<vmem>>, vector<128x32xbf16>,
    } else {
    }
    %c1_i32 = arith.constant 1 : i32
    %11 = arith.cmpi eq, %arg0, %c1_i32 : i32
    %12 = arith.extui %11 : i1 to i32
    %c0_i32_7 = arith.constant 0 : i32
    %13 = arith.cmpi ne, %12, %c0_i32_7 : i32
    scf.if %13 {
      %c0_8 = arith.constant 0 : index
      %c0_9 = arith.constant 0 : index
      %14 = vector.load %arg7[%c0_8, %c0_9] : memref<1x32xf32, #tpu.memory_space<vmem>>, vector<1x32xf32>
      %cst_10 = arith.constant 7.812500e-03 : f32
      %15 = vector.broadcast %cst_10 : f32 to vector<1x32xf32>
      %16 = arith.mulf %14, %15 : vector<1x32xf32>
      %c0_11 = arith.constant 0 : index
      %c0_12 = arith.constant 0 : index
      %17 = vector.load %arg8[%c0_11, %c0_12] : memref<1x32xf32, #tpu.memory_space<vmem>>, vector<1x32xf32>
      %cst_13 = arith.constant 7.812500e-03 : f32
      %18 = vector.broadcast %cst_13 : f32 to vector<1x32xf32>
      %19 = arith.mulf %17, %18 : vector<1x32xf32>
      %20 = arith.mulf %16, %16 : vector<1x32xf32>
      %21 = arith.subf %19, %20 : vector<1x32xf32>
      %cst_14 = arith.constant 0.000000e+00 : f32
      %22 = vector.broadcast %cst_14 : f32 to vector<1x32xf32>
      %23 = arith.maximumf %21, %22 : vector<1x32xf32>
      %c0_15 = arith.constant 0 : index
      %c0_16 = arith.constant 0 : index
      %24 = vector.load %arg4[%c0_15, %c0_16] : memref<1x32xf32, #tpu.memory_space<vmem>>, vector<1x32xf32>
      %cst_17 = arith.constant 9.99999974E-6 : f32
      %25 = vector.broadcast %cst_17 : f32 to vector<1x32xf32>
      %26 = arith.addf %23, %25 : vector<1x32xf32>
      %27 = math.rsqrt %26 : vector<1x32xf32>
      %28 = arith.mulf %24, %27 : vector<1x32xf32>
      %c0_18 = arith.constant 0 : index
      %c0_19 = arith.constant 0 : index
      %29 = vector.load %arg5[%c0_18, %c0_19] : memref<1x32xf32, #tpu.memory_space<vmem>>, vector<1x32xf32>
      %30 = arith.mulf %16, %28 : vector<1x32xf32>
      %31 = arith.subf %29, %30 : vector<1x32xf32>
      %32 = vector.broadcast %28 : vector<1x32xf32> to vector<128x32xf32>
      %33 = arith.mulf %2, %32 : vector<128x32xf32>
      %34 = vector.broadcast %31 : vector<1x32xf32> to vector<128x32xf32>
      %35 = arith.addf %33, %34 : vector<128x32xf32>
      %cst_20 = arith.constant 0.000000e+00 : f32
      %36 = vector.broadcast %cst_20 : f32 to vector<128x32xf32>
      %37 = arith.cmpf ogt, %35, %36 : vector<128x32xf32>
      %cst_21 = arith.constant 2.000000e-01 : f32
      %38 = vector.broadcast %cst_21 : f32 to vector<128x32xf32>
      %39 = arith.mulf %38, %35 : vector<128x32xf32>
      %40 = arith.select %37, %35, %39 : vector<128x32xi1>, vector<128x32xf32>
      %41 = arith.truncf %40 : vector<128x32xf32> to vector<128x32xbf16>
      %c0_22 = arith.constant 0 : index
      %c0_23 = arith.constant 0 : index
      %42 = vector.load %arg6[%c0_22, %c0_23] : memref<128x32xbf16, #tpu.memory_space<vmem>>, vector<128x32xbf16>
      tpu.vector_store %arg6[%c0_22, %c0_23], %41 {strides = array<i32>} : memref<128x32xbf16, #tpu.memory_space<vmem>>, vector<128x32xbf16>,
    } else {
    }
    return
  }
  func.func @transform_0(%arg0: i32, %arg1: i32) -> (i32, i32) {
    %c0_i32 = arith.constant 0 : i32
    %c0_i32_0 = arith.constant 0 : i32
    return %arg1, %c0_i32 : i32, i32
  }
  func.func @transform_1(%arg0: i32, %arg1: i32) -> (i32, i32) {
    %c0_i32 = arith.constant 0 : i32
    %c0_i32_0 = arith.constant 0 : i32
    %c0_i32_1 = arith.constant 0 : i32
    return %c0_i32, %c0_i32_0 : i32, i32
  }
  func.func @transform_2(%arg0: i32, %arg1: i32) -> (i32, i32) {
    %c0_i32 = arith.constant 0 : i32
    %c0_i32_0 = arith.constant 0 : i32
    %c0_i32_1 = arith.constant 0 : i32
    return %c0_i32, %c0_i32_0 : i32, i32
  }
  func.func @transform_3(%arg0: i32, %arg1: i32) -> (i32, i32) {
    %c0_i32 = arith.constant 0 : i32
    %c0_i32_0 = arith.constant 0 : i32
    %c0_i32_1 = arith.constant 0 : i32
    return %c0_i32, %c0_i32_0 : i32, i32
  }
  func.func @transform_4(%arg0: i32, %arg1: i32) -> (i32, i32) {
    %c0_i32 = arith.constant 0 : i32
    %c0_i32_0 = arith.constant 0 : i32
    return %arg1, %c0_i32 : i32, i32
  }
}

module attributes {stable_mosaic.version = 11 : i64} {
  func.func @_conv_bn_leaky_kernel(%arg0: i32, %arg1: i32, %arg2: memref<32x512xbf16, #tpu.memory_space<vmem>>, %arg3: memref<512x64xbf16, #tpu.memory_space<vmem>>, %arg4: memref<1x64xf32, #tpu.memory_space<vmem>>, %arg5: memref<1x64xf32, #tpu.memory_space<vmem>>, %arg6: memref<32x64xbf16, #tpu.memory_space<vmem>>, %arg7: memref<1x64xf32, #tpu.memory_space<vmem>>, %arg8: memref<1x64xf32, #tpu.memory_space<vmem>>) attributes {dimension_semantics = [#tpu.dimension_semantics<arbitrary>, #tpu.dimension_semantics<arbitrary>], iteration_bounds = array<i64: 2, 1>, scalar_prefetch = 0 : i64, scratch_operands = 2 : i64, tpu.core_type = #tpu.core_type<tc>, window_params = [{transform_indices = @transform_0, window_bounds = array<i64: 32, 512>}, {pipeline_mode = #tpu.pipeline_mode<synchronous>, transform_indices = @transform_1, window_bounds = array<i64: 512, 64>}, {pipeline_mode = #tpu.pipeline_mode<synchronous>, transform_indices = @transform_2, window_bounds = array<i64: 1, 64>}, {pipeline_mode = #tpu.pipeline_mode<synchronous>, transform_indices = @transform_3, window_bounds = array<i64: 1, 64>}, {transform_indices = @transform_4, window_bounds = array<i64: 32, 64>}]} {
    %c0 = arith.constant 0 : index
    %c0_0 = arith.constant 0 : index
    %0 = vector.load %arg2[%c0, %c0_0] : memref<32x512xbf16, #tpu.memory_space<vmem>>, vector<32x512xbf16>
    %c0_1 = arith.constant 0 : index
    %c0_2 = arith.constant 0 : index
    %1 = vector.load %arg3[%c0_1, %c0_2] : memref<512x64xbf16, #tpu.memory_space<vmem>>, vector<512x64xbf16>
    %cst = arith.constant dense<0.000000e+00> : vector<32x64xf32>
    %2 = tpu.matmul %0, %1, %cst {dimension_numbers = #tpu.dot_dimension_numbers<[1], [0], [0], [1], [0, 0, 1, 1], [], []>} : vector<32x512xbf16>, vector<512x64xbf16>, vector<32x64xf32> -> vector<32x64xf32>
    %c0_i32 = arith.constant 0 : i32
    %3 = arith.cmpi eq, %arg0, %c0_i32 : i32
    %c0_i32_3 = arith.constant 0 : i32
    %4 = arith.cmpi eq, %arg1, %c0_i32_3 : i32
    %5 = arith.andi %3, %4 : i1
    %6 = arith.extui %5 : i1 to i32
    %c0_i32_4 = arith.constant 0 : i32
    %7 = arith.cmpi ne, %6, %c0_i32_4 : i32
    scf.if %7 {
      %cst_8 = arith.constant 0.000000e+00 : f32
      %14 = vector.broadcast %cst_8 : f32 to vector<1x64xf32>
      %c0_9 = arith.constant 0 : index
      %c0_10 = arith.constant 0 : index
      %15 = vector.load %arg7[%c0_9, %c0_10] : memref<1x64xf32, #tpu.memory_space<vmem>>, vector<1x64xf32>
      tpu.vector_store %arg7[%c0_9, %c0_10], %14 {strides = array<i32>} : memref<1x64xf32, #tpu.memory_space<vmem>>, vector<1x64xf32>,
      %cst_11 = arith.constant 0.000000e+00 : f32
      %16 = vector.broadcast %cst_11 : f32 to vector<1x64xf32>
      %c0_12 = arith.constant 0 : index
      %c0_13 = arith.constant 0 : index
      %17 = vector.load %arg8[%c0_12, %c0_13] : memref<1x64xf32, #tpu.memory_space<vmem>>, vector<1x64xf32>
      tpu.vector_store %arg8[%c0_12, %c0_13], %16 {strides = array<i32>} : memref<1x64xf32, #tpu.memory_space<vmem>>, vector<1x64xf32>,
    } else {
    }
    %c0_i32_5 = arith.constant 0 : i32
    %8 = arith.cmpi eq, %arg0, %c0_i32_5 : i32
    %9 = arith.extui %8 : i1 to i32
    %c0_i32_6 = arith.constant 0 : i32
    %10 = arith.cmpi ne, %9, %c0_i32_6 : i32
    scf.if %10 {
      %c0_8 = arith.constant 0 : index
      %c0_9 = arith.constant 0 : index
      %14 = vector.load %arg7[%c0_8, %c0_9] : memref<1x64xf32, #tpu.memory_space<vmem>>, vector<1x64xf32>
      %cst_10 = arith.constant dense<0.000000e+00> : vector<64xf32>
      %15 = vector.multi_reduction <add>, %2, %cst_10 [0] : vector<32x64xf32> to vector<64xf32>
      %16 = vector.shape_cast %15 : vector<64xf32> to vector<1x64xf32>
      %17 = arith.addf %14, %16 : vector<1x64xf32>
      %c0_11 = arith.constant 0 : index
      %c0_12 = arith.constant 0 : index
      %18 = vector.load %arg7[%c0_11, %c0_12] : memref<1x64xf32, #tpu.memory_space<vmem>>, vector<1x64xf32>
      tpu.vector_store %arg7[%c0_11, %c0_12], %17 {strides = array<i32>} : memref<1x64xf32, #tpu.memory_space<vmem>>, vector<1x64xf32>,
      %c0_13 = arith.constant 0 : index
      %c0_14 = arith.constant 0 : index
      %19 = vector.load %arg8[%c0_13, %c0_14] : memref<1x64xf32, #tpu.memory_space<vmem>>, vector<1x64xf32>
      %20 = arith.mulf %2, %2 : vector<32x64xf32>
      %cst_15 = arith.constant dense<0.000000e+00> : vector<64xf32>
      %21 = vector.multi_reduction <add>, %20, %cst_15 [0] : vector<32x64xf32> to vector<64xf32>
      %22 = vector.shape_cast %21 : vector<64xf32> to vector<1x64xf32>
      %23 = arith.addf %19, %22 : vector<1x64xf32>
      %c0_16 = arith.constant 0 : index
      %c0_17 = arith.constant 0 : index
      %24 = vector.load %arg8[%c0_16, %c0_17] : memref<1x64xf32, #tpu.memory_space<vmem>>, vector<1x64xf32>
      tpu.vector_store %arg8[%c0_16, %c0_17], %23 {strides = array<i32>} : memref<1x64xf32, #tpu.memory_space<vmem>>, vector<1x64xf32>,
      %25 = arith.truncf %2 : vector<32x64xf32> to vector<32x64xbf16>
      %c0_18 = arith.constant 0 : index
      %c0_19 = arith.constant 0 : index
      %26 = vector.load %arg6[%c0_18, %c0_19] : memref<32x64xbf16, #tpu.memory_space<vmem>>, vector<32x64xbf16>
      tpu.vector_store %arg6[%c0_18, %c0_19], %25 {strides = array<i32>} : memref<32x64xbf16, #tpu.memory_space<vmem>>, vector<32x64xbf16>,
    } else {
    }
    %c1_i32 = arith.constant 1 : i32
    %11 = arith.cmpi eq, %arg0, %c1_i32 : i32
    %12 = arith.extui %11 : i1 to i32
    %c0_i32_7 = arith.constant 0 : i32
    %13 = arith.cmpi ne, %12, %c0_i32_7 : i32
    scf.if %13 {
      %c0_8 = arith.constant 0 : index
      %c0_9 = arith.constant 0 : index
      %14 = vector.load %arg7[%c0_8, %c0_9] : memref<1x64xf32, #tpu.memory_space<vmem>>, vector<1x64xf32>
      %cst_10 = arith.constant 3.125000e-02 : f32
      %15 = vector.broadcast %cst_10 : f32 to vector<1x64xf32>
      %16 = arith.mulf %14, %15 : vector<1x64xf32>
      %c0_11 = arith.constant 0 : index
      %c0_12 = arith.constant 0 : index
      %17 = vector.load %arg8[%c0_11, %c0_12] : memref<1x64xf32, #tpu.memory_space<vmem>>, vector<1x64xf32>
      %cst_13 = arith.constant 3.125000e-02 : f32
      %18 = vector.broadcast %cst_13 : f32 to vector<1x64xf32>
      %19 = arith.mulf %17, %18 : vector<1x64xf32>
      %20 = arith.mulf %16, %16 : vector<1x64xf32>
      %21 = arith.subf %19, %20 : vector<1x64xf32>
      %cst_14 = arith.constant 0.000000e+00 : f32
      %22 = vector.broadcast %cst_14 : f32 to vector<1x64xf32>
      %23 = arith.maximumf %21, %22 : vector<1x64xf32>
      %c0_15 = arith.constant 0 : index
      %c0_16 = arith.constant 0 : index
      %24 = vector.load %arg4[%c0_15, %c0_16] : memref<1x64xf32, #tpu.memory_space<vmem>>, vector<1x64xf32>
      %cst_17 = arith.constant 9.99999974E-6 : f32
      %25 = vector.broadcast %cst_17 : f32 to vector<1x64xf32>
      %26 = arith.addf %23, %25 : vector<1x64xf32>
      %27 = math.rsqrt %26 : vector<1x64xf32>
      %28 = arith.mulf %24, %27 : vector<1x64xf32>
      %c0_18 = arith.constant 0 : index
      %c0_19 = arith.constant 0 : index
      %29 = vector.load %arg5[%c0_18, %c0_19] : memref<1x64xf32, #tpu.memory_space<vmem>>, vector<1x64xf32>
      %30 = arith.mulf %16, %28 : vector<1x64xf32>
      %31 = arith.subf %29, %30 : vector<1x64xf32>
      %32 = vector.broadcast %28 : vector<1x64xf32> to vector<32x64xf32>
      %33 = arith.mulf %2, %32 : vector<32x64xf32>
      %34 = vector.broadcast %31 : vector<1x64xf32> to vector<32x64xf32>
      %35 = arith.addf %33, %34 : vector<32x64xf32>
      %cst_20 = arith.constant 0.000000e+00 : f32
      %36 = vector.broadcast %cst_20 : f32 to vector<32x64xf32>
      %37 = arith.cmpf ogt, %35, %36 : vector<32x64xf32>
      %cst_21 = arith.constant 2.000000e-01 : f32
      %38 = vector.broadcast %cst_21 : f32 to vector<32x64xf32>
      %39 = arith.mulf %38, %35 : vector<32x64xf32>
      %40 = arith.select %37, %35, %39 : vector<32x64xi1>, vector<32x64xf32>
      %41 = arith.truncf %40 : vector<32x64xf32> to vector<32x64xbf16>
      %c0_22 = arith.constant 0 : index
      %c0_23 = arith.constant 0 : index
      %42 = vector.load %arg6[%c0_22, %c0_23] : memref<32x64xbf16, #tpu.memory_space<vmem>>, vector<32x64xbf16>
      tpu.vector_store %arg6[%c0_22, %c0_23], %41 {strides = array<i32>} : memref<32x64xbf16, #tpu.memory_space<vmem>>, vector<32x64xbf16>,
    } else {
    }
    return
  }
  func.func @transform_0(%arg0: i32, %arg1: i32) -> (i32, i32) {
    %c0_i32 = arith.constant 0 : i32
    %c0_i32_0 = arith.constant 0 : i32
    return %arg1, %c0_i32 : i32, i32
  }
  func.func @transform_1(%arg0: i32, %arg1: i32) -> (i32, i32) {
    %c0_i32 = arith.constant 0 : i32
    %c0_i32_0 = arith.constant 0 : i32
    %c0_i32_1 = arith.constant 0 : i32
    return %c0_i32, %c0_i32_0 : i32, i32
  }
  func.func @transform_2(%arg0: i32, %arg1: i32) -> (i32, i32) {
    %c0_i32 = arith.constant 0 : i32
    %c0_i32_0 = arith.constant 0 : i32
    %c0_i32_1 = arith.constant 0 : i32
    return %c0_i32, %c0_i32_0 : i32, i32
  }
  func.func @transform_3(%arg0: i32, %arg1: i32) -> (i32, i32) {
    %c0_i32 = arith.constant 0 : i32
    %c0_i32_0 = arith.constant 0 : i32
    %c0_i32_1 = arith.constant 0 : i32
    return %c0_i32, %c0_i32_0 : i32, i32
  }
  func.func @transform_4(%arg0: i32, %arg1: i32) -> (i32, i32) {
    %c0_i32 = arith.constant 0 : i32
    %c0_i32_0 = arith.constant 0 : i32
    return %arg1, %c0_i32 : i32, i32
  }
}

module attributes {stable_mosaic.version = 11 : i64} {
  func.func @_conv_bias_act_kernel(%arg0: i32, %arg1: memref<8x1024xbf16, #tpu.memory_space<vmem>>, %arg2: memref<1024x128xbf16, #tpu.memory_space<vmem>>, %arg3: memref<1x128xf32, #tpu.memory_space<vmem>>, %arg4: memref<8x128xf32, #tpu.memory_space<vmem>>) attributes {dimension_semantics = [#tpu.dimension_semantics<parallel>], iteration_bounds = array<i64: 1>, scalar_prefetch = 0 : i64, scratch_operands = 0 : i64, tpu.core_type = #tpu.core_type<tc>, window_params = [{transform_indices = @transform_0, window_bounds = array<i64: 8, 1024>}, {pipeline_mode = #tpu.pipeline_mode<synchronous>, transform_indices = @transform_1, window_bounds = array<i64: 1024, 128>}, {pipeline_mode = #tpu.pipeline_mode<synchronous>, transform_indices = @transform_2, window_bounds = array<i64: 1, 128>}, {transform_indices = @transform_3, window_bounds = array<i64: 8, 128>}]} {
    %c0 = arith.constant 0 : index
    %c0_0 = arith.constant 0 : index
    %0 = vector.load %arg1[%c0, %c0_0] : memref<8x1024xbf16, #tpu.memory_space<vmem>>, vector<8x1024xbf16>
    %c0_1 = arith.constant 0 : index
    %c0_2 = arith.constant 0 : index
    %1 = vector.load %arg2[%c0_1, %c0_2] : memref<1024x128xbf16, #tpu.memory_space<vmem>>, vector<1024x128xbf16>
    %cst = arith.constant dense<0.000000e+00> : vector<8x128xf32>
    %2 = tpu.matmul %0, %1, %cst {dimension_numbers = #tpu.dot_dimension_numbers<[1], [0], [0], [1], [0, 0, 1, 1], [], []>} : vector<8x1024xbf16>, vector<1024x128xbf16>, vector<8x128xf32> -> vector<8x128xf32>
    %c0_3 = arith.constant 0 : index
    %c0_4 = arith.constant 0 : index
    %3 = vector.load %arg3[%c0_3, %c0_4] : memref<1x128xf32, #tpu.memory_space<vmem>>, vector<1x128xf32>
    %4 = vector.broadcast %3 : vector<1x128xf32> to vector<8x128xf32>
    %5 = arith.addf %2, %4 : vector<8x128xf32>
    %cst_5 = arith.constant 0.000000e+00 : f32
    %6 = vector.broadcast %cst_5 : f32 to vector<8x128xf32>
    %7 = arith.subf %6, %5 : vector<8x128xf32>
    %8 = math.exp %7 : vector<8x128xf32>
    %cst_6 = arith.constant 1.000000e+00 : f32
    %9 = vector.broadcast %cst_6 : f32 to vector<8x128xf32>
    %10 = arith.addf %9, %8 : vector<8x128xf32>
    %11 = tpu.reciprocal %10 {approx = true} : vector<8x128xf32> -> vector<8x128xf32>
    %c0_7 = arith.constant 0 : index
    %c0_8 = arith.constant 0 : index
    %12 = vector.load %arg4[%c0_7, %c0_8] : memref<8x128xf32, #tpu.memory_space<vmem>>, vector<8x128xf32>
    tpu.vector_store %arg4[%c0_7, %c0_8], %11 {strides = array<i32>} : memref<8x128xf32, #tpu.memory_space<vmem>>, vector<8x128xf32>,
    return
  }
  func.func @transform_0(%arg0: i32) -> (i32, i32) {
    %c0_i32 = arith.constant 0 : i32
    %c0_i32_0 = arith.constant 0 : i32
    return %arg0, %c0_i32 : i32, i32
  }
  func.func @transform_1(%arg0: i32) -> (i32, i32) {
    %c0_i32 = arith.constant 0 : i32
    %c0_i32_0 = arith.constant 0 : i32
    %c0_i32_1 = arith.constant 0 : i32
    return %c0_i32, %c0_i32_0 : i32, i32
  }
  func.func @transform_2(%arg0: i32) -> (i32, i32) {
    %c0_i32 = arith.constant 0 : i32
    %c0_i32_0 = arith.constant 0 : i32
    %c0_i32_1 = arith.constant 0 : i32
    return %c0_i32, %c0_i32_0 : i32, i32
  }
  func.func @transform_3(%arg0: i32) -> (i32, i32) {
    %c0_i32 = arith.constant 0 : i32
    %c0_i32_0 = arith.constant 0 : i32
    return %arg0, %c0_i32 : i32, i32
  }
}

</mosaic_0001>

<bundles_post_ra>
// kernel: discriminator_forward.5
= control target key start
LH: loop header
LB: loop body
LE: loop exit
PB: predicated region body
PF: predicated region fallthrough
CT: control target
= control target key end

     0   :  { %vm3959_vm2 = vcmask 60416   ;;  %s7792_s1 = inlined_call_operand.vmem [shape: bf16[128,8], index: 1, kind: input, shape index: {}]   ;;  %s7793_s0 = inlined_call_operand.vmem [shape: bf16[2048,128], index: 0, kind: input, shape index: {}]   ;;  %s7794_s2 = inlined_call_operand.vmem [shape: f32[1,8], index: 2, kind: input, shape index: {}]   ;;  %s7795_s3 = inlined_call_operand.vmem [shape: bf16[2048,8], index: 3, kind: output, shape index: {}]  }
   0x1   :  { %v5293_v0 = vld [vmem:[%s7792_s1 + $0x38] sm:$0xff]   ;;  %v5294_v1 = vld [vmem:[%s7792_s1 + $0x30] sm:$0xff]   ;;  %v5295_v2 = vld [vmem:[%s7792_s1 + $0x28] sm:$0xff]  }
   0x2   :  { %5005 = vmatprep.subr.bf16.mxu0 %v5293_v0  ;;  %5277 = vmatprep.subr.bf16.mxu1 %v5293_v0  ;;  %v5296_v3 = vld [vmem:[%s7792_s1 + $0x20] sm:$0xff]   ;;  %v5297_v6 = vld [vmem:[%s7792_s1 + $0x18] sm:$0xff]   ;;  %v5298_v7 = vld [vmem:[%s7792_s1 + $0x10] sm:$0xff]  }
   0x3   :  { %5006 = vmatpush3.bf16.msra.mxu0 %v5293_v0  ;;  %5285 = vmatpush3.bf16.msra.mxu1 %v5293_v0  ;;  %v5301_v4 = vld [vmem:[%s7793_s0] sm:$0xff]   ;;  %v5299_v8 = vld [vmem:[%s7792_s1 + $0x8] sm:$0xff]   ;;  %v5305_v12 = vld [vmem:[%s7793_s0 + $0x10] sm:$0xff]  }
   0x4   :  { %5007 = vmatprep.subr.bf16.mxu0 %v5294_v1  ;;  %5278 = vmatprep.subr.bf16.mxu1 %v5294_v1  ;;  %v5302_v5 = vld [vmem:[%s7793_s0 + $0x200] sm:$0xff]   ;;  %v5303_v10 = vld [vmem:[%s7793_s0 + $0x8] sm:$0xff]   ;;  %v5306_v13 = vld [vmem:[%s7793_s0 + $0x210] sm:$0xff]  }
   0x5   :  { %5021 = vmatprep.mubr.bf16.mxu0 %v5301_v4  ;;  %5149 = vmatprep.mubr.bf16.mxu1 %v5302_v5  ;;  %v5300_v9 = vld [vmem:[%s7792_s1] sm:$0xff]   ;;  %v5304_v11 = vld [vmem:[%s7793_s0 + $0x208] sm:$0xff]   ;;  %v5307_v14 = vld [vmem:[%s7793_s0 + $0x18] sm:$0xff]  }
   0x6   :  { %v5308_v15 = vld [vmem:[%s7793_s0 + $0x218] sm:$0xff]   ;;  %v5309_v16 = vld [vmem:[%s7793_s0 + $0x20] sm:$0xff]   ;;  %v5311_v18 = vld [vmem:[%s7793_s0 + $0x28] sm:$0xff]  }
   0x7   :  { %5008 = vmatpush3.bf16.msra.mxu0 %v5294_v1  ;;  %5286 = vmatpush3.bf16.msra.mxu1 %v5294_v1  ;;  %v5310_v17 = vld [vmem:[%s7793_s0 + $0x220] sm:$0xff]   ;;  %v5312_v19 = vld [vmem:[%s7793_s0 + $0x228] sm:$0xff]   ;;  %v5313_v20 = vld [vmem:[%s7793_s0 + $0x30] sm:$0xff]  }
   0x8   :  { %5009 = vmatprep.subr.bf16.mxu0 %v5295_v2  ;;  %5279 = vmatprep.subr.bf16.mxu1 %v5295_v2  ;;  %v5314_v21 = vld [vmem:[%s7793_s0 + $0x230] sm:$0xff]   ;;  %v5315_v22 = vld [vmem:[%s7793_s0 + $0x38] sm:$0xff]   ;;  %v5317_v24 = vld [vmem:[%s7793_s0 + $0x40] sm:$0xff]  }
   0x9   :  { %v5316_v23 = vld [vmem:[%s7793_s0 + $0x238] sm:$0xff]   ;;  %v5318_v25 = vld [vmem:[%s7793_s0 + $0x240] sm:$0xff]   ;;  %v5319_v26 = vld [vmem:[%s7793_s0 + $0x48] sm:$0xff]  }
   0xa   :  { %v5320_v27 = vld [vmem:[%s7793_s0 + $0x248] sm:$0xff]   ;;  %v5321_v28 = vld [vmem:[%s7793_s0 + $0x50] sm:$0xff]   ;;  %v5323_v30 = vld [vmem:[%s7793_s0 + $0x58] sm:$0xff]  }
   0xb   :  { %5010 = vmatpush3.bf16.msra.mxu0 %v5295_v2  ;;  %5287 = vmatpush3.bf16.msra.mxu1 %v5295_v2  ;;  %v5322_v29 = vld [vmem:[%s7793_s0 + $0x250] sm:$0xff]   ;;  %v5324_v31 = vld [vmem:[%s7793_s0 + $0x258] sm:$0xff]   ;;  %v5325_v32 = vld [vmem:[%s7793_s0 + $0x60] sm:$0xff]  }
   0xc   :  { %5011 = vmatprep.subr.bf16.mxu0 %v5296_v3  ;;  %5280 = vmatprep.subr.bf16.mxu1 %v5296_v3  ;;  %v5326_v33 = vld [vmem:[%s7793_s0 + $0x260] sm:$0xff]   ;;  %v5327_v34 = vld [vmem:[%s7793_s0 + $0x68] sm:$0xff]   ;;  %v5329_v36 = vld [vmem:[%s7793_s0 + $0x70] sm:$0xff]  }
   0xd   :  { %v5328_v35 = vld [vmem:[%s7793_s0 + $0x268] sm:$0xff]   ;;  %v5330_v37 = vld [vmem:[%s7793_s0 + $0x270] sm:$0xff]   ;;  %v5331_v38 = vld [vmem:[%s7793_s0 + $0x78] sm:$0xff]  }
   0xe   :  { %v5332_v39 = vld [vmem:[%s7793_s0 + $0x278] sm:$0xff]   ;;  %v5333_v40 = vld [vmem:[%s7793_s0 + $0x80] sm:$0xff]   ;;  %v5335_v42 = vld [vmem:[%s7793_s0 + $0x88] sm:$0xff]  }
   0xf   :  { %5012 = vmatpush3.bf16.msra.mxu0 %v5296_v3  ;;  %5288 = vmatpush3.bf16.msra.mxu1 %v5296_v3  ;;  %v5334_v41 = vld [vmem:[%s7793_s0 + $0x280] sm:$0xff]   ;;  %v5336_v43 = vld [vmem:[%s7793_s0 + $0x288] sm:$0xff]   ;;  %v5337_v44 = vld [vmem:[%s7793_s0 + $0x90] sm:$0xff]  }
  0x10   :  { %5013 = vmatprep.subr.bf16.mxu0 %v5297_v6  ;;  %5281 = vmatprep.subr.bf16.mxu1 %v5297_v6  ;;  %v5338_v45 = vld [vmem:[%s7793_s0 + $0x290] sm:$0xff]   ;;  %v5339_v46 = vld [vmem:[%s7793_s0 + $0x98] sm:$0xff]   ;;  %v5341_v48 = vld [vmem:[%s7793_s0 + $0xa0] sm:$0xff]  }
  0x11   :  { %v5340_v47 = vld [vmem:[%s7793_s0 + $0x298] sm:$0xff]   ;;  %v5342_v49 = vld [vmem:[%s7793_s0 + $0x2a0] sm:$0xff]   ;;  %v5343_v50 = vld [vmem:[%s7793_s0 + $0xa8] sm:$0xff]  }
  0x12   :  { %v5344_v51 = vld [vmem:[%s7793_s0 + $0x2a8] sm:$0xff]   ;;  %v5345_v52 = vld [vmem:[%s7793_s0 + $0xb0] sm:$0xff]   ;;  %v5347_v54 = vld [vmem:[%s7793_s0 + $0xb8] sm:$0xff]  }
  0x13   :  { %5014 = vmatpush3.bf16.msra.mxu0 %v5297_v6  ;;  %5289 = vmatpush3.bf16.msra.mxu1 %v5297_v6  ;;  %v5346_v53 = vld [vmem:[%s7793_s0 + $0x2b0] sm:$0xff]   ;;  %v5348_v55 = vld [vmem:[%s7793_s0 + $0x2b8] sm:$0xff]   ;;  %v5349_v56 = vld [vmem:[%s7793_s0 + $0xc0] sm:$0xff]  }
  0x14   :  { %5015 = vmatprep.subr.bf16.mxu0 %v5298_v7  ;;  %5282 = vmatprep.subr.bf16.mxu1 %v5298_v7  ;;  %v5350_v57 = vld [vmem:[%s7793_s0 + $0x2c0] sm:$0xff]   ;;  %v5351_v58 = vld [vmem:[%s7793_s0 + $0xc8] sm:$0xff]   ;;  %v5353_v60 = vld [vmem:[%s7793_s0 + $0xd0] sm:$0xff]  }
  0x15   :  { %v5352_v59 = vld [vmem:[%s7793_s0 + $0x2c8] sm:$0xff]   ;;  %v5354_v61 = vld [vmem:[%s7793_s0 + $0x2d0] sm:$0xff]   ;;  %v5355_v62 = vld [vmem:[%s7793_s0 + $0xd8] sm:$0xff]  }
  0x16   :  { %v5356_v63 = vld [vmem:[%s7793_s0 + $0x2d8] sm:$0xff]   ;;  %v5357_v0 = vld [vmem:[%s7793_s0 + $0xe0] sm:$0xff]   ;;  %v5359_v2 = vld [vmem:[%s7793_s0 + $0xe8] sm:$0xff]  }
  0x17   :  { %5016 = vmatpush3.bf16.msra.mxu0 %v5298_v7  ;;  %5290 = vmatpush3.bf16.msra.mxu1 %v5298_v7  ;;  %v5358_v1 = vld [vmem:[%s7793_s0 + $0x2e0] sm:$0xff]   ;;  %v5360_v3 = vld [vmem:[%s7793_s0 + $0x2e8] sm:$0xff]   ;;  %v5361_v4 = vld [vmem:[%s7793_s0 + $0xf0] sm:$0xff]  }
  0x18   :  { %5017 = vmatprep.subr.bf16.mxu0 %v5299_v8  ;;  %5283 = vmatprep.subr.bf16.mxu1 %v5299_v8  ;;  %v5362_v5 = vld [vmem:[%s7793_s0 + $0x2f0] sm:$0xff]   ;;  %v5363_v6 = vld [vmem:[%s7793_s0 + $0xf8] sm:$0xff]  }
  0x19   :  { %v5364_v7 = vld [vmem:[%s7793_s0 + $0x2f8] sm:$0xff]  }
  0x1b   :  { %5018 = vmatpush3.bf16.msra.mxu0 %v5299_v8  ;;  %5291 = vmatpush3.bf16.msra.mxu1 %v5299_v8  ;;  %v5365_v8 = vld [vmem:[%s7793_s0 + $0x100] sm:$0xff]  }
  0x1c   :  { %5019 = vmatprep.subr.bf16.mxu0 %v5300_v9  ;;  %5284 = vmatprep.subr.bf16.mxu1 %v5300_v9 }
  0x1f   :  { %5020 = vmatpush3.bf16.msra.mxu0 %v5300_v9  ;;  %5292 = vmatpush3.bf16.msra.mxu1 %v5300_v9  ;;  %v5366_v9 = vld [vmem:[%s7793_s0 + $0x300] sm:$0xff]  }
  0x22   :  { %5022 = vmatmul.mubr.bf16.vlgmr.msra.gmra.mxu0 %v5303_v10  ;;  %5150 = vmatmul.mubr.bf16.vlgmr.msra.gmra.mxu1 %v5304_v11  ;;  %v5367_v10 = vld [vmem:[%s7793_s0 + $0x108] sm:$0xff]  }
  0x23   :  { %5025 = vmatprep.mubr.bf16.mxu0 %v5305_v12  ;;  %5153 = vmatprep.mubr.bf16.mxu1 %v5306_v13  ;;  %v5368_v11 = vld [vmem:[%s7793_s0 + $0x308] sm:$0xff]   ;;  %v5369_v12 = vld [vmem:[%s7793_s0 + $0x110] sm:$0xff]  }
  0x24   :  { %v5370_v13 = vld [vmem:[%s7793_s0 + $0x310] sm:$0xff]  }
  0x2a   :  { %5026 = vmatmul.mubr.bf16.gmra.mxu0 %v5307_v14  ;;  %5154 = vmatmul.mubr.bf16.gmra.mxu1 %v5308_v15  ;;  %v5371_v14 = vld [vmem:[%s7793_s0 + $0x118] sm:$0xff]  }
  0x2b   :  { %5029 = vmatprep.mubr.bf16.mxu0 %v5309_v16  ;;  %5157 = vmatprep.mubr.bf16.mxu1 %v5310_v17  ;;  %v5372_v15 = vld [vmem:[%s7793_s0 + $0x318] sm:$0xff]   ;;  %v5373_v16 = vld [vmem:[%s7793_s0 + $0x120] sm:$0xff]  }
  0x2c   :  { %v5374_v17 = vld [vmem:[%s7793_s0 + $0x320] sm:$0xff]  }
  0x32   :  { %5030 = vmatmul.mubr.bf16.gmra.mxu0 %v5311_v18  ;;  %5158 = vmatmul.mubr.bf16.gmra.mxu1 %v5312_v19  ;;  %v5375_v18 = vld [vmem:[%s7793_s0 + $0x128] sm:$0xff]  }
  0x33   :  { %5033 = vmatprep.mubr.bf16.mxu0 %v5313_v20  ;;  %5161 = vmatprep.mubr.bf16.mxu1 %v5314_v21  ;;  %v5376_v19 = vld [vmem:[%s7793_s0 + $0x328] sm:$0xff]   ;;  %v5377_v20 = vld [vmem:[%s7793_s0 + $0x130] sm:$0xff]  }
  0x34   :  { %v5378_v21 = vld [vmem:[%s7793_s0 + $0x330] sm:$0xff]  }
  0x3a   :  { %5034 = vmatmul.mubr.bf16.gmra.mxu0 %v5315_v22  ;;  %5162 = vmatmul.mubr.bf16.gmra.mxu1 %v5316_v23  ;;  %v5379_v22 = vld [vmem:[%s7793_s0 + $0x138] sm:$0xff]  }
  0x3b   :  { %5037 = vmatprep.mubr.bf16.mxu0 %v5317_v24  ;;  %5165 = vmatprep.mubr.bf16.mxu1 %v5318_v25  ;;  %v5380_v23 = vld [vmem:[%s7793_s0 + $0x338] sm:$0xff]   ;;  %v5381_v24 = vld [vmem:[%s7793_s0 + $0x140] sm:$0xff]  }
  0x3c   :  { %v5382_v25 = vld [vmem:[%s7793_s0 + $0x340] sm:$0xff]  }
  0x42   :  { %5038 = vmatmul.mubr.bf16.gmra.mxu0 %v5319_v26  ;;  %5166 = vmatmul.mubr.bf16.gmra.mxu1 %v5320_v27  ;;  %v5383_v26 = vld [vmem:[%s7793_s0 + $0x148] sm:$0xff]  }
  0x43   :  { %5041 = vmatprep.mubr.bf16.mxu0 %v5321_v28  ;;  %5169 = vmatprep.mubr.bf16.mxu1 %v5322_v29  ;;  %v5384_v27 = vld [vmem:[%s7793_s0 + $0x348] sm:$0xff]   ;;  %v5385_v28 = vld [vmem:[%s7793_s0 + $0x150] sm:$0xff]  }
  0x44   :  { %v5386_v29 = vld [vmem:[%s7793_s0 + $0x350] sm:$0xff]  }
  0x4a   :  { %5042 = vmatmul.mubr.bf16.gmra.mxu0 %v5323_v30  ;;  %5170 = vmatmul.mubr.bf16.gmra.mxu1 %v5324_v31  ;;  %v5387_v30 = vld [vmem:[%s7793_s0 + $0x158] sm:$0xff]  }
  0x4b   :  { %5045 = vmatprep.mubr.bf16.mxu0 %v5325_v32  ;;  %5173 = vmatprep.mubr.bf16.mxu1 %v5326_v33  ;;  %v5388_v31 = vld [vmem:[%s7793_s0 + $0x358] sm:$0xff]   ;;  %v5389_v32 = vld [vmem:[%s7793_s0 + $0x160] sm:$0xff]  }
  0x4c   :  { %v5390_v33 = vld [vmem:[%s7793_s0 + $0x360] sm:$0xff]  }
  0x52   :  { %5046 = vmatmul.mubr.bf16.gmra.mxu0 %v5327_v34  ;;  %5174 = vmatmul.mubr.bf16.gmra.mxu1 %v5328_v35  ;;  %v5391_v34 = vld [vmem:[%s7793_s0 + $0x168] sm:$0xff]  }
  0x53   :  { %5049 = vmatprep.mubr.bf16.mxu0 %v5329_v36  ;;  %5177 = vmatprep.mubr.bf16.mxu1 %v5330_v37  ;;  %v5392_v35 = vld [vmem:[%s7793_s0 + $0x368] sm:$0xff]   ;;  %v5393_v36 = vld [vmem:[%s7793_s0 + $0x170] sm:$0xff]  }
  0x54   :  { %v5394_v37 = vld [vmem:[%s7793_s0 + $0x370] sm:$0xff]  }
  0x5a   :  { %5050 = vmatmul.mubr.bf16.gmra.mxu0 %v5331_v38  ;;  %5178 = vmatmul.mubr.bf16.gmra.mxu1 %v5332_v39  ;;  %v5395_v38 = vld [vmem:[%s7793_s0 + $0x178] sm:$0xff]  }
  0x5b   :  { %5053 = vmatprep.mubr.bf16.mxu0 %v5333_v40  ;;  %5181 = vmatprep.mubr.bf16.mxu1 %v5334_v41  ;;  %v5396_v39 = vld [vmem:[%s7793_s0 + $0x378] sm:$0xff]   ;;  %v5397_v40 = vld [vmem:[%s7793_s0 + $0x180] sm:$0xff]  }
  0x5c   :  { %v5398_v41 = vld [vmem:[%s7793_s0 + $0x380] sm:$0xff]  }
  0x62   :  { %5054 = vmatmul.mubr.bf16.gmra.mxu0 %v5335_v42  ;;  %5182 = vmatmul.mubr.bf16.gmra.mxu1 %v5336_v43  ;;  %v5399_v42 = vld [vmem:[%s7793_s0 + $0x188] sm:$0xff]  }
  0x63   :  { %5057 = vmatprep.mubr.bf16.mxu0 %v5337_v44  ;;  %5185 = vmatprep.mubr.bf16.mxu1 %v5338_v45  ;;  %v5400_v43 = vld [vmem:[%s7793_s0 + $0x388] sm:$0xff]   ;;  %v5401_v44 = vld [vmem:[%s7793_s0 + $0x190] sm:$0xff]  }
  0x64   :  { %v5402_v45 = vld [vmem:[%s7793_s0 + $0x390] sm:$0xff]  }
  0x6a   :  { %5058 = vmatmul.mubr.bf16.gmra.mxu0 %v5339_v46  ;;  %5186 = vmatmul.mubr.bf16.gmra.mxu1 %v5340_v47  ;;  %v5785_v46 = vld [vmem:[%s7794_s2] ss:$0 sm:$0xff] }
  0x6b   :  { %5061 = vmatprep.mubr.bf16.mxu0 %v5341_v48  ;;  %5189 = vmatprep.mubr.bf16.mxu1 %v5342_v49 }
  0x72   :  { %5062 = vmatmul.mubr.bf16.gmra.mxu0 %v5343_v50  ;;  %5190 = vmatmul.mubr.bf16.gmra.mxu1 %v5344_v51 }
  0x73   :  { %5065 = vmatprep.mubr.bf16.mxu0 %v5345_v52  ;;  %5193 = vmatprep.mubr.bf16.mxu1 %v5346_v53 }
  0x7a   :  { %5066 = vmatmul.mubr.bf16.gmra.mxu0 %v5347_v54  ;;  %5194 = vmatmul.mubr.bf16.gmra.mxu1 %v5348_v55 }
  0x7b   :  { %5069 = vmatprep.mubr.bf16.mxu0 %v5349_v56  ;;  %5197 = vmatprep.mubr.bf16.mxu1 %v5350_v57 }
  0x82   :  { %5070 = vmatmul.mubr.bf16.gmra.mxu0 %v5351_v58  ;;  %5198 = vmatmul.mubr.bf16.gmra.mxu1 %v5352_v59  ;;  %v5403_v59 = vld [vmem:[%s7793_s0 + $0x198] sm:$0xff]  }
  0x83   :  { %5073 = vmatprep.mubr.bf16.mxu0 %v5353_v60  ;;  %5201 = vmatprep.mubr.bf16.mxu1 %v5354_v61  ;;  %v5404_v60 = vld [vmem:[%s7793_s0 + $0x398] sm:$0xff]  }
  0x8a   :  { %5074 = vmatmul.mubr.bf16.gmra.mxu0 %v5355_v62  ;;  %5202 = vmatmul.mubr.bf16.gmra.mxu1 %v5356_v63 }
  0x8b   :  { %5077 = vmatprep.mubr.bf16.mxu0 %v5357_v0  ;;  %5205 = vmatprep.mubr.bf16.mxu1 %v5358_v1  ;;  %v5405_v1 = vld [vmem:[%s7793_s0 + $0x1a0] sm:$0xff]  }
  0x92   :  { %5078 = vmatmul.mubr.bf16.gmra.mxu0 %v5359_v2  ;;  %5206 = vmatmul.mubr.bf16.gmra.mxu1 %v5360_v3 }
  0x93   :  { %5081 = vmatprep.mubr.bf16.mxu0 %v5361_v4  ;;  %5209 = vmatprep.mubr.bf16.mxu1 %v5362_v5 }
  0x9a   :  { %5082 = vmatmul.mubr.bf16.gmra.mxu0 %v5363_v6  ;;  %5210 = vmatmul.mubr.bf16.gmra.mxu1 %v5364_v7  ;;  %v5406_v7 = vld [vmem:[%s7793_s0 + $0x3a0] sm:$0xff]  }
  0x9b   :  { %5085 = vmatprep.mubr.bf16.mxu0 %v5365_v8  ;;  %5213 = vmatprep.mubr.bf16.mxu1 %v5366_v9 }
  0xa2   :  { %5086 = vmatmul.mubr.bf16.gmra.mxu0 %v5367_v10  ;;  %5214 = vmatmul.mubr.bf16.gmra.mxu1 %v5368_v11 }
  0xa3   :  { %5089 = vmatprep.mubr.bf16.mxu0 %v5369_v12  ;;  %5217 = vmatprep.mubr.bf16.mxu1 %v5370_v13 }
  0xaa   :  { %5090 = vmatmul.mubr.bf16.gmra.mxu0 %v5371_v14  ;;  %5218 = vmatmul.mubr.bf16.gmra.mxu1 %v5372_v15 }
  0xab   :  { %5093 = vmatprep.mubr.bf16.mxu0 %v5373_v16  ;;  %5221 = vmatprep.mubr.bf16.mxu1 %v5374_v17 }
  0xb2   :  { %5094 = vmatmul.mubr.bf16.gmra.mxu0 %v5375_v18  ;;  %5222 = vmatmul.mubr.bf16.gmra.mxu1 %v5376_v19 }
  0xb3   :  { %5097 = vmatprep.mubr.bf16.mxu0 %v5377_v20  ;;  %5225 = vmatprep.mubr.bf16.mxu1 %v5378_v21 }
  0xba   :  { %5098 = vmatmul.mubr.bf16.gmra.mxu0 %v5379_v22  ;;  %5226 = vmatmul.mubr.bf16.gmra.mxu1 %v5380_v23 }
  0xbb   :  { %5101 = vmatprep.mubr.bf16.mxu0 %v5381_v24  ;;  %5229 = vmatprep.mubr.bf16.mxu1 %v5382_v25 }
  0xc2   :  { %5102 = vmatmul.mubr.bf16.gmra.mxu0 %v5383_v26  ;;  %5230 = vmatmul.mubr.bf16.gmra.mxu1 %v5384_v27 }
  0xc3   :  { %5105 = vmatprep.mubr.bf16.mxu0 %v5385_v28  ;;  %5233 = vmatprep.mubr.bf16.mxu1 %v5386_v29 }
  0xca   :  { %5106 = vmatmul.mubr.bf16.gmra.mxu0 %v5387_v30  ;;  %5234 = vmatmul.mubr.bf16.gmra.mxu1 %v5388_v31 }
  0xcb   :  { %5109 = vmatprep.mubr.bf16.mxu0 %v5389_v32  ;;  %5237 = vmatprep.mubr.bf16.mxu1 %v5390_v33  ;;  %v5407_v33 = vld [vmem:[%s7793_s0 + $0x1a8] sm:$0xff]  }
  0xd2   :  { %5110 = vmatmul.mubr.bf16.gmra.mxu0 %v5391_v34  ;;  %5238 = vmatmul.mubr.bf16.gmra.mxu1 %v5392_v35  ;;  %v5408_v34 = vld [vmem:[%s7793_s0 + $0x3a8] sm:$0xff]  }
  0xd3   :  { %5113 = vmatprep.mubr.bf16.mxu0 %v5393_v36  ;;  %5241 = vmatprep.mubr.bf16.mxu1 %v5394_v37 }
  0xda   :  { %5114 = vmatmul.mubr.bf16.gmra.mxu0 %v5395_v38  ;;  %5242 = vmatmul.mubr.bf16.gmra.mxu1 %v5396_v39  ;;  %v5409_v39 = vld [vmem:[%s7793_s0 + $0x1b0] sm:$0xff]  }
  0xdb   :  { %5117 = vmatprep.mubr.bf16.mxu0 %v5397_v40  ;;  %5245 = vmatprep.mubr.bf16.mxu1 %v5398_v41  ;;  %v5410_v40 = vld [vmem:[%s7793_s0 + $0x3b0] sm:$0xff]  }
  0xe2   :  { %v5023_v47 = vpop.f32.mrf.mxu0  ;;  %5118 = vmatmul.mubr.bf16.gmra.mxu0 %v5399_v42  ;;  %v5151_v48 = vpop.f32.mrf.mxu1  ;;  %5246 = vmatmul.mubr.bf16.gmra.mxu1 %v5400_v43 }
  0xe3   :  { %v1153_v49 = vadd.f32 %v5023_v47, %v5785_v46  ;;  %v1665_v50 = vadd.f32 %v5151_v48, %v5785_v46  ;;  %5121 = vmatprep.mubr.bf16.mxu0 %v5401_v44  ;;  %5249 = vmatprep.mubr.bf16.mxu1 %v5402_v45 }
  0xe4   :  { %v1144_v51 = vpop.f32.mrf.mxu0  ;;  %v1656_v52 = vpop.f32.mrf.mxu1 }
  0xe5   :  { %vm2169_vm0 = vcmp.gt.f32.partialorder %v1153_v49, 0.0  ;;  %v2425_v53 = vmul.f32 0.2, %v1153_v49  ;;  %vm2297_vm1 = vcmp.gt.f32.partialorder %v1665_v50, 0.0  ;;  %v2553_v54 = vmul.f32 0.2, %v1665_v50 }
  0xe6   :  { %v1145_v55 = vadd.f32 %v5785_v46, %v1144_v51  ;;  %v1657_v56 = vadd.f32 %v5785_v46, %v1656_v52  ;;  %v5024_v57 = vpop.f32.mrf.mxu0  ;;  %v5152_v58 = vpop.f32.mrf.mxu1 }
  0xe7   :  { %v2681_v61 = vsel %vm2169_vm0, %v1153_v49, %v2425_v53  ;;  %v2809_v62 = vsel %vm2297_vm1, %v1665_v50, %v2553_v54  ;;  %v1156_v63 = vadd.f32 %v5024_v57, %v5785_v46  ;;  %v1668_v0 = vadd.f32 %v5152_v58, %v5785_v46 }
  0xe8   :  { %v4615_v2 = vpack.c.bf16 %v2681_v61, %v2681_v61  ;;  %v4743_v3 = vpack.c.bf16 %v2809_v62, %v2809_v62  ;;  %vm2167_vm3 = vcmp.gt.f32.partialorder %v1145_v55, 0.0  ;;  %v2423_v4 = vmul.f32 0.2, %v1145_v55  ;;  %v1147_v5 = vpop.f32.mrf.mxu0  ;;  %v1659_v6 = vpop.f32.mrf.mxu1 }
  0xe9   :  { %vm2295_vm4 = vcmp.gt.f32.partialorder %v1657_v56, 0.0  ;;  %v2551_v8 = vmul.f32 0.2, %v1657_v56  ;;  %vm2170_vm5 = vcmp.gt.f32.partialorder %v1156_v63, 0.0  ;;  %v2426_v9 = vmul.f32 0.2, %v1156_v63 }
  0xea   :  { %3962 = vst.msk [vmem:[%s7795_s3 + $0x8] sm:$0xf] %vm3959_vm2, %v4615_v2  ;;  %4090 = vst.msk [vmem:[%s7795_s3 + $0x208] sm:$0xf] %vm3959_vm2, %v4743_v3  ;;  %v2679_v10 = vsel %vm2167_vm3, %v1145_v55, %v2423_v4  ;;  %vm2298_vm6 = vcmp.gt.f32.partialorder %v1668_v0, 0.0  ;;  %v1148_v12 = vadd.f32 %v5785_v46, %v1147_v5  ;;  %v5027_v13 = vpop.f32.mrf.mxu0  ;;  %5122 = vmatmul.mubr.bf16.gmra.mxu0 %v5403_v59  ;;  %v5155_v14 = vpop.f32.mrf.mxu1  ;;  %5250 = vmatmul.mubr.bf16.gmra.mxu1 %v5404_v60 }
  0xeb   :  { %v2554_v11 = vmul.f32 0.2, %v1668_v0  ;;  %v4613_v15 = vpack.c.bf16 %v2679_v10, %v2679_v10  ;;  %v2807_v16 = vsel %vm2295_vm4, %v1657_v56, %v2551_v8  ;;  %v2682_v17 = vsel %vm2170_vm5, %v1156_v63, %v2426_v9  ;;  %5125 = vmatprep.mubr.bf16.mxu0 %v5405_v1  ;;  %5253 = vmatprep.mubr.bf16.mxu1 %v5406_v7  ;;  %v5411_v8 = vld [vmem:[%s7793_s0 + $0x1b8] sm:$0xff]  }
  0xec   :  { %v1660_v18 = vadd.f32 %v5785_v46, %v1659_v6  ;;  %v4741_v19 = vpack.c.bf16 %v2807_v16, %v2807_v16  ;;  %v4616_v20 = vpack.c.bf16 %v2682_v17, %v2682_v17  ;;  %vm2168_vm7 = vcmp.gt.f32.partialorder %v1148_v12, 0.0  ;;  %v1160_v22 = vpop.f32.mrf.mxu0  ;;  %v1672_v23 = vpop.f32.mrf.mxu1  ;;  %v5412_v9 = vld [vmem:[%s7793_s0 + $0x3b8] sm:$0xff]  }
  0xed   :  { %v2810_v21 = vsel %vm2298_vm6, %v1668_v0, %v2554_v11  ;;  %3960 = vst.msk [vmem:[%s7795_s3] sm:$0xf] %vm3959_vm2, %v4613_v15  ;;  %v2424_v25 = vmul.f32 0.2, %v1148_v12  ;;  %v1169_v27 = vadd.f32 %v5027_v13, %v5785_v46  ;;  %v1681_v28 = vadd.f32 %v5155_v14, %v5785_v46  ;;  %v5413_v13 = vld [vmem:[%s7793_s0 + $0x1c0] sm:$0xff]  }
  0xee   :  { %v4744_v24 = vpack.c.bf16 %v2810_v21, %v2810_v21  ;;  %vm2296_vm8 = vcmp.gt.f32.partialorder %v1660_v18, 0.0  ;;  %v2552_v26 = vmul.f32 0.2, %v1660_v18  ;;  %4088 = vst.msk [vmem:[%s7795_s3 + $0x200] sm:$0xf] %vm3959_vm2, %v4741_v19  ;;  %v1161_v29 = vadd.f32 %v5785_v46, %v1160_v22  ;;  %v5028_v31 = vpop.f32.mrf.mxu0  ;;  %v5156_v32 = vpop.f32.mrf.mxu1 }
  0xef   :  { %3963 = vst.msk [vmem:[%s7795_s3 + $0xc] sm:$0xf] %vm3959_vm2, %v4616_v20  ;;  %v1673_v30 = vadd.f32 %v5785_v46, %v1672_v23  ;;  %v2680_v35 = vsel %vm2168_vm7, %v1148_v12, %v2424_v25  ;;  %v1172_v37 = vadd.f32 %v5028_v31, %v5785_v46  ;;  %v1684_v38 = vadd.f32 %v5156_v32, %v5785_v46 }
  0xf0   :  { %4091 = vst.msk [vmem:[%s7795_s3 + $0x20c] sm:$0xf] %vm3959_vm2, %v4744_v24  ;;  %v2808_v36 = vsel %vm2296_vm8, %v1660_v18, %v2552_v26  ;;  %v4614_v41 = vpack.c.bf16 %v2680_v35, %v2680_v35  ;;  %vm2173_vm9 = vcmp.gt.f32.partialorder %v1169_v27, 0.0  ;;  %v2429_v43 = vmul.f32 0.2, %v1169_v27  ;;  %v1163_v44 = vpop.f32.mrf.mxu0  ;;  %v1675_v45 = vpop.f32.mrf.mxu1  ;;  %v5414_v18 = vld [vmem:[%s7793_s0 + $0x3c0] sm:$0xff]  }
  0xf1   :  { %v4742_v42 = vpack.c.bf16 %v2808_v36, %v2808_v36  ;;  %vm2301_vm10 = vcmp.gt.f32.partialorder %v1681_v28, 0.0  ;;  %v2557_v47 = vmul.f32 0.2, %v1681_v28  ;;  %vm2171_vm11 = vcmp.gt.f32.partialorder %v1161_v29, 0.0 }
  0xf2   :  { %v2427_v48 = vmul.f32 0.2, %v1161_v29  ;;  %3961 = vst.msk [vmem:[%s7795_s3 + $0x4] sm:$0xf] %vm3959_vm2, %v4614_v41  ;;  %v2685_v49 = vsel %vm2173_vm9, %v1169_v27, %v2429_v43  ;;  %vm2299_vm12 = vcmp.gt.f32.partialorder %v1673_v30, 0.0  ;;  %vm2174_vm13 = vcmp.gt.f32.partialorder %v1172_v37, 0.0  ;;  %v5031_v51 = vpop.f32.mrf.mxu0  ;;  %5126 = vmatmul.mubr.bf16.gmra.mxu0 %v5407_v33  ;;  %v5159_v52 = vpop.f32.mrf.mxu1  ;;  %5254 = vmatmul.mubr.bf16.gmra.mxu1 %v5408_v34 }
  0xf3   :  { %4089 = vst.msk [vmem:[%s7795_s3 + $0x204] sm:$0xf] %vm3959_vm2, %v4742_v42  ;;  %v2555_v50 = vmul.f32 0.2, %v1673_v30  ;;  %v4619_v53 = vpack.c.bf16 %v2685_v49, %v2685_v49  ;;  %v2813_v54 = vsel %vm2301_vm10, %v1681_v28, %v2557_v47  ;;  %v2430_v56 = vmul.f32 0.2, %v1172_v37  ;;  %5129 = vmatprep.mubr.bf16.mxu0 %v5409_v39  ;;  %5257 = vmatprep.mubr.bf16.mxu1 %v5410_v40 }
  0xf4   :  { %v2683_v55 = vsel %vm2171_vm11, %v1161_v29, %v2427_v48  ;;  %v4747_v57 = vpack.c.bf16 %v2813_v54, %v2813_v54  ;;  %vm2302_vm14 = vcmp.gt.f32.partialorder %v1684_v38, 0.0  ;;  %v1176_v60 = vpop.f32.mrf.mxu0  ;;  %v1688_v61 = vpop.f32.mrf.mxu1  ;;  %v2558_v0 = vmul.f32 0.2, %v1684_v38  ;;  %v5416_v47 = vld [vmem:[%s7793_s0 + $0x3c8] sm:$0xff]  }
  0xf5   :  { %v4617_v58 = vpack.c.bf16 %v2683_v55, %v2683_v55  ;;  %v2811_v59 = vsel %vm2299_vm12, %v1673_v30, %v2555_v50  ;;  %3966 = vst.msk [vmem:[%s7795_s3 + $0x18] sm:$0xf] %vm3959_vm2, %v4619_v53  ;;  %v2686_v63 = vsel %vm2174_vm13, %v1172_v37, %v2430_v56  ;;  %v1164_v1 = vadd.f32 %v5785_v46, %v1163_v44 }
  0xf6   :  { %v4745_v62 = vpack.c.bf16 %v2811_v59, %v2811_v59  ;;  %4094 = vst.msk [vmem:[%s7795_s3 + $0x218] sm:$0xf] %vm3959_vm2, %v4747_v57  ;;  %v4620_v2 = vpack.c.bf16 %v2686_v63, %v2686_v63  ;;  %v1676_v3 = vadd.f32 %v5785_v46, %v1675_v45  ;;  %v1185_v4 = vadd.f32 %v5031_v51, %v5785_v46  ;;  %v5032_v6 = vpop.f32.mrf.mxu0  ;;  %v5160_v7 = vpop.f32.mrf.mxu1  ;;  %v5415_v45 = vld [vmem:[%s7793_s0 + $0x1c8] sm:$0xff]   ;;  %v5417_v51 = vld [vmem:[%s7793_s0 + $0x1d0] sm:$0xff]  }
  0xf7   :  { %3964 = vst.msk [vmem:[%s7795_s3 + $0x10] sm:$0xf] %vm3959_vm2, %v4617_v58  ;;  %v1697_v5 = vadd.f32 %v5159_v52, %v5785_v46  ;;  %v2814_v10 = vsel %vm2302_vm14, %v1684_v38, %v2558_v0  ;;  %vm2172_vm15 = vcmp.gt.f32.partialorder %v1164_v1, 0.0  ;;  %v2428_v11 = vmul.f32 0.2, %v1164_v1  ;;  %v5418_v57 = vld [vmem:[%s7793_s0 + $0x3d0] sm:$0xff]  }
  0xf8   :  { %4092 = vst.msk [vmem:[%s7795_s3 + $0x210] sm:$0xf] %vm3959_vm2, %v4745_v62  ;;  %v1177_v12 = vadd.f32 %v5785_v46, %v1176_v60  ;;  %3967 = vst.msk [vmem:[%s7795_s3 + $0x1c] sm:$0xf] %vm3959_vm2, %v4620_v2  ;;  %v4748_v14 = vpack.c.bf16 %v2814_v10, %v2814_v10  ;;  %vm2300_vm0 = vcmp.gt.f32.partialorder %v1676_v3, 0.0  ;;  %vm2177_vm1 = vcmp.gt.f32.partialorder %v1185_v4, 0.0  ;;  %v1179_v16 = vpop.f32.mrf.mxu0  ;;  %v1691_v17 = vpop.f32.mrf.mxu1 }
  0xf9   :  { %v2556_v15 = vmul.f32 0.2, %v1676_v3  ;;  %v2684_v19 = vsel %vm2172_vm15, %v1164_v1, %v2428_v11  ;;  %v2433_v20 = vmul.f32 0.2, %v1185_v4  ;;  %vm2305_vm3 = vcmp.gt.f32.partialorder %v1697_v5, 0.0 }
  0xfa   :  { %v2561_v21 = vmul.f32 0.2, %v1697_v5  ;;  %4095 = vst.msk [vmem:[%s7795_s3 + $0x21c] sm:$0xf] %vm3959_vm2, %v4748_v14  ;;  %v4618_v22 = vpack.c.bf16 %v2684_v19, %v2684_v19  ;;  %vm2175_vm4 = vcmp.gt.f32.partialorder %v1177_v12, 0.0  ;;  %v5035_v25 = vpop.f32.mrf.mxu0  ;;  %5130 = vmatmul.mubr.bf16.gmra.mxu0 %v5411_v8  ;;  %v5163_v26 = vpop.f32.mrf.mxu1  ;;  %5258 = vmatmul.mubr.bf16.gmra.mxu1 %v5412_v9  ;;  %v1689_v30 = vadd.f32 %v5785_v46, %v1688_v61  ;;  %v5419_v14 = vld [vmem:[%s7793_s0 + $0x1d8] sm:$0xff]  }
  0xfb   :  { %v2812_v23 = vsel %vm2300_vm0, %v1676_v3, %v2556_v15  ;;  %v2431_v24 = vmul.f32 0.2, %v1177_v12  ;;  %v2689_v28 = vsel %vm2177_vm1, %v1185_v4, %v2433_v20  ;;  %5133 = vmatprep.mubr.bf16.mxu0 %v5413_v13  ;;  %v1188_v34 = vadd.f32 %v5032_v6, %v5785_v46  ;;  %5261 = vmatprep.mubr.bf16.mxu1 %v5414_v18  ;;  %v5420_v15 = vld [vmem:[%s7793_s0 + $0x3d8] sm:$0xff]  }
  0xfc   :  { %v4746_v27 = vpack.c.bf16 %v2812_v23, %v2812_v23  ;;  %v2817_v29 = vsel %vm2305_vm3, %v1697_v5, %v2561_v21  ;;  %3965 = vst.msk [vmem:[%s7795_s3 + $0x14] sm:$0xf] %vm3959_vm2, %v4618_v22  ;;  %v4623_v31 = vpack.c.bf16 %v2689_v28, %v2689_v28  ;;  %v1192_v35 = vpop.f32.mrf.mxu0  ;;  %v1704_v36 = vpop.f32.mrf.mxu1  ;;  %vm2303_vm5 = vcmp.gt.f32.partialorder %v1689_v30, 0.0 }
  0xfd   :  { %v4751_v32 = vpack.c.bf16 %v2817_v29, %v2817_v29  ;;  %v2687_v33 = vsel %vm2175_vm4, %v1177_v12, %v2431_v24  ;;  %v2559_v38 = vmul.f32 0.2, %v1689_v30  ;;  %v1700_v39 = vadd.f32 %v5160_v7, %v5785_v46  ;;  %v5421_v24 = vld [vmem:[%s7793_s0 + $0x1e0] sm:$0xff]  }
  0xfe   :  { %4093 = vst.msk [vmem:[%s7795_s3 + $0x214] sm:$0xf] %vm3959_vm2, %v4746_v27  ;;  %v4621_v37 = vpack.c.bf16 %v2687_v33, %v2687_v33  ;;  %3970 = vst.msk [vmem:[%s7795_s3 + $0x28] sm:$0xf] %vm3959_vm2, %v4623_v31  ;;  %vm2178_vm6 = vcmp.gt.f32.partialorder %v1188_v34, 0.0  ;;  %v1180_v41 = vadd.f32 %v5785_v46, %v1179_v16  ;;  %v1692_v42 = vadd.f32 %v5785_v46, %v1691_v17  ;;  %v5036_v43 = vpop.f32.mrf.mxu0  ;;  %v5164_v44 = vpop.f32.mrf.mxu1 }
  0xff   :  { %4098 = vst.msk [vmem:[%s7795_s3 + $0x228] sm:$0xf] %vm3959_vm2, %v4751_v32  ;;  %v2434_v40 = vmul.f32 0.2, %v1188_v34  ;;  %v2815_v48 = vsel %vm2303_vm5, %v1689_v30, %v2559_v38  ;;  %vm2306_vm7 = vcmp.gt.f32.partialorder %v1700_v39, 0.0  ;;  %v1201_v50 = vadd.f32 %v5035_v25, %v5785_v46  ;;  %v5422_v25 = vld [vmem:[%s7793_s0 + $0x3e0] sm:$0xff]  }
 0x100   :  { %3968 = vst.msk [vmem:[%s7795_s3 + $0x20] sm:$0xf] %vm3959_vm2, %v4621_v37  ;;  %v2562_v49 = vmul.f32 0.2, %v1700_v39  ;;  %v4749_v52 = vpack.c.bf16 %v2815_v48, %v2815_v48  ;;  %vm2176_vm8 = vcmp.gt.f32.partialorder %v1180_v41, 0.0  ;;  %v1195_v55 = vpop.f32.mrf.mxu0  ;;  %v1707_v56 = vpop.f32.mrf.mxu1  ;;  %vm2304_vm9 = vcmp.gt.f32.partialorder %v1692_v42, 0.0 }
 0x101   :  { %v2690_v53 = vsel %vm2178_vm6, %v1188_v34, %v2434_v40  ;;  %v2432_v54 = vmul.f32 0.2, %v1180_v41  ;;  %v2560_v60 = vmul.f32 0.2, %v1692_v42  ;;  %vm2181_vm10 = vcmp.gt.f32.partialorder %v1201_v50, 0.0 }
 0x102   :  { %v4624_v58 = vpack.c.bf16 %v2690_v53, %v2690_v53  ;;  %v2818_v59 = vsel %vm2306_vm7, %v1700_v39, %v2562_v49  ;;  %4096 = vst.msk [vmem:[%s7795_s3 + $0x220] sm:$0xf] %vm3959_vm2, %v4749_v52  ;;  %v2437_v63 = vmul.f32 0.2, %v1201_v50  ;;  %v5039_v0 = vpop.f32.mrf.mxu0  ;;  %5134 = vmatmul.mubr.bf16.gmra.mxu0 %v5415_v45  ;;  %v5167_v1 = vpop.f32.mrf.mxu1  ;;  %5262 = vmatmul.mubr.bf16.gmra.mxu1 %v5416_v47  ;;  %v5423_v53 = vld [vmem:[%s7793_s0 + $0x1e8] sm:$0xff]  }
 0x103   :  { %v4752_v61 = vpack.c.bf16 %v2818_v59, %v2818_v59  ;;  %v2688_v62 = vsel %vm2176_vm8, %v1180_v41, %v2432_v54  ;;  %v2816_v3 = vsel %vm2304_vm9, %v1692_v42, %v2560_v60  ;;  %v1713_v4 = vadd.f32 %v5163_v26, %v5785_v46  ;;  %5137 = vmatprep.mubr.bf16.mxu0 %v5417_v51  ;;  %v5424_v54 = vld [vmem:[%s7793_s0 + $0x3e8] sm:$0xff]  }
 0x104   :  { %3971 = vst.msk [vmem:[%s7795_s3 + $0x2c] sm:$0xf] %vm3959_vm2, %v4624_v58  ;;  %v4622_v2 = vpack.c.bf16 %v2688_v62, %v2688_v62  ;;  %v1193_v5 = vadd.f32 %v5785_v46, %v1192_v35  ;;  %v4750_v6 = vpack.c.bf16 %v2816_v3, %v2816_v3  ;;  %v2693_v7 = vsel %vm2181_vm10, %v1201_v50, %v2437_v63  ;;  %v1208_v10 = vpop.f32.mrf.mxu0  ;;  %v1720_v11 = vpop.f32.mrf.mxu1 }
 0x105   :  { %4099 = vst.msk [vmem:[%s7795_s3 + $0x22c] sm:$0xf] %vm3959_vm2, %v4752_v61  ;;  %v1705_v8 = vadd.f32 %v5785_v46, %v1704_v36  ;;  %v1204_v9 = vadd.f32 %v5036_v43, %v5785_v46  ;;  %5265 = vmatprep.mubr.bf16.mxu1 %v5418_v57  ;;  %v4627_v12 = vpack.c.bf16 %v2693_v7, %v2693_v7  ;;  %vm2309_vm11 = vcmp.gt.f32.partialorder %v1713_v4, 0.0  ;;  %v5426_v61 = vld [vmem:[%s7793_s0 + $0x3f0] sm:$0xff]  }
 0x106   :  { %3969 = vst.msk [vmem:[%s7795_s3 + $0x24] sm:$0xf] %vm3959_vm2, %v4622_v2  ;;  %v2565_v13 = vmul.f32 0.2, %v1713_v4  ;;  %vm2179_vm12 = vcmp.gt.f32.partialorder %v1193_v5, 0.0  ;;  %v5970_v18 = vpop.f32.mrf.mxu0  ;;  %v5972_v19 = vpop.f32.mrf.mxu1  ;;  %v1716_v22 = vadd.f32 %v5164_v44, %v5785_v46  ;;  %v1196_v23 = vadd.f32 %v5785_v46, %v1195_v55  ;;  %v5425_v55 = vld [vmem:[%s7793_s0 + $0x1f0] sm:$0xff]  }
 0x107   :  { %4097 = vst.msk [vmem:[%s7795_s3 + $0x224] sm:$0xf] %vm3959_vm2, %v4750_v6  ;;  %v2435_v16 = vmul.f32 0.2, %v1193_v5  ;;  %vm2307_vm13 = vcmp.gt.f32.partialorder %v1705_v8, 0.0  ;;  %vm2182_vm14 = vcmp.gt.f32.partialorder %v1204_v9, 0.0  ;;  %v1708_v29 = vadd.f32 %v5785_v46, %v1707_v56 }
 0x108   :  { %v2563_v17 = vmul.f32 0.2, %v1705_v8  ;;  %3974 = vst.msk [vmem:[%s7795_s3 + $0x38] sm:$0xf] %vm3959_vm2, %v4627_v12  ;;  %v2821_v20 = vsel %vm2309_vm11, %v1713_v4, %v2565_v13  ;;  %v2438_v21 = vmul.f32 0.2, %v1204_v9  ;;  %v5988_v30 = vpop.f32.mrf.mxu0  ;;  %v5990_v31 = vpop.f32.mrf.mxu1  ;;  %v1217_v41 = vadd.f32 %v5039_v0, %v5785_v46 }
 0x109   :  { %v4755_v26 = vpack.c.bf16 %v2821_v20, %v2821_v20  ;;  %v2691_v27 = vsel %vm2179_vm12, %v1193_v5, %v2435_v16  ;;  %vm2310_vm15 = vcmp.gt.f32.partialorder %v1716_v22, 0.0  ;;  %v2566_v36 = vmul.f32 0.2, %v1716_v22 }
 0x10a   :  { %v2819_v28 = vsel %vm2307_vm13, %v1705_v8, %v2563_v17  ;;  %v4625_v32 = vpack.c.bf16 %v2691_v27, %v2691_v27  ;;  %v2694_v34 = vsel %vm2182_vm14, %v1204_v9, %v2438_v21  ;;  %vm2180_vm0 = vcmp.gt.f32.partialorder %v1196_v23, 0.0  ;;  %v5997_v38 = vpop.f32.mrf.mxu0  ;;  %5138 = vmatmul.mubr.bf16.gmra.mxu0 %v5419_v14  ;;  %v5999_v39 = vpop.f32.mrf.mxu1  ;;  %5266 = vmatmul.mubr.bf16.gmra.mxu1 %v5420_v15 }
 0x10b   :  { %v4753_v33 = vpack.c.bf16 %v2819_v28, %v2819_v28  ;;  %4102 = vst.msk [vmem:[%s7795_s3 + $0x238] sm:$0xf] %vm3959_vm2, %v4755_v26  ;;  %v4628_v35 = vpack.c.bf16 %v2694_v34, %v2694_v34  ;;  %v2436_v37 = vmul.f32 0.2, %v1196_v23  ;;  %vm2308_vm1 = vcmp.gt.f32.partialorder %v1708_v29, 0.0  ;;  %5141 = vmatprep.mubr.bf16.mxu0 %v5421_v24  ;;  %5269 = vmatprep.mubr.bf16.mxu1 %v5422_v25 }
 0x10c   :  { %3972 = vst.msk [vmem:[%s7795_s3 + $0x30] sm:$0xf] %vm3959_vm2, %v4625_v32  ;;  %v2564_v40 = vmul.f32 0.2, %v1708_v29  ;;  %v1729_v42 = vadd.f32 %v5167_v1, %v5785_v46  ;;  %v2822_v43 = vsel %vm2310_vm15, %v1716_v22, %v2566_v36  ;;  %v1209_v45 = vadd.f32 %v5785_v46, %v1208_v10  ;;  %v1224_v48 = vpop.f32.mrf.mxu0  ;;  %v6019_v49 = vpop.f32.mrf.mxu1 }
 0x10d   :  { %4100 = vst.msk [vmem:[%s7795_s3 + $0x230] sm:$0xf] %vm3959_vm2, %v4753_v33  ;;  %3975 = vst.msk [vmem:[%s7795_s3 + $0x3c] sm:$0xf] %vm3959_vm2, %v4628_v35  ;;  %v2692_v44 = vsel %vm2180_vm0, %v1196_v23, %v2436_v37  ;;  %v1721_v47 = vadd.f32 %v5785_v46, %v1720_v11  ;;  %v4756_v50 = vpack.c.bf16 %v2822_v43, %v2822_v43  ;;  %vm2185_vm3 = vcmp.gt.f32.partialorder %v1217_v41, 0.0  ;;  %v5428_v35 = vld [vmem:[%s7793_s0 + $0x3f8] sm:$0xff]  }
 0x10e   :  { %v4626_v51 = vpack.c.bf16 %v2692_v44, %v2692_v44  ;;  %v2820_v52 = vsel %vm2308_vm1, %v1708_v29, %v2564_v40  ;;  %v2441_v57 = vmul.f32 0.2, %v1217_v41  ;;  %vm2313_vm4 = vcmp.gt.f32.partialorder %v1729_v42, 0.0  ;;  %v6030_v59 = vpop.f32.mrf.mxu0  ;;  %v6032_v60 = vpop.f32.mrf.mxu1 }
 0x10f   :  { %v4754_v56 = vpack.c.bf16 %v2820_v52, %v2820_v52  ;;  %v2569_v58 = vmul.f32 0.2, %v1729_v42  ;;  %4103 = vst.msk [vmem:[%s7795_s3 + $0x23c] sm:$0xf] %vm3959_vm2, %v4756_v50  ;;  %vm2183_vm5 = vcmp.gt.f32.partialorder %v1209_v45, 0.0  ;;  %vm2311_vm6 = vcmp.gt.f32.partialorder %v1721_v47, 0.0 }
 0x110   :  { %3973 = vst.msk [vmem:[%s7795_s3 + $0x34] sm:$0xf] %vm3959_vm2, %v4626_v51  ;;  %v2439_v62 = vmul.f32 0.2, %v1209_v45  ;;  %v2567_v63 = vmul.f32 0.2, %v1721_v47  ;;  %v2697_v0 = vsel %vm2185_vm3, %v1217_v41, %v2441_v57  ;;  %v1220_v2 = vadd.f32 %v5970_v18, %v5785_v46  ;;  %v6054_v4 = vpop.f32.mrf.mxu0  ;;  %v6056_v5 = vpop.f32.mrf.mxu1 }
 0x111   :  { %4101 = vst.msk [vmem:[%s7795_s3 + $0x234] sm:$0xf] %vm3959_vm2, %v4754_v56  ;;  %v2825_v1 = vsel %vm2313_vm4, %v1729_v42, %v2569_v58  ;;  %v1732_v3 = vadd.f32 %v5972_v19, %v5785_v46  ;;  %v4631_v6 = vpack.c.bf16 %v2697_v0, %v2697_v0  ;;  %v1212_v16 = vadd.f32 %v5785_v46, %v5988_v30 }
 0x112   :  { %v4759_v7 = vpack.c.bf16 %v2825_v1, %v2825_v1  ;;  %v2695_v8 = vsel %vm2183_vm5, %v1209_v45, %v2439_v62  ;;  %v2823_v9 = vsel %vm2311_vm6, %v1721_v47, %v2567_v63  ;;  %vm2186_vm7 = vcmp.gt.f32.partialorder %v1220_v2, 0.0  ;;  %v6058_v13 = vpop.f32.mrf.mxu0  ;;  %5142 = vmatmul.mubr.bf16.gmra.mxu0 %v5423_v53  ;;  %v6060_v14 = vpop.f32.mrf.mxu1  ;;  %5270 = vmatmul.mubr.bf16.gmra.mxu1 %v5424_v54 }
 0x113   :  { %v4629_v10 = vpack.c.bf16 %v2695_v8, %v2695_v8  ;;  %v4757_v11 = vpack.c.bf16 %v2823_v9, %v2823_v9  ;;  %v2442_v12 = vmul.f32 0.2, %v1220_v2  ;;  %3978 = vst.msk [vmem:[%s7795_s3 + $0x48] sm:$0xf] %vm3959_vm2, %v4631_v6  ;;  %vm2314_vm8 = vcmp.gt.f32.partialorder %v1732_v3, 0.0  ;;  %5145 = vmatprep.mubr.bf16.mxu0 %v5425_v55  ;;  %5273 = vmatprep.mubr.bf16.mxu1 %v5426_v61 }
 0x114   :  { %4106 = vst.msk [vmem:[%s7795_s3 + $0x248] sm:$0xf] %vm3959_vm2, %v4759_v7  ;;  %v2570_v15 = vmul.f32 0.2, %v1732_v3  ;;  %v1724_v17 = vadd.f32 %v5785_v46, %v5990_v31  ;;  %v1233_v19 = vadd.f32 %v5997_v38, %v5785_v46  ;;  %v1745_v20 = vadd.f32 %v5999_v39, %v5785_v46  ;;  %v6088_v22 = vpop.f32.mrf.mxu0  ;;  %v6090_v23 = vpop.f32.mrf.mxu1  ;;  %v5427_v31 = vld [vmem:[%s7793_s0 + $0x1f8] sm:$0xff]  }
 0x115   :  { %3976 = vst.msk [vmem:[%s7795_s3 + $0x40] sm:$0xf] %vm3959_vm2, %v4629_v10  ;;  %4104 = vst.msk [vmem:[%s7795_s3 + $0x240] sm:$0xf] %vm3959_vm2, %v4757_v11  ;;  %v2698_v18 = vsel %vm2186_vm7, %v1220_v2, %v2442_v12  ;;  %v1225_v21 = vadd.f32 %v5785_v46, %v1224_v48  ;;  %vm2184_vm9 = vcmp.gt.f32.partialorder %v1212_v16, 0.0  ;;  %v1737_v44 = vadd.f32 %v5785_v46, %v6019_v49 }
 0x116   :  { %v4632_v24 = vpack.c.bf16 %v2698_v18, %v2698_v18  ;;  %v2826_v25 = vsel %vm2314_vm8, %v1732_v3, %v2570_v15  ;;  %v2440_v26 = vmul.f32 0.2, %v1212_v16  ;;  %vm2312_vm10 = vcmp.gt.f32.partialorder %v1724_v17, 0.0  ;;  %v6092_v29 = vpop.f32.mrf.mxu0  ;;  %v6094_v30 = vpop.f32.mrf.mxu1 }
 0x117   :  { %v4760_v27 = vpack.c.bf16 %v2826_v25, %v2826_v25  ;;  %v2568_v28 = vmul.f32 0.2, %v1724_v17  ;;  %vm2189_vm11 = vcmp.gt.f32.partialorder %v1233_v19, 0.0  ;;  %v2445_v33 = vmul.f32 0.2, %v1233_v19 }
 0x118   :  { %3979 = vst.msk [vmem:[%s7795_s3 + $0x4c] sm:$0xf] %vm3959_vm2, %v4632_v24  ;;  %v2696_v32 = vsel %vm2184_vm9, %v1212_v16, %v2440_v26  ;;  %vm2317_vm12 = vcmp.gt.f32.partialorder %v1745_v20, 0.0  ;;  %v2573_v34 = vmul.f32 0.2, %v1745_v20  ;;  %vm2187_vm13 = vcmp.gt.f32.partialorder %v1225_v21, 0.0  ;;  %v6110_v39 = vpop.f32.mrf.mxu0  ;;  %v6112_v40 = vpop.f32.mrf.mxu1 }
 0x119   :  { %4107 = vst.msk [vmem:[%s7795_s3 + $0x24c] sm:$0xf] %vm3959_vm2, %v4760_v27  ;;  %v4630_v36 = vpack.c.bf16 %v2696_v32, %v2696_v32  ;;  %v2824_v37 = vsel %vm2312_vm10, %v1724_v17, %v2568_v28  ;;  %v2443_v38 = vmul.f32 0.2, %v1225_v21  ;;  %v2701_v42 = vsel %vm2189_vm11, %v1233_v19, %v2445_v33 }
 0x11a   :  { %v4758_v41 = vpack.c.bf16 %v2824_v37, %v2824_v37  ;;  %v2829_v43 = vsel %vm2317_vm12, %v1745_v20, %v2573_v34  ;;  %v4635_v45 = vpack.c.bf16 %v2701_v42, %v2701_v42  ;;  %v1236_v50 = vadd.f32 %v6030_v59, %v5785_v46  ;;  %v6123_v51 = vpop.f32.mrf.mxu0  ;;  %5146 = vmatmul.mubr.bf16.gmra.mxu0 %v5427_v31  ;;  %v6125_v52 = vpop.f32.mrf.mxu1 }
 0x11b   :  { %3977 = vst.msk [vmem:[%s7795_s3 + $0x44] sm:$0xf] %vm3959_vm2, %v4630_v36  ;;  %v4763_v47 = vpack.c.bf16 %v2829_v43, %v2829_v43  ;;  %v2699_v48 = vsel %vm2187_vm13, %v1225_v21, %v2443_v38  ;;  %vm2315_vm14 = vcmp.gt.f32.partialorder %v1737_v44, 0.0  ;;  %v2571_v53 = vmul.f32 0.2, %v1737_v44  ;;  %5274 = vmatmul.mubr.bf16.gmra.mxu1 %v5428_v35 }
 0x11c   :  { %4105 = vst.msk [vmem:[%s7795_s3 + $0x244] sm:$0xf] %vm3959_vm2, %v4758_v41  ;;  %v4633_v49 = vpack.c.bf16 %v2699_v48, %v2699_v48  ;;  %v1748_v54 = vadd.f32 %v6032_v60, %v5785_v46  ;;  %3982 = vst.msk [vmem:[%s7795_s3 + $0x58] sm:$0xf] %vm3959_vm2, %v4635_v45  ;;  %vm2190_vm15 = vcmp.gt.f32.partialorder %v1236_v50, 0.0  ;;  %v1228_v56 = vadd.f32 %v5785_v46, %v6054_v4  ;;  %v6145_v58 = vpop.f32.mrf.mxu0  ;;  %v6147_v59 = vpop.f32.mrf.mxu1 }
 0x11d   :  { %4110 = vst.msk [vmem:[%s7795_s3 + $0x258] sm:$0xf] %vm3959_vm2, %v4763_v47  ;;  %v2446_v55 = vmul.f32 0.2, %v1236_v50  ;;  %v1740_v57 = vadd.f32 %v5785_v46, %v6056_v5  ;;  %v2827_v60 = vsel %vm2315_vm14, %v1737_v44, %v2571_v53  ;;  %v1249_v62 = vadd.f32 %v6058_v13, %v5785_v46 }
 0x11e   :  { %3980 = vst.msk [vmem:[%s7795_s3 + $0x50] sm:$0xf] %vm3959_vm2, %v4633_v49  ;;  %vm2318_vm0 = vcmp.gt.f32.partialorder %v1748_v54, 0.0  ;;  %v2574_v61 = vmul.f32 0.2, %v1748_v54  ;;  %v4761_v63 = vpack.c.bf16 %v2827_v60, %v2827_v60  ;;  %vm2188_vm1 = vcmp.gt.f32.partialorder %v1228_v56, 0.0  ;;  %v6155_v2 = vpop.f32.mrf.mxu0  ;;  %v6157_v3 = vpop.f32.mrf.mxu1 }
 0x11f   :  { %v2702_v0 = vsel %vm2190_vm15, %v1236_v50, %v2446_v55  ;;  %v2444_v1 = vmul.f32 0.2, %v1228_v56  ;;  %vm2316_vm3 = vcmp.gt.f32.partialorder %v1740_v57, 0.0  ;;  %v2572_v6 = vmul.f32 0.2, %v1740_v57 }
 0x120   :  { %v4636_v4 = vpack.c.bf16 %v2702_v0, %v2702_v0  ;;  %v2830_v5 = vsel %vm2318_vm0, %v1748_v54, %v2574_v61  ;;  %4108 = vst.msk [vmem:[%s7795_s3 + $0x250] sm:$0xf] %vm3959_vm2, %v4761_v63  ;;  %vm2193_vm4 = vcmp.gt.f32.partialorder %v1249_v62, 0.0  ;;  %v2449_v9 = vmul.f32 0.2, %v1249_v62  ;;  %v6163_v10 = vpop.f32.mrf.mxu0  ;;  %v6165_v11 = vpop.f32.mrf.mxu1 }
 0x121   :  { %v4764_v7 = vpack.c.bf16 %v2830_v5, %v2830_v5  ;;  %v2700_v8 = vsel %vm2188_vm1, %v1228_v56, %v2444_v1  ;;  %v2828_v13 = vsel %vm2316_vm3, %v1740_v57, %v2572_v6  ;;  %v1761_v15 = vadd.f32 %v6060_v14, %v5785_v46 }
 0x122   :  { %3983 = vst.msk [vmem:[%s7795_s3 + $0x5c] sm:$0xf] %vm3959_vm2, %v4636_v4  ;;  %v4634_v12 = vpack.c.bf16 %v2700_v8, %v2700_v8  ;;  %v1241_v16 = vadd.f32 %v5785_v46, %v6088_v22  ;;  %v4762_v17 = vpack.c.bf16 %v2828_v13, %v2828_v13  ;;  %v2705_v18 = vsel %vm2193_vm4, %v1249_v62, %v2449_v9  ;;  %v6183_v21 = vpop.f32.mrf.mxu0  ;;  %v6185_v24 = vpop.f32.mrf.mxu1 }
 0x123   :  { %4111 = vst.msk [vmem:[%s7795_s3 + $0x25c] sm:$0xf] %vm3959_vm2, %v4764_v7  ;;  %v1753_v19 = vadd.f32 %v5785_v46, %v6090_v23  ;;  %v1252_v20 = vadd.f32 %v6092_v29, %v5785_v46  ;;  %v4639_v14 = vpack.c.bf16 %v2705_v18, %v2705_v18  ;;  %vm2321_vm5 = vcmp.gt.f32.partialorder %v1761_v15, 0.0 }
 0x124   :  { %3981 = vst.msk [vmem:[%s7795_s3 + $0x54] sm:$0xf] %vm3959_vm2, %v4634_v12  ;;  %v2577_v22 = vmul.f32 0.2, %v1761_v15  ;;  %vm2191_vm6 = vcmp.gt.f32.partialorder %v1241_v16, 0.0  ;;  %v6195_v26 = vpop.f32.mrf.mxu0  ;;  %v6197_v27 = vpop.f32.mrf.mxu1  ;;  %v1764_v31 = vadd.f32 %v6094_v30, %v5785_v46  ;;  %v1244_v32 = vadd.f32 %v5785_v46, %v6110_v39 }
 0x125   :  { %4109 = vst.msk [vmem:[%s7795_s3 + $0x254] sm:$0xf] %vm3959_vm2, %v4762_v17  ;;  %v2447_v23 = vmul.f32 0.2, %v1241_v16  ;;  %vm2319_vm7 = vcmp.gt.f32.partialorder %v1753_v19, 0.0  ;;  %vm2194_vm8 = vcmp.gt.f32.partialorder %v1252_v20, 0.0  ;;  %v1756_v36 = vadd.f32 %v5785_v46, %v6112_v40 }
 0x126   :  { %v2575_v25 = vmul.f32 0.2, %v1753_v19  ;;  %3986 = vst.msk [vmem:[%s7795_s3 + $0x68] sm:$0xf] %vm3959_vm2, %v4639_v14  ;;  %v2833_v28 = vsel %vm2321_vm5, %v1761_v15, %v2577_v22  ;;  %v2450_v29 = vmul.f32 0.2, %v1252_v20  ;;  %v6209_v37 = vpop.f32.mrf.mxu0  ;;  %v6211_v38 = vpop.f32.mrf.mxu1  ;;  %v1265_v48 = vadd.f32 %v6123_v51, %v5785_v46 }
 0x127   :  { %v4767_v33 = vpack.c.bf16 %v2833_v28, %v2833_v28  ;;  %v2703_v34 = vsel %vm2191_vm6, %v1241_v16, %v2447_v23  ;;  %vm2322_vm9 = vcmp.gt.f32.partialorder %v1764_v31, 0.0  ;;  %v2578_v39 = vmul.f32 0.2, %v1764_v31 }
 0x128   :  { %v2831_v35 = vsel %vm2319_vm7, %v1753_v19, %v2575_v25  ;;  %v4637_v41 = vpack.c.bf16 %v2703_v34, %v2703_v34  ;;  %v2706_v43 = vsel %vm2194_vm8, %v1252_v20, %v2450_v29  ;;  %vm2192_vm10 = vcmp.gt.f32.partialorder %v1244_v32, 0.0  ;;  %v6218_v45 = vpop.f32.mrf.mxu0  ;;  %v6220_v40 = vpop.f32.mrf.mxu1 }
 0x129   :  { %v4765_v42 = vpack.c.bf16 %v2831_v35, %v2831_v35  ;;  %4114 = vst.msk [vmem:[%s7795_s3 + $0x268] sm:$0xf] %vm3959_vm2, %v4767_v33  ;;  %v4640_v30 = vpack.c.bf16 %v2706_v43, %v2706_v43  ;;  %v2448_v44 = vmul.f32 0.2, %v1244_v32  ;;  %vm2320_vm11 = vcmp.gt.f32.partialorder %v1756_v36, 0.0 }
 0x12a   :  { %3984 = vst.msk [vmem:[%s7795_s3 + $0x60] sm:$0xf] %vm3959_vm2, %v4637_v41  ;;  %v2576_v47 = vmul.f32 0.2, %v1756_v36  ;;  %v1777_v50 = vadd.f32 %v6125_v52, %v5785_v46  ;;  %v2834_v49 = vsel %vm2322_vm9, %v1764_v31, %v2578_v39  ;;  %v1257_v54 = vadd.f32 %v5785_v46, %v6145_v58  ;;  %v6242_v56 = vpop.f32.mrf.mxu0  ;;  %v6244_v57 = vpop.f32.mrf.mxu1 }
 0x12b   :  { %4112 = vst.msk [vmem:[%s7795_s3 + $0x260] sm:$0xf] %vm3959_vm2, %v4765_v42  ;;  %3987 = vst.msk [vmem:[%s7795_s3 + $0x6c] sm:$0xf] %vm3959_vm2, %v4640_v30  ;;  %v2704_v53 = vsel %vm2192_vm10, %v1244_v32, %v2448_v44  ;;  %v1769_v55 = vadd.f32 %v5785_v46, %v6147_v59  ;;  %v4768_v51 = vpack.c.bf16 %v2834_v49, %v2834_v49  ;;  %vm2197_vm12 = vcmp.gt.f32.partialorder %v1265_v48, 0.0 }
 0x12c   :  { %v4638_v60 = vpack.c.bf16 %v2704_v53, %v2704_v53  ;;  %v2832_v52 = vsel %vm2320_vm11, %v1756_v36, %v2576_v47  ;;  %v2453_v62 = vmul.f32 0.2, %v1265_v48  ;;  %vm2325_vm13 = vcmp.gt.f32.partialorder %v1777_v50, 0.0  ;;  %v6246_v0 = vpop.f32.mrf.mxu0  ;;  %v6248_v1 = vpop.f32.mrf.mxu1 }
 0x12d   :  { %v4766_v61 = vpack.c.bf16 %v2832_v52, %v2832_v52  ;;  %v2581_v63 = vmul.f32 0.2, %v1777_v50  ;;  %4115 = vst.msk [vmem:[%s7795_s3 + $0x26c] sm:$0xf] %vm3959_vm2, %v4768_v51  ;;  %vm2195_vm14 = vcmp.gt.f32.partialorder %v1257_v54, 0.0  ;;  %vm2323_vm15 = vcmp.gt.f32.partialorder %v1769_v55, 0.0 }
 0x12e   :  { %3985 = vst.msk [vmem:[%s7795_s3 + $0x64] sm:$0xf] %vm3959_vm2, %v4638_v60  ;;  %v2451_v58 = vmul.f32 0.2, %v1257_v54  ;;  %v2579_v59 = vmul.f32 0.2, %v1769_v55  ;;  %v2709_v4 = vsel %vm2197_vm12, %v1265_v48, %v2453_v62  ;;  %v1268_v6 = vadd.f32 %v6155_v2, %v5785_v46  ;;  %v6266_v8 = vpop.f32.mrf.mxu0  ;;  %v6268_v9 = vpop.f32.mrf.mxu1 }
 0x12f   :  { %4113 = vst.msk [vmem:[%s7795_s3 + $0x264] sm:$0xf] %vm3959_vm2, %v4766_v61  ;;  %v2837_v5 = vsel %vm2325_vm13, %v1777_v50, %v2581_v63  ;;  %v1780_v7 = vadd.f32 %v6157_v3, %v5785_v46  ;;  %v4643_v12 = vpack.c.bf16 %v2709_v4, %v2709_v4  ;;  %v1260_v3 = vadd.f32 %v5785_v46, %v6163_v10  ;;  %v6324_v50 = vld [vmem:[%s7794_s2] ss:$0 sm:$0xff] }
 0x130   :  { %v4771_v13 = vpack.c.bf16 %v2837_v5, %v2837_v5  ;;  %v2707_v15 = vsel %vm2195_vm14, %v1257_v54, %v2451_v58  ;;  %v2835_v16 = vsel %vm2323_vm15, %v1769_v55, %v2579_v59  ;;  %vm2198_vm0 = vcmp.gt.f32.partialorder %v1268_v6, 0.0  ;;  %v6270_v20 = vpop.f32.mrf.mxu0  ;;  %v6272_v14 = vpop.f32.mrf.mxu1 }
 0x131   :  { %v4641_v17 = vpack.c.bf16 %v2707_v15, %v2707_v15  ;;  %v4769_v18 = vpack.c.bf16 %v2835_v16, %v2835_v16  ;;  %v2454_v19 = vmul.f32 0.2, %v1268_v6  ;;  %3990 = vst.msk [vmem:[%s7795_s3 + $0x78] sm:$0xf] %vm3959_vm2, %v4643_v12  ;;  %vm2326_vm1 = vcmp.gt.f32.partialorder %v1780_v7, 0.0 }
 0x132   :  { %4118 = vst.msk [vmem:[%s7795_s3 + $0x278] sm:$0xf] %vm3959_vm2, %v4771_v13  ;;  %v2582_v2 = vmul.f32 0.2, %v1780_v7  ;;  %v1772_v22 = vadd.f32 %v5785_v46, %v6165_v11  ;;  %v1281_v25 = vadd.f32 %v6183_v21, %v5785_v46  ;;  %v1793_v10 = vadd.f32 %v6185_v24, %v5785_v46  ;;  %v6300_v28 = vpop.f32.mrf.mxu0  ;;  %v6302_v29 = vpop.f32.mrf.mxu1 }
 0x133   :  { %3988 = vst.msk [vmem:[%s7795_s3 + $0x70] sm:$0xf] %vm3959_vm2, %v4641_v17  ;;  %4116 = vst.msk [vmem:[%s7795_s3 + $0x270] sm:$0xf] %vm3959_vm2, %v4769_v18  ;;  %v2710_v23 = vsel %vm2198_vm0, %v1268_v6, %v2454_v19  ;;  %v1273_v11 = vadd.f32 %v5785_v46, %v6195_v26  ;;  %vm2196_vm3 = vcmp.gt.f32.partialorder %v1260_v3, 0.0  ;;  %v1785_v49 = vadd.f32 %v6324_v50, %v6197_v27 }
 0x134   :  { %v4644_v31 = vpack.c.bf16 %v2710_v23, %v2710_v23  ;;  %v2838_v32 = vsel %vm2326_vm1, %v1780_v7, %v2582_v2  ;;  %v2452_v33 = vmul.f32 0.2, %v1260_v3  ;;  %vm2324_vm4 = vcmp.gt.f32.partialorder %v1772_v22, 0.0  ;;  %v6304_v36 = vpop.f32.mrf.mxu0  ;;  %v6306_v21 = vpop.f32.mrf.mxu1 }
 0x135   :  { %v4772_v34 = vpack.c.bf16 %v2838_v32, %v2838_v32  ;;  %v2580_v35 = vmul.f32 0.2, %v1772_v22  ;;  %vm2201_vm5 = vcmp.gt.f32.partialorder %v1281_v25, 0.0  ;;  %v2457_v24 = vmul.f32 0.2, %v1281_v25 }
 0x136   :  { %3991 = vst.msk [vmem:[%s7795_s3 + $0x7c] sm:$0xf] %vm3959_vm2, %v4644_v31  ;;  %v2708_v46 = vsel %vm2196_vm3, %v1260_v3, %v2452_v33  ;;  %vm2329_vm6 = vcmp.gt.f32.partialorder %v1793_v10, 0.0  ;;  %v2585_v26 = vmul.f32 0.2, %v1793_v10  ;;  %vm2199_vm7 = vcmp.gt.f32.partialorder %v1273_v11, 0.0  ;;  %v6316_v30 = vpop.f32.mrf.mxu0  ;;  %v6318_v39 = vpop.f32.mrf.mxu1 }
 0x137   :  { %4119 = vst.msk [vmem:[%s7795_s3 + $0x27c] sm:$0xf] %vm3959_vm2, %v4772_v34  ;;  %v4642_v41 = vpack.c.bf16 %v2708_v46, %v2708_v46  ;;  %v2836_v42 = vsel %vm2324_vm4, %v1772_v22, %v2580_v35  ;;  %v2455_v43 = vmul.f32 0.2, %v1273_v11  ;;  %v2713_v47 = vsel %vm2201_vm5, %v1281_v25, %v2457_v24 }
 0x138   :  { %v4770_v44 = vpack.c.bf16 %v2836_v42, %v2836_v42  ;;  %v2841_v48 = vsel %vm2329_vm6, %v1793_v10, %v2585_v26  ;;  %v4647_v53 = vpack.c.bf16 %v2713_v47, %v2713_v47  ;;  %v1284_v51 = vadd.f32 %v6324_v50, %v6209_v37  ;;  %v6334_v60 = vpop.f32.mrf.mxu0  ;;  %v6336_v52 = vpop.f32.mrf.mxu1 }
 0x139   :  { %3989 = vst.msk [vmem:[%s7795_s3 + $0x74] sm:$0xf] %vm3959_vm2, %v4642_v41  ;;  %v4775_v54 = vpack.c.bf16 %v2841_v48, %v2841_v48  ;;  %v2711_v55 = vsel %vm2199_vm7, %v1273_v11, %v2455_v43  ;;  %vm2327_vm8 = vcmp.gt.f32.partialorder %v1785_v49, 0.0  ;;  %v2583_v61 = vmul.f32 0.2, %v1785_v49 }
 0x13a   :  { %4117 = vst.msk [vmem:[%s7795_s3 + $0x274] sm:$0xf] %vm3959_vm2, %v4770_v44  ;;  %v4645_v27 = vpack.c.bf16 %v2711_v55, %v2711_v55  ;;  %v1796_v62 = vadd.f32 %v6324_v50, %v6211_v38  ;;  %3994 = vst.msk [vmem:[%s7795_s3 + $0x88] sm:$0xf] %vm3959_vm2, %v4647_v53  ;;  %vm2202_vm9 = vcmp.gt.f32.partialorder %v1284_v51, 0.0  ;;  %v1276_v63 = vadd.f32 %v6324_v50, %v6218_v45  ;;  %v6356_v59 = vpop.f32.mrf.mxu0  ;;  %v6358_v38 = vpop.f32.mrf.mxu1 }
 0x13b   :  { %4122 = vst.msk [vmem:[%s7795_s3 + $0x288] sm:$0xf] %vm3959_vm2, %v4775_v54  ;;  %v2458_v37 = vmul.f32 0.2, %v1284_v51  ;;  %v1788_v58 = vadd.f32 %v6324_v50, %v6220_v40  ;;  %v2839_v4 = vsel %vm2327_vm8, %v1785_v49, %v2583_v61  ;;  %v1297_v6 = vadd.f32 %v6324_v50, %v6242_v56 }
 0x13c   :  { %3992 = vst.msk [vmem:[%s7795_s3 + $0x80] sm:$0xf] %vm3959_vm2, %v4645_v27  ;;  %vm2330_vm10 = vcmp.gt.f32.partialorder %v1796_v62, 0.0  ;;  %v2586_v5 = vmul.f32 0.2, %v1796_v62  ;;  %v4773_v7 = vpack.c.bf16 %v2839_v4, %v2839_v4  ;;  %vm2200_vm11 = vcmp.gt.f32.partialorder %v1276_v63, 0.0  ;;  %v6366_v40 = vpop.f32.mrf.mxu0  ;;  %v6368_v13 = vpop.f32.mrf.mxu1 }
 0x13d   :  { %v2714_v45 = vsel %vm2202_vm9, %v1284_v51, %v2458_v37  ;;  %v2456_v12 = vmul.f32 0.2, %v1276_v63  ;;  %vm2328_vm12 = vcmp.gt.f32.partialorder %v1788_v58, 0.0  ;;  %v2584_v17 = vmul.f32 0.2, %v1788_v58 }
 0x13e   :  { %v4648_v15 = vpack.c.bf16 %v2714_v45, %v2714_v45  ;;  %v2842_v16 = vsel %vm2330_vm10, %v1796_v62, %v2586_v5  ;;  %4120 = vst.msk [vmem:[%s7795_s3 + $0x280] sm:$0xf] %vm3959_vm2, %v4773_v7  ;;  %vm2205_vm13 = vcmp.gt.f32.partialorder %v1297_v6, 0.0  ;;  %v2461_v56 = vmul.f32 0.2, %v1297_v6  ;;  %v6374_v2 = vpop.f32.mrf.mxu0  ;;  %v6376_v3 = vpop.f32.mrf.mxu1 }
 0x13f   :  { %v4776_v18 = vpack.c.bf16 %v2842_v16, %v2842_v16  ;;  %v2712_v19 = vsel %vm2200_vm11, %v1276_v63, %v2456_v12  ;;  %v2840_v23 = vsel %vm2328_vm12, %v1788_v58, %v2584_v17  ;;  %v1809_v25 = vadd.f32 %v6324_v50, %v6244_v57 }
 0x140   :  { %3995 = vst.msk [vmem:[%s7795_s3 + $0x8c] sm:$0xf] %vm3959_vm2, %v4648_v15  ;;  %v4646_v22 = vpack.c.bf16 %v2712_v19, %v2712_v19  ;;  %v1289_v10 = vadd.f32 %v6324_v50, %v6246_v0  ;;  %v4774_v11 = vpack.c.bf16 %v2840_v23, %v2840_v23  ;;  %v2717_v31 = vsel %vm2205_vm13, %v1297_v6, %v2461_v56  ;;  %v6394_v34 = vpop.f32.mrf.mxu0  ;;  %v6396_v35 = vpop.f32.mrf.mxu1 }
 0x141   :  { %4123 = vst.msk [vmem:[%s7795_s3 + $0x28c] sm:$0xf] %vm3959_vm2, %v4776_v18  ;;  %v1801_v32 = vadd.f32 %v6324_v50, %v6248_v1  ;;  %v1300_v33 = vadd.f32 %v6324_v50, %v6266_v8  ;;  %v4651_v57 = vpack.c.bf16 %v2717_v31, %v2717_v31  ;;  %vm2333_vm14 = vcmp.gt.f32.partialorder %v1809_v25, 0.0 }
 0x142   :  { %3993 = vst.msk [vmem:[%s7795_s3 + $0x84] sm:$0xf] %vm3959_vm2, %v4646_v22  ;;  %v2589_v0 = vmul.f32 0.2, %v1809_v25  ;;  %vm2203_vm15 = vcmp.gt.f32.partialorder %v1289_v10, 0.0  ;;  %v6406_v46 = vpop.f32.mrf.mxu0  ;;  %v6408_v24 = vpop.f32.mrf.mxu1  ;;  %v1812_v42 = vadd.f32 %v6324_v50, %v6268_v9  ;;  %v1292_v43 = vadd.f32 %v6324_v50, %v6270_v20 }
 0x143   :  { %4121 = vst.msk [vmem:[%s7795_s3 + $0x284] sm:$0xf] %vm3959_vm2, %v4774_v11  ;;  %v2459_v1 = vmul.f32 0.2, %v1289_v10  ;;  %vm2331_vm0 = vcmp.gt.f32.partialorder %v1801_v32, 0.0  ;;  %vm2206_vm1 = vcmp.gt.f32.partialorder %v1300_v33, 0.0  ;;  %v1804_v49 = vadd.f32 %v6324_v50, %v6272_v14 }
 0x144   :  { %v2587_v8 = vmul.f32 0.2, %v1801_v32  ;;  %3998 = vst.msk [vmem:[%s7795_s3 + $0x98] sm:$0xf] %vm3959_vm2, %v4651_v57  ;;  %v2845_v26 = vsel %vm2333_vm14, %v1809_v25, %v2589_v0  ;;  %v2462_v41 = vmul.f32 0.2, %v1300_v33  ;;  %v6420_v53 = vpop.f32.mrf.mxu0  ;;  %v6422_v54 = vpop.f32.mrf.mxu1  ;;  %v1313_v63 = vadd.f32 %v6324_v50, %v6300_v28 }
 0x145   :  { %v4779_v44 = vpack.c.bf16 %v2845_v26, %v2845_v26  ;;  %v2715_v47 = vsel %vm2203_vm15, %v1289_v10, %v2459_v1  ;;  %vm2334_vm3 = vcmp.gt.f32.partialorder %v1812_v42, 0.0  ;;  %v2590_v20 = vmul.f32 0.2, %v1812_v42 }
 0x146   :  { %v2843_v48 = vsel %vm2331_vm0, %v1801_v32, %v2587_v8  ;;  %v4649_v55 = vpack.c.bf16 %v2715_v47, %v2715_v47  ;;  %v2718_v27 = vsel %vm2206_vm1, %v1300_v33, %v2462_v41  ;;  %vm2204_vm4 = vcmp.gt.f32.partialorder %v1292_v43, 0.0  ;;  %v6429_v62 = vpop.f32.mrf.mxu0  ;;  %v6431_v14 = vpop.f32.mrf.mxu1 }
 0x147   :  { %v4777_v51 = vpack.c.bf16 %v2843_v48, %v2843_v48  ;;  %4126 = vst.msk [vmem:[%s7795_s3 + $0x298] sm:$0xf] %vm3959_vm2, %v4779_v44  ;;  %v4652_v9 = vpack.c.bf16 %v2718_v27, %v2718_v27  ;;  %v2460_v61 = vmul.f32 0.2, %v1292_v43  ;;  %vm2332_vm5 = vcmp.gt.f32.partialorder %v1804_v49, 0.0 }
 0x148   :  { %3996 = vst.msk [vmem:[%s7795_s3 + $0x90] sm:$0xf] %vm3959_vm2, %v4649_v55  ;;  %v2588_v37 = vmul.f32 0.2, %v1804_v49  ;;  %v1825_v58 = vadd.f32 %v6324_v50, %v6302_v29  ;;  %v2846_v4 = vsel %vm2334_vm3, %v1812_v42, %v2590_v20  ;;  %v1305_v6 = vadd.f32 %v6324_v50, %v6304_v36  ;;  %v6453_v45 = vpop.f32.mrf.mxu0  ;;  %v6455_v12 = vpop.f32.mrf.mxu1 }
 0x149   :  { %4124 = vst.msk [vmem:[%s7795_s3 + $0x290] sm:$0xf] %vm3959_vm2, %v4777_v51  ;;  %3999 = vst.msk [vmem:[%s7795_s3 + $0x9c] sm:$0xf] %vm3959_vm2, %v4652_v9  ;;  %v2716_v5 = vsel %vm2204_vm4, %v1292_v43, %v2460_v61  ;;  %v1817_v7 = vadd.f32 %v6324_v50, %v6306_v21  ;;  %v4780_v28 = vpack.c.bf16 %v2846_v4, %v2846_v4  ;;  %vm2209_vm6 = vcmp.gt.f32.partialorder %v1313_v63, 0.0 }
 0x14a   :  { %v4650_v15 = vpack.c.bf16 %v2716_v5, %v2716_v5  ;;  %v2844_v29 = vsel %vm2332_vm5, %v1804_v49, %v2588_v37  ;;  %v2465_v17 = vmul.f32 0.2, %v1313_v63  ;;  %vm2337_vm7 = vcmp.gt.f32.partialorder %v1825_v58, 0.0  ;;  %v6457_v19 = vpop.f32.mrf.mxu0  ;;  %v6459_v56 = vpop.f32.mrf.mxu1 }
 0x14b   :  { %v4778_v16 = vpack.c.bf16 %v2844_v29, %v2844_v29  ;;  %v2593_v18 = vmul.f32 0.2, %v1825_v58  ;;  %4127 = vst.msk [vmem:[%s7795_s3 + $0x29c] sm:$0xf] %vm3959_vm2, %v4780_v28  ;;  %vm2207_vm8 = vcmp.gt.f32.partialorder %v1305_v6, 0.0  ;;  %vm2335_vm9 = vcmp.gt.f32.partialorder %v1817_v7, 0.0 }
 0x14c   :  { %3997 = vst.msk [vmem:[%s7795_s3 + $0x94] sm:$0xf] %vm3959_vm2, %v4650_v15  ;;  %v2463_v36 = vmul.f32 0.2, %v1305_v6  ;;  %v2591_v21 = vmul.f32 0.2, %v1817_v7  ;;  %v2721_v22 = vsel %vm2209_vm6, %v1313_v63, %v2465_v17  ;;  %v1316_v25 = vadd.f32 %v6324_v50, %v6316_v30  ;;  %v6477_v11 = vpop.f32.mrf.mxu0  ;;  %v6479_v31 = vpop.f32.mrf.mxu1 }
 0x14d   :  { %4125 = vst.msk [vmem:[%s7795_s3 + $0x294] sm:$0xf] %vm3959_vm2, %v4778_v16  ;;  %v2849_v23 = vsel %vm2337_vm7, %v1825_v58, %v2593_v18  ;;  %v1828_v10 = vadd.f32 %v6324_v50, %v6318_v39  ;;  %v4655_v32 = vpack.c.bf16 %v2721_v22, %v2721_v22  ;;  %v1308_v39 = vadd.f32 %v6324_v50, %v6334_v60 }
 0x14e   :  { %v4783_v33 = vpack.c.bf16 %v2849_v23, %v2849_v23  ;;  %v2719_v57 = vsel %vm2207_vm8, %v1305_v6, %v2463_v36  ;;  %v2847_v0 = vsel %vm2335_vm9, %v1817_v7, %v2591_v21  ;;  %vm2210_vm10 = vcmp.gt.f32.partialorder %v1316_v25, 0.0  ;;  %v6481_v41 = vpop.f32.mrf.mxu0  ;;  %v6483_v42 = vpop.f32.mrf.mxu1 }
 0x14f   :  { %v4653_v1 = vpack.c.bf16 %v2719_v57, %v2719_v57  ;;  %v4781_v8 = vpack.c.bf16 %v2847_v0, %v2847_v0  ;;  %v2466_v26 = vmul.f32 0.2, %v1316_v25  ;;  %4002 = vst.msk [vmem:[%s7795_s3 + $0xa8] sm:$0xf] %vm3959_vm2, %v4655_v32  ;;  %vm2338_vm11 = vcmp.gt.f32.partialorder %v1828_v10, 0.0 }
 0x150   :  { %4130 = vst.msk [vmem:[%s7795_s3 + $0x2a8] sm:$0xf] %vm3959_vm2, %v4783_v33  ;;  %v2594_v30 = vmul.f32 0.2, %v1828_v10  ;;  %v1820_v43 = vadd.f32 %v6324_v50, %v6336_v52  ;;  %v1329_v47 = vadd.f32 %v6324_v50, %v6356_v59  ;;  %v1841_v60 = vadd.f32 %v6324_v50, %v6358_v38  ;;  %v6511_v48 = vpop.f32.mrf.mxu0  ;;  %v6513_v49 = vpop.f32.mrf.mxu1 }
 0x151   :  { %4000 = vst.msk [vmem:[%s7795_s3 + $0xa0] sm:$0xf] %vm3959_vm2, %v4653_v1  ;;  %4128 = vst.msk [vmem:[%s7795_s3 + $0x2a0] sm:$0xf] %vm3959_vm2, %v4781_v8  ;;  %v2722_v44 = vsel %vm2210_vm10, %v1316_v25, %v2466_v26  ;;  %v1321_v52 = vadd.f32 %v6324_v50, %v6366_v40  ;;  %vm2208_vm12 = vcmp.gt.f32.partialorder %v1308_v39, 0.0  ;;  %v1833_v29 = vadd.f32 %v6324_v50, %v6368_v13 }
 0x152   :  { %v4656_v55 = vpack.c.bf16 %v2722_v44, %v2722_v44  ;;  %v2850_v51 = vsel %vm2338_vm11, %v1828_v10, %v2594_v30  ;;  %v2464_v27 = vmul.f32 0.2, %v1308_v39  ;;  %vm2336_vm13 = vcmp.gt.f32.partialorder %v1820_v43, 0.0  ;;  %v6515_v61 = vpop.f32.mrf.mxu0  ;;  %v6517_v59 = vpop.f32.mrf.mxu1 }
 0x153   :  { %v4784_v9 = vpack.c.bf16 %v2850_v51, %v2850_v51  ;;  %v2592_v20 = vmul.f32 0.2, %v1820_v43  ;;  %vm2213_vm14 = vcmp.gt.f32.partialorder %v1329_v47, 0.0  ;;  %v2469_v40 = vmul.f32 0.2, %v1329_v47 }
 0x154   :  { %4003 = vst.msk [vmem:[%s7795_s3 + $0xac] sm:$0xf] %vm3959_vm2, %v4656_v55  ;;  %v2720_v38 = vsel %vm2208_vm12, %v1308_v39, %v2464_v27  ;;  %vm2341_vm15 = vcmp.gt.f32.partialorder %v1841_v60, 0.0  ;;  %v2597_v37 = vmul.f32 0.2, %v1841_v60  ;;  %vm2211_vm0 = vcmp.gt.f32.partialorder %v1321_v52, 0.0  ;;  %v6527_v5 = vpop.f32.mrf.mxu0  ;;  %v6529_v6 = vpop.f32.mrf.mxu1 }
 0x155   :  { %4131 = vst.msk [vmem:[%s7795_s3 + $0x2ac] sm:$0xf] %vm3959_vm2, %v4784_v9  ;;  %v4654_v63 = vpack.c.bf16 %v2720_v38, %v2720_v38  ;;  %v2848_v58 = vsel %vm2336_vm13, %v1820_v43, %v2592_v20  ;;  %v2467_v4 = vmul.f32 0.2, %v1321_v52  ;;  %v2725_v28 = vsel %vm2213_vm14, %v1329_v47, %v2469_v40 }
 0x156   :  { %v4782_v7 = vpack.c.bf16 %v2848_v58, %v2848_v58  ;;  %v2853_v15 = vsel %vm2341_vm15, %v1841_v60, %v2597_v37  ;;  %v4659_v16 = vpack.c.bf16 %v2725_v28, %v2725_v28  ;;  %v1332_v36 = vadd.f32 %v6324_v50, %v6374_v2  ;;  %v6540_v21 = vpop.f32.mrf.mxu0  ;;  %v6542_v22 = vpop.f32.mrf.mxu1 }
 0x157   :  { %4001 = vst.msk [vmem:[%s7795_s3 + $0xa4] sm:$0xf] %vm3959_vm2, %v4654_v63  ;;  %v4787_v17 = vpack.c.bf16 %v2853_v15, %v2853_v15  ;;  %v2723_v18 = vsel %vm2211_vm0, %v1321_v52, %v2467_v4  ;;  %vm2339_vm1 = vcmp.gt.f32.partialorder %v1833_v29, 0.0  ;;  %v2595_v23 = vmul.f32 0.2, %v1833_v29 }
 0x158   :  { %4129 = vst.msk [vmem:[%s7795_s3 + $0x2a4] sm:$0xf] %vm3959_vm2, %v4782_v7  ;;  %v4657_v13 = vpack.c.bf16 %v2723_v18, %v2723_v18  ;;  %v1844_v25 = vadd.f32 %v6324_v50, %v6376_v3  ;;  %4006 = vst.msk [vmem:[%s7795_s3 + $0xb8] sm:$0xf] %vm3959_vm2, %v4659_v16  ;;  %vm2214_vm3 = vcmp.gt.f32.partialorder %v1332_v36, 0.0  ;;  %v1324_v10 = vadd.f32 %v6324_v50, %v6394_v34  ;;  %v6562_v33 = vpop.f32.mrf.mxu0  ;;  %v6564_v3 = vpop.f32.mrf.mxu1 }
 0x159   :  { %4134 = vst.msk [vmem:[%s7795_s3 + $0x2b8] sm:$0xf] %vm3959_vm2, %v4787_v17  ;;  %v2470_v2 = vmul.f32 0.2, %v1332_v36  ;;  %v1836_v32 = vadd.f32 %v6324_v50, %v6396_v35  ;;  %v2851_v57 = vsel %vm2339_vm1, %v1833_v29, %v2595_v23  ;;  %v1345_v1 = vadd.f32 %v6324_v50, %v6406_v46 }
 0x15a   :  { %4004 = vst.msk [vmem:[%s7795_s3 + $0xb0] sm:$0xf] %vm3959_vm2, %v4657_v13  ;;  %vm2342_vm4 = vcmp.gt.f32.partialorder %v1844_v25, 0.0  ;;  %v2598_v0 = vmul.f32 0.2, %v1844_v25  ;;  %v4785_v8 = vpack.c.bf16 %v2851_v57, %v2851_v57  ;;  %vm2212_vm5 = vcmp.gt.f32.partialorder %v1324_v10, 0.0  ;;  %v6572_v35 = vpop.f32.mrf.mxu0  ;;  %v6574_v30 = vpop.f32.mrf.mxu1 }
 0x15b   :  { %v2726_v34 = vsel %vm2214_vm3, %v1332_v36, %v2470_v2  ;;  %v2468_v26 = vmul.f32 0.2, %v1324_v10  ;;  %vm2340_vm6 = vcmp.gt.f32.partialorder %v1836_v32, 0.0  ;;  %v2596_v44 = vmul.f32 0.2, %v1836_v32 }
 0x15c   :  { %v4660_v39 = vpack.c.bf16 %v2726_v34, %v2726_v34  ;;  %v2854_v43 = vsel %vm2342_vm4, %v1844_v25, %v2598_v0  ;;  %4132 = vst.msk [vmem:[%s7795_s3 + $0x2b0] sm:$0xf] %vm3959_vm2, %v4785_v8  ;;  %vm2217_vm7 = vcmp.gt.f32.partialorder %v1345_v1, 0.0  ;;  %v2473_v46 = vmul.f32 0.2, %v1345_v1  ;;  %v6580_v52 = vpop.f32.mrf.mxu0  ;;  %v6582_v55 = vpop.f32.mrf.mxu1 }
 0x15d   :  { %v4788_v47 = vpack.c.bf16 %v2854_v43, %v2854_v43  ;;  %v2724_v60 = vsel %vm2212_vm5, %v1324_v10, %v2468_v26  ;;  %v2852_v27 = vsel %vm2340_vm6, %v1836_v32, %v2596_v44  ;;  %v1857_v9 = vadd.f32 %v6324_v50, %v6408_v24 }
 0x15e   :  { %4007 = vst.msk [vmem:[%s7795_s3 + $0xbc] sm:$0xf] %vm3959_vm2, %v4660_v39  ;;  %v4658_v51 = vpack.c.bf16 %v2724_v60, %v2724_v60  ;;  %v1337_v20 = vadd.f32 %v6324_v50, %v6420_v53  ;;  %v4786_v38 = vpack.c.bf16 %v2852_v27, %v2852_v27  ;;  %v2729_v40 = vsel %vm2217_vm7, %v1345_v1, %v2473_v46  ;;  %v6600_v58 = vpop.f32.mrf.mxu0  ;;  %v6602_v4 = vpop.f32.mrf.mxu1 }
 0x15f   :  { %4135 = vst.msk [vmem:[%s7795_s3 + $0x2bc] sm:$0xf] %vm3959_vm2, %v4788_v47  ;;  %v1849_v37 = vadd.f32 %v6324_v50, %v6422_v54  ;;  %v1348_v63 = vadd.f32 %v6324_v50, %v6429_v62  ;;  %v4663_v24 = vpack.c.bf16 %v2729_v40, %v2729_v40  ;;  %vm2345_vm8 = vcmp.gt.f32.partialorder %v1857_v9, 0.0 }
 0x160   :  { %4005 = vst.msk [vmem:[%s7795_s3 + $0xb4] sm:$0xf] %vm3959_vm2, %v4658_v51  ;;  %v2601_v53 = vmul.f32 0.2, %v1857_v9  ;;  %vm2215_vm9 = vcmp.gt.f32.partialorder %v1337_v20, 0.0  ;;  %v6612_v7 = vpop.f32.mrf.mxu0  ;;  %v6614_v28 = vpop.f32.mrf.mxu1  ;;  %v1860_v16 = vadd.f32 %v6324_v50, %v6431_v14  ;;  %v1340_v17 = vadd.f32 %v6324_v50, %v6453_v45 }
 0x161   :  { %4133 = vst.msk [vmem:[%s7795_s3 + $0x2b4] sm:$0xf] %vm3959_vm2, %v4786_v38  ;;  %v2471_v54 = vmul.f32 0.2, %v1337_v20  ;;  %vm2343_vm10 = vcmp.gt.f32.partialorder %v1849_v37, 0.0  ;;  %vm2218_vm11 = vcmp.gt.f32.partialorder %v1348_v63, 0.0  ;;  %v1852_v23 = vadd.f32 %v6324_v50, %v6455_v12 }
 0x162   :  { %v2599_v62 = vmul.f32 0.2, %v1849_v37  ;;  %4010 = vst.msk [vmem:[%s7795_s3 + $0xc8] sm:$0xf] %vm3959_vm2, %v4663_v24  ;;  %v2857_v15 = vsel %vm2345_vm8, %v1857_v9, %v2601_v53  ;;  %v2474_v29 = vmul.f32 0.2, %v1348_v63  ;;  %v6626_v25 = vpop.f32.mrf.mxu0  ;;  %v6628_v2 = vpop.f32.mrf.mxu1  ;;  %v1361_v34 = vadd.f32 %v6324_v50, %v6457_v19 }
 0x163   :  { %v4791_v18 = vpack.c.bf16 %v2857_v15, %v2857_v15  ;;  %v2727_v36 = vsel %vm2215_vm9, %v1337_v20, %v2471_v54  ;;  %vm2346_vm12 = vcmp.gt.f32.partialorder %v1860_v16, 0.0  ;;  %v2602_v45 = vmul.f32 0.2, %v1860_v16 }
 0x164   :  { %v2855_v13 = vsel %vm2343_vm10, %v1849_v37, %v2599_v62  ;;  %v4661_v10 = vpack.c.bf16 %v2727_v36, %v2727_v36  ;;  %v2730_v57 = vsel %vm2218_vm11, %v1348_v63, %v2474_v29  ;;  %vm2216_vm13 = vcmp.gt.f32.partialorder %v1340_v17, 0.0  ;;  %v6635_v1 = vpop.f32.mrf.mxu0  ;;  %v6637_v12 = vpop.f32.mrf.mxu1 }
 0x165   :  { %v4789_v32 = vpack.c.bf16 %v2855_v13, %v2855_v13  ;;  %4138 = vst.msk [vmem:[%s7795_s3 + $0x2c8] sm:$0xf] %vm3959_vm2, %v4791_v18  ;;  %v4664_v14 = vpack.c.bf16 %v2730_v57, %v2730_v57  ;;  %v2472_v0 = vmul.f32 0.2, %v1340_v17  ;;  %vm2344_vm14 = vcmp.gt.f32.partialorder %v1852_v23, 0.0 }
 0x166   :  { %4008 = vst.msk [vmem:[%s7795_s3 + $0xc0] sm:$0xf] %vm3959_vm2, %v4661_v10  ;;  %v2600_v8 = vmul.f32 0.2, %v1852_v23  ;;  %v1873_v26 = vadd.f32 %v6324_v50, %v6459_v56  ;;  %v2858_v39 = vsel %vm2346_vm12, %v1860_v16, %v2602_v45  ;;  %v1353_v44 = vadd.f32 %v6324_v50, %v6477_v11  ;;  %v6659_v60 = vpop.f32.mrf.mxu0  ;;  %v6661_v46 = vpop.f32.mrf.mxu1 }
 0x167   :  { %4136 = vst.msk [vmem:[%s7795_s3 + $0x2c0] sm:$0xf] %vm3959_vm2, %v4789_v32  ;;  %4011 = vst.msk [vmem:[%s7795_s3 + $0xcc] sm:$0xf] %vm3959_vm2, %v4664_v14  ;;  %v2728_v43 = vsel %vm2216_vm13, %v1340_v17, %v2472_v0  ;;  %v1865_v47 = vadd.f32 %v6324_v50, %v6479_v31  ;;  %v4792_v19 = vpack.c.bf16 %v2858_v39, %v2858_v39  ;;  %vm2221_vm15 = vcmp.gt.f32.partialorder %v1361_v34, 0.0 }
 0x168   :  { %v4662_v51 = vpack.c.bf16 %v2728_v43, %v2728_v43  ;;  %v2856_v56 = vsel %vm2344_vm14, %v1852_v23, %v2600_v8  ;;  %v2477_v9 = vmul.f32 0.2, %v1361_v34  ;;  %vm2349_vm0 = vcmp.gt.f32.partialorder %v1873_v26, 0.0  ;;  %v6663_v38 = vpop.f32.mrf.mxu0  ;;  %v6665_v40 = vpop.f32.mrf.mxu1 }
 0x169   :  { %v4790_v27 = vpack.c.bf16 %v2856_v56, %v2856_v56  ;;  %v2605_v20 = vmul.f32 0.2, %v1873_v26  ;;  %4139 = vst.msk [vmem:[%s7795_s3 + $0x2cc] sm:$0xf] %vm3959_vm2, %v4792_v19  ;;  %vm2219_vm1 = vcmp.gt.f32.partialorder %v1353_v44, 0.0  ;;  %vm2347_vm3 = vcmp.gt.f32.partialorder %v1865_v47, 0.0 }
 0x16a   :  { %4009 = vst.msk [vmem:[%s7795_s3 + $0xc4] sm:$0xf] %vm3959_vm2, %v4662_v51  ;;  %v2475_v11 = vmul.f32 0.2, %v1353_v44  ;;  %v2603_v31 = vmul.f32 0.2, %v1865_v47  ;;  %v2733_v37 = vsel %vm2221_vm15, %v1361_v34, %v2477_v9  ;;  %v1364_v24 = vadd.f32 %v6324_v50, %v6481_v41  ;;  %v6683_v54 = vpop.f32.mrf.mxu0  ;;  %v6685_v62 = vpop.f32.mrf.mxu1 }
 0x16b   :  { %4137 = vst.msk [vmem:[%s7795_s3 + $0x2c4] sm:$0xf] %vm3959_vm2, %v4790_v27  ;;  %v2861_v63 = vsel %vm2349_vm0, %v1873_v26, %v2605_v20  ;;  %v1876_v53 = vadd.f32 %v6324_v50, %v6483_v42  ;;  %v4667_v15 = vpack.c.bf16 %v2733_v37, %v2733_v37  ;;  %v1356_v42 = vadd.f32 %v6324_v50, %v6511_v48 }
 0x16c   :  { %v4795_v29 = vpack.c.bf16 %v2861_v63, %v2861_v63  ;;  %v2731_v16 = vsel %vm2219_vm1, %v1353_v44, %v2475_v11  ;;  %v2859_v17 = vsel %vm2347_vm3, %v1865_v47, %v2603_v31  ;;  %vm2222_vm4 = vcmp.gt.f32.partialorder %v1364_v24, 0.0  ;;  %v6687_v23 = vpop.f32.mrf.mxu0  ;;  %v6689_v10 = vpop.f32.mrf.mxu1 }
 0x16d   :  { %v4665_v18 = vpack.c.bf16 %v2731_v16, %v2731_v16  ;;  %v4793_v36 = vpack.c.bf16 %v2859_v17, %v2859_v17  ;;  %v2478_v13 = vmul.f32 0.2, %v1364_v24  ;;  %4014 = vst.msk [vmem:[%s7795_s3 + $0xd8] sm:$0xf] %vm3959_vm2, %v4667_v15  ;;  %vm2350_vm5 = vcmp.gt.f32.partialorder %v1876_v53, 0.0 }
 0x16e   :  { %4142 = vst.msk [vmem:[%s7795_s3 + $0x2d8] sm:$0xf] %vm3959_vm2, %v4795_v29  ;;  %v2606_v41 = vmul.f32 0.2, %v1876_v53  ;;  %v1868_v32 = vadd.f32 %v6324_v50, %v6513_v49  ;;  %v1377_v14 = vadd.f32 %v6324_v50, %v6515_v61  ;;  %v1889_v48 = vadd.f32 %v6324_v50, %v6517_v59  ;;  %v6717_v45 = vpop.f32.mrf.mxu0  ;;  %v6719_v0 = vpop.f32.mrf.mxu1 }
 0x16f   :  { %4012 = vst.msk [vmem:[%s7795_s3 + $0xd0] sm:$0xf] %vm3959_vm2, %v4665_v18  ;;  %4140 = vst.msk [vmem:[%s7795_s3 + $0x2d0] sm:$0xf] %vm3959_vm2, %v4793_v36  ;;  %v2734_v57 = vsel %vm2222_vm4, %v1364_v24, %v2478_v13  ;;  %v1369_v49 = vadd.f32 %v6324_v50, %v6527_v5  ;;  %vm2220_vm6 = vcmp.gt.f32.partialorder %v1356_v42, 0.0  ;;  %v1881_v37 = vadd.f32 %v6324_v50, %v6529_v6 }
 0x170   :  { %v4668_v8 = vpack.c.bf16 %v2734_v57, %v2734_v57  ;;  %v2862_v34 = vsel %vm2350_vm5, %v1876_v53, %v2606_v41  ;;  %v2476_v26 = vmul.f32 0.2, %v1356_v42  ;;  %vm2348_vm7 = vcmp.gt.f32.partialorder %v1868_v32, 0.0  ;;  %v6721_v44 = vpop.f32.mrf.mxu0  ;;  %v6723_v61 = vpop.f32.mrf.mxu1 }
 0x171   :  { %v4796_v39 = vpack.c.bf16 %v2862_v34, %v2862_v34  ;;  %v2604_v43 = vmul.f32 0.2, %v1868_v32  ;;  %vm2225_vm8 = vcmp.gt.f32.partialorder %v1377_v14, 0.0  ;;  %v2481_v5 = vmul.f32 0.2, %v1377_v14 }
 0x172   :  { %4015 = vst.msk [vmem:[%s7795_s3 + $0xdc] sm:$0xf] %vm3959_vm2, %v4668_v8  ;;  %v2732_v59 = vsel %vm2220_vm6, %v1356_v42, %v2476_v26  ;;  %vm2353_vm9 = vcmp.gt.f32.partialorder %v1889_v48, 0.0  ;;  %v2609_v47 = vmul.f32 0.2, %v1889_v48  ;;  %vm2223_vm10 = vcmp.gt.f32.partialorder %v1369_v49, 0.0  ;;  %v6733_v27 = vpop.f32.mrf.mxu0  ;;  %v6735_v9 = vpop.f32.mrf.mxu1 }
 0x173   :  { %4143 = vst.msk [vmem:[%s7795_s3 + $0x2dc] sm:$0xf] %vm3959_vm2, %v4796_v39  ;;  %v4666_v19 = vpack.c.bf16 %v2732_v59, %v2732_v59  ;;  %v2860_v51 = vsel %vm2348_vm7, %v1868_v32, %v2604_v43  ;;  %v2479_v56 = vmul.f32 0.2, %v1369_v49  ;;  %v2737_v11 = vsel %vm2225_vm8, %v1377_v14, %v2481_v5 }
 0x174   :  { %v4794_v20 = vpack.c.bf16 %v2860_v51, %v2860_v51  ;;  %v2865_v31 = vsel %vm2353_vm9, %v1889_v48, %v2609_v47  ;;  %v4671_v63 = vpack.c.bf16 %v2737_v11, %v2737_v11  ;;  %v1380_v15 = vadd.f32 %v6324_v50, %v6540_v21  ;;  %v6746_v29 = vpop.f32.mrf.mxu0  ;;  %v6748_v16 = vpop.f32.mrf.mxu1 }
 0x175   :  { %4013 = vst.msk [vmem:[%s7795_s3 + $0xd4] sm:$0xf] %vm3959_vm2, %v4666_v19  ;;  %v4799_v24 = vpack.c.bf16 %v2865_v31, %v2865_v31  ;;  %v2735_v53 = vsel %vm2223_vm10, %v1369_v49, %v2479_v56  ;;  %vm2351_vm11 = vcmp.gt.f32.partialorder %v1881_v37, 0.0  ;;  %v2607_v17 = vmul.f32 0.2, %v1881_v37 }
 0x176   :  { %4141 = vst.msk [vmem:[%s7795_s3 + $0x2d4] sm:$0xf] %vm3959_vm2, %v4794_v20  ;;  %v4669_v6 = vpack.c.bf16 %v2735_v53, %v2735_v53  ;;  %v1892_v18 = vadd.f32 %v6324_v50, %v6542_v22  ;;  %4018 = vst.msk [vmem:[%s7795_s3 + $0xe8] sm:$0xf] %vm3959_vm2, %v4671_v63  ;;  %vm2226_vm12 = vcmp.gt.f32.partialorder %v1380_v15, 0.0  ;;  %v1372_v36 = vadd.f32 %v6324_v50, %v6562_v33  ;;  %v6768_v41 = vpop.f32.mrf.mxu0  ;;  %v6770_v22 = vpop.f32.mrf.mxu1 }
 0x177   :  { %4146 = vst.msk [vmem:[%s7795_s3 + $0x2e8] sm:$0xf] %vm3959_vm2, %v4799_v24  ;;  %v2482_v21 = vmul.f32 0.2, %v1380_v15  ;;  %v1884_v13 = vadd.f32 %v6324_v50, %v6564_v3  ;;  %v2863_v42 = vsel %vm2351_vm11, %v1881_v37, %v2607_v17  ;;  %v1393_v57 = vadd.f32 %v6324_v50, %v6572_v35 }
 0x178   :  { %4016 = vst.msk [vmem:[%s7795_s3 + $0xe0] sm:$0xf] %vm3959_vm2, %v4669_v6  ;;  %vm2354_vm13 = vcmp.gt.f32.partialorder %v1892_v18, 0.0  ;;  %v2610_v32 = vmul.f32 0.2, %v1892_v18  ;;  %v4797_v14 = vpack.c.bf16 %v2863_v42, %v2863_v42  ;;  %vm2224_vm14 = vcmp.gt.f32.partialorder %v1372_v36, 0.0  ;;  %v6778_v3 = vpop.f32.mrf.mxu0  ;;  %v6780_v49 = vpop.f32.mrf.mxu1 }
 0x179   :  { %v2738_v33 = vsel %vm2226_vm12, %v1380_v15, %v2482_v21  ;;  %v2480_v48 = vmul.f32 0.2, %v1372_v36  ;;  %vm2352_vm15 = vcmp.gt.f32.partialorder %v1884_v13, 0.0  ;;  %v2608_v26 = vmul.f32 0.2, %v1884_v13 }
 0x17a   :  { %v4672_v8 = vpack.c.bf16 %v2738_v33, %v2738_v33  ;;  %v2866_v34 = vsel %vm2354_vm13, %v1892_v18, %v2610_v32  ;;  %4144 = vst.msk [vmem:[%s7795_s3 + $0x2e0] sm:$0xf] %vm3959_vm2, %v4797_v14  ;;  %vm2229_vm0 = vcmp.gt.f32.partialorder %v1393_v57, 0.0  ;;  %v2485_v35 = vmul.f32 0.2, %v1393_v57  ;;  %v6786_v59 = vpop.f32.mrf.mxu0  ;;  %v6788_v5 = vpop.f32.mrf.mxu1 }
 0x17b   :  { %v4800_v39 = vpack.c.bf16 %v2866_v34, %v2866_v34  ;;  %v2736_v43 = vsel %vm2224_vm14, %v1372_v36, %v2480_v48  ;;  %v2864_v19 = vsel %vm2352_vm15, %v1884_v13, %v2608_v26  ;;  %v1905_v51 = vadd.f32 %v6324_v50, %v6574_v30 }
 0x17c   :  { %4019 = vst.msk [vmem:[%s7795_s3 + $0xec] sm:$0xf] %vm3959_vm2, %v4672_v8  ;;  %v4670_v47 = vpack.c.bf16 %v2736_v43, %v2736_v43  ;;  %v1385_v56 = vadd.f32 %v6324_v50, %v6580_v52  ;;  %v4798_v20 = vpack.c.bf16 %v2864_v19, %v2864_v19  ;;  %v2741_v11 = vsel %vm2229_vm0, %v1393_v57, %v2485_v35  ;;  %v6806_v63 = vpop.f32.mrf.mxu0  ;;  %v6808_v24 = vpop.f32.mrf.mxu1 }
 0x17d   :  { %4147 = vst.msk [vmem:[%s7795_s3 + $0x2ec] sm:$0xf] %vm3959_vm2, %v4800_v39  ;;  %v1897_v31 = vadd.f32 %v6324_v50, %v6582_v55  ;;  %v1396_v37 = vadd.f32 %v6324_v50, %v6600_v58  ;;  %v4675_v30 = vpack.c.bf16 %v2741_v11, %v2741_v11  ;;  %vm2357_vm1 = vcmp.gt.f32.partialorder %v1905_v51, 0.0 }
 0x17e   :  { %4017 = vst.msk [vmem:[%s7795_s3 + $0xe4] sm:$0xf] %vm3959_vm2, %v4670_v47  ;;  %v2613_v52 = vmul.f32 0.2, %v1905_v51  ;;  %vm2227_vm3 = vcmp.gt.f32.partialorder %v1385_v56, 0.0  ;;  %v6818_v53 = vpop.f32.mrf.mxu0  ;;  %v6820_v15 = vpop.f32.mrf.mxu1  ;;  %v1908_v18 = vadd.f32 %v6324_v50, %v6602_v4  ;;  %v1388_v21 = vadd.f32 %v6324_v50, %v6612_v7 }
 0x17f   :  { %4145 = vst.msk [vmem:[%s7795_s3 + $0x2e4] sm:$0xf] %vm3959_vm2, %v4798_v20  ;;  %v2483_v55 = vmul.f32 0.2, %v1385_v56  ;;  %vm2355_vm4 = vcmp.gt.f32.partialorder %v1897_v31, 0.0  ;;  %vm2230_vm5 = vcmp.gt.f32.partialorder %v1396_v37, 0.0  ;;  %v1900_v32 = vadd.f32 %v6324_v50, %v6614_v28 }
 0x180   :  { %v2611_v58 = vmul.f32 0.2, %v1897_v31  ;;  %4022 = vst.msk [vmem:[%s7795_s3 + $0xf8] sm:$0xf] %vm3959_vm2, %v4675_v30  ;;  %v2869_v6 = vsel %vm2357_vm1, %v1905_v51, %v2613_v52  ;;  %v2486_v17 = vmul.f32 0.2, %v1396_v37  ;;  %v6832_v57 = vpop.f32.mrf.mxu0  ;;  %v6834_v14 = vpop.f32.mrf.mxu1  ;;  %v1409_v43 = vadd.f32 %v6324_v50, %v6626_v25 }
 0x181   :  { %v4803_v36 = vpack.c.bf16 %v2869_v6, %v2869_v6  ;;  %v2739_v13 = vsel %vm2227_vm3, %v1385_v56, %v2483_v55  ;;  %vm2358_vm6 = vcmp.gt.f32.partialorder %v1908_v18, 0.0  ;;  %v2614_v7 = vmul.f32 0.2, %v1908_v18 }
 0x182   :  { %v2867_v42 = vsel %vm2355_vm4, %v1897_v31, %v2611_v58  ;;  %v4673_v33 = vpack.c.bf16 %v2739_v13, %v2739_v13  ;;  %v2742_v8 = vsel %vm2230_vm5, %v1396_v37, %v2486_v17  ;;  %vm2228_vm7 = vcmp.gt.f32.partialorder %v1388_v21, 0.0  ;;  %v6841_v26 = vpop.f32.mrf.mxu0  ;;  %v6843_v28 = vpop.f32.mrf.mxu1 }
 0x183   :  { %v4801_v48 = vpack.c.bf16 %v2867_v42, %v2867_v42  ;;  %4150 = vst.msk [vmem:[%s7795_s3 + $0x2f8] sm:$0xf] %vm3959_vm2, %v4803_v36  ;;  %v4676_v4 = vpack.c.bf16 %v2742_v8, %v2742_v8  ;;  %v2484_v34 = vmul.f32 0.2, %v1388_v21  ;;  %vm2356_vm8 = vcmp.gt.f32.partialorder %v1900_v32, 0.0 }
 0x184   :  { %4020 = vst.msk [vmem:[%s7795_s3 + $0xf0] sm:$0xf] %vm3959_vm2, %v4673_v33  ;;  %v2612_v39 = vmul.f32 0.2, %v1900_v32  ;;  %v1921_v35 = vadd.f32 %v6324_v50, %v6628_v2  ;;  %v2870_v47 = vsel %vm2358_vm6, %v1908_v18, %v2614_v7  ;;  %v1401_v51 = vadd.f32 %v6324_v50, %v6635_v1  ;;  %v6865_v20 = vpop.f32.mrf.mxu0  ;;  %v6867_v11 = vpop.f32.mrf.mxu1 }
 0x185   :  { %4148 = vst.msk [vmem:[%s7795_s3 + $0x2f0] sm:$0xf] %vm3959_vm2, %v4801_v48  ;;  %4023 = vst.msk [vmem:[%s7795_s3 + $0xfc] sm:$0xf] %vm3959_vm2, %v4676_v4  ;;  %v2740_v19 = vsel %vm2228_vm7, %v1388_v21, %v2484_v34  ;;  %v1913_v56 = vadd.f32 %v6324_v50, %v6637_v12  ;;  %v4804_v25 = vpack.c.bf16 %v2870_v47, %v2870_v47  ;;  %vm2233_vm9 = vcmp.gt.f32.partialorder %v1409_v43, 0.0 }
 0x186   :  { %v4674_v31 = vpack.c.bf16 %v2740_v19, %v2740_v19  ;;  %v2868_v2 = vsel %vm2356_vm8, %v1900_v32, %v2612_v39  ;;  %v2489_v30 = vmul.f32 0.2, %v1409_v43  ;;  %vm2361_vm10 = vcmp.gt.f32.partialorder %v1921_v35, 0.0  ;;  %v6869_v55 = vpop.f32.mrf.mxu0  ;;  %v6871_v58 = vpop.f32.mrf.mxu1 }
 0x187   :  { %v4802_v37 = vpack.c.bf16 %v2868_v2, %v2868_v2  ;;  %v2617_v52 = vmul.f32 0.2, %v1921_v35  ;;  %4151 = vst.msk [vmem:[%s7795_s3 + $0x2fc] sm:$0xf] %vm3959_vm2, %v4804_v25  ;;  %vm2231_vm11 = vcmp.gt.f32.partialorder %v1401_v51, 0.0  ;;  %vm2359_vm12 = vcmp.gt.f32.partialorder %v1913_v56, 0.0 }
 0x188   :  { %4021 = vst.msk [vmem:[%s7795_s3 + $0xf4] sm:$0xf] %vm3959_vm2, %v4674_v31  ;;  %v2487_v1 = vmul.f32 0.2, %v1401_v51  ;;  %v2615_v12 = vmul.f32 0.2, %v1913_v56  ;;  %v2745_v6 = vsel %vm2233_vm9, %v1409_v43, %v2489_v30  ;;  %v1412_v18 = vadd.f32 %v6324_v50, %v6659_v60  ;;  %v6889_v36 = vpop.f32.mrf.mxu0  ;;  %v6891_v13 = vpop.f32.mrf.mxu1 }
 0x189   :  { %4149 = vst.msk [vmem:[%s7795_s3 + $0x2f4] sm:$0xf] %vm3959_vm2, %v4802_v37  ;;  %v2873_v17 = vsel %vm2361_vm10, %v1921_v35, %v2617_v52  ;;  %v1924_v21 = vadd.f32 %v6324_v50, %v6661_v46  ;;  %v4679_v42 = vpack.c.bf16 %v2745_v6, %v2745_v6  ;;  %v1404_v46 = vadd.f32 %v6324_v50, %v6663_v38 }
 0x18a   :  { %v4807_v32 = vpack.c.bf16 %v2873_v17, %v2873_v17  ;;  %v2743_v33 = vsel %vm2231_vm11, %v1401_v51, %v2487_v1  ;;  %v2871_v48 = vsel %vm2359_vm12, %v1913_v56, %v2615_v12  ;;  %vm2234_vm13 = vcmp.gt.f32.partialorder %v1412_v18, 0.0  ;;  %v6893_v34 = vpop.f32.mrf.mxu0  ;;  %v6895_v39 = vpop.f32.mrf.mxu1 }
 0x18b   :  { %v4677_v8 = vpack.c.bf16 %v2743_v33, %v2743_v33  ;;  %v4805_v4 = vpack.c.bf16 %v2871_v48, %v2871_v48  ;;  %v2490_v7 = vmul.f32 0.2, %v1412_v18  ;;  %4026 = vst.msk [vmem:[%s7795_s3 + $0x108] sm:$0xf] %vm3959_vm2, %v4679_v42  ;;  %vm2362_vm14 = vcmp.gt.f32.partialorder %v1924_v21, 0.0 }
 0x18c   :  { %4154 = vst.msk [vmem:[%s7795_s3 + $0x308] sm:$0xf] %vm3959_vm2, %v4807_v32  ;;  %v2618_v60 = vmul.f32 0.2, %v1924_v21  ;;  %v1916_v43 = vadd.f32 %v6324_v50, %v6665_v40  ;;  %v1425_v47 = vadd.f32 %v6324_v50, %v6683_v54  ;;  %v1937_v38 = vadd.f32 %v6324_v50, %v6685_v62  ;;  %v6923_v19 = vpop.f32.mrf.mxu0  ;;  %v6925_v51 = vpop.f32.mrf.mxu1  ;;  %v6947_v32 = vld [vmem:[%s7794_s2] ss:$0 sm:$0xff] }
 0x18d   :  { %4024 = vst.msk [vmem:[%s7795_s3 + $0x100] sm:$0xf] %vm3959_vm2, %v4677_v8  ;;  %4152 = vst.msk [vmem:[%s7795_s3 + $0x300] sm:$0xf] %vm3959_vm2, %v4805_v4  ;;  %v2746_v35 = vsel %vm2234_vm13, %v1412_v18, %v2490_v7  ;;  %v1417_v40 = vadd.f32 %v6324_v50, %v6687_v23  ;;  %vm2232_vm15 = vcmp.gt.f32.partialorder %v1404_v46, 0.0  ;;  %v1929_v33 = vadd.f32 %v6947_v32, %v6689_v10 }
 0x18e   :  { %v4680_v56 = vpack.c.bf16 %v2746_v35, %v2746_v35  ;;  %v2874_v25 = vsel %vm2362_vm14, %v1924_v21, %v2618_v60  ;;  %v2488_v31 = vmul.f32 0.2, %v1404_v46  ;;  %vm2360_vm0 = vcmp.gt.f32.partialorder %v1916_v43, 0.0  ;;  %v6927_v30 = vpop.f32.mrf.mxu0  ;;  %v6929_v54 = vpop.f32.mrf.mxu1 }
 0x18f   :  { %v4808_v2 = vpack.c.bf16 %v2874_v25, %v2874_v25  ;;  %v2616_v37 = vmul.f32 0.2, %v1916_v43  ;;  %vm2237_vm1 = vcmp.gt.f32.partialorder %v1425_v47, 0.0  ;;  %v2493_v62 = vmul.f32 0.2, %v1425_v47 }
 0x190   :  { %4027 = vst.msk [vmem:[%s7795_s3 + $0x10c] sm:$0xf] %vm3959_vm2, %v4680_v56  ;;  %v2744_v50 = vsel %vm2232_vm15, %v1404_v46, %v2488_v31  ;;  %vm2365_vm3 = vcmp.gt.f32.partialorder %v1937_v38, 0.0  ;;  %v2621_v23 = vmul.f32 0.2, %v1937_v38  ;;  %vm2235_vm4 = vcmp.gt.f32.partialorder %v1417_v40, 0.0  ;;  %v6939_v6 = vpop.f32.mrf.mxu0  ;;  %v6941_v17 = vpop.f32.mrf.mxu1 }
 0x191   :  { %4155 = vst.msk [vmem:[%s7795_s3 + $0x30c] sm:$0xf] %vm3959_vm2, %v4808_v2  ;;  %v4678_v52 = vpack.c.bf16 %v2744_v50, %v2744_v50  ;;  %v2872_v1 = vsel %vm2360_vm0, %v1916_v43, %v2616_v37  ;;  %v2491_v12 = vmul.f32 0.2, %v1417_v40  ;;  %v2749_v21 = vsel %vm2237_vm1, %v1425_v47, %v2493_v62 }
 0x192   :  { %v4806_v18 = vpack.c.bf16 %v2872_v1, %v2872_v1  ;;  %v2877_v42 = vsel %vm2365_vm3, %v1937_v38, %v2621_v23  ;;  %v4683_v48 = vpack.c.bf16 %v2749_v21, %v2749_v21  ;;  %v1428_v7 = vadd.f32 %v6947_v32, %v6717_v45  ;;  %v6957_v60 = vpop.f32.mrf.mxu0  ;;  %v6959_v46 = vpop.f32.mrf.mxu1 }
 0x193   :  { %4025 = vst.msk [vmem:[%s7795_s3 + $0x104] sm:$0xf] %vm3959_vm2, %v4678_v52  ;;  %v4811_v8 = vpack.c.bf16 %v2877_v42, %v2877_v42  ;;  %v2747_v4 = vsel %vm2235_vm4, %v1417_v40, %v2491_v12  ;;  %vm2363_vm5 = vcmp.gt.f32.partialorder %v1929_v33, 0.0  ;;  %v2619_v43 = vmul.f32 0.2, %v1929_v33 }
 0x194   :  { %4153 = vst.msk [vmem:[%s7795_s3 + $0x304] sm:$0xf] %vm3959_vm2, %v4806_v18  ;;  %v4681_v10 = vpack.c.bf16 %v2747_v4, %v2747_v4  ;;  %v1940_v35 = vadd.f32 %v6947_v32, %v6719_v0  ;;  %4030 = vst.msk [vmem:[%s7795_s3 + $0x118] sm:$0xf] %vm3959_vm2, %v4683_v48  ;;  %vm2238_vm6 = vcmp.gt.f32.partialorder %v1428_v7, 0.0  ;;  %v1420_v47 = vadd.f32 %v6947_v32, %v6721_v44  ;;  %v6979_v40 = vpop.f32.mrf.mxu0  ;;  %v6981_v0 = vpop.f32.mrf.mxu1 }
 0x195   :  { %4158 = vst.msk [vmem:[%s7795_s3 + $0x318] sm:$0xf] %vm3959_vm2, %v4811_v8  ;;  %v2494_v45 = vmul.f32 0.2, %v1428_v7  ;;  %v1932_v38 = vadd.f32 %v6947_v32, %v6723_v61  ;;  %v2875_v56 = vsel %vm2363_vm5, %v1929_v33, %v2619_v43  ;;  %v1441_v31 = vadd.f32 %v6947_v32, %v6733_v27 }
 0x196   :  { %4028 = vst.msk [vmem:[%s7795_s3 + $0x110] sm:$0xf] %vm3959_vm2, %v4681_v10  ;;  %vm2366_vm7 = vcmp.gt.f32.partialorder %v1940_v35, 0.0  ;;  %v2622_v25 = vmul.f32 0.2, %v1940_v35  ;;  %v4809_v2 = vpack.c.bf16 %v2875_v56, %v2875_v56  ;;  %vm2236_vm8 = vcmp.gt.f32.partialorder %v1420_v47, 0.0  ;;  %v6989_v61 = vpop.f32.mrf.mxu0  ;;  %v6991_v50 = vpop.f32.mrf.mxu1 }
 0x197   :  { %v2750_v44 = vsel %vm2238_vm6, %v1428_v7, %v2494_v45  ;;  %v2492_v37 = vmul.f32 0.2, %v1420_v47  ;;  %vm2364_vm9 = vcmp.gt.f32.partialorder %v1932_v38, 0.0  ;;  %v2620_v52 = vmul.f32 0.2, %v1932_v38 }
 0x198   :  { %v4684_v62 = vpack.c.bf16 %v2750_v44, %v2750_v44  ;;  %v2878_v23 = vsel %vm2366_vm7, %v1940_v35, %v2622_v25  ;;  %4156 = vst.msk [vmem:[%s7795_s3 + $0x310] sm:$0xf] %vm3959_vm2, %v4809_v2  ;;  %vm2241_vm10 = vcmp.gt.f32.partialorder %v1441_v31, 0.0  ;;  %v2497_v27 = vmul.f32 0.2, %v1441_v31  ;;  %v6997_v18 = vpop.f32.mrf.mxu0  ;;  %v6999_v21 = vpop.f32.mrf.mxu1 }
 0x199   :  { %v4812_v1 = vpack.c.bf16 %v2878_v23, %v2878_v23  ;;  %v2748_v12 = vsel %vm2236_vm8, %v1420_v47, %v2492_v37  ;;  %v2876_v33 = vsel %vm2364_vm9, %v1932_v38, %v2620_v52  ;;  %v1953_v48 = vadd.f32 %v6947_v32, %v6735_v9 }
 0x19a   :  { %4031 = vst.msk [vmem:[%s7795_s3 + $0x11c] sm:$0xf] %vm3959_vm2, %v4684_v62  ;;  %v4682_v42 = vpack.c.bf16 %v2748_v12, %v2748_v12  ;;  %v1433_v8 = vadd.f32 %v6947_v32, %v6746_v29  ;;  %v4810_v4 = vpack.c.bf16 %v2876_v33, %v2876_v33  ;;  %v2753_v7 = vsel %vm2241_vm10, %v1441_v31, %v2497_v27  ;;  %v7017_v35 = vpop.f32.mrf.mxu0  ;;  %v7019_v45 = vpop.f32.mrf.mxu1 }
 0x19b   :  { %4159 = vst.msk [vmem:[%s7795_s3 + $0x31c] sm:$0xf] %vm3959_vm2, %v4812_v1  ;;  %v1945_v10 = vadd.f32 %v6947_v32, %v6748_v16  ;;  %v1444_v43 = vadd.f32 %v6947_v32, %v6768_v41  ;;  %v4687_v9 = vpack.c.bf16 %v2753_v7, %v2753_v7  ;;  %vm2369_vm11 = vcmp.gt.f32.partialorder %v1953_v48, 0.0 }
 0x19c   :  { %4029 = vst.msk [vmem:[%s7795_s3 + $0x114] sm:$0xf] %vm3959_vm2, %v4682_v42  ;;  %v2625_v29 = vmul.f32 0.2, %v1953_v48  ;;  %vm2239_vm12 = vcmp.gt.f32.partialorder %v1433_v8, 0.0  ;;  %v7029_v47 = vpop.f32.mrf.mxu0  ;;  %v7031_v38 = vpop.f32.mrf.mxu1  ;;  %v1956_v31 = vadd.f32 %v6947_v32, %v6770_v22  ;;  %v1436_v2 = vadd.f32 %v6947_v32, %v6778_v3 }
 0x19d   :  { %4157 = vst.msk [vmem:[%s7795_s3 + $0x314] sm:$0xf] %vm3959_vm2, %v4810_v4  ;;  %v2495_v16 = vmul.f32 0.2, %v1433_v8  ;;  %vm2367_vm13 = vcmp.gt.f32.partialorder %v1945_v10, 0.0  ;;  %vm2242_vm14 = vcmp.gt.f32.partialorder %v1444_v43, 0.0  ;;  %v1948_v23 = vadd.f32 %v6947_v32, %v6780_v49 }
 0x19e   :  { %v2623_v41 = vmul.f32 0.2, %v1945_v10  ;;  %4034 = vst.msk [vmem:[%s7795_s3 + $0x128] sm:$0xf] %vm3959_vm2, %v4687_v9  ;;  %v2881_v56 = vsel %vm2369_vm11, %v1953_v48, %v2625_v29  ;;  %v2498_v25 = vmul.f32 0.2, %v1444_v43  ;;  %v7043_v52 = vpop.f32.mrf.mxu0  ;;  %v7045_v1 = vpop.f32.mrf.mxu1  ;;  %v1457_v4 = vadd.f32 %v6947_v32, %v6786_v59 }
 0x19f   :  { %v4815_v44 = vpack.c.bf16 %v2881_v56, %v2881_v56  ;;  %v2751_v37 = vsel %vm2239_vm12, %v1433_v8, %v2495_v16  ;;  %vm2370_vm15 = vcmp.gt.f32.partialorder %v1956_v31, 0.0  ;;  %v2626_v3 = vmul.f32 0.2, %v1956_v31 }
 0x1a0   :  { %v2879_v62 = vsel %vm2367_vm13, %v1945_v10, %v2623_v41  ;;  %v4685_v12 = vpack.c.bf16 %v2751_v37, %v2751_v37  ;;  %v2754_v42 = vsel %vm2242_vm14, %v1444_v43, %v2498_v25  ;;  %vm2240_vm0 = vcmp.gt.f32.partialorder %v1436_v2, 0.0  ;;  %v7052_v48 = vpop.f32.mrf.mxu0  ;;  %v7054_v49 = vpop.f32.mrf.mxu1 }
 0x1a1   :  { %v4813_v27 = vpack.c.bf16 %v2879_v62, %v2879_v62  ;;  %4162 = vst.msk [vmem:[%s7795_s3 + $0x328] sm:$0xf] %vm3959_vm2, %v4815_v44  ;;  %v4688_v22 = vpack.c.bf16 %v2754_v42, %v2754_v42  ;;  %v2496_v33 = vmul.f32 0.2, %v1436_v2  ;;  %vm2368_vm1 = vcmp.gt.f32.partialorder %v1948_v23, 0.0 }
 0x1a2   :  { %4032 = vst.msk [vmem:[%s7795_s3 + $0x120] sm:$0xf] %vm3959_vm2, %v4685_v12  ;;  %v2624_v8 = vmul.f32 0.2, %v1948_v23  ;;  %v1969_v7 = vadd.f32 %v6947_v32, %v6788_v5  ;;  %v2882_v10 = vsel %vm2370_vm15, %v1956_v31, %v2626_v3  ;;  %v1449_v9 = vadd.f32 %v6947_v32, %v6806_v63  ;;  %v7076_v16 = vpop.f32.mrf.mxu0  ;;  %v7078_v41 = vpop.f32.mrf.mxu1 }
 0x1a3   :  { %4160 = vst.msk [vmem:[%s7795_s3 + $0x320] sm:$0xf] %vm3959_vm2, %v4813_v27  ;;  %4035 = vst.msk [vmem:[%s7795_s3 + $0x12c] sm:$0xf] %vm3959_vm2, %v4688_v22  ;;  %v2752_v43 = vsel %vm2240_vm0, %v1436_v2, %v2496_v33  ;;  %v1961_v29 = vadd.f32 %v6947_v32, %v6808_v24  ;;  %v4816_v59 = vpack.c.bf16 %v2882_v10, %v2882_v10  ;;  %vm2245_vm3 = vcmp.gt.f32.partialorder %v1457_v4, 0.0 }
 0x1a4   :  { %v4686_v56 = vpack.c.bf16 %v2752_v43, %v2752_v43  ;;  %v2880_v5 = vsel %vm2368_vm1, %v1948_v23, %v2624_v8  ;;  %v2501_v44 = vmul.f32 0.2, %v1457_v4  ;;  %vm2373_vm4 = vcmp.gt.f32.partialorder %v1969_v7, 0.0  ;;  %v7096_v12 = vpop.f32.mrf.mxu0  ;;  %v7098_v27 = vpop.f32.mrf.mxu1 }
 0x1a5   :  { %v4814_v25 = vpack.c.bf16 %v2880_v5, %v2880_v5  ;;  %v2629_v37 = vmul.f32 0.2, %v1969_v7  ;;  %4163 = vst.msk [vmem:[%s7795_s3 + $0x32c] sm:$0xf] %vm3959_vm2, %v4816_v59  ;;  %vm2243_vm5 = vcmp.gt.f32.partialorder %v1449_v9, 0.0  ;;  %vm2371_vm6 = vcmp.gt.f32.partialorder %v1961_v29, 0.0 }
 0x1a6   :  { %4033 = vst.msk [vmem:[%s7795_s3 + $0x124] sm:$0xf] %vm3959_vm2, %v4686_v56  ;;  %v2499_v63 = vmul.f32 0.2, %v1449_v9  ;;  %v2627_v24 = vmul.f32 0.2, %v1961_v29  ;;  %v2757_v31 = vsel %vm2245_vm3, %v1457_v4, %v2501_v44  ;;  %v1460_v62 = vadd.f32 %v6947_v32, %v6818_v53  ;;  %v7128_v59 = vpop.f32.mrf.mxu1 }
 0x1a7   :  { %4161 = vst.msk [vmem:[%s7795_s3 + $0x324] sm:$0xf] %vm3959_vm2, %v4814_v25  ;;  %v2885_v2 = vsel %vm2373_vm4, %v1969_v7, %v2629_v37  ;;  %v1972_v23 = vadd.f32 %v6947_v32, %v6820_v15  ;;  %v4691_v42 = vpack.c.bf16 %v2757_v31, %v2757_v31  ;;  %v1452_v15 = vadd.f32 %v6947_v32, %v6832_v57 }
 0x1a8   :  { %v4819_v22 = vpack.c.bf16 %v2885_v2, %v2885_v2  ;;  %v2755_v3 = vsel %vm2243_vm5, %v1449_v9, %v2499_v63  ;;  %v2883_v33 = vsel %vm2371_vm6, %v1961_v29, %v2627_v24  ;;  %vm2246_vm7 = vcmp.gt.f32.partialorder %v1460_v62, 0.0  ;;  %v7126_v29 = vpop.f32.mrf.mxu0 }
 0x1a9   :  { %v4689_v8 = vpack.c.bf16 %v2755_v3, %v2755_v3  ;;  %v4817_v10 = vpack.c.bf16 %v2883_v33, %v2883_v33  ;;  %v2502_v43 = vmul.f32 0.2, %v1460_v62  ;;  %4038 = vst.msk [vmem:[%s7795_s3 + $0x138] sm:$0xf] %vm3959_vm2, %v4691_v42  ;;  %vm2374_vm8 = vcmp.gt.f32.partialorder %v1972_v23, 0.0 }
 0x1aa   :  { %4166 = vst.msk [vmem:[%s7795_s3 + $0x338] sm:$0xf] %vm3959_vm2, %v4819_v22  ;;  %v2630_v53 = vmul.f32 0.2, %v1972_v23  ;;  %v1964_v4 = vadd.f32 %v6947_v32, %v6834_v14  ;;  %v1473_v9 = vadd.f32 %v6947_v32, %v6841_v26  ;;  %v1985_v57 = vadd.f32 %v6947_v32, %v6843_v28  ;;  %v7138_v2 = vpop.f32.mrf.mxu0 }
 0x1ab   :  { %4036 = vst.msk [vmem:[%s7795_s3 + $0x130] sm:$0xf] %vm3959_vm2, %v4689_v8  ;;  %4164 = vst.msk [vmem:[%s7795_s3 + $0x330] sm:$0xf] %vm3959_vm2, %v4817_v10  ;;  %v2758_v7 = vsel %vm2246_vm7, %v1460_v62, %v2502_v43  ;;  %v1465_v14 = vadd.f32 %v6947_v32, %v6865_v20  ;;  %vm2244_vm9 = vcmp.gt.f32.partialorder %v1452_v15, 0.0  ;;  %v7140_v62 = vpop.f32.mrf.mxu1  ;;  %v1977_v3 = vadd.f32 %v6947_v32, %v6867_v11 }
 0x1ac   :  { %v4692_v56 = vpack.c.bf16 %v2758_v7, %v2758_v7  ;;  %v2886_v5 = vsel %vm2374_vm8, %v1972_v23, %v2630_v53  ;;  %v2500_v25 = vmul.f32 0.2, %v1452_v15  ;;  %vm2372_vm10 = vcmp.gt.f32.partialorder %v1964_v4, 0.0 }
 0x1ad   :  { %v4820_v44 = vpack.c.bf16 %v2886_v5, %v2886_v5  ;;  %v2628_v37 = vmul.f32 0.2, %v1964_v4  ;;  %vm2249_vm11 = vcmp.gt.f32.partialorder %v1473_v9, 0.0  ;;  %v2505_v28 = vmul.f32 0.2, %v1473_v9 }
 0x1ae   :  { %4039 = vst.msk [vmem:[%s7795_s3 + $0x13c] sm:$0xf] %vm3959_vm2, %v4692_v56  ;;  %v2756_v26 = vsel %vm2244_vm9, %v1452_v15, %v2500_v25  ;;  %vm2377_vm12 = vcmp.gt.f32.partialorder %v1985_v57, 0.0  ;;  %v2633_v20 = vmul.f32 0.2, %v1985_v57  ;;  %vm2247_vm13 = vcmp.gt.f32.partialorder %v1465_v14, 0.0 }
 0x1af   :  { %4167 = vst.msk [vmem:[%s7795_s3 + $0x33c] sm:$0xf] %vm3959_vm2, %v4820_v44  ;;  %v4690_v63 = vpack.c.bf16 %v2756_v26, %v2756_v26  ;;  %v2884_v24 = vsel %vm2372_vm10, %v1964_v4, %v2628_v37  ;;  %v2503_v31 = vmul.f32 0.2, %v1465_v14  ;;  %v2761_v42 = vsel %vm2249_vm11, %v1473_v9, %v2505_v28  ;;  %v7168_v9 = vpop.f32.mrf.mxu0 }
 0x1b0   :  { %v4818_v23 = vpack.c.bf16 %v2884_v24, %v2884_v24  ;;  %v2889_v22 = vsel %vm2377_vm12, %v1985_v57, %v2633_v20  ;;  %v4695_v33 = vpack.c.bf16 %v2761_v42, %v2761_v42  ;;  %v1476_v43 = vadd.f32 %v6947_v32, %v6869_v55 }
 0x1b1   :  { %4037 = vst.msk [vmem:[%s7795_s3 + $0x134] sm:$0xf] %vm3959_vm2, %v4690_v63  ;;  %v4823_v8 = vpack.c.bf16 %v2889_v22, %v2889_v22  ;;  %v2759_v10 = vsel %vm2247_vm13, %v1465_v14, %v2503_v31  ;;  %vm2375_vm14 = vcmp.gt.f32.partialorder %v1977_v3, 0.0  ;;  %v2631_v15 = vmul.f32 0.2, %v1977_v3  ;;  %v7182_v63 = vpop.f32.mrf.mxu0 }
 0x1b2   :  { %4165 = vst.msk [vmem:[%s7795_s3 + $0x334] sm:$0xf] %vm3959_vm2, %v4818_v23  ;;  %v4693_v53 = vpack.c.bf16 %v2759_v10, %v2759_v10  ;;  %v1988_v11 = vadd.f32 %v6947_v32, %v6871_v58  ;;  %4042 = vst.msk [vmem:[%s7795_s3 + $0x148] sm:$0xf] %vm3959_vm2, %v4695_v33  ;;  %vm2250_vm15 = vcmp.gt.f32.partialorder %v1476_v43, 0.0  ;;  %v1468_v4 = vadd.f32 %v6947_v32, %v6889_v36  ;;  %v7170_v58 = vpop.f32.mrf.mxu1 }
 0x1b3   :  { %4170 = vst.msk [vmem:[%s7795_s3 + $0x348] sm:$0xf] %vm3959_vm2, %v4823_v8  ;;  %v2506_v55 = vmul.f32 0.2, %v1476_v43  ;;  %v1980_v7 = vadd.f32 %v6947_v32, %v6891_v13  ;;  %v2887_v57 = vsel %vm2375_vm14, %v1977_v3, %v2631_v15  ;;  %v1489_v56 = vadd.f32 %v6947_v32, %v6893_v34 }
 0x1b4   :  { %4040 = vst.msk [vmem:[%s7795_s3 + $0x140] sm:$0xf] %vm3959_vm2, %v4693_v53  ;;  %vm2378_vm0 = vcmp.gt.f32.partialorder %v1988_v11, 0.0  ;;  %v2634_v14 = vmul.f32 0.2, %v1988_v11  ;;  %v4821_v5 = vpack.c.bf16 %v2887_v57, %v2887_v57  ;;  %vm2248_vm1 = vcmp.gt.f32.partialorder %v1468_v4, 0.0  ;;  %v7184_v34 = vpop.f32.mrf.mxu1 }
 0x1b5   :  { %v2762_v36 = vsel %vm2250_vm15, %v1476_v43, %v2506_v55  ;;  %v2504_v25 = vmul.f32 0.2, %v1468_v4  ;;  %vm2376_vm3 = vcmp.gt.f32.partialorder %v1980_v7, 0.0  ;;  %v2632_v37 = vmul.f32 0.2, %v1980_v7  ;;  %v7210_v43 = vpop.f32.mrf.mxu0 }
 0x1b6   :  { %v4696_v13 = vpack.c.bf16 %v2762_v36, %v2762_v36  ;;  %v2890_v44 = vsel %vm2378_vm0, %v1988_v11, %v2634_v14  ;;  %4168 = vst.msk [vmem:[%s7795_s3 + $0x340] sm:$0xf] %vm3959_vm2, %v4821_v5  ;;  %vm2253_vm4 = vcmp.gt.f32.partialorder %v1489_v56, 0.0  ;;  %v2509_v20 = vmul.f32 0.2, %v1489_v56 }
 0x1b7   :  { %v4824_v26 = vpack.c.bf16 %v2890_v44, %v2890_v44  ;;  %v2760_v28 = vsel %vm2248_vm1, %v1468_v4, %v2504_v25  ;;  %v2888_v31 = vsel %vm2376_vm3, %v1980_v7, %v2632_v37  ;;  %v2001_v23 = vadd.f32 %v6947_v32, %v6895_v39 }
 0x1b8   :  { %4043 = vst.msk [vmem:[%s7795_s3 + $0x14c] sm:$0xf] %vm3959_vm2, %v4696_v13  ;;  %v4694_v24 = vpack.c.bf16 %v2760_v28, %v2760_v28  ;;  %v1481_v42 = vadd.f32 %v6947_v32, %v6923_v19  ;;  %v4822_v22 = vpack.c.bf16 %v2888_v31, %v2888_v31  ;;  %v2765_v3 = vsel %vm2253_vm4, %v1489_v56, %v2509_v20 }
 0x1b9   :  { %4171 = vst.msk [vmem:[%s7795_s3 + $0x34c] sm:$0xf] %vm3959_vm2, %v4824_v26  ;;  %v1993_v33 = vadd.f32 %v6947_v32, %v6925_v51  ;;  %v1492_v8 = vadd.f32 %v6947_v32, %v6927_v30  ;;  %v4699_v39 = vpack.c.bf16 %v2765_v3, %v2765_v3  ;;  %vm2381_vm5 = vcmp.gt.f32.partialorder %v2001_v23, 0.0  ;;  %v7212_v30 = vpop.f32.mrf.mxu1 }
 0x1ba   :  { %4041 = vst.msk [vmem:[%s7795_s3 + $0x144] sm:$0xf] %vm3959_vm2, %v4694_v24  ;;  %v2637_v19 = vmul.f32 0.2, %v2001_v23  ;;  %vm2251_vm6 = vcmp.gt.f32.partialorder %v1481_v42, 0.0  ;;  %v2004_v11 = vadd.f32 %v6947_v32, %v6929_v54  ;;  %v1484_v55 = vadd.f32 %v6947_v32, %v6939_v6  ;;  %v7228_v6 = vpop.f32.mrf.mxu0 }
 0x1bb   :  { %4169 = vst.msk [vmem:[%s7795_s3 + $0x344] sm:$0xf] %vm3959_vm2, %v4822_v22  ;;  %v2507_v10 = vmul.f32 0.2, %v1481_v42  ;;  %vm2379_vm7 = vcmp.gt.f32.partialorder %v1993_v33, 0.0  ;;  %vm2254_vm8 = vcmp.gt.f32.partialorder %v1492_v8, 0.0  ;;  %v1996_v14 = vadd.f32 %v6947_v32, %v6941_v17  ;;  %v7230_v44 = vpop.f32.mrf.mxu1 }
 0x1bc   :  { %v2635_v51 = vmul.f32 0.2, %v1993_v33  ;;  %4046 = vst.msk [vmem:[%s7795_s3 + $0x158] sm:$0xf] %vm3959_vm2, %v4699_v39  ;;  %v2893_v53 = vsel %vm2381_vm5, %v2001_v23, %v2637_v19  ;;  %v2510_v15 = vmul.f32 0.2, %v1492_v8  ;;  %v1505_v37 = vadd.f32 %v6947_v32, %v6957_v60 }
 0x1bd   :  { %v4827_v4 = vpack.c.bf16 %v2893_v53, %v2893_v53  ;;  %v2763_v7 = vsel %vm2251_vm6, %v1481_v42, %v2507_v10  ;;  %vm2382_vm9 = vcmp.gt.f32.partialorder %v2004_v11, 0.0  ;;  %v2638_v54 = vmul.f32 0.2, %v2004_v11 }
 0x1be   :  { %v2891_v57 = vsel %vm2379_vm7, %v1993_v33, %v2635_v51  ;;  %v4697_v56 = vpack.c.bf16 %v2763_v7, %v2763_v7  ;;  %v2766_v36 = vsel %vm2254_vm8, %v1492_v8, %v2510_v15  ;;  %vm2252_vm10 = vcmp.gt.f32.partialorder %v1484_v55, 0.0  ;;  %v7252_v33 = vpop.f32.mrf.mxu0  ;;  %v7254_v8 = vpop.f32.mrf.mxu1 }
 0x1bf   :  { %v4825_v5 = vpack.c.bf16 %v2891_v57, %v2891_v57  ;;  %4174 = vst.msk [vmem:[%s7795_s3 + $0x358] sm:$0xf] %vm3959_vm2, %v4827_v4  ;;  %v4700_v25 = vpack.c.bf16 %v2766_v36, %v2766_v36  ;;  %v2508_v13 = vmul.f32 0.2, %v1484_v55  ;;  %vm2380_vm11 = vcmp.gt.f32.partialorder %v1996_v14, 0.0 }
 0x1c0   :  { %4044 = vst.msk [vmem:[%s7795_s3 + $0x150] sm:$0xf] %vm3959_vm2, %v4697_v56  ;;  %v2636_v17 = vmul.f32 0.2, %v1996_v14  ;;  %v2017_v26 = vadd.f32 %v6947_v32, %v6959_v46  ;;  %v2894_v28 = vsel %vm2382_vm9, %v2004_v11, %v2638_v54  ;;  %v1497_v24 = vadd.f32 %v6947_v32, %v6979_v40  ;;  %v7274_v56 = vpop.f32.mrf.mxu1 }
 0x1c1   :  { %4172 = vst.msk [vmem:[%s7795_s3 + $0x350] sm:$0xf] %vm3959_vm2, %v4825_v5  ;;  %4047 = vst.msk [vmem:[%s7795_s3 + $0x15c] sm:$0xf] %vm3959_vm2, %v4700_v25  ;;  %v2764_v20 = vsel %vm2252_vm10, %v1484_v55, %v2508_v13  ;;  %v2009_v31 = vadd.f32 %v6947_v32, %v6981_v0  ;;  %v4828_v23 = vpack.c.bf16 %v2894_v28, %v2894_v28  ;;  %vm2257_vm12 = vcmp.gt.f32.partialorder %v1505_v37, 0.0 }
 0x1c2   :  { %v4698_v42 = vpack.c.bf16 %v2764_v20, %v2764_v20  ;;  %v2892_v22 = vsel %vm2380_vm11, %v1996_v14, %v2636_v17  ;;  %v2513_v3 = vmul.f32 0.2, %v1505_v37  ;;  %vm2385_vm13 = vcmp.gt.f32.partialorder %v2017_v26, 0.0  ;;  %v7272_v14 = vpop.f32.mrf.mxu0  ;;  %v7304_v20 = vpop.f32.mrf.mxu1 }
 0x1c3   :  { %v4826_v60 = vpack.c.bf16 %v2892_v22, %v2892_v22  ;;  %v2641_v46 = vmul.f32 0.2, %v2017_v26  ;;  %4175 = vst.msk [vmem:[%s7795_s3 + $0x35c] sm:$0xf] %vm3959_vm2, %v4828_v23  ;;  %vm2255_vm14 = vcmp.gt.f32.partialorder %v1497_v24, 0.0  ;;  %vm2383_vm15 = vcmp.gt.f32.partialorder %v2009_v31, 0.0 }
 0x1c4   :  { %4045 = vst.msk [vmem:[%s7795_s3 + $0x154] sm:$0xf] %vm3959_vm2, %v4698_v42  ;;  %v2511_v40 = vmul.f32 0.2, %v1497_v24  ;;  %v2639_v0 = vmul.f32 0.2, %v2009_v31  ;;  %v2769_v39 = vsel %vm2257_vm12, %v1505_v37, %v2513_v3  ;;  %v1508_v10 = vadd.f32 %v6947_v32, %v6989_v61  ;;  %v7302_v28 = vpop.f32.mrf.mxu0 }
 0x1c5   :  { %4173 = vst.msk [vmem:[%s7795_s3 + $0x354] sm:$0xf] %vm3959_vm2, %v4826_v60  ;;  %v2897_v19 = vsel %vm2385_vm13, %v2017_v26, %v2641_v46  ;;  %v2020_v51 = vadd.f32 %v6947_v32, %v6991_v50  ;;  %v4703_v53 = vpack.c.bf16 %v2769_v39, %v2769_v39  ;;  %v1500_v50 = vadd.f32 %v6947_v32, %v6997_v18 }
 0x1c6   :  { %v4831_v15 = vpack.c.bf16 %v2897_v19, %v2897_v19  ;;  %v2767_v11 = vsel %vm2255_vm14, %v1497_v24, %v2511_v40  ;;  %v2895_v55 = vsel %vm2383_vm15, %v2009_v31, %v2639_v0  ;;  %vm2258_vm0 = vcmp.gt.f32.partialorder %v1508_v10, 0.0  ;;  %v7322_v19 = vpop.f32.mrf.mxu0 }
 0x1c7   :  { %v4701_v4 = vpack.c.bf16 %v2767_v11, %v2767_v11  ;;  %v4829_v7 = vpack.c.bf16 %v2895_v55, %v2895_v55  ;;  %v2514_v57 = vmul.f32 0.2, %v1508_v10  ;;  %4050 = vst.msk [vmem:[%s7795_s3 + $0x168] sm:$0xf] %vm3959_vm2, %v4703_v53  ;;  %vm2386_vm1 = vcmp.gt.f32.partialorder %v2020_v51, 0.0 }
 0x1c8   :  { %4178 = vst.msk [vmem:[%s7795_s3 + $0x368] sm:$0xf] %vm3959_vm2, %v4831_v15  ;;  %v2642_v61 = vmul.f32 0.2, %v2020_v51  ;;  %v2012_v5 = vadd.f32 %v6947_v32, %v6999_v21  ;;  %v1521_v25 = vadd.f32 %v6947_v32, %v7017_v35  ;;  %v2033_v18 = vadd.f32 %v6947_v32, %v7019_v45 }
 0x1c9   :  { %4048 = vst.msk [vmem:[%s7795_s3 + $0x160] sm:$0xf] %vm3959_vm2, %v4701_v4  ;;  %4176 = vst.msk [vmem:[%s7795_s3 + $0x360] sm:$0xf] %vm3959_vm2, %v4829_v7  ;;  %v2770_v36 = vsel %vm2258_vm0, %v1508_v10, %v2514_v57  ;;  %v1513_v21 = vadd.f32 %v6947_v32, %v7029_v47  ;;  %vm2256_vm3 = vcmp.gt.f32.partialorder %v1500_v50, 0.0  ;;  %v2025_v3 = vadd.f32 %v6947_v32, %v7031_v38  ;;  %v7324_v10 = vpop.f32.mrf.mxu1 }
 0x1ca   :  { %v4704_v54 = vpack.c.bf16 %v2770_v36, %v2770_v36  ;;  %v2898_v13 = vsel %vm2386_vm1, %v2020_v51, %v2642_v61  ;;  %v2512_v17 = vmul.f32 0.2, %v1500_v50  ;;  %vm2384_vm4 = vcmp.gt.f32.partialorder %v2012_v5, 0.0 }
 0x1cb   :  { %v4832_v37 = vpack.c.bf16 %v2898_v13, %v2898_v13  ;;  %v2640_v26 = vmul.f32 0.2, %v2012_v5  ;;  %vm2261_vm5 = vcmp.gt.f32.partialorder %v1521_v25, 0.0  ;;  %v2517_v45 = vmul.f32 0.2, %v1521_v25 }
 0x1cc   :  { %4051 = vst.msk [vmem:[%s7795_s3 + $0x16c] sm:$0xf] %vm3959_vm2, %v4704_v54  ;;  %v2768_v35 = vsel %vm2256_vm3, %v1500_v50, %v2512_v17  ;;  %vm2389_vm6 = vcmp.gt.f32.partialorder %v2033_v18, 0.0  ;;  %v2645_v47 = vmul.f32 0.2, %v2033_v18  ;;  %vm2259_vm7 = vcmp.gt.f32.partialorder %v1513_v21, 0.0  ;;  %v7350_v50 = vpop.f32.mrf.mxu0 }
 0x1cd   :  { %4179 = vst.msk [vmem:[%s7795_s3 + $0x36c] sm:$0xf] %vm3959_vm2, %v4832_v37  ;;  %v4702_v24 = vpack.c.bf16 %v2768_v35, %v2768_v35  ;;  %v2896_v31 = vsel %vm2384_vm4, %v2012_v5, %v2640_v26  ;;  %v2515_v23 = vmul.f32 0.2, %v1513_v21  ;;  %v2773_v22 = vsel %vm2261_vm5, %v1521_v25, %v2517_v45 }
 0x1ce   :  { %v4830_v42 = vpack.c.bf16 %v2896_v31, %v2896_v31  ;;  %v2901_v60 = vsel %vm2389_vm6, %v2033_v18, %v2645_v47  ;;  %v4707_v46 = vpack.c.bf16 %v2773_v22, %v2773_v22  ;;  %v1524_v39 = vadd.f32 %v6947_v32, %v7043_v52  ;;  %v7374_v47 = vpop.f32.mrf.mxu0 }
 0x1cf   :  { %4049 = vst.msk [vmem:[%s7795_s3 + $0x164] sm:$0xf] %vm3959_vm2, %v4702_v24  ;;  %v4835_v40 = vpack.c.bf16 %v2901_v60, %v2901_v60  ;;  %v2771_v0 = vsel %vm2259_vm7, %v1513_v21, %v2515_v23  ;;  %vm2387_vm8 = vcmp.gt.f32.partialorder %v2025_v3, 0.0  ;;  %v2643_v51 = vmul.f32 0.2, %v2025_v3 }
 0x1d0   :  { %4177 = vst.msk [vmem:[%s7795_s3 + $0x364] sm:$0xf] %vm3959_vm2, %v4830_v42  ;;  %v4705_v38 = vpack.c.bf16 %v2771_v0, %v2771_v0  ;;  %v2036_v53 = vadd.f32 %v6947_v32, %v7045_v1  ;;  %4054 = vst.msk [vmem:[%s7795_s3 + $0x178] sm:$0xf] %vm3959_vm2, %v4707_v46  ;;  %vm2262_vm9 = vcmp.gt.f32.partialorder %v1524_v39, 0.0  ;;  %v1516_v15 = vadd.f32 %v6947_v32, %v7052_v48  ;;  %v7352_v48 = vpop.f32.mrf.mxu1  ;;  %v7396_v0 = vpop.f32.mrf.mxu0 }
 0x1d1   :  { %4182 = vst.msk [vmem:[%s7795_s3 + $0x378] sm:$0xf] %vm3959_vm2, %v4835_v40  ;;  %v2518_v52 = vmul.f32 0.2, %v1524_v39  ;;  %v2028_v11 = vadd.f32 %v6947_v32, %v7054_v49  ;;  %v2899_v1 = vsel %vm2387_vm8, %v2025_v3, %v2643_v51  ;;  %v1537_v4 = vadd.f32 %v6947_v32, %v7076_v16 }
 0x1d2   :  { %4052 = vst.msk [vmem:[%s7795_s3 + $0x170] sm:$0xf] %vm3959_vm2, %v4705_v38  ;;  %vm2390_vm10 = vcmp.gt.f32.partialorder %v2036_v53, 0.0  ;;  %v2646_v55 = vmul.f32 0.2, %v2036_v53  ;;  %v4833_v7 = vpack.c.bf16 %v2899_v1, %v2899_v1  ;;  %vm2260_vm11 = vcmp.gt.f32.partialorder %v1516_v15, 0.0  ;;  %v7376_v24 = vpop.f32.mrf.mxu1 }
 0x1d3   :  { %v2774_v57 = vsel %vm2262_vm9, %v1524_v39, %v2518_v52  ;;  %v2516_v61 = vmul.f32 0.2, %v1516_v15  ;;  %vm2388_vm12 = vcmp.gt.f32.partialorder %v2028_v11, 0.0  ;;  %v2644_v36 = vmul.f32 0.2, %v2028_v11 }
 0x1d4   :  { %v4708_v49 = vpack.c.bf16 %v2774_v57, %v2774_v57  ;;  %v2902_v5 = vsel %vm2390_vm10, %v2036_v53, %v2646_v55  ;;  %4180 = vst.msk [vmem:[%s7795_s3 + $0x370] sm:$0xf] %vm3959_vm2, %v4833_v7  ;;  %vm2265_vm13 = vcmp.gt.f32.partialorder %v1537_v4, 0.0  ;;  %v2521_v16 = vmul.f32 0.2, %v1537_v4  ;;  %v7398_v39 = vpop.f32.mrf.mxu1  ;;  %v7424_v57 = vpop.f32.mrf.mxu0 }
 0x1d5   :  { %v4836_v25 = vpack.c.bf16 %v2902_v5, %v2902_v5  ;;  %v2772_v18 = vsel %vm2260_vm11, %v1516_v15, %v2516_v61  ;;  %v2900_v54 = vsel %vm2388_vm12, %v2028_v11, %v2644_v36  ;;  %v2049_v13 = vadd.f32 %v6947_v32, %v7078_v41 }
 0x1d6   :  { %4055 = vst.msk [vmem:[%s7795_s3 + $0x17c] sm:$0xf] %vm3959_vm2, %v4708_v49  ;;  %v4706_v21 = vpack.c.bf16 %v2772_v18, %v2772_v18  ;;  %v1529_v17 = vadd.f32 %v6947_v32, %v7096_v12  ;;  %v4834_v37 = vpack.c.bf16 %v2900_v54, %v2900_v54  ;;  %v2777_v26 = vsel %vm2265_vm13, %v1537_v4, %v2521_v16  ;;  %v7426_v61 = vpop.f32.mrf.mxu1 }
 0x1d7   :  { %4183 = vst.msk [vmem:[%s7795_s3 + $0x37c] sm:$0xf] %vm3959_vm2, %v4836_v25  ;;  %v2041_v35 = vadd.f32 %v6947_v32, %v7098_v27  ;;  %v1540_v45 = vadd.f32 %v6947_v32, %v7126_v29  ;;  %v4711_v41 = vpack.c.bf16 %v2777_v26, %v2777_v26  ;;  %vm2393_vm14 = vcmp.gt.f32.partialorder %v2049_v13, 0.0 }
 0x1d8   :  { %4053 = vst.msk [vmem:[%s7795_s3 + $0x174] sm:$0xf] %vm3959_vm2, %v4706_v21  ;;  %v2649_v12 = vmul.f32 0.2, %v2049_v13  ;;  %vm2263_vm15 = vcmp.gt.f32.partialorder %v1529_v17, 0.0  ;;  %v2052_v42 = vadd.f32 %v6947_v32, %v7128_v59  ;;  %v1532_v22 = vadd.f32 %v6947_v32, %v7138_v2 }
 0x1d9   :  { %4181 = vst.msk [vmem:[%s7795_s3 + $0x374] sm:$0xf] %vm3959_vm2, %v4834_v37  ;;  %v2519_v27 = vmul.f32 0.2, %v1529_v17  ;;  %vm2391_vm0 = vcmp.gt.f32.partialorder %v2041_v35, 0.0  ;;  %vm2266_vm1 = vcmp.gt.f32.partialorder %v1540_v45, 0.0  ;;  %v2044_v40 = vadd.f32 %v6947_v32, %v7140_v62 }
 0x1da   :  { %v2647_v29 = vmul.f32 0.2, %v2041_v35  ;;  %4058 = vst.msk [vmem:[%s7795_s3 + $0x188] sm:$0xf] %vm3959_vm2, %v4711_v41  ;;  %v2905_v31 = vsel %vm2393_vm14, %v2049_v13, %v2649_v12  ;;  %v2522_v23 = vmul.f32 0.2, %v1540_v45  ;;  %v1553_v15 = vadd.f32 %v6947_v32, %v7168_v9  ;;  %v7444_v13 = vpop.f32.mrf.mxu0 }
 0x1db   :  { %v4839_v60 = vpack.c.bf16 %v2905_v31, %v2905_v31  ;;  %v2775_v3 = vsel %vm2263_vm15, %v1529_v17, %v2519_v27  ;;  %vm2394_vm3 = vcmp.gt.f32.partialorder %v2052_v42, 0.0  ;;  %v2650_v2 = vmul.f32 0.2, %v2052_v42  ;;  %v7446_v17 = vpop.f32.mrf.mxu1 }
 0x1dc   :  { %v2903_v46 = vsel %vm2391_vm0, %v2041_v35, %v2647_v29  ;;  %v4709_v38 = vpack.c.bf16 %v2775_v3, %v2775_v3  ;;  %v2778_v53 = vsel %vm2266_vm1, %v1540_v45, %v2522_v23  ;;  %vm2264_vm4 = vcmp.gt.f32.partialorder %v1532_v22, 0.0 }
 0x1dd   :  { %v4837_v51 = vpack.c.bf16 %v2903_v46, %v2903_v46  ;;  %4186 = vst.msk [vmem:[%s7795_s3 + $0x388] sm:$0xf] %vm3959_vm2, %v4839_v60  ;;  %v4712_v59 = vpack.c.bf16 %v2778_v53, %v2778_v53  ;;  %v2520_v52 = vmul.f32 0.2, %v1532_v22  ;;  %vm2392_vm5 = vcmp.gt.f32.partialorder %v2044_v40, 0.0 }
 0x1de   :  { %4056 = vst.msk [vmem:[%s7795_s3 + $0x180] sm:$0xf] %vm3959_vm2, %v4709_v38  ;;  %v2648_v62 = vmul.f32 0.2, %v2044_v40  ;;  %v2065_v11 = vadd.f32 %v6947_v32, %v7170_v58  ;;  %v2906_v1 = vsel %vm2394_vm3, %v2052_v42, %v2650_v2  ;;  %v1545_v4 = vadd.f32 %v6947_v32, %v7182_v63  ;;  %v7474_v42 = vpop.f32.mrf.mxu0 }
 0x1df   :  { %4184 = vst.msk [vmem:[%s7795_s3 + $0x380] sm:$0xf] %vm3959_vm2, %v4837_v51  ;;  %4059 = vst.msk [vmem:[%s7795_s3 + $0x18c] sm:$0xf] %vm3959_vm2, %v4712_v59  ;;  %v2776_v55 = vsel %vm2264_vm4, %v1532_v22, %v2520_v52  ;;  %v2057_v7 = vadd.f32 %v6947_v32, %v7184_v34  ;;  %v4840_v9 = vpack.c.bf16 %v2906_v1, %v2906_v1  ;;  %vm2269_vm6 = vcmp.gt.f32.partialorder %v1553_v15, 0.0  ;;  %v7476_v22 = vpop.f32.mrf.mxu1 }
 0x1e0   :  { %v4710_v49 = vpack.c.bf16 %v2776_v55, %v2776_v55  ;;  %v2904_v58 = vsel %vm2392_vm5, %v2044_v40, %v2648_v62  ;;  %v2525_v36 = vmul.f32 0.2, %v1553_v15  ;;  %vm2397_vm7 = vcmp.gt.f32.partialorder %v2065_v11, 0.0  ;;  %v7486_v2 = vpop.f32.mrf.mxu0 }
 0x1e1   :  { %v4838_v5 = vpack.c.bf16 %v2904_v58, %v2904_v58  ;;  %v2653_v25 = vmul.f32 0.2, %v2065_v11  ;;  %4187 = vst.msk [vmem:[%s7795_s3 + $0x38c] sm:$0xf] %vm3959_vm2, %v4840_v9  ;;  %vm2267_vm8 = vcmp.gt.f32.partialorder %v1545_v4, 0.0  ;;  %vm2395_vm9 = vcmp.gt.f32.partialorder %v2057_v7, 0.0  ;;  %v7488_v52 = vpop.f32.mrf.mxu1 }
 0x1e2   :  { %4057 = vst.msk [vmem:[%s7795_s3 + $0x184] sm:$0xf] %vm3959_vm2, %v4710_v49  ;;  %v2523_v63 = vmul.f32 0.2, %v1545_v4  ;;  %v2651_v34 = vmul.f32 0.2, %v2057_v7  ;;  %v2781_v18 = vsel %vm2269_vm6, %v1553_v15, %v2525_v36  ;;  %v1556_v21 = vadd.f32 %v6947_v32, %v7210_v43 }
 0x1e3   :  { %4185 = vst.msk [vmem:[%s7795_s3 + $0x384] sm:$0xf] %vm3959_vm2, %v4838_v5  ;;  %v2909_v16 = vsel %vm2397_vm7, %v2065_v11, %v2653_v25  ;;  %v2068_v54 = vadd.f32 %v6947_v32, %v7212_v30  ;;  %v4715_v37 = vpack.c.bf16 %v2781_v18, %v2781_v18  ;;  %v1548_v30 = vadd.f32 %v6947_v32, %v7228_v6  ;;  %v7516_v25 = vpop.f32.mrf.mxu0 }
 0x1e4   :  { %v4843_v26 = vpack.c.bf16 %v2909_v16, %v2909_v16  ;;  %v2779_v35 = vsel %vm2267_vm8, %v1545_v4, %v2523_v63  ;;  %v2907_v45 = vsel %vm2395_vm9, %v2057_v7, %v2651_v34  ;;  %vm2270_vm10 = vcmp.gt.f32.partialorder %v1556_v21, 0.0 }
 0x1e5   :  { %v4713_v41 = vpack.c.bf16 %v2779_v35, %v2779_v35  ;;  %v4841_v12 = vpack.c.bf16 %v2907_v45, %v2907_v45  ;;  %v2526_v27 = vmul.f32 0.2, %v1556_v21  ;;  %4062 = vst.msk [vmem:[%s7795_s3 + $0x198] sm:$0xf] %vm3959_vm2, %v4715_v37  ;;  %vm2398_vm11 = vcmp.gt.f32.partialorder %v2068_v54, 0.0 }
 0x1e6   :  { %4190 = vst.msk [vmem:[%s7795_s3 + $0x398] sm:$0xf] %vm3959_vm2, %v4843_v26  ;;  %v2654_v43 = vmul.f32 0.2, %v2068_v54  ;;  %v2060_v29 = vadd.f32 %v6947_v32, %v7230_v44  ;;  %v1569_v23 = vadd.f32 %v6947_v32, %v7252_v33  ;;  %v2081_v6 = vadd.f32 %v6947_v32, %v7254_v8 }
 0x1e7   :  { %4060 = vst.msk [vmem:[%s7795_s3 + $0x190] sm:$0xf] %vm3959_vm2, %v4713_v41  ;;  %4188 = vst.msk [vmem:[%s7795_s3 + $0x390] sm:$0xf] %vm3959_vm2, %v4841_v12  ;;  %v2782_v31 = vsel %vm2270_vm10, %v1556_v21, %v2526_v27  ;;  %v1561_v44 = vadd.f32 %v6947_v32, %v7272_v14  ;;  %vm2268_vm12 = vcmp.gt.f32.partialorder %v1548_v30, 0.0  ;;  %v2073_v1 = vadd.f32 %v6947_v32, %v7274_v56  ;;  %v7530_v41 = vpop.f32.mrf.mxu0 }
 0x1e8   :  { %v4716_v60 = vpack.c.bf16 %v2782_v31, %v2782_v31  ;;  %v2910_v3 = vsel %vm2398_vm11, %v2068_v54, %v2654_v43  ;;  %v2524_v46 = vmul.f32 0.2, %v1548_v30  ;;  %vm2396_vm13 = vcmp.gt.f32.partialorder %v2060_v29, 0.0  ;;  %v7541_v27 = vld [vmem:[%s7794_s2] ss:$0 sm:$0xff] }
 0x1e9   :  { %v4844_v40 = vpack.c.bf16 %v2910_v3, %v2910_v3  ;;  %v2652_v38 = vmul.f32 0.2, %v2060_v29  ;;  %vm2273_vm14 = vcmp.gt.f32.partialorder %v1569_v23, 0.0  ;;  %v2529_v8 = vmul.f32 0.2, %v1569_v23 }
 0x1ea   :  { %4063 = vst.msk [vmem:[%s7795_s3 + $0x19c] sm:$0xf] %vm3959_vm2, %v4716_v60  ;;  %v2780_v33 = vsel %vm2268_vm12, %v1548_v30, %v2524_v46  ;;  %vm2401_vm15 = vcmp.gt.f32.partialorder %v2081_v6, 0.0  ;;  %v2657_v14 = vmul.f32 0.2, %v2081_v6  ;;  %vm2271_vm0 = vcmp.gt.f32.partialorder %v1561_v44, 0.0  ;;  %v7563_v60 = vpop.f32.mrf.mxu0 }
 0x1eb   :  { %4191 = vst.msk [vmem:[%s7795_s3 + $0x39c] sm:$0xf] %vm3959_vm2, %v4844_v40  ;;  %v4714_v51 = vpack.c.bf16 %v2780_v33, %v2780_v33  ;;  %v2908_v53 = vsel %vm2396_vm13, %v2060_v29, %v2652_v38  ;;  %v2527_v59 = vmul.f32 0.2, %v1561_v44  ;;  %v2785_v15 = vsel %vm2273_vm14, %v1569_v23, %v2529_v8 }
 0x1ec   :  { %v4842_v62 = vpack.c.bf16 %v2908_v53, %v2908_v53  ;;  %v2913_v11 = vsel %vm2401_vm15, %v2081_v6, %v2657_v14  ;;  %v4719_v55 = vpack.c.bf16 %v2785_v15, %v2785_v15  ;;  %v1572_v9 = vadd.f32 %v6947_v32, %v7302_v28 }
 0x1ed   :  { %4061 = vst.msk [vmem:[%s7795_s3 + $0x194] sm:$0xf] %vm3959_vm2, %v4714_v51  ;;  %v4847_v4 = vpack.c.bf16 %v2913_v11, %v2913_v11  ;;  %v2783_v7 = vsel %vm2271_vm0, %v1561_v44, %v2527_v59  ;;  %vm2399_vm1 = vcmp.gt.f32.partialorder %v2073_v1, 0.0  ;;  %v2655_v58 = vmul.f32 0.2, %v2073_v1 }
 0x1ee   :  { %4189 = vst.msk [vmem:[%s7795_s3 + $0x394] sm:$0xf] %vm3959_vm2, %v4842_v62  ;;  %v4717_v49 = vpack.c.bf16 %v2783_v7, %v2783_v7  ;;  %v2084_v56 = vadd.f32 %v6947_v32, %v7304_v20  ;;  %4066 = vst.msk [vmem:[%s7795_s3 + $0x1a8] sm:$0xf] %vm3959_vm2, %v4719_v55  ;;  %vm2274_vm3 = vcmp.gt.f32.partialorder %v1572_v9, 0.0  ;;  %v1564_v5 = vadd.f32 %v6947_v32, %v7322_v19  ;;  %v7518_v20 = vpop.f32.mrf.mxu1 }
 0x1ef   :  { %4194 = vst.msk [vmem:[%s7795_s3 + $0x3a8] sm:$0xf] %vm3959_vm2, %v4847_v4  ;;  %v2530_v28 = vmul.f32 0.2, %v1572_v9  ;;  %v2076_v36 = vadd.f32 %v6947_v32, %v7324_v10  ;;  %v2911_v63 = vsel %vm2399_vm1, %v2073_v1, %v2655_v58  ;;  %v1585_v18 = vadd.f32 %v6947_v32, %v7350_v50 }
 0x1f0   :  { %4064 = vst.msk [vmem:[%s7795_s3 + $0x1a0] sm:$0xf] %vm3959_vm2, %v4717_v49  ;;  %vm2402_vm4 = vcmp.gt.f32.partialorder %v2084_v56, 0.0  ;;  %v2658_v34 = vmul.f32 0.2, %v2084_v56  ;;  %v4845_v16 = vpack.c.bf16 %v2911_v63, %v2911_v63  ;;  %vm2272_vm5 = vcmp.gt.f32.partialorder %v1564_v5, 0.0  ;;  %v7532_v32 = vpop.f32.mrf.mxu1 }
 0x1f1   :  { %v2786_v19 = vsel %vm2274_vm3, %v1572_v9, %v2530_v28  ;;  %v2528_v21 = vmul.f32 0.2, %v1564_v5  ;;  %vm2400_vm6 = vcmp.gt.f32.partialorder %v2076_v36, 0.0  ;;  %v2656_v37 = vmul.f32 0.2, %v2076_v36 }
 0x1f2   :  { %v4720_v10 = vpack.c.bf16 %v2786_v19, %v2786_v19  ;;  %v2914_v54 = vsel %vm2402_vm4, %v2084_v56, %v2658_v34  ;;  %4192 = vst.msk [vmem:[%s7795_s3 + $0x3a0] sm:$0xf] %vm3959_vm2, %v4845_v16  ;;  %vm2277_vm7 = vcmp.gt.f32.partialorder %v1585_v18, 0.0  ;;  %v2533_v45 = vmul.f32 0.2, %v1585_v18 }
 0x1f3   :  { %v4848_v26 = vpack.c.bf16 %v2914_v54, %v2914_v54  ;;  %v2784_v35 = vsel %vm2272_vm5, %v1564_v5, %v2528_v21  ;;  %v2912_v12 = vsel %vm2400_vm6, %v2076_v36, %v2656_v37  ;;  %v2097_v43 = vadd.f32 %v7541_v27, %v7352_v48 }
 0x1f4   :  { %4067 = vst.msk [vmem:[%s7795_s3 + $0x1ac] sm:$0xf] %vm3959_vm2, %v4720_v10  ;;  %v4718_v50 = vpack.c.bf16 %v2784_v35, %v2784_v35  ;;  %v1577_v30 = vadd.f32 %v7541_v27, %v7374_v47  ;;  %v4846_v29 = vpack.c.bf16 %v2912_v12, %v2912_v12  ;;  %v2789_v31 = vsel %vm2277_vm7, %v1585_v18, %v2533_v45 }
 0x1f5   :  { %4195 = vst.msk [vmem:[%s7795_s3 + $0x3ac] sm:$0xf] %vm3959_vm2, %v4848_v26  ;;  %v2089_v23 = vadd.f32 %v7541_v27, %v7376_v24  ;;  %v1588_v6 = vadd.f32 %v7541_v27, %v7396_v0  ;;  %v4723_v48 = vpack.c.bf16 %v2789_v31, %v2789_v31  ;;  %vm2405_vm8 = vcmp.gt.f32.partialorder %v2097_v43, 0.0  ;;  %v7565_v0 = vpop.f32.mrf.mxu1 }
 0x1f6   :  { %4065 = vst.msk [vmem:[%s7795_s3 + $0x1a4] sm:$0xf] %vm3959_vm2, %v4718_v50  ;;  %v2661_v47 = vmul.f32 0.2, %v2097_v43  ;;  %vm2275_vm9 = vcmp.gt.f32.partialorder %v1577_v30, 0.0  ;;  %v2100_v40 = vadd.f32 %v7541_v27, %v7398_v39  ;;  %v1580_v38 = vadd.f32 %v7541_v27, %v7424_v57  ;;  %v7581_v57 = vpop.f32.mrf.mxu0 }
 0x1f7   :  { %4193 = vst.msk [vmem:[%s7795_s3 + $0x3a4] sm:$0xf] %vm3959_vm2, %v4846_v29  ;;  %v2531_v44 = vmul.f32 0.2, %v1577_v30  ;;  %vm2403_vm10 = vcmp.gt.f32.partialorder %v2089_v23, 0.0  ;;  %vm2278_vm11 = vcmp.gt.f32.partialorder %v1588_v6, 0.0  ;;  %v2092_v51 = vadd.f32 %v7541_v27, %v7426_v61  ;;  %v7583_v1 = vpop.f32.mrf.mxu1 }
 0x1f8   :  { %v2659_v24 = vmul.f32 0.2, %v2089_v23  ;;  %4070 = vst.msk [vmem:[%s7795_s3 + $0x1b8] sm:$0xf] %vm3959_vm2, %v4723_v48  ;;  %v2917_v3 = vsel %vm2405_vm8, %v2097_v43, %v2661_v47  ;;  %v2534_v46 = vmul.f32 0.2, %v1588_v6  ;;  %v1601_v55 = vadd.f32 %v7541_v27, %v7444_v13  ;;  %v7605_v63 = vpop.f32.mrf.mxu0 }
 0x1f9   :  { %v4851_v33 = vpack.c.bf16 %v2917_v3, %v2917_v3  ;;  %v2787_v8 = vsel %vm2275_vm9, %v1577_v30, %v2531_v44  ;;  %vm2406_vm12 = vcmp.gt.f32.partialorder %v2100_v40, 0.0  ;;  %v2662_v39 = vmul.f32 0.2, %v2100_v40  ;;  %v7607_v34 = vpop.f32.mrf.mxu1 }
 0x1fa   :  { %v2915_v14 = vsel %vm2403_vm10, %v2089_v23, %v2659_v24  ;;  %v4721_v53 = vpack.c.bf16 %v2787_v8, %v2787_v8  ;;  %v2790_v62 = vsel %vm2278_vm11, %v1588_v6, %v2534_v46  ;;  %vm2276_vm13 = vcmp.gt.f32.partialorder %v1580_v38, 0.0  ;;  %v5143_v12 = vpop.f32.mrf.mxu0 }
 0x1fb   :  { %v4849_v59 = vpack.c.bf16 %v2915_v14, %v2915_v14  ;;  %4198 = vst.msk [vmem:[%s7795_s3 + $0x3b8] sm:$0xf] %vm3959_vm2, %v4851_v33  ;;  %v4724_v15 = vpack.c.bf16 %v2790_v62, %v2790_v62  ;;  %v2532_v11 = vmul.f32 0.2, %v1580_v38  ;;  %vm2404_vm14 = vcmp.gt.f32.partialorder %v2092_v51, 0.0  ;;  %v7625_v43 = vpop.f32.mrf.mxu1 }
 0x1fc   :  { %4068 = vst.msk [vmem:[%s7795_s3 + $0x1b0] sm:$0xf] %vm3959_vm2, %v4721_v53  ;;  %v2660_v61 = vmul.f32 0.2, %v2092_v51  ;;  %v2113_v4 = vadd.f32 %v7541_v27, %v7446_v17  ;;  %v2918_v7 = vsel %vm2406_vm12, %v2100_v40, %v2662_v39  ;;  %v1593_v49 = vadd.f32 %v7541_v27, %v7474_v42  ;;  %v1624_v24 = vpop.f32.mrf.mxu0 }
 0x1fd   :  { %4196 = vst.msk [vmem:[%s7795_s3 + $0x3b0] sm:$0xf] %vm3959_vm2, %v4849_v59  ;;  %4071 = vst.msk [vmem:[%s7795_s3 + $0x1bc] sm:$0xf] %vm3959_vm2, %v4724_v15  ;;  %v2788_v9 = vsel %vm2276_vm13, %v1580_v38, %v2532_v11  ;;  %v2105_v58 = vadd.f32 %v7541_v27, %v7476_v22  ;;  %v4852_v56 = vpack.c.bf16 %v2918_v7, %v2918_v7  ;;  %vm2281_vm15 = vcmp.gt.f32.partialorder %v1601_v55, 0.0  ;;  %v2136_v3 = vpop.f32.mrf.mxu1 }
 0x1fe   :  { %v4722_v28 = vpack.c.bf16 %v2788_v9, %v2788_v9  ;;  %v2916_v5 = vsel %vm2404_vm14, %v2092_v51, %v2660_v61  ;;  %v2537_v36 = vmul.f32 0.2, %v1601_v55  ;;  %vm2409_vm0 = vcmp.gt.f32.partialorder %v2113_v4, 0.0  ;;  %v5144_v39 = vpop.f32.mrf.mxu0 }
 0x1ff   :  { %v4850_v13 = vpack.c.bf16 %v2916_v5, %v2916_v5  ;;  %v2665_v17 = vmul.f32 0.2, %v2113_v4  ;;  %4199 = vst.msk [vmem:[%s7795_s3 + $0x3bc] sm:$0xf] %vm3959_vm2, %v4852_v56  ;;  %vm2279_vm1 = vcmp.gt.f32.partialorder %v1593_v49, 0.0  ;;  %vm2407_vm3 = vcmp.gt.f32.partialorder %v2105_v58, 0.0  ;;  %v5272_v11 = vpop.f32.mrf.mxu1 }
 0x200   :  { %4069 = vst.msk [vmem:[%s7795_s3 + $0x1b4] sm:$0xf] %vm3959_vm2, %v4722_v28  ;;  %v2535_v42 = vmul.f32 0.2, %v1593_v49  ;;  %v2663_v22 = vmul.f32 0.2, %v2105_v58  ;;  %v2793_v18 = vsel %vm2281_vm15, %v1601_v55, %v2537_v36  ;;  %v1604_v19 = vadd.f32 %v7541_v27, %v7486_v2  ;;  %v1627_v5 = vpop.f32.mrf.mxu0 }
 0x201   :  { %4197 = vst.msk [vmem:[%s7795_s3 + $0x3b4] sm:$0xf] %vm3959_vm2, %v4850_v13  ;;  %v2921_v16 = vsel %vm2409_vm0, %v2113_v4, %v2665_v17  ;;  %v2116_v21 = vadd.f32 %v7541_v27, %v7488_v52  ;;  %v4727_v10 = vpack.c.bf16 %v2793_v18, %v2793_v18  ;;  %v1596_v52 = vadd.f32 %v7541_v27, %v7516_v25  ;;  %v2139_v13 = vpop.f32.mrf.mxu1 }
 0x202   :  { %v4855_v54 = vpack.c.bf16 %v2921_v16, %v2921_v16  ;;  %v2791_v37 = vsel %vm2279_vm1, %v1593_v49, %v2535_v42  ;;  %v2919_v26 = vsel %vm2407_vm3, %v2105_v58, %v2663_v22  ;;  %vm2282_vm4 = vcmp.gt.f32.partialorder %v1604_v19, 0.0 }
 0x203   :  { %v4725_v35 = vpack.c.bf16 %v2791_v37, %v2791_v37  ;;  %v4853_v45 = vpack.c.bf16 %v2919_v26, %v2919_v26  ;;  %v2538_v50 = vmul.f32 0.2, %v1604_v19  ;;  %4074 = vst.msk [vmem:[%s7795_s3 + $0x1c8] sm:$0xf] %vm3959_vm2, %v4727_v10  ;;  %vm2410_vm5 = vcmp.gt.f32.partialorder %v2116_v21, 0.0 }
 0x204   :  { %4202 = vst.msk [vmem:[%s7795_s3 + $0x3c8] sm:$0xf] %vm3959_vm2, %v4855_v54  ;;  %v2666_v2 = vmul.f32 0.2, %v2116_v21  ;;  %v2108_v30 = vadd.f32 %v7541_v27, %v7518_v20  ;;  %v1617_v31 = vadd.f32 %v7541_v27, %v7530_v41  ;;  %v2129_v25 = vadd.f32 %v7541_v27, %v7532_v32 }
 0x205   :  { %4072 = vst.msk [vmem:[%s7795_s3 + $0x1c0] sm:$0xf] %vm3959_vm2, %v4725_v35  ;;  %4200 = vst.msk [vmem:[%s7795_s3 + $0x3c0] sm:$0xf] %vm3959_vm2, %v4853_v45  ;;  %v2794_v29 = vsel %vm2282_vm4, %v1604_v19, %v2538_v50  ;;  %v1609_v20 = vadd.f32 %v7541_v27, %v7563_v60  ;;  %vm2280_vm6 = vcmp.gt.f32.partialorder %v1596_v52, 0.0  ;;  %v2121_v51 = vadd.f32 %v7541_v27, %v7565_v0  ;;  %v5147_v35 = vpop.f32.mrf.mxu0  ;;  %v5275_v45 = vpop.f32.mrf.mxu1 }
 0x206   :  { %v4728_v23 = vpack.c.bf16 %v2794_v29, %v2794_v29  ;;  %v2922_v6 = vsel %vm2410_vm5, %v2116_v21, %v2666_v2  ;;  %v2536_v48 = vmul.f32 0.2, %v1596_v52  ;;  %vm2408_vm7 = vcmp.gt.f32.partialorder %v2108_v30, 0.0 }
 0x207   :  { %v4856_v47 = vpack.c.bf16 %v2922_v6, %v2922_v6  ;;  %v2664_v44 = vmul.f32 0.2, %v2108_v30  ;;  %vm2285_vm8 = vcmp.gt.f32.partialorder %v1617_v31, 0.0  ;;  %v2541_v32 = vmul.f32 0.2, %v1617_v31 }
 0x208   :  { %4075 = vst.msk [vmem:[%s7795_s3 + $0x1cc] sm:$0xf] %vm3959_vm2, %v4728_v23  ;;  %v2792_v41 = vsel %vm2280_vm6, %v1596_v52, %v2536_v48  ;;  %vm2413_vm9 = vcmp.gt.f32.partialorder %v2129_v25, 0.0  ;;  %v2669_v46 = vmul.f32 0.2, %v2129_v25  ;;  %vm2283_vm10 = vcmp.gt.f32.partialorder %v1609_v20, 0.0  ;;  %v1640_v48 = vpop.f32.mrf.mxu0 }
 0x209   :  { %4203 = vst.msk [vmem:[%s7795_s3 + $0x3cc] sm:$0xf] %vm3959_vm2, %v4856_v47  ;;  %v4726_v60 = vpack.c.bf16 %v2792_v41, %v2792_v41  ;;  %v2920_v40 = vsel %vm2408_vm7, %v2108_v30, %v2664_v44  ;;  %v2539_v38 = vmul.f32 0.2, %v1609_v20  ;;  %v2797_v8 = vsel %vm2285_vm8, %v1617_v31, %v2541_v32  ;;  %v2152_v47 = vpop.f32.mrf.mxu1 }
 0x20a   :  { %v4854_v33 = vpack.c.bf16 %v2920_v40, %v2920_v40  ;;  %v2925_v14 = vsel %vm2413_vm9, %v2129_v25, %v2669_v46  ;;  %v4731_v53 = vpack.c.bf16 %v2797_v8, %v2797_v8  ;;  %v1620_v15 = vadd.f32 %v7541_v27, %v7581_v57 }
 0x20b   :  { %4073 = vst.msk [vmem:[%s7795_s3 + $0x1c4] sm:$0xf] %vm3959_vm2, %v4726_v60  ;;  %v4859_v59 = vpack.c.bf16 %v2925_v14, %v2925_v14  ;;  %v2795_v62 = vsel %vm2283_vm10, %v1609_v20, %v2539_v38  ;;  %vm2411_vm11 = vcmp.gt.f32.partialorder %v2121_v51, 0.0  ;;  %v2667_v0 = vmul.f32 0.2, %v2121_v51 }
 0x20c   :  { %4201 = vst.msk [vmem:[%s7795_s3 + $0x3c4] sm:$0xf] %vm3959_vm2, %v4854_v33  ;;  %v4729_v61 = vpack.c.bf16 %v2795_v62, %v2795_v62  ;;  %v2132_v55 = vadd.f32 %v7541_v27, %v7583_v1  ;;  %4078 = vst.msk [vmem:[%s7795_s3 + $0x1d8] sm:$0xf] %vm3959_vm2, %v4731_v53  ;;  %vm2286_vm12 = vcmp.gt.f32.partialorder %v1620_v15, 0.0  ;;  %v1612_v4 = vadd.f32 %v7541_v27, %v7605_v63  ;;  %v5148_v53 = vpop.f32.mrf.mxu0 }
 0x20d   :  { %4206 = vst.msk [vmem:[%s7795_s3 + $0x3d8] sm:$0xf] %vm3959_vm2, %v4859_v59  ;;  %v2542_v57 = vmul.f32 0.2, %v1620_v15  ;;  %v2124_v7 = vadd.f32 %v7541_v27, %v7607_v34  ;;  %v2923_v1 = vsel %vm2411_vm11, %v2121_v51, %v2667_v0  ;;  %v1633_v49 = vadd.f32 %v7541_v27, %v5143_v12  ;;  %v5276_v59 = vpop.f32.mrf.mxu1 }
 0x20e   :  { %4076 = vst.msk [vmem:[%s7795_s3 + $0x1d0] sm:$0xf] %vm3959_vm2, %v4729_v61  ;;  %vm2414_vm13 = vcmp.gt.f32.partialorder %v2132_v55, 0.0  ;;  %v2670_v9 = vmul.f32 0.2, %v2132_v55  ;;  %v4857_v58 = vpack.c.bf16 %v2923_v1, %v2923_v1  ;;  %vm2284_vm14 = vcmp.gt.f32.partialorder %v1612_v4, 0.0 }
 0x20f   :  { %v2798_v56 = vsel %vm2286_vm12, %v1620_v15, %v2542_v57  ;;  %v2540_v28 = vmul.f32 0.2, %v1612_v4  ;;  %vm2412_vm15 = vcmp.gt.f32.partialorder %v2124_v7, 0.0  ;;  %v2668_v63 = vmul.f32 0.2, %v2124_v7 }
 0x210   :  { %v4732_v36 = vpack.c.bf16 %v2798_v56, %v2798_v56  ;;  %v2926_v17 = vsel %vm2414_vm13, %v2132_v55, %v2670_v9  ;;  %4204 = vst.msk [vmem:[%s7795_s3 + $0x3d0] sm:$0xf] %vm3959_vm2, %v4857_v58  ;;  %vm2289_vm0 = vcmp.gt.f32.partialorder %v1633_v49, 0.0  ;;  %v2545_v22 = vmul.f32 0.2, %v1633_v49  ;;  %v2155_v58 = vpop.f32.mrf.mxu1 }
 0x211   :  { %v4860_v34 = vpack.c.bf16 %v2926_v17, %v2926_v17  ;;  %v2796_v42 = vsel %vm2284_vm14, %v1612_v4, %v2540_v28  ;;  %v2924_v16 = vsel %vm2412_vm15, %v2124_v7, %v2668_v63  ;;  %v2145_v19 = vadd.f32 %v7541_v27, %v7625_v43 }
 0x212   :  { %4079 = vst.msk [vmem:[%s7795_s3 + $0x1dc] sm:$0xf] %vm3959_vm2, %v4732_v36  ;;  %v4730_v18 = vpack.c.bf16 %v2796_v42, %v2796_v42  ;;  %v1625_v21 = vadd.f32 %v7541_v27, %v1624_v24  ;;  %v4858_v10 = vpack.c.bf16 %v2924_v16, %v2924_v16  ;;  %v2801_v54 = vsel %vm2289_vm0, %v1633_v49, %v2545_v22  ;;  %v1643_v49 = vpop.f32.mrf.mxu0 }
 0x213   :  { %4207 = vst.msk [vmem:[%s7795_s3 + $0x3dc] sm:$0xf] %vm3959_vm2, %v4860_v34  ;;  %v2137_v37 = vadd.f32 %v7541_v27, %v2136_v3  ;;  %v1636_v26 = vadd.f32 %v7541_v27, %v5144_v39  ;;  %v4735_v50 = vpack.c.bf16 %v2801_v54, %v2801_v54  ;;  %vm2417_vm1 = vcmp.gt.f32.partialorder %v2145_v19, 0.0 }
 0x214   :  { %4077 = vst.msk [vmem:[%s7795_s3 + $0x1d4] sm:$0xf] %vm3959_vm2, %v4730_v18  ;;  %v2673_v12 = vmul.f32 0.2, %v2145_v19  ;;  %vm2287_vm3 = vcmp.gt.f32.partialorder %v1625_v21, 0.0  ;;  %v2148_v29 = vadd.f32 %v7541_v27, %v5272_v11  ;;  %v1628_v31 = vadd.f32 %v7541_v27, %v1627_v5 }
 0x215   :  { %4205 = vst.msk [vmem:[%s7795_s3 + $0x3d4] sm:$0xf] %vm3959_vm2, %v4858_v10  ;;  %v2543_v43 = vmul.f32 0.2, %v1625_v21  ;;  %vm2415_vm4 = vcmp.gt.f32.partialorder %v2137_v37, 0.0  ;;  %vm2290_vm5 = vcmp.gt.f32.partialorder %v1636_v26, 0.0  ;;  %v2140_v6 = vadd.f32 %v7541_v27, %v2139_v13 }
 0x216   :  { %v2671_v2 = vmul.f32 0.2, %v2137_v37  ;;  %4082 = vst.msk [vmem:[%s7795_s3 + $0x1e8] sm:$0xf] %vm3959_vm2, %v4735_v50  ;;  %v2929_v52 = vsel %vm2417_vm1, %v2145_v19, %v2673_v12  ;;  %v2546_v30 = vmul.f32 0.2, %v1636_v26  ;;  %v1649_v40 = vadd.f32 %v7541_v27, %v5147_v35 }
 0x217   :  { %v4863_v25 = vpack.c.bf16 %v2929_v52, %v2929_v52  ;;  %v2799_v20 = vsel %vm2287_vm3, %v1625_v21, %v2543_v43  ;;  %vm2418_vm6 = vcmp.gt.f32.partialorder %v2148_v29, 0.0  ;;  %v2674_v32 = vmul.f32 0.2, %v2148_v29 }
 0x218   :  { %v2927_v23 = vsel %vm2415_vm4, %v2137_v37, %v2671_v2  ;;  %v4733_v44 = vpack.c.bf16 %v2799_v20, %v2799_v20  ;;  %v2802_v3 = vsel %vm2290_vm5, %v1636_v26, %v2546_v30  ;;  %vm2288_vm7 = vcmp.gt.f32.partialorder %v1628_v31, 0.0 }
 0x219   :  { %v4861_v24 = vpack.c.bf16 %v2927_v23, %v2927_v23  ;;  %4210 = vst.msk [vmem:[%s7795_s3 + $0x3e8] sm:$0xf] %vm3959_vm2, %v4863_v25  ;;  %v4736_v41 = vpack.c.bf16 %v2802_v3, %v2802_v3  ;;  %v2544_v46 = vmul.f32 0.2, %v1628_v31  ;;  %vm2416_vm8 = vcmp.gt.f32.partialorder %v2140_v6, 0.0 }
 0x21a   :  { %4080 = vst.msk [vmem:[%s7795_s3 + $0x1e0] sm:$0xf] %vm3959_vm2, %v4733_v44  ;;  %v2672_v60 = vmul.f32 0.2, %v2140_v6  ;;  %v2161_v38 = vadd.f32 %v7541_v27, %v5275_v45  ;;  %v2930_v33 = vsel %vm2418_vm6, %v2148_v29, %v2674_v32  ;;  %v1641_v14 = vadd.f32 %v7541_v27, %v1640_v48 }
 0x21b   :  { %4208 = vst.msk [vmem:[%s7795_s3 + $0x3e0] sm:$0xf] %vm3959_vm2, %v4861_v24  ;;  %4083 = vst.msk [vmem:[%s7795_s3 + $0x1ec] sm:$0xf] %vm3959_vm2, %v4736_v41  ;;  %v2800_v8 = vsel %vm2288_vm7, %v1628_v31, %v2544_v46  ;;  %v2153_v51 = vadd.f32 %v7541_v27, %v2152_v47  ;;  %v4864_v62 = vpack.c.bf16 %v2930_v33, %v2930_v33  ;;  %vm2293_vm9 = vcmp.gt.f32.partialorder %v1649_v40, 0.0 }
 0x21c   :  { %v4734_v15 = vpack.c.bf16 %v2800_v8, %v2800_v8  ;;  %v2928_v39 = vsel %vm2416_vm8, %v2140_v6, %v2672_v60  ;;  %v2549_v61 = vmul.f32 0.2, %v1649_v40  ;;  %vm2421_vm10 = vcmp.gt.f32.partialorder %v2161_v38, 0.0 }
 0x21d   :  { %v4862_v11 = vpack.c.bf16 %v2928_v39, %v2928_v39  ;;  %v2677_v0 = vmul.f32 0.2, %v2161_v38  ;;  %4211 = vst.msk [vmem:[%s7795_s3 + $0x3ec] sm:$0xf] %vm3959_vm2, %v4864_v62  ;;  %vm2291_vm11 = vcmp.gt.f32.partialorder %v1641_v14, 0.0  ;;  %vm2419_vm12 = vcmp.gt.f32.partialorder %v2153_v51, 0.0 }
 0x21e   :  { %4081 = vst.msk [vmem:[%s7795_s3 + $0x1e4] sm:$0xf] %vm3959_vm2, %v4734_v15  ;;  %v2547_v55 = vmul.f32 0.2, %v1641_v14  ;;  %v2675_v57 = vmul.f32 0.2, %v2153_v51  ;;  %v2805_v4 = vsel %vm2293_vm9, %v1649_v40, %v2549_v61  ;;  %v1652_v1 = vadd.f32 %v7541_v27, %v5148_v53 }
 0x21f   :  { %4209 = vst.msk [vmem:[%s7795_s3 + $0x3e4] sm:$0xf] %vm3959_vm2, %v4862_v11  ;;  %v2933_v7 = vsel %vm2421_vm10, %v2161_v38, %v2677_v0  ;;  %v2164_v9 = vadd.f32 %v7541_v27, %v5276_v59  ;;  %v4739_v56 = vpack.c.bf16 %v2805_v4, %v2805_v4  ;;  %v1644_v42 = vadd.f32 %v7541_v27, %v1643_v49 }
 0x220   :  { %v4867_v28 = vpack.c.bf16 %v2933_v7, %v2933_v7  ;;  %v2803_v5 = vsel %vm2291_vm11, %v1641_v14, %v2547_v55  ;;  %v2931_v13 = vsel %vm2419_vm12, %v2153_v51, %v2675_v57  ;;  %vm2294_vm13 = vcmp.gt.f32.partialorder %v1652_v1, 0.0 }
 0x221   :  { %v4737_v36 = vpack.c.bf16 %v2803_v5, %v2803_v5  ;;  %v4865_v17 = vpack.c.bf16 %v2931_v13, %v2931_v13  ;;  %v2550_v63 = vmul.f32 0.2, %v1652_v1  ;;  %4086 = vst.msk [vmem:[%s7795_s3 + $0x1f8] sm:$0xf] %vm3959_vm2, %v4739_v56  ;;  %vm2422_vm14 = vcmp.gt.f32.partialorder %v2164_v9, 0.0 }
 0x222   :  { %4214 = vst.msk [vmem:[%s7795_s3 + $0x3f8] sm:$0xf] %vm3959_vm2, %v4867_v28  ;;  %v2678_v34 = vmul.f32 0.2, %v2164_v9  ;;  %v2156_v22 = vadd.f32 %v7541_v27, %v2155_v58  ;;  %vm2292_vm15 = vcmp.gt.f32.partialorder %v1644_v42, 0.0 }
 0x223   :  { %4084 = vst.msk [vmem:[%s7795_s3 + $0x1f0] sm:$0xf] %vm3959_vm2, %v4737_v36  ;;  %4212 = vst.msk [vmem:[%s7795_s3 + $0x3f0] sm:$0xf] %vm3959_vm2, %v4865_v17  ;;  %v2806_v18 = vsel %vm2294_vm13, %v1652_v1, %v2550_v63  ;;  %v2548_v21 = vmul.f32 0.2, %v1644_v42 }
 0x224   :  { %v4740_v16 = vpack.c.bf16 %v2806_v18, %v2806_v18  ;;  %v2934_v19 = vsel %vm2422_vm14, %v2164_v9, %v2678_v34  ;;  %vm2420_vm0 = vcmp.gt.f32.partialorder %v2156_v22, 0.0  ;;  %v2676_v54 = vmul.f32 0.2, %v2156_v22 }
 0x225   :  { %v4868_v10 = vpack.c.bf16 %v2934_v19, %v2934_v19  ;;  %v2804_v27 = vsel %vm2292_vm15, %v1644_v42, %v2548_v21 }
 0x226   :  { %4087 = vst.msk [vmem:[%s7795_s3 + $0x1fc] sm:$0xf] %vm3959_vm2, %v4740_v16  ;;  %v4738_v37 = vpack.c.bf16 %v2804_v27, %v2804_v27  ;;  %v2932_v26 = vsel %vm2420_vm0, %v2156_v22, %v2676_v54 }
 0x227   :  { %4215 = vst.msk [vmem:[%s7795_s3 + $0x3fc] sm:$0xf] %vm3959_vm2, %v4868_v10  ;;  %v4866_v35 = vpack.c.bf16 %v2932_v26, %v2932_v26 }
 0x228   :  { %4085 = vst.msk [vmem:[%s7795_s3 + $0x1f4] sm:$0xf] %vm3959_vm2, %v4738_v37 }
 0x229   :  { %4213 = vst.msk [vmem:[%s7795_s3 + $0x3f4] sm:$0xf] %vm3959_vm2, %v4866_v35 }

// kernel: discriminator_forward.6
= control target key start
LH: loop header
LB: loop body
LE: loop exit
PB: predicated region body
PF: predicated region fallthrough
CT: control target
= control target key end

     0   :  { %s2791_s15 = smov 0   ;;  %s2793_s16 = smov 0   ;;  %s4312_s0 = inlined_call_operand.vmem [shape: bf16[512,128], index: 0, kind: input, shape index: {}]   ;;  %s4313_s1 = inlined_call_operand.vmem [shape: bf16[128,16], index: 1, kind: input, shape index: {}]   ;;  %s4314_s2 = inlined_call_operand.vmem [shape: f32[1,16], index: 2, kind: input, shape index: {}]   ;;  %s4315_s3 = inlined_call_operand.vmem [shape: f32[1,16], index: 3, kind: input, shape index: {}]   ;;  %s4316_s4 = inlined_call_operand.vmem [shape: bf16[512,16], index: 4, kind: output, shape index: {}]  }
   0x1   :  { %s2795_s17 = smov 0  }
   0x2 LB: > { %s26_s18 = sadd.s32 1, %s2759_s16  ;;  %p2233_p0 = scmp.ge.s32.totalorder %s2763_s17, 1  ;;  %s2763_s17 = sphi %s2795_s17, %s14_s17   ;;  %s2759_s16 = sphi %s2793_s16, %s4547_s16   ;;  %s2755_s15 = sphi %s2791_s15, %s4546_s15  }
   0x3   : > { %p28_p1 = scmp.ge.s32.totalorder %s26_s18, 2  ;;  %p175_p2 = scmp.lt.s32.totalorder %s2763_s17, 3 }
   0x5   : > { %s4549_s18 = smov (%p28_p1, %s26_s18), 0  ;;  %p176_p3 = pnand %p2233_p0, %p175_p2 }
   0x7   : > { %179 = sbr.rel (%p176_p3) target bundleno = 625 (0x271), region = 36 }
   0xc   : > { %v2699_v0 = vld [vmem:[%s4313_s1 + $0x38] sm:$0xff]   ;;  %v2700_v1 = vld [vmem:[%s4313_s1 + $0x30] sm:$0xff]   ;;  %v2701_v2 = vld [vmem:[%s4313_s1 + $0x28] sm:$0xff]   ;;  %p823_p4 = scmp.eq.s32.totalorder %s2755_s15, 0 }
   0xd   : > { %2578 = vmatprep.subr.bf16.mxu0 %v2699_v0  ;;  %2658 = vmatprep.subr.bf16.mxu1 %v2699_v0  ;;  %v2702_v3 = vld [vmem:[%s4313_s1 + $0x20] sm:$0xff]   ;;  %v2703_v6 = vld [vmem:[%s4313_s1 + $0x18] sm:$0xff]   ;;  %v2704_v7 = vld [vmem:[%s4313_s1 + $0x10] sm:$0xff]   ;;  %vm829_vm0 = vcmask (%p823_p4), 122880  }
   0xe   : > { %2579 = vmatpush3.bf16.msra.mxu0 %v2699_v0  ;;  %2666 = vmatpush3.bf16.msra.mxu1 %v2699_v0  ;;  %v2707_v4 = vld [vmem:[%s4312_s0] sm:$0xff]   ;;  %v2705_v8 = vld [vmem:[%s4313_s1 + $0x8] sm:$0xff]   ;;  %v2711_v12 = vld [vmem:[%s4312_s0 + $0x10] sm:$0xff]  }
   0xf   : > { %2580 = vmatprep.subr.bf16.mxu0 %v2700_v1  ;;  %2659 = vmatprep.subr.bf16.mxu1 %v2700_v1  ;;  %v2708_v5 = vld [vmem:[%s4312_s0 + $0x80] sm:$0xff]   ;;  %v2709_v10 = vld [vmem:[%s4312_s0 + $0x8] sm:$0xff]   ;;  %v2712_v13 = vld [vmem:[%s4312_s0 + $0x90] sm:$0xff]  }
  0x10   : > { %2594 = vmatprep.mubr.bf16.mxu0 %v2707_v4  ;;  %2626 = vmatprep.mubr.bf16.mxu1 %v2708_v5  ;;  %v2706_v9 = vld [vmem:[%s4313_s1] sm:$0xff]   ;;  %v2710_v11 = vld [vmem:[%s4312_s0 + $0x88] sm:$0xff]   ;;  %v2713_v14 = vld [vmem:[%s4312_s0 + $0x18] sm:$0xff]  }
  0x11   : > { %v2714_v15 = vld [vmem:[%s4312_s0 + $0x98] sm:$0xff]   ;;  %v2715_v16 = vld [vmem:[%s4312_s0 + $0x20] sm:$0xff]   ;;  %v2717_v18 = vld [vmem:[%s4312_s0 + $0x28] sm:$0xff]  }
  0x12   : > { %2581 = vmatpush3.bf16.msra.mxu0 %v2700_v1  ;;  %2667 = vmatpush3.bf16.msra.mxu1 %v2700_v1  ;;  %v2716_v17 = vld [vmem:[%s4312_s0 + $0xa0] sm:$0xff]   ;;  %v2718_v19 = vld [vmem:[%s4312_s0 + $0xa8] sm:$0xff]   ;;  %v2719_v20 = vld [vmem:[%s4312_s0 + $0x30] sm:$0xff]  }
  0x13   : > { %2582 = vmatprep.subr.bf16.mxu0 %v2701_v2  ;;  %2660 = vmatprep.subr.bf16.mxu1 %v2701_v2  ;;  %v2720_v21 = vld [vmem:[%s4312_s0 + $0xb0] sm:$0xff]   ;;  %v2721_v22 = vld [vmem:[%s4312_s0 + $0x38] sm:$0xff]   ;;  %v2723_v24 = vld [vmem:[%s4312_s0 + $0x40] sm:$0xff]  }
  0x14   : > { %v2722_v23 = vld [vmem:[%s4312_s0 + $0xb8] sm:$0xff]   ;;  %v2724_v25 = vld [vmem:[%s4312_s0 + $0xc0] sm:$0xff]   ;;  %v2725_v26 = vld [vmem:[%s4312_s0 + $0x48] sm:$0xff]  }
  0x15   : > { %v2726_v27 = vld [vmem:[%s4312_s0 + $0xc8] sm:$0xff]   ;;  %v2727_v28 = vld [vmem:[%s4312_s0 + $0x50] sm:$0xff]   ;;  %v2729_v30 = vld [vmem:[%s4312_s0 + $0x58] sm:$0xff]  }
  0x16   : > { %2583 = vmatpush3.bf16.msra.mxu0 %v2701_v2  ;;  %2668 = vmatpush3.bf16.msra.mxu1 %v2701_v2  ;;  %v2728_v29 = vld [vmem:[%s4312_s0 + $0xd0] sm:$0xff]   ;;  %v2730_v31 = vld [vmem:[%s4312_s0 + $0xd8] sm:$0xff]   ;;  %v2731_v32 = vld [vmem:[%s4312_s0 + $0x60] sm:$0xff]  }
  0x17   : > { %2584 = vmatprep.subr.bf16.mxu0 %v2702_v3  ;;  %2661 = vmatprep.subr.bf16.mxu1 %v2702_v3  ;;  %v2732_v33 = vld [vmem:[%s4312_s0 + $0xe0] sm:$0xff]   ;;  %v2733_v34 = vld [vmem:[%s4312_s0 + $0x68] sm:$0xff]   ;;  %v2735_v36 = vld [vmem:[%s4312_s0 + $0x70] sm:$0xff]  }
  0x18   : > { %v2734_v35 = vld [vmem:[%s4312_s0 + $0xe8] sm:$0xff]   ;;  %v2736_v37 = vld [vmem:[%s4312_s0 + $0xf0] sm:$0xff]   ;;  %v2737_v38 = vld [vmem:[%s4312_s0 + $0x78] sm:$0xff]  }
  0x19   : > { %v2738_v39 = vld [vmem:[%s4312_s0 + $0xf8] sm:$0xff]  }
  0x1a   : > { %2585 = vmatpush3.bf16.msra.mxu0 %v2702_v3  ;;  %2669 = vmatpush3.bf16.msra.mxu1 %v2702_v3 }
  0x1b   : > { %2586 = vmatprep.subr.bf16.mxu0 %v2703_v6  ;;  %2662 = vmatprep.subr.bf16.mxu1 %v2703_v6 }
  0x1e   : > { %2587 = vmatpush3.bf16.msra.mxu0 %v2703_v6  ;;  %2670 = vmatpush3.bf16.msra.mxu1 %v2703_v6 }
  0x1f   : > { %2588 = vmatprep.subr.bf16.mxu0 %v2704_v7  ;;  %2663 = vmatprep.subr.bf16.mxu1 %v2704_v7 }
  0x22   : > { %2589 = vmatpush3.bf16.msra.mxu0 %v2704_v7  ;;  %2671 = vmatpush3.bf16.msra.mxu1 %v2704_v7 }
  0x23   : > { %2590 = vmatprep.subr.bf16.mxu0 %v2705_v8  ;;  %2664 = vmatprep.subr.bf16.mxu1 %v2705_v8 }
  0x26   : > { %2591 = vmatpush3.bf16.msra.mxu0 %v2705_v8  ;;  %2672 = vmatpush3.bf16.msra.mxu1 %v2705_v8 }
  0x27   : > { %2592 = vmatprep.subr.bf16.mxu0 %v2706_v9  ;;  %2665 = vmatprep.subr.bf16.mxu1 %v2706_v9 }
  0x2a   : > { %2593 = vmatpush3.bf16.msra.mxu0 %v2706_v9  ;;  %2673 = vmatpush3.bf16.msra.mxu1 %v2706_v9 }
  0x2d   : > { %2595 = vmatmul.mubr.bf16.vlgmr.msra.gmra.mxu0 %v2709_v10  ;;  %2627 = vmatmul.mubr.bf16.vlgmr.msra.gmra.mxu1 %v2710_v11 }
  0x2e   : > { %2598 = vmatprep.mubr.bf16.mxu0 %v2711_v12  ;;  %2630 = vmatprep.mubr.bf16.mxu1 %v2712_v13 }
  0x35   : > { %2599 = vmatmul.mubr.bf16.gmra.mxu0 %v2713_v14  ;;  %2631 = vmatmul.mubr.bf16.gmra.mxu1 %v2714_v15 }
  0x36   : > { %2602 = vmatprep.mubr.bf16.mxu0 %v2715_v16  ;;  %2634 = vmatprep.mubr.bf16.mxu1 %v2716_v17 }
  0x3d   : > { %2603 = vmatmul.mubr.bf16.gmra.mxu0 %v2717_v18  ;;  %2635 = vmatmul.mubr.bf16.gmra.mxu1 %v2718_v19 }
  0x3e   : > { %2606 = vmatprep.mubr.bf16.mxu0 %v2719_v20  ;;  %2638 = vmatprep.mubr.bf16.mxu1 %v2720_v21 }
  0x45   : > { %2607 = vmatmul.mubr.bf16.gmra.mxu0 %v2721_v22  ;;  %2639 = vmatmul.mubr.bf16.gmra.mxu1 %v2722_v23 }
  0x46   : > { %2610 = vmatprep.mubr.bf16.mxu0 %v2723_v24  ;;  %2642 = vmatprep.mubr.bf16.mxu1 %v2724_v25 }
  0x4d   : > { %2611 = vmatmul.mubr.bf16.gmra.mxu0 %v2725_v26  ;;  %2643 = vmatmul.mubr.bf16.gmra.mxu1 %v2726_v27 }
  0x4e   : > { %2614 = vmatprep.mubr.bf16.mxu0 %v2727_v28  ;;  %2646 = vmatprep.mubr.bf16.mxu1 %v2728_v29 }
  0x55   : > { %2615 = vmatmul.mubr.bf16.gmra.mxu0 %v2729_v30  ;;  %2647 = vmatmul.mubr.bf16.gmra.mxu1 %v2730_v31 }
  0x56   : > { %2618 = vmatprep.mubr.bf16.mxu0 %v2731_v32  ;;  %2650 = vmatprep.mubr.bf16.mxu1 %v2732_v33 }
  0x5d   : > { %2619 = vmatmul.mubr.bf16.gmra.mxu0 %v2733_v34  ;;  %2651 = vmatmul.mubr.bf16.gmra.mxu1 %v2734_v35 }
  0x5e   : > { %2622 = vmatprep.mubr.bf16.mxu0 %v2735_v36  ;;  %2654 = vmatprep.mubr.bf16.mxu1 %v2736_v37 }
  0x65   : > { %2623 = vmatmul.mubr.bf16.gmra.mxu0 %v2737_v38  ;;  %2655 = vmatmul.mubr.bf16.gmra.mxu1 %v2738_v39 }
  0xed   : > { %v2932_v40 = vpop.f32.mrf.mxu0  ;;  %v2934_v41 = vpop.f32.mrf.mxu1 }
  0xee   : > { %4383 = vst [vmem:[#allocation4_spill] sm:$0xff] %v2934_v41 }
  0xef   : > { %v2936_v42 = vpop.f32.mrf.mxu0  ;;  %v2938_v43 = vpop.f32.mrf.mxu1 }
  0xf0   : > { %4384 = vst [vmem:[#allocation5_spill] sm:$0xff] %v2938_v43 }
  0xf1   : > { %v2940_v44 = vpop.f32.mrf.mxu0  ;;  %v2942_v45 = vpop.f32.mrf.mxu1 }
  0xf2   : > { %4385 = vst [vmem:[#allocation6_spill] sm:$0xff] %v2942_v45 }
  0xf3   : > { %v2944_v46 = vpop.f32.mrf.mxu0  ;;  %v2946_v47 = vpop.f32.mrf.mxu1 }
  0xf4   : > { %4386 = vst [vmem:[#allocation7_spill] sm:$0xff] %v2946_v47 }
  0xf5   : > { %v2948_v48 = vpop.f32.mrf.mxu0  ;;  %v2950_v49 = vpop.f32.mrf.mxu1 }
  0xf6   : > { %4387 = vst [vmem:[#allocation8_spill] sm:$0xff] %v2950_v49 }
  0xf7   : > { %v2952_v50 = vpop.f32.mrf.mxu0  ;;  %v2954_v51 = vpop.f32.mrf.mxu1 }
  0xf8   : > { %4388 = vst [vmem:[#allocation9_spill] sm:$0xff] %v2954_v51 }
  0xf9   : > { %v2956_v52 = vpop.f32.mrf.mxu0  ;;  %v2958_v53 = vpop.f32.mrf.mxu1 }
  0xfa   : > { %4389 = vst [vmem:[#allocation10_spill] sm:$0xff] %v2958_v53 }
  0xfb   : > { %v2960_v54 = vpop.f32.mrf.mxu0  ;;  %v2962_v55 = vpop.f32.mrf.mxu1 }
  0xfc   : > { %4390 = vst [vmem:[#allocation11_spill] sm:$0xff] %v2962_v55 }
  0xfd   : > { %v2964_v56 = vpop.f32.mrf.mxu0  ;;  %v2966_v57 = vpop.f32.mrf.mxu1 }
  0xfe   : > { %4391 = vst [vmem:[#allocation12_spill] sm:$0xff] %v2964_v56  ;;  %4392 = vst [vmem:[#allocation13_spill] sm:$0xff] %v2966_v57 }
  0xff   : > { %v2968_v58 = vpop.f32.mrf.mxu0  ;;  %v2970_v59 = vpop.f32.mrf.mxu1 }
 0x100   : > { %4393 = vst [vmem:[#allocation14_spill] sm:$0xff] %v2970_v59 }
 0x101   : > { %v2972_v60 = vpop.f32.mrf.mxu0  ;;  %v2974_v61 = vpop.f32.mrf.mxu1 }
 0x102   : > { %4394 = vst [vmem:[#allocation15_spill] sm:$0xff] %v2972_v60  ;;  %4395 = vst [vmem:[#allocation16_spill] sm:$0xff] %v2974_v61 }
 0x103   : > { %v2976_v62 = vpop.f32.mrf.mxu0  ;;  %v2978_v63 = vpop.f32.mrf.mxu1 }
 0x104   : > { %4396 = vst [vmem:[#allocation17_spill] sm:$0xff] %v2978_v63 }
 0x105   : > { %v2980_v0 = vpop.f32.mrf.mxu0  ;;  %v2982_v1 = vpop.f32.mrf.mxu1 }
 0x106   : > { %4397 = vst [vmem:[#allocation18_spill] sm:$0xff] %v2980_v0  ;;  %4398 = vst [vmem:[#allocation19_spill] sm:$0xff] %v2982_v1 }
 0x107   : > { %v2984_v2 = vpop.f32.mrf.mxu0  ;;  %v2986_v3 = vpop.f32.mrf.mxu1 }
 0x108   : > { %4399 = vst [vmem:[#allocation20_spill] sm:$0xff] %v2984_v2  ;;  %4400 = vst [vmem:[#allocation21_spill] sm:$0xff] %v2986_v3 }
 0x109   : > { %v2988_v4 = vpop.f32.mrf.mxu0  ;;  %v2990_v5 = vpop.f32.mrf.mxu1 }
 0x10a   : > { %4401 = vst [vmem:[#allocation22_spill] sm:$0xff] %v2988_v4  ;;  %4402 = vst [vmem:[#allocation23_spill] sm:$0xff] %v2990_v5 }
 0x10b   : > { %v2992_v6 = vpop.f32.mrf.mxu0  ;;  %v2994_v7 = vpop.f32.mrf.mxu1 }
 0x10c   : > { %4403 = vst [vmem:[#allocation24_spill] sm:$0xff] %v2992_v6  ;;  %4404 = vst [vmem:[#allocation25_spill] sm:$0xff] %v2994_v7 }
 0x10d   : > { %v2996_v8 = vpop.f32.mrf.mxu0  ;;  %v2998_v9 = vpop.f32.mrf.mxu1 }
 0x10e   : > { %4405 = vst [vmem:[#allocation26_spill] sm:$0xff] %v2996_v8  ;;  %4406 = vst [vmem:[#allocation27_spill] sm:$0xff] %v2998_v9 }
 0x10f   : > { %v3000_v10 = vpop.f32.mrf.mxu0  ;;  %v3002_v11 = vpop.f32.mrf.mxu1 }
 0x110   : > { %4407 = vst [vmem:[#allocation28_spill] sm:$0xff] %v3000_v10  ;;  %4408 = vst [vmem:[#allocation29_spill] sm:$0xff] %v3002_v11 }
 0x111   : > { %v3004_v12 = vpop.f32.mrf.mxu0  ;;  %v3006_v13 = vpop.f32.mrf.mxu1 }
 0x112   : > { %4409 = vst [vmem:[#allocation30_spill] sm:$0xff] %v3004_v12  ;;  %4410 = vst [vmem:[#allocation31_spill] sm:$0xff] %v3006_v13 }
 0x113   : > { %v3008_v14 = vpop.f32.mrf.mxu0  ;;  %v3010_v15 = vpop.f32.mrf.mxu1 }
 0x114   : > { %4411 = vst [vmem:[#allocation32_spill] sm:$0xff] %v3008_v14  ;;  %4412 = vst [vmem:[#allocation33_spill] sm:$0xff] %v3010_v15 }
 0x115   : > { %v3012_v16 = vpop.f32.mrf.mxu0  ;;  %v3014_v17 = vpop.f32.mrf.mxu1 }
 0x116   : > { %4413 = vst [vmem:[#allocation34_spill] sm:$0xff] %v3012_v16  ;;  %4414 = vst [vmem:[#allocation35_spill] sm:$0xff] %v3014_v17 }
 0x117   : > { %v3016_v18 = vpop.f32.mrf.mxu0  ;;  %v3018_v19 = vpop.f32.mrf.mxu1 }
 0x118   : > { %4415 = vst [vmem:[#allocation36_spill] sm:$0xff] %v3016_v18  ;;  %4416 = vst [vmem:[#allocation37_spill] sm:$0xff] %v3018_v19 }
 0x119   : > { %v3020_v20 = vpop.f32.mrf.mxu0  ;;  %v3022_v21 = vpop.f32.mrf.mxu1 }
 0x11a   : > { %4417 = vst [vmem:[#allocation38_spill] sm:$0xff] %v3020_v20  ;;  %4418 = vst [vmem:[#allocation39_spill] sm:$0xff] %v3022_v21 }
 0x11b   : > { %v3024_v22 = vpop.f32.mrf.mxu0  ;;  %v3026_v23 = vpop.f32.mrf.mxu1 }
 0x11c   : > { %4419 = vst [vmem:[#allocation40_spill] sm:$0xff] %v3024_v22  ;;  %4420 = vst [vmem:[#allocation41_spill] sm:$0xff] %v3026_v23 }
 0x11d   : > { %v3028_v24 = vpop.f32.mrf.mxu0  ;;  %v3030_v25 = vpop.f32.mrf.mxu1 }
 0x11e   : > { %4421 = vst [vmem:[#allocation42_spill] sm:$0xff] %v3028_v24  ;;  %4422 = vst [vmem:[#allocation43_spill] sm:$0xff] %v3030_v25 }
 0x11f   : > { %v3032_v26 = vpop.f32.mrf.mxu0  ;;  %v3034_v27 = vpop.f32.mrf.mxu1 }
 0x120   : > { %4423 = vst [vmem:[#allocation44_spill] sm:$0xff] %v3032_v26  ;;  %4424 = vst [vmem:[#allocation45_spill] sm:$0xff] %v3034_v27 }
 0x121   : > { %v3036_v28 = vpop.f32.mrf.mxu0  ;;  %v3038_v29 = vpop.f32.mrf.mxu1 }
 0x122   : > { %4425 = vst [vmem:[#allocation46_spill] sm:$0xff] %v3036_v28  ;;  %4426 = vst [vmem:[#allocation47_spill] sm:$0xff] %v3038_v29  ;;  %v2765_v29 = vmov (%p823_p4), 0.0  }
 0x123   : > { %v3040_v30 = vpop.f32.mrf.mxu0  ;;  %v3042_v31 = vpop.f32.mrf.mxu1  ;;  %830 = vst.msk [vmem:[#allocation2] sm:$0x1] (%p823_p4), %vm829_vm0, %v2765_v29  ;;  %831 = vst.msk [vmem:[#allocation3] sm:$0x1] (%p823_p4), %vm829_vm0, %v2765_v29 }
 0x124   : > { %4427 = vst [vmem:[#allocation48_spill] sm:$0xff] %v3040_v30  ;;  %4428 = vst [vmem:[#allocation49_spill] sm:$0xff] %v3042_v31 }
 0x125   : > { %v3044_v32 = vpop.f32.mrf.mxu0  ;;  %v3046_v33 = vpop.f32.mrf.mxu1 }
 0x126   : > { %4429 = vst [vmem:[#allocation50_spill] sm:$0xff] %v3044_v32  ;;  %4430 = vst [vmem:[#allocation51_spill] sm:$0xff] %v3046_v33 }
 0x127   : > { %v3048_v34 = vpop.f32.mrf.mxu0  ;;  %v3050_v35 = vpop.f32.mrf.mxu1 }
 0x128   : > { %4431 = vst [vmem:[#allocation52_spill] sm:$0xff] %v3050_v35  ;;  %828 = sbr.rel (!%p823_p4) target bundleno = 301 (0x12d), region = 40 }
 0x129   : > { %v3052_v36 = vpop.f32.mrf.mxu0  ;;  %v3054_v37 = vpop.f32.mrf.mxu1 }
 0x12a   : > { %4432 = vst [vmem:[#allocation53_spill] sm:$0xff] %v3052_v36  ;;  %4433 = vst [vmem:[#allocation54_spill] sm:$0xff] %v3054_v37 }
 0x12b   : > { %v3056_v38 = vpop.f32.mrf.mxu0  ;;  %v3058_v39 = vpop.f32.mrf.mxu1 }
 0x12c   : > { %4434 = vst [vmem:[#allocation55_spill] sm:$0xff] %v3056_v38  ;;  %4435 = vst [vmem:[#allocation56_spill] sm:$0xff] %v3058_v39 }
 0x12d PF: > { %p2275_p5 = scmp.ne.s32.totalorder %s2755_s15, 0 }
 0x12f   : > { %834 = sbr.rel (%p2275_p5) target bundleno = 488 (0x1e8), region = 44 }
 0x134   : > { %vm836_vm1 = vcmask 130048   ;;  %v978_v9 = vmul.f32 %v2952_v50, %v2952_v50  ;;  %v980_v61 = vmul.f32 %v2948_v48, %v2948_v48  ;;  %vm1429_vm2 = vcmask 125952  }
 0x135   : > { %v837_v33 = vsel %vm836_vm1, %v2936_v42, 0.0  ;;  %v838_v37 = vsel %vm836_vm1, %v2944_v46, 0.0  ;;  %v840_v39 = vsel %vm836_vm1, %v2932_v40, 0.0  ;;  %v842_v25 = vsel %vm836_vm1, %v2940_v44, 0.0 }
 0x136   : > { %v839_v35 = vadd.f32 %v838_v37, %v837_v33  ;;  %v844_v29 = vsel %vm836_vm1, %v2952_v50, 0.0  ;;  %v846_v21 = vsel %vm836_vm1, %v2960_v54, 0.0  ;;  %v848_v23 = vsel %vm836_vm1, %v2948_v48, 0.0 }
 0x137   : > { %v850_v13 = vsel %vm836_vm1, %v2956_v52, 0.0  ;;  %v852_v37 = vsel %vm836_vm1, %v2968_v58, 0.0  ;;  %v886_v1 = vsel %vm836_vm1, %v3040_v30, 0.0  ;;  %v888_v7 = vsel %vm836_vm1, %v3028_v24, 0.0 }
 0x138   : > { %v841_v31 = vadd.f32 %v840_v39, %v839_v35  ;;  %v854_v39 = vsel %vm836_vm1, %v2976_v62, 0.0  ;;  %v3158_v57 = vsel %vm836_vm1, %v2946_v47, 0.0  ;;  %v3177_v47 = vsel %vm836_vm1, %v2962_v55, 0.0 }
 0x139   : > { %4439 = vst [vmem:[#allocation60_spill] sm:$0xff] %v3177_v47  ;;  %v3196_v47 = vsel %vm836_vm1, %v2978_v63, 0.0  ;;  %v989_v63 = vmul.f32 %v2988_v4, %v2988_v4  ;;  %vm971_vm3 = vcmask 122880  }
 0x13a   : > { %v843_v27 = vadd.f32 %v842_v25, %v841_v31  ;;  %v856_v31 = vsel %vm836_vm1, %v2964_v56, 0.0  ;;  %4443 = vst [vmem:[#allocation64_spill] sm:$0xff] %v3196_v47  ;;  %v988_v47 = vmul.f32 %v2980_v0, %v2980_v0 }
 0x13c   : > { %v845_v17 = vadd.f32 %v844_v29, %v843_v27  ;;  %v858_v29 = vsel %vm836_vm1, %v2972_v60, 0.0 }
 0x13e   : > { %v847_v19 = vadd.f32 %v846_v21, %v845_v17  ;;  %v860_v21 = vsel %vm836_vm1, %v2984_v2, 0.0 }
 0x140   : > { %v849_v33 = vadd.f32 %v848_v23, %v847_v19  ;;  %v862_v23 = vsel %vm836_vm1, %v2992_v6, 0.0 }
 0x142   : > { %v851_v35 = vadd.f32 %v850_v13, %v849_v33  ;;  %v864_v33 = vsel %vm836_vm1, %v2980_v0, 0.0 }
 0x144   : > { %v853_v25 = vadd.f32 %v852_v37, %v851_v35  ;;  %v866_v35 = vsel %vm836_vm1, %v2988_v4, 0.0 }
 0x146   : > { %v855_v27 = vadd.f32 %v854_v39, %v853_v25  ;;  %v868_v25 = vsel %vm836_vm1, %v3000_v10, 0.0 }
 0x148   : > { %v857_v17 = vadd.f32 %v856_v31, %v855_v27  ;;  %v870_v27 = vsel %vm836_vm1, %v3008_v14, 0.0 }
 0x14a   : > { %v859_v19 = vadd.f32 %v858_v29, %v857_v17  ;;  %v872_v17 = vsel %vm836_vm1, %v2996_v8, 0.0 }
 0x14c   : > { %v861_v13 = vadd.f32 %v860_v21, %v859_v19  ;;  %v974_v21 = vmul.f32 %v2936_v42, %v2936_v42  ;;  %v975_v19 = vmul.f32 %v2944_v46, %v2944_v46 }
 0x14e   : > { %v863_v37 = vadd.f32 %v862_v23, %v861_v13  ;;  %v976_v23 = vmul.f32 %v2932_v40, %v2932_v40 }
 0x150   : > { %v865_v39 = vadd.f32 %v864_v33, %v863_v37  ;;  %v874_v33 = vsel %vm836_vm1, %v3004_v12, 0.0  ;;  %v977_v37 = vmul.f32 %v2940_v44, %v2940_v44  ;;  %v1041_v15 = vsel %vm836_vm1, %v976_v23, 0.0 }
 0x152   : > { %v867_v31 = vadd.f32 %v866_v35, %v865_v39  ;;  %v876_v39 = vsel %vm836_vm1, %v3016_v18, 0.0 }
 0x154   : > { %v869_v29 = vadd.f32 %v868_v25, %v867_v31  ;;  %v878_v25 = vsel %vm836_vm1, %v3024_v22, 0.0  ;;  %v880_v31 = vsel %vm836_vm1, %v3012_v16, 0.0 }
 0x156   : > { %v871_v13 = vadd.f32 %v870_v27, %v869_v29  ;;  %v1038_v27 = vsel %vm836_vm1, %v974_v21, 0.0  ;;  %v1039_v29 = vsel %vm836_vm1, %v975_v19, 0.0  ;;  %v979_v21 = vmul.f32 %v2960_v54, %v2960_v54 }
 0x157   : > { %v1040_v5 = vadd.f32 %v1039_v29, %v1038_v27  ;;  %v1043_v19 = vsel %vm836_vm1, %v977_v37, 0.0  ;;  %v3139_v27 = vsel %vm836_vm1, %v3056_v38, 0.0  ;;  %v3143_v29 = vsel %vm836_vm1, %v3044_v32, 0.0 }
 0x158   : > { %v873_v35 = vadd.f32 %v872_v17, %v871_v13  ;;  %v882_v17 = vsel %vm836_vm1, %v3020_v20, 0.0  ;;  %v884_v13 = vsel %vm836_vm1, %v3032_v26, 0.0  ;;  %v3162_v32 = vsel %vm836_vm1, %v2934_v41, 0.0 }
 0x159   : > { %v1042_v3 = vadd.f32 %v1041_v15, %v1040_v5  ;;  %v3154_v5 = vsel %vm836_vm1, %v2938_v43, 0.0  ;;  %4436 = vst [vmem:[#allocation57_spill] sm:$0xff] %v3162_v32  ;;  %v3181_v41 = vsel %vm836_vm1, %v2950_v49, 0.0  ;;  %v1067_v43 = vsel %vm836_vm1, %v989_v63, 0.0 }
 0x15a   : > { %v875_v11 = vadd.f32 %v874_v33, %v873_v35  ;;  %v890_v33 = vsel %vm836_vm1, %v3036_v28, 0.0  ;;  %v892_v35 = vsel %vm836_vm1, %v3048_v34, 0.0  ;;  %4440 = vst [vmem:[#allocation61_spill] sm:$0xff] %v3181_v41  ;;  %v983_v41 = vmul.f32 %v2976_v62, %v2976_v62 }
 0x15b   : > { %v1044_v15 = vadd.f32 %v1043_v19, %v1042_v3  ;;  %v3173_v3 = vsel %vm836_vm1, %v2954_v51, 0.0  ;;  %v3239_v51 = vmul.f32 %v3040_v30, %v3040_v30 }
 0x15c   : > { %v877_v23 = vadd.f32 %v876_v39, %v875_v11  ;;  %v1045_v11 = vsel %vm836_vm1, %v978_v9, 0.0  ;;  %v3150_v39 = vsel %vm836_vm1, %v3052_v36, 0.0  ;;  %v981_v9 = vmul.f32 %v2956_v52, %v2956_v52  ;;  %4438 = vst [vmem:[#allocation59_spill] sm:$0xff] %v3173_v3 }
 0x15d   : > { %v3169_v36 = vsel %vm836_vm1, %v2942_v45, 0.0  ;;  %v1046_v19 = vadd.f32 %v1045_v11, %v1044_v15  ;;  %v3188_v45 = vsel %vm836_vm1, %v2958_v53, 0.0  ;;  %v3192_v11 = vsel %vm836_vm1, %v2970_v59, 0.0  ;;  %4446 = vst [vmem:[#allocation67_spill] sm:$0xff] %v3239_v51 }
 0x15e   : > { %v879_v37 = vadd.f32 %v878_v25, %v877_v23  ;;  %v1047_v25 = vsel %vm836_vm1, %v979_v21, 0.0  ;;  %4437 = vst [vmem:[#allocation58_spill] sm:$0xff] %v3169_v36  ;;  %v1049_v21 = vsel %vm836_vm1, %v980_v61, 0.0  ;;  %4441 = vst [vmem:[#allocation62_spill] sm:$0xff] %v3188_v45  ;;  %v984_v61 = vmul.f32 %v2964_v56, %v2964_v56 }
 0x15f   : > { %4442 = vst [vmem:[#allocation63_spill] sm:$0xff] %v3192_v11  ;;  %v1048_v15 = vadd.f32 %v1047_v25, %v1046_v19  ;;  %v985_v45 = vmul.f32 %v2972_v60, %v2972_v60  ;;  %v986_v11 = vmul.f32 %v2984_v2, %v2984_v2  ;;  %v987_v19 = vmul.f32 %v2992_v6, %v2992_v6 }
 0x160   : > { %v881_v23 = vadd.f32 %v880_v31, %v879_v37  ;;  %v982_v31 = vmul.f32 %v2968_v58, %v2968_v58  ;;  %v994_v53 = vmul.f32 %v3016_v18, %v3016_v18  ;;  %v1055_v49 = vsel %vm836_vm1, %v983_v41, 0.0 }
 0x161   : > { %v1050_v25 = vadd.f32 %v1049_v21, %v1048_v15  ;;  %v992_v21 = vmul.f32 %v2996_v8, %v2996_v8  ;;  %v993_v15 = vmul.f32 %v3004_v12, %v3004_v12  ;;  %v1057_v41 = vsel %vm836_vm1, %v984_v61, 0.0 }
 0x162   : > { %v883_v37 = vadd.f32 %v882_v17, %v881_v23  ;;  %v1051_v17 = vsel %vm836_vm1, %v981_v9, 0.0  ;;  %v1053_v3 = vsel %vm836_vm1, %v982_v31, 0.0  ;;  %v1059_v36 = vsel %vm836_vm1, %v985_v45, 0.0 }
 0x163   : > { %v1052_v59 = vadd.f32 %v1051_v17, %v1050_v25  ;;  %v3231_v17 = vmul.f32 %v3020_v20, %v3020_v20  ;;  %v3235_v25 = vmul.f32 %v3032_v26, %v3032_v26  ;;  %v3257_v45 = vsel %vm836_vm1, %v993_v15, 0.0 }
 0x164   : > { %v885_v23 = vadd.f32 %v884_v13, %v883_v37  ;;  %v990_v13 = vmul.f32 %v3000_v10, %v3000_v10  ;;  %v991_v37 = vmul.f32 %v3008_v14, %v3008_v14  ;;  %v2411_v61 = vpack.c.bf16 %v2944_v46, %v2944_v46 }
 0x165   : > { %v1054_v55 = vadd.f32 %v1053_v3, %v1052_v59  ;;  %4444 = vst [vmem:[#allocation65_spill] sm:$0xff] %v3231_v17  ;;  %4445 = vst [vmem:[#allocation66_spill] sm:$0xff] %v3235_v25  ;;  %v1061_v59 = vsel %vm836_vm1, %v986_v11, 0.0  ;;  %v1063_v3 = vsel %vm836_vm1, %v987_v19, 0.0  ;;  %v1065_v17 = vsel %vm836_vm1, %v988_v47, 0.0 }
 0x166   : > { %v887_v9 = vadd.f32 %v886_v1, %v885_v23  ;;  %v995_v1 = vmul.f32 %v3024_v22, %v3024_v22  ;;  %v996_v23 = vmul.f32 %v3012_v16, %v3012_v16  ;;  %v3248_v25 = vsel %vm836_vm1, %v990_v13, 0.0  ;;  %1431 = vst.msk [vmem:[%s4316_s4 + $0x4] sm:$0xf] %vm1429_vm2, %v2411_v61 }
 0x167   : > { %v3251_v51 = vsel %vm836_vm1, %v991_v37, 0.0  ;;  %v2410_v11 = vpack.c.bf16 %v2936_v42, %v2936_v42  ;;  %v2413_v19 = vpack.c.bf16 %v2940_v44, %v2940_v44  ;;  %v2414_v13 = vpack.c.bf16 %v2952_v50, %v2952_v50 }
 0x168   : > { %v889_v31 = vadd.f32 %v888_v7, %v887_v9  ;;  %v1056_v9 = vadd.f32 %v1055_v49, %v1054_v55  ;;  %v3254_v49 = vsel %vm836_vm1, %v992_v21, 0.0  ;;  %v3260_v55 = vsel %vm836_vm1, %v994_v53, 0.0 }
 0x169   : > { %v3263_v47 = vsel %vm836_vm1, %v995_v1, 0.0  ;;  %v3266_v63 = vsel %vm836_vm1, %v996_v23, 0.0  ;;  %v2412_v53 = vpack.c.bf16 %v2932_v40, %v2932_v40  ;;  %1430 = vst.msk [vmem:[%s4316_s4] sm:$0xf] %vm1429_vm2, %v2410_v11  ;;  %1433 = vst.msk [vmem:[%s4316_s4 + $0xc] sm:$0xf] %vm1429_vm2, %v2413_v19  ;;  %v2419_v21 = vpack.c.bf16 %v2976_v62, %v2976_v62 }
 0x16a   : > { %v891_v7 = vadd.f32 %v890_v33, %v889_v31  ;;  %v1058_v32 = vadd.f32 %v1057_v41, %v1056_v9  ;;  %1434 = vst.msk [vmem:[%s4316_s4 + $0x10] sm:$0xf] %vm1429_vm2, %v2414_v13  ;;  %v2420_v15 = vpack.c.bf16 %v2964_v56, %v2964_v56  ;;  %v2421_v23 = vpack.c.bf16 %v2972_v60, %v2972_v60 }
 0x16b   : > { %1432 = vst.msk [vmem:[%s4316_s4 + $0x8] sm:$0xf] %vm1429_vm2, %v2412_v53  ;;  %v2422_v41 = vpack.c.bf16 %v2984_v2, %v2984_v2  ;;  %1439 = vst.msk [vmem:[%s4316_s4 + $0x24] sm:$0xf] %vm1429_vm2, %v2419_v21  ;;  %v2425_v9 = vpack.c.bf16 %v2988_v4, %v2988_v4  ;;  %v2428_v11 = vpack.c.bf16 %v2996_v8, %v2996_v8  ;;  %v4482_v8 = vld [vmem:[#allocation62_spill] sm:$0xff]  ;;  %v4484_v4 = vld [vmem:[#allocation52_spill] sm:$0xff] }
 0x16c   : > { %v893_v38 = vadd.f32 %v892_v35, %v891_v7  ;;  %v1060_v35 = vadd.f32 %v1059_v36, %v1058_v32  ;;  %v2415_v32 = vpack.c.bf16 %v2960_v54, %v2960_v54  ;;  %v2416_v36 = vpack.c.bf16 %v2948_v48, %v2948_v48  ;;  %1440 = vst.msk [vmem:[%s4316_s4 + $0x28] sm:$0xf] %vm1429_vm2, %v2420_v15  ;;  %v4448_v15 = vld [vmem:[#allocation55_spill] sm:$0xff]  ;;  %v4490_v60 = vld [vmem:[#allocation66_spill] sm:$0xff] }
 0x16d   : > { %v2424_v7 = vpack.c.bf16 %v2980_v0, %v2980_v0  ;;  %1441 = vst.msk [vmem:[%s4316_s4 + $0x2c] sm:$0xf] %vm1429_vm2, %v2421_v23  ;;  %1442 = vst.msk [vmem:[%s4316_s4 + $0x30] sm:$0xf] %vm1429_vm2, %v2422_v41  ;;  %v2431_v61 = vpack.c.bf16 %v3024_v22, %v3024_v22  ;;  %v2432_v53 = vpack.c.bf16 %v3012_v16, %v3012_v16 }
 0x16e   : > { %v895_v33 = vadd.f32 %v3139_v27, %v893_v38  ;;  %v1062_v38 = vadd.f32 %v1061_v59, %v1060_v35  ;;  %v2417_v27 = vpack.c.bf16 %v2956_v52, %v2956_v52  ;;  %1435 = vst.msk [vmem:[%s4316_s4 + $0x14] sm:$0xf] %vm1429_vm2, %v2415_v32  ;;  %1436 = vst.msk [vmem:[%s4316_s4 + $0x18] sm:$0xf] %vm1429_vm2, %v2416_v36 }
 0x16f   : > { %v2426_v59 = vpack.c.bf16 %v3000_v10, %v3000_v10  ;;  %v2427_v35 = vpack.c.bf16 %v3008_v14, %v3008_v14  ;;  %1444 = vst.msk [vmem:[%s4316_s4 + $0x38] sm:$0xf] %vm1429_vm2, %v2424_v7  ;;  %1445 = vst.msk [vmem:[%s4316_s4 + $0x3c] sm:$0xf] %vm1429_vm2, %v2425_v9  ;;  %v2437_v32 = vpack.c.bf16 %v3036_v28, %v3036_v28  ;;  %v4452_v9 = vld [vmem:[#allocation7_spill] sm:$0xff] }
 0x170   : > { %v897_v37 = vadd.f32 %v3143_v29, %v895_v33  ;;  %v2418_v29 = vpack.c.bf16 %v2968_v58, %v2968_v58  ;;  %v1064_v1 = vadd.f32 %v1063_v3, %v1062_v38  ;;  %1437 = vst.msk [vmem:[%s4316_s4 + $0x1c] sm:$0xf] %vm1429_vm2, %v2417_v27  ;;  %1448 = vst.msk [vmem:[%s4316_s4 + $0x48] sm:$0xf] %vm1429_vm2, %v2428_v11  ;;  %v4447_v27 = vld [vmem:[#allocation57_spill] sm:$0xff] }
 0x171   : > { %1446 = vst.msk [vmem:[%s4316_s4 + $0x40] sm:$0xf] %vm1429_vm2, %v2426_v59  ;;  %1447 = vst.msk [vmem:[%s4316_s4 + $0x44] sm:$0xf] %vm1429_vm2, %v2427_v35  ;;  %v2434_v38 = vpack.c.bf16 %v3032_v26, %v3032_v26  ;;  %v2438_v36 = vpack.c.bf16 %v3048_v34, %v3048_v34  ;;  %v2443_v59 = vpack.c.bf16 %v4452_v9, %v4452_v9  ;;  %v4454_v35 = vld [vmem:[#allocation58_spill] sm:$0xff] }
 0x172   : > { %v899_v31 = vadd.f32 %v3150_v39, %v897_v37  ;;  %1438 = vst.msk [vmem:[%s4316_s4 + $0x20] sm:$0xf] %vm1429_vm2, %v2418_v29  ;;  %v2423_v39 = vpack.c.bf16 %v2992_v6, %v2992_v6  ;;  %v1066_v33 = vadd.f32 %v1065_v17, %v1064_v1  ;;  %v2430_v17 = vpack.c.bf16 %v3016_v18, %v3016_v18  ;;  %v4449_v1 = vld [vmem:[#allocation50_spill] sm:$0xff]  ;;  %v4477_v18 = vld [vmem:[#allocation35_spill] sm:$0xff]  ;;  %v4485_v6 = vld [vmem:[#allocation65_spill] sm:$0xff] }
 0x173   : > { %v2433_v37 = vpack.c.bf16 %v3020_v20, %v3020_v20  ;;  %1451 = vst.msk [vmem:[%s4316_s4 + $0x54] sm:$0xf] %vm1429_vm2, %v2431_v61  ;;  %1452 = vst.msk [vmem:[%s4316_s4 + $0x58] sm:$0xf] %vm1429_vm2, %v2432_v53  ;;  %v2440_v23 = vpack.c.bf16 %v4449_v1, %v4449_v1  ;;  %v4456_v53 = vld [vmem:[#allocation9_spill] sm:$0xff]  ;;  %v2470_v0 = vpack.c.bf16 %v4484_v4, %v4484_v4 }
 0x174   : > { %v901_v3 = vadd.f32 %v3154_v5, %v899_v31  ;;  %1443 = vst.msk [vmem:[%s4316_s4 + $0x34] sm:$0xf] %vm1429_vm2, %v2423_v39  ;;  %v2429_v5 = vpack.c.bf16 %v3004_v12, %v3004_v12  ;;  %v1068_v13 = vadd.f32 %v1067_v43, %v1066_v33  ;;  %1450 = vst.msk [vmem:[%s4316_s4 + $0x50] sm:$0xf] %vm1429_vm2, %v2430_v17  ;;  %v4451_v39 = vld [vmem:[#allocation5_spill] sm:$0xff]  ;;  %v4455_v17 = vld [vmem:[#allocation6_spill] sm:$0xff] }
 0x175   : > { %v2435_v43 = vpack.c.bf16 %v3040_v30, %v3040_v30  ;;  %1453 = vst.msk [vmem:[%s4316_s4 + $0x5c] sm:$0xf] %vm1429_vm2, %v2433_v37  ;;  %1454 = vst.msk [vmem:[%s4316_s4 + $0x60] sm:$0xf] %vm1429_vm2, %v2434_v38  ;;  %v2439_v31 = vpack.c.bf16 %v4448_v15, %v4448_v15  ;;  %v2442_v7 = vpack.c.bf16 %v4451_v39, %v4451_v39  ;;  %v4458_v37 = vld [vmem:[#allocation8_spill] sm:$0xff]  ;;  %v4470_v30 = vld [vmem:[#allocation29_spill] sm:$0xff] }
 0x176   : > { %v903_v19 = vadd.f32 %v3158_v57, %v901_v3  ;;  %1449 = vst.msk [vmem:[%s4316_s4 + $0x4c] sm:$0xf] %vm1429_vm2, %v2429_v5  ;;  %v2436_v57 = vpack.c.bf16 %v3028_v24, %v3028_v24  ;;  %v1070_v21 = vadd.f32 %v3248_v25, %v1068_v13  ;;  %1457 = vst.msk [vmem:[%s4316_s4 + $0x6c] sm:$0xf] %vm1429_vm2, %v2437_v32  ;;  %v4450_v25 = vld [vmem:[#allocation53_spill] sm:$0xff]  ;;  %v4453_v3 = vld [vmem:[#allocation4_spill] sm:$0xff] }
 0x177   : > { %1455 = vst.msk [vmem:[%s4316_s4 + $0x64] sm:$0xf] %vm1429_vm2, %v2435_v43  ;;  %1458 = vst.msk [vmem:[%s4316_s4 + $0x70] sm:$0xf] %vm1429_vm2, %v2438_v36  ;;  %v2441_v41 = vpack.c.bf16 %v4450_v25, %v4450_v25  ;;  %v2444_v33 = vpack.c.bf16 %v4453_v3, %v4453_v3  ;;  %v2445_v61 = vpack.c.bf16 %v4455_v17, %v4455_v17  ;;  %v4459_v43 = vld [vmem:[#allocation10_spill] sm:$0xff]  ;;  %v4475_v20 = vld [vmem:[#allocation61_spill] sm:$0xff] }
 0x178   : > { %v905_v29 = vadd.f32 %v4447_v27, %v903_v19  ;;  %1456 = vst.msk [vmem:[%s4316_s4 + $0x68] sm:$0xf] %vm1429_vm2, %v2436_v57  ;;  %v1072_v5 = vadd.f32 %v3251_v51, %v1070_v21  ;;  %1459 = vst.msk [vmem:[%s4316_s4 + $0x74] sm:$0xf] %vm1429_vm2, %v2439_v31  ;;  %v2446_v19 = vpack.c.bf16 %v4456_v53, %v4456_v53  ;;  %v4457_v51 = vld [vmem:[#allocation11_spill] sm:$0xff]  ;;  %v4460_v32 = vld [vmem:[#allocation14_spill] sm:$0xff] }
 0x179   : > { %1460 = vst.msk [vmem:[%s4316_s4 + $0x78] sm:$0xf] %vm1429_vm2, %v2440_v23  ;;  %1461 = vst.msk [vmem:[%s4316_s4 + $0x7c] sm:$0xf] %vm1429_vm2, %v2441_v41  ;;  %v2447_v13 = vpack.c.bf16 %v4457_v51, %v4457_v51  ;;  %v2448_v38 = vpack.c.bf16 %v4458_v37, %v4458_v37  ;;  %v2449_v57 = vpack.c.bf16 %v4459_v43, %v4459_v43  ;;  %v4461_v27 = vld [vmem:[#allocation59_spill] sm:$0xff]  ;;  %v4462_v31 = vld [vmem:[#allocation17_spill] sm:$0xff] }
 0x17a   : > { %v907_v11 = vadd.f32 %v4454_v35, %v905_v29  ;;  %1462 = vst.msk [vmem:[%s4316_s4 + $0x80] sm:$0xf] %vm1429_vm2, %v2442_v7  ;;  %1463 = vst.msk [vmem:[%s4316_s4 + $0x84] sm:$0xf] %vm1429_vm2, %v2443_v59  ;;  %v2450_v36 = vpack.c.bf16 %v4460_v32, %v4460_v32  ;;  %v1074_v21 = vadd.f32 %v3254_v49, %v1072_v5  ;;  %v4463_v41 = vld [vmem:[#allocation13_spill] sm:$0xff]  ;;  %v4464_v49 = vld [vmem:[#allocation16_spill] sm:$0xff] }
 0x17b   : > { %1464 = vst.msk [vmem:[%s4316_s4 + $0x88] sm:$0xf] %vm1429_vm2, %v2444_v33  ;;  %1465 = vst.msk [vmem:[%s4316_s4 + $0x8c] sm:$0xf] %vm1429_vm2, %v2445_v61  ;;  %v2451_v23 = vpack.c.bf16 %v4462_v31, %v4462_v31  ;;  %v2452_v7 = vpack.c.bf16 %v4463_v41, %v4463_v41  ;;  %v2453_v59 = vpack.c.bf16 %v4464_v49, %v4464_v49  ;;  %v4465_v33 = vld [vmem:[#allocation21_spill] sm:$0xff]  ;;  %v4467_v61 = vld [vmem:[#allocation19_spill] sm:$0xff] }
 0x17c   : > { %v909_v29 = vadd.f32 %v4461_v27, %v907_v11  ;;  %1466 = vst.msk [vmem:[%s4316_s4 + $0x90] sm:$0xf] %vm1429_vm2, %v2446_v19  ;;  %1467 = vst.msk [vmem:[%s4316_s4 + $0x94] sm:$0xf] %vm1429_vm2, %v2447_v13  ;;  %v2454_v35 = vpack.c.bf16 %v4465_v33, %v4465_v33  ;;  %v4466_v11 = vld [vmem:[#allocation25_spill] sm:$0xff]  ;;  %v2456_v19 = vpack.c.bf16 %v4467_v61, %v4467_v61  ;;  %v4468_v13 = vld [vmem:[#allocation60_spill] sm:$0xff] }
 0x17d   : > { %1468 = vst.msk [vmem:[%s4316_s4 + $0x98] sm:$0xf] %vm1429_vm2, %v2448_v38  ;;  %1469 = vst.msk [vmem:[%s4316_s4 + $0x9c] sm:$0xf] %vm1429_vm2, %v2449_v57  ;;  %v2455_v5 = vpack.c.bf16 %v4466_v11, %v4466_v11  ;;  %v1076_v57 = vadd.f32 %v3257_v45, %v1074_v21  ;;  %v2458_v26 = vpack.c.bf16 %v4470_v30, %v4470_v30  ;;  %v4471_v45 = vld [vmem:[#allocation33_spill] sm:$0xff]  ;;  %v4472_v21 = vld [vmem:[#allocation27_spill] sm:$0xff] }
 0x17e   : > { %1470 = vst.msk [vmem:[%s4316_s4 + $0xa0] sm:$0xf] %vm1429_vm2, %v2450_v36  ;;  %v911_v38 = vadd.f32 %v4468_v13, %v909_v29  ;;  %1471 = vst.msk [vmem:[%s4316_s4 + $0xa4] sm:$0xf] %vm1429_vm2, %v2451_v23  ;;  %v4469_v36 = vld [vmem:[#allocation23_spill] sm:$0xff]  ;;  %v2459_v29 = vpack.c.bf16 %v4471_v45, %v4471_v45  ;;  %v2460_v23 = vpack.c.bf16 %v4472_v21, %v4472_v21 }
 0x17f   : > { %1472 = vst.msk [vmem:[%s4316_s4 + $0xa8] sm:$0xf] %vm1429_vm2, %v2452_v7  ;;  %v2457_v27 = vpack.c.bf16 %v4469_v36, %v4469_v36  ;;  %1473 = vst.msk [vmem:[%s4316_s4 + $0xac] sm:$0xf] %vm1429_vm2, %v2453_v59  ;;  %v4473_v7 = vld [vmem:[#allocation31_spill] sm:$0xff]  ;;  %v2464_v12 = vpack.c.bf16 %v4477_v18, %v4477_v18 }
 0x180   : > { %1474 = vst.msk [vmem:[%s4316_s4 + $0xb0] sm:$0xf] %vm1429_vm2, %v2454_v35  ;;  %1475 = vst.msk [vmem:[%s4316_s4 + $0xb4] sm:$0xf] %vm1429_vm2, %v2455_v5  ;;  %v2461_v59 = vpack.c.bf16 %v4473_v7, %v4473_v7  ;;  %v4474_v35 = vld [vmem:[#allocation37_spill] sm:$0xff]  ;;  %v913_v16 = vadd.f32 %v4475_v20, %v911_v38  ;;  %v1078_v5 = vadd.f32 %v3260_v55, %v1076_v57  ;;  %v4478_v20 = vld [vmem:[#allocation39_spill] sm:$0xff] }
 0x181   : > { %1476 = vst.msk [vmem:[%s4316_s4 + $0xb8] sm:$0xf] %vm1429_vm2, %v2456_v19  ;;  %v2462_v13 = vpack.c.bf16 %v4474_v35, %v4474_v35  ;;  %1477 = vst.msk [vmem:[%s4316_s4 + $0xbc] sm:$0xf] %vm1429_vm2, %v2457_v27  ;;  %v4476_v19 = vld [vmem:[#allocation41_spill] sm:$0xff] }
 0x182   : > { %1478 = vst.msk [vmem:[%s4316_s4 + $0xc0] sm:$0xf] %vm1429_vm2, %v2458_v26  ;;  %v2463_v22 = vpack.c.bf16 %v4476_v19, %v4476_v19  ;;  %1479 = vst.msk [vmem:[%s4316_s4 + $0xc4] sm:$0xf] %vm1429_vm2, %v2459_v29  ;;  %v2465_v26 = vpack.c.bf16 %v4478_v20, %v4478_v20  ;;  %v4479_v55 = vld [vmem:[#allocation45_spill] sm:$0xff]  ;;  %v4481_v29 = vld [vmem:[#allocation43_spill] sm:$0xff]  ;;  %v915_v14 = vadd.f32 %v4482_v8, %v913_v16 }
 0x183   : > { %1480 = vst.msk [vmem:[%s4316_s4 + $0xc8] sm:$0xf] %vm1429_vm2, %v2460_v23  ;;  %1481 = vst.msk [vmem:[%s4316_s4 + $0xcc] sm:$0xf] %vm1429_vm2, %v2461_v59  ;;  %v2466_v38 = vpack.c.bf16 %v4479_v55, %v4479_v55  ;;  %v4480_v57 = vld [vmem:[#allocation49_spill] sm:$0xff]  ;;  %v2468_v23 = vpack.c.bf16 %v4481_v29, %v4481_v29  ;;  %v1080_v59 = vadd.f32 %v3263_v47, %v1078_v5  ;;  %v1083_v8 = vsel %vm836_vm1, %v4485_v6, 0.0 }
 0x184   : > { %1482 = vst.msk [vmem:[%s4316_s4 + $0xd0] sm:$0xf] %vm1429_vm2, %v2462_v13  ;;  %v2467_v27 = vpack.c.bf16 %v4480_v57, %v4480_v57  ;;  %1483 = vst.msk [vmem:[%s4316_s4 + $0xd4] sm:$0xf] %vm1429_vm2, %v2463_v22  ;;  %v4483_v13 = vld [vmem:[#allocation47_spill] sm:$0xff]  ;;  %v4486_v6 = vld [vmem:[#allocation56_spill] sm:$0xff] }
 0x185   : > { %1484 = vst.msk [vmem:[%s4316_s4 + $0xd8] sm:$0xf] %vm1429_vm2, %v2464_v12  ;;  %v2469_v10 = vpack.c.bf16 %v4483_v13, %v4483_v13  ;;  %1485 = vst.msk [vmem:[%s4316_s4 + $0xdc] sm:$0xf] %vm1429_vm2, %v2465_v26  ;;  %v2471_v12 = vpack.c.bf16 %v4486_v6, %v4486_v6  ;;  %v4487_v16 = vld [vmem:[#allocation51_spill] sm:$0xff]  ;;  %v4488_v47 = vld [vmem:[#allocation54_spill] sm:$0xff]  ;;  %v1082_v2 = vadd.f32 %v3266_v63, %v1080_v59 }
 0x186   : > { %1486 = vst.msk [vmem:[%s4316_s4 + $0xe0] sm:$0xf] %vm1429_vm2, %v2466_v38  ;;  %1487 = vst.msk [vmem:[%s4316_s4 + $0xe4] sm:$0xf] %vm1429_vm2, %v2467_v27  ;;  %v2472_v22 = vpack.c.bf16 %v4487_v16, %v4487_v16  ;;  %v2473_v5 = vpack.c.bf16 %v4488_v47, %v4488_v47  ;;  %v4489_v26 = vld [vmem:[#allocation63_spill] sm:$0xff]  ;;  %v920_v27 = vsel %vm836_vm1, %v4463_v41, 0.0  ;;  %v1001_v59 = vmul.f32 %v3036_v28, %v3036_v28 }
 0x187   : > { %1488 = vst.msk [vmem:[%s4316_s4 + $0xe8] sm:$0xf] %vm1429_vm2, %v2468_v23  ;;  %v917_v38 = vadd.f32 %v4489_v26, %v915_v14  ;;  %1489 = vst.msk [vmem:[%s4316_s4 + $0xec] sm:$0xf] %vm1429_vm2, %v2469_v10  ;;  %v1000_v23 = vmul.f32 %v3028_v24, %v3028_v24  ;;  %v1085_v14 = vsel %vm836_vm1, %v4490_v60, 0.0  ;;  %v1084_v63 = vadd.f32 %v1083_v8, %v1082_v2 }
 0x188   : > { %1490 = vst.msk [vmem:[%s4316_s4 + $0xf0] sm:$0xf] %vm1429_vm2, %v2470_v0  ;;  %1491 = vst.msk [vmem:[%s4316_s4 + $0xf4] sm:$0xf] %vm1429_vm2, %v2471_v12  ;;  %v4491_v0 = vld [vmem:[#allocation64_spill] sm:$0xff]  ;;  %v922_v60 = vsel %vm836_vm1, %v4464_v49, 0.0  ;;  %v1003_v28 = vmul.f32 %v4448_v15, %v4448_v15  ;;  %v1005_v15 = vmul.f32 %v4450_v25, %v4450_v25  ;;  %v1007_v25 = vmul.f32 %v4452_v9, %v4452_v9 }
 0x189   : > { %1492 = vst.msk [vmem:[%s4316_s4 + $0xf8] sm:$0xf] %vm1429_vm2, %v2472_v22  ;;  %1493 = vst.msk [vmem:[%s4316_s4 + $0xfc] sm:$0xf] %vm1429_vm2, %v2473_v5  ;;  %v919_v10 = vadd.f32 %v4491_v0, %v917_v38  ;;  %v4492_v12 = vld [vmem:[#allocation67_spill] sm:$0xff]  ;;  %v1086_v56 = vadd.f32 %v1085_v14, %v1084_v63  ;;  %v924_v22 = vsel %vm836_vm1, %v4465_v33, 0.0  ;;  %v1002_v5 = vmul.f32 %v3048_v34, %v3048_v34 }
 0x18a   : > { %v1087_v26 = vsel %vm836_vm1, %v4492_v12, 0.0  ;;  %v1089_v38 = vsel %vm836_vm1, %v1000_v23, 0.0  ;;  %v926_v0 = vsel %vm836_vm1, %v4466_v11, 0.0  ;;  %v1091_v12 = vsel %vm836_vm1, %v1001_v59, 0.0 }
 0x18b   : > { %v921_v24 = vadd.f32 %v920_v27, %v919_v10  ;;  %v1088_v8 = vadd.f32 %v1087_v26, %v1086_v56  ;;  %v928_v10 = vsel %vm836_vm1, %v4467_v61, 0.0  ;;  %v1004_v63 = vmul.f32 %v4449_v1, %v4449_v1 }
 0x18c   : > { %v1093_v23 = vsel %vm836_vm1, %v1002_v5, 0.0  ;;  %v1095_v59 = vsel %vm836_vm1, %v1003_v28, 0.0  ;;  %v1006_v1 = vmul.f32 %v4451_v39, %v4451_v39  ;;  %v1099_v28 = vsel %vm836_vm1, %v1005_v15, 0.0 }
 0x18d   : > { %v923_v2 = vadd.f32 %v922_v60, %v921_v24  ;;  %v1090_v14 = vadd.f32 %v1089_v38, %v1088_v8  ;;  %v930_v60 = vsel %vm836_vm1, %v4469_v36, 0.0  ;;  %v932_v38 = vsel %vm836_vm1, %v4470_v30, 0.0 }
 0x18e   : > { %v1097_v5 = vsel %vm836_vm1, %v1004_v63, 0.0  ;;  %v1008_v39 = vmul.f32 %v4453_v3, %v4453_v3  ;;  %v1009_v9 = vmul.f32 %v4455_v17, %v4455_v17  ;;  %v1010_v3 = vmul.f32 %v4456_v53, %v4456_v53 }
 0x18f   : > { %v925_v27 = vadd.f32 %v924_v22, %v923_v2  ;;  %v1092_v56 = vadd.f32 %v1091_v12, %v1090_v14  ;;  %v936_v14 = vsel %vm836_vm1, %v4472_v21, 0.0  ;;  %v1011_v17 = vmul.f32 %v4457_v51, %v4457_v51 }
 0x190   : > { %v1012_v53 = vmul.f32 %v4458_v37, %v4458_v37  ;;  %v1013_v51 = vmul.f32 %v4459_v43, %v4459_v43  ;;  %v1014_v37 = vmul.f32 %v4460_v32, %v4460_v32  ;;  %v1015_v43 = vmul.f32 %v4462_v31, %v4462_v31 }
 0x191   : > { %v927_v24 = vadd.f32 %v926_v0, %v925_v27  ;;  %v1094_v22 = vadd.f32 %v1093_v23, %v1092_v56  ;;  %v934_v0 = vsel %vm836_vm1, %v4471_v45, 0.0  ;;  %v1103_v56 = vsel %vm836_vm1, %v1007_v25, 0.0 }
 0x192   : > { %v1109_v25 = vsel %vm836_vm1, %v1010_v3, 0.0  ;;  %v952_v3 = vsel %vm836_vm1, %v4481_v29, 0.0  ;;  %v1016_v32 = vmul.f32 %v4463_v41, %v4463_v41  ;;  %v1017_v31 = vmul.f32 %v4464_v49, %v4464_v49 }
 0x193   : > { %v929_v26 = vadd.f32 %v928_v10, %v927_v24  ;;  %v1096_v8 = vadd.f32 %v1095_v59, %v1094_v22  ;;  %v1101_v10 = vsel %vm836_vm1, %v1006_v1, 0.0  ;;  %v938_v24 = vsel %vm836_vm1, %v4473_v7, 0.0 }
 0x194   : > { %v940_v59 = vsel %vm836_vm1, %v4474_v35, 0.0  ;;  %v942_v1 = vsel %vm836_vm1, %v4476_v19, 0.0  ;;  %v1018_v41 = vmul.f32 %v4465_v33, %v4465_v33  ;;  %v1019_v49 = vmul.f32 %v4466_v11, %v4466_v11 }
 0x195   : > { %v931_v2 = vadd.f32 %v930_v60, %v929_v26  ;;  %v1098_v27 = vadd.f32 %v1097_v5, %v1096_v8  ;;  %v1105_v26 = vsel %vm836_vm1, %v1008_v39, 0.0  ;;  %v1107_v5 = vsel %vm836_vm1, %v1009_v9, 0.0 }
 0x196   : > { %v1020_v33 = vmul.f32 %v4467_v61, %v4467_v61  ;;  %v1021_v11 = vmul.f32 %v4469_v36, %v4469_v36  ;;  %v1024_v36 = vmul.f32 %v4472_v21, %v4472_v21  ;;  %v1027_v21 = vmul.f32 %v4476_v19, %v4476_v19 }
 0x197   : > { %v933_v12 = vadd.f32 %v932_v38, %v931_v2  ;;  %v1100_v23 = vadd.f32 %v1099_v28, %v1098_v27  ;;  %v946_v27 = vsel %vm836_vm1, %v4478_v20, 0.0 }
 0x199   : > { %v935_v63 = vadd.f32 %v934_v0, %v933_v12  ;;  %v1102_v15 = vadd.f32 %v1101_v10, %v1100_v23  ;;  %v944_v0 = vsel %vm836_vm1, %v4477_v18, 0.0  ;;  %v1113_v23 = vsel %vm836_vm1, %v1012_v53, 0.0 }
 0x19b   : > { %v937_v60 = vadd.f32 %v936_v14, %v935_v63  ;;  %v1104_v38 = vadd.f32 %v1103_v56, %v1102_v15  ;;  %v1111_v14 = vsel %vm836_vm1, %v1011_v17, 0.0  ;;  %v948_v63 = vsel %vm836_vm1, %v4479_v55, 0.0 }
 0x19c   : > { %v950_v56 = vsel %vm836_vm1, %v4480_v57, 0.0  ;;  %v1119_v17 = vsel %vm836_vm1, %v1015_v43, 0.0  ;;  %v1129_v43 = vsel %vm836_vm1, %v1020_v33, 0.0 }
 0x19d   : > { %v939_v22 = vadd.f32 %v938_v24, %v937_v60  ;;  %v1106_v8 = vadd.f32 %v1105_v26, %v1104_v38  ;;  %v1115_v60 = vsel %vm836_vm1, %v1013_v51, 0.0  ;;  %v1117_v26 = vsel %vm836_vm1, %v1014_v37, 0.0 }
 0x19e   : > { %v962_v37 = vsel %vm836_vm1, %v4488_v47, 0.0 }
 0x19f   : > { %v941_v2 = vadd.f32 %v940_v59, %v939_v22  ;;  %v1108_v12 = vadd.f32 %v1107_v5, %v1106_v8  ;;  %v956_v8 = vsel %vm836_vm1, %v4484_v4, 0.0 }
 0x1a1   : > { %v943_v28 = vadd.f32 %v942_v1, %v941_v2  ;;  %v1110_v10 = vadd.f32 %v1109_v25, %v1108_v12  ;;  %v954_v1 = vsel %vm836_vm1, %v4483_v13, 0.0  ;;  %v1123_v12 = vsel %vm836_vm1, %v1017_v31, 0.0 }
 0x1a3   : > { %v945_v39 = vadd.f32 %v944_v0, %v943_v28  ;;  %v1112_v9 = vadd.f32 %v1111_v14, %v1110_v10  ;;  %v1121_v0 = vsel %vm836_vm1, %v1016_v32, 0.0  ;;  %v958_v28 = vsel %vm836_vm1, %v4486_v6, 0.0 }
 0x1a4   : > { %v960_v14 = vsel %vm836_vm1, %v4487_v16, 0.0 }
 0x1a5   : > { %v947_v24 = vadd.f32 %v946_v27, %v945_v39  ;;  %v1114_v59 = vadd.f32 %v1113_v23, %v1112_v9  ;;  %v1125_v39 = vsel %vm836_vm1, %v1018_v41, 0.0  ;;  %v1127_v23 = vsel %vm836_vm1, %v1019_v49, 0.0 }
 0x1a7   : > { %v949_v15 = vadd.f32 %v948_v63, %v947_v24  ;;  %v1116_v38 = vadd.f32 %v1115_v60, %v1114_v59  ;;  %v1131_v59 = vsel %vm836_vm1, %v1021_v11, 0.0 }
 0x1a9   : > { %v951_v22 = vadd.f32 %v950_v56, %v949_v15  ;;  %v1118_v2 = vadd.f32 %v1117_v26, %v1116_v38  ;;  %v1022_v56 = vmul.f32 %v4470_v30, %v4470_v30  ;;  %v1023_v15 = vmul.f32 %v4471_v45, %v4471_v45 }
 0x1aa   : > { %v1025_v30 = vmul.f32 %v4473_v7, %v4473_v7  ;;  %v1026_v45 = vmul.f32 %v4474_v35, %v4474_v35  ;;  %v1028_v7 = vmul.f32 %v4477_v18, %v4477_v18  ;;  %v1029_v35 = vmul.f32 %v4478_v20, %v4478_v20 }
 0x1ab   : > { %v953_v5 = vadd.f32 %v952_v3, %v951_v22  ;;  %v1120_v25 = vadd.f32 %v1119_v17, %v1118_v2  ;;  %v1133_v26 = vsel %vm836_vm1, %v1022_v56, 0.0  ;;  %v1032_v20 = vmul.f32 %v4481_v29, %v4481_v29 }
 0x1ac   : > { %v1139_v41 = vsel %vm836_vm1, %v1025_v30, 0.0  ;;  %v1145_v33 = vsel %vm836_vm1, %v1028_v7, 0.0 }
 0x1ad   : > { %v955_v53 = vadd.f32 %v954_v1, %v953_v5  ;;  %v1122_v51 = vadd.f32 %v1121_v0, %v1120_v25  ;;  %v1135_v1 = vsel %vm836_vm1, %v1023_v15, 0.0  ;;  %v1137_v5 = vsel %vm836_vm1, %v1024_v36, 0.0  ;;  %v835_v25 = vld [vmem:[#allocation2] sm:$0x1] }
 0x1af   : > { %v957_v27 = vadd.f32 %v956_v8, %v955_v53  ;;  %v1124_v63 = vadd.f32 %v1123_v12, %v1122_v51 }
 0x1b1   : > { %v959_v10 = vadd.f32 %v958_v28, %v957_v27  ;;  %v1126_v9 = vadd.f32 %v1125_v39, %v1124_v63  ;;  %v1141_v28 = vsel %vm836_vm1, %v1026_v45, 0.0  ;;  %v1143_v27 = vsel %vm836_vm1, %v1027_v21, 0.0 }
 0x1b2   : > { %v1031_v39 = vmul.f32 %v4480_v57, %v4480_v57  ;;  %v1153_v57 = vsel %vm836_vm1, %v1032_v20, 0.0 }
 0x1b3   : > { %v961_v24 = vadd.f32 %v960_v14, %v959_v10  ;;  %v1128_v60 = vadd.f32 %v1127_v23, %v1126_v9  ;;  %v1030_v14 = vmul.f32 %v4479_v55, %v4479_v55  ;;  %v1147_v10 = vsel %vm836_vm1, %v1029_v35, 0.0 }
 0x1b4   : > { %v1033_v55 = vmul.f32 %v4483_v13, %v4483_v13  ;;  %v1151_v23 = vsel %vm836_vm1, %v1031_v39, 0.0  ;;  %v1034_v9 = vmul.f32 %v4484_v4, %v4484_v4 }
 0x1b5   : > { %v963_v61 = vadd.f32 %v962_v37, %v961_v24  ;;  %v1130_v32 = vadd.f32 %v1129_v43, %v1128_v60  ;;  %v1149_v37 = vsel %vm836_vm1, %v1030_v14, 0.0  ;;  %v1035_v43 = vmul.f32 %v4486_v6, %v4486_v6 }
 0x1b6   : > { %v1155_v29 = vsel %vm836_vm1, %v1033_v55, 0.0  ;;  %v1036_v60 = vmul.f32 %v4487_v16, %v4487_v16  ;;  %v1157_v13 = vsel %vm836_vm1, %v1034_v9, 0.0 }
 0x1b7   : > { %v964_v3 = vrot.slane %v963_v61, 4  ;;  %v1132_v38 = vadd.f32 %v1131_v59, %v1130_v32  ;;  %v1037_v59 = vmul.f32 %v4488_v47, %v4488_v47  ;;  %v1159_v4 = vsel %vm836_vm1, %v1035_v43, 0.0 }
 0x1b8   : > { %v1161_v32 = vsel %vm836_vm1, %v1036_v60, 0.0 }
 0x1b9   : > { %v965_v22 = vadd.f32 %v964_v3, %v963_v61  ;;  %v1134_v17 = vadd.f32 %v1133_v26, %v1132_v38  ;;  %v1163_v6 = vsel %vm836_vm1, %v1037_v59, 0.0 }
 0x1bb   : > { %v966_v31 = vrot.slane %v965_v22, 2  ;;  %v1136_v8 = vadd.f32 %v1135_v1, %v1134_v17  ;;  %v973_v17 = vld [vmem:[#allocation3] sm:$0x1] }
 0x1bd   : > { %v967_v2 = vadd.f32 %v966_v31, %v965_v22  ;;  %v1138_v53 = vadd.f32 %v1137_v5, %v1136_v8 }
 0x1bf   : > { %v968_v0 = vrot.slane %v967_v2, 1  ;;  %v1140_v12 = vadd.f32 %v1139_v41, %v1138_v53 }
 0x1c1   : > { %v969_v49 = vadd.f32 %v968_v0, %v967_v2  ;;  %v1142_v19 = vadd.f32 %v1141_v28, %v1140_v12 }
 0x1c3   : > { %v970_v51 = vadd.f32 %v969_v49, %v835_v25  ;;  %v1144_v18 = vadd.f32 %v1143_v27, %v1142_v19 }
 0x1c5   : > { %972 = vst.msk [vmem:[#allocation2] sm:$0x1] %vm971_vm3, %v970_v51  ;;  %v1146_v63 = vadd.f32 %v1145_v33, %v1144_v18 }
 0x1c7   : > { %v1148_v11 = vadd.f32 %v1147_v10, %v1146_v63 }
 0x1c9   : > { %v1150_v24 = vadd.f32 %v1149_v37, %v1148_v11 }
 0x1cb   : > { %v1152_v56 = vadd.f32 %v1151_v23, %v1150_v24 }
 0x1cd   : > { %v1154_v61 = vadd.f32 %v1153_v57, %v1152_v56 }
 0x1cf   : > { %v1156_v15 = vadd.f32 %v1155_v29, %v1154_v61 }
 0x1d1   : > { %v1158_v3 = vadd.f32 %v1157_v13, %v1156_v15 }
 0x1d3   : > { %v1160_v36 = vadd.f32 %v1159_v4, %v1158_v3 }
 0x1d5   : > { %v1162_v26 = vadd.f32 %v1161_v32, %v1160_v36 }
 0x1d7   : > { %v1164_v22 = vadd.f32 %v1163_v6, %v1162_v26 }
 0x1d9   : > { %v1165_v38 = vrot.slane %v1164_v22, 4 }
 0x1db   : > { %v1166_v30 = vadd.f32 %v1165_v38, %v1164_v22 }
 0x1dd   : > { %v1167_v1 = vrot.slane %v1166_v30, 2 }
 0x1df   : > { %v1168_v16 = vadd.f32 %v1167_v1, %v1166_v30 }
 0x1e1   : > { %v1169_v31 = vrot.slane %v1168_v16, 1 }
 0x1e3   : > { %v1170_v45 = vadd.f32 %v1169_v31, %v1168_v16 }
 0x1e5   : > { %v1171_v5 = vadd.f32 %v1170_v45, %v973_v17 }
 0x1e7   : > { %1172 = vst.msk [vmem:[#allocation3] sm:$0x1] %vm971_vm3, %v1171_v5 }
 0x1e8 PF: > { %p2340_p6 = scmp.ne.s32.totalorder %s2755_s15, 1 }
 0x1ea   : > { %1497 = sbr.rel (%p2340_p6) target bundleno = 625 (0x271), region = 48 }
 0x1ef   : > { %v1498_v47 = vld [vmem:[#allocation2] sm:$0x1]  ;;  %v1500_v2 = vld [vmem:[#allocation3] sm:$0x1]  ;;  %v1513_v7 = vlaneseq  ;;  %vm2100_vm4 = vcmask 125952   ;;  %v4493_v55 = vld [vmem:[#allocation12_spill] sm:$0xff] }
 0x1f0   : > { %v1499_v8 = vmul.f32 0.001953125, %v1498_v47  ;;  %v1501_v21 = vmul.f32 0.001953125, %v1500_v2  ;;  %v1505_v49 = vld [vmem:[%s4314_s2] sm:$0x1]  ;;  %v4495_v24 = vld [vmem:[#allocation20_spill] sm:$0xff] }
 0x1f1   : > { %v1514_v28 = vshrl.u32 %v1513_v7, 7  ;;  %v1509_v51 = vld [vmem:[%s4315_s3] sm:$0x1]  ;;  %v4496_v9 = vld [vmem:[#allocation24_spill] sm:$0xff] }
 0x1f2   : > { %v1502_v41 = vmul.f32 %v1499_v8, %v1499_v8  ;;  %v4494_v23 = vld [vmem:[#allocation15_spill] sm:$0xff] }
 0x1f3   : > { %v1515_v12 = vsub.s32 0, %v1514_v28 }
 0x1f4   : > { %v1503_v0 = vsub.f32 %v1501_v21, %v1502_v41 }
 0x1f6   : > { %v1504_v53 = vmax.f32 %v1503_v0, 0.0 }
 0x1f8   : > { %v1506_v25 = vadd.f32 1e-05, %v1504_v53 }
 0x1fa   : > { %2739 = vrsqrt.f32 %v1506_v25 }
 0x207   : > { %v2740_v35 = vpop.eup %2739 }
 0x208   : > { %v1508_v27 = vmul.f32 %v2740_v35, %v1505_v49 }
 0x20a   : > { %v1510_v19 = vmul.f32 %v1508_v27, %v1499_v8  ;;  %v3845_v14 = vrot.slane %v1508_v27, %v1515_v12 }
 0x20c   : > { %v1511_v33 = vsub.f32 %v1509_v51, %v1510_v19  ;;  %v1518_v18 = vmul.f32 %v3845_v14, %v2936_v42  ;;  %v1519_v39 = vmul.f32 %v3845_v14, %v2944_v46  ;;  %v1520_v10 = vmul.f32 %v2932_v40, %v3845_v14 }
 0x20d   : > { %v1521_v63 = vmul.f32 %v2940_v44, %v3845_v14  ;;  %v1522_v20 = vmul.f32 %v3845_v14, %v2952_v50  ;;  %v1523_v37 = vmul.f32 %v3845_v14, %v2960_v54  ;;  %v1524_v11 = vmul.f32 %v2948_v48, %v3845_v14 }
 0x20e   : > { %v3861_v42 = vrot.slane %v1511_v33, %v1515_v12  ;;  %v1525_v46 = vmul.f32 %v2956_v52, %v3845_v14  ;;  %v1526_v40 = vmul.f32 %v3845_v14, %v2968_v58  ;;  %v1527_v44 = vmul.f32 %v3845_v14, %v2976_v62 }
 0x20f   : > { %v1528_v50 = vmul.f32 %v4493_v55, %v3845_v14  ;;  %v1529_v54 = vmul.f32 %v4494_v23, %v3845_v14  ;;  %v3875_v48 = vmul.f32 %v3845_v14, %v4495_v24  ;;  %v3879_v57 = vmul.f32 %v3845_v14, %v4496_v9  ;;  %v4499_v24 = vld [vmem:[#allocation28_spill] sm:$0xff] }
 0x210   : > { %v1588_v52 = vadd.f32 %v3861_v42, %v1518_v18  ;;  %v1589_v58 = vadd.f32 %v3861_v42, %v1519_v39  ;;  %v1590_v62 = vadd.f32 %v3861_v42, %v1520_v10  ;;  %v1591_v56 = vadd.f32 %v3861_v42, %v1521_v63  ;;  %v4500_v9 = vld [vmem:[#allocation32_spill] sm:$0xff] }
 0x211   : > { %v1592_v43 = vadd.f32 %v3861_v42, %v1522_v20  ;;  %v1593_v29 = vadd.f32 %v3861_v42, %v1523_v37  ;;  %v1594_v61 = vadd.f32 %v3861_v42, %v1524_v11  ;;  %v1595_v60 = vadd.f32 %v3861_v42, %v1525_v46 }
 0x212   : > { %vm1652_vm5 = vcmp.gt.f32.partialorder %v1588_v52, 0.0  ;;  %v1716_v13 = vmul.f32 0.2, %v1588_v52  ;;  %vm1653_vm6 = vcmp.gt.f32.partialorder %v1589_v58, 0.0  ;;  %v1717_v15 = vmul.f32 0.2, %v1589_v58 }
 0x213   : > { %vm1654_vm7 = vcmp.gt.f32.partialorder %v1590_v62, 0.0  ;;  %v1718_v59 = vmul.f32 0.2, %v1590_v62  ;;  %vm1655_vm8 = vcmp.gt.f32.partialorder %v1591_v56, 0.0  ;;  %v1719_v4 = vmul.f32 0.2, %v1591_v56 }
 0x214   : > { %v1780_v3 = vsel %vm1652_vm5, %v1588_v52, %v1716_v13  ;;  %v1781_v32 = vsel %vm1653_vm6, %v1589_v58, %v1717_v15  ;;  %vm1656_vm9 = vcmp.gt.f32.partialorder %v1592_v43, 0.0  ;;  %v1720_v36 = vmul.f32 0.2, %v1592_v43  ;;  %v4501_v52 = vld [vmem:[#allocation26_spill] sm:$0xff] }
 0x215   : > { %v2474_v6 = vpack.c.bf16 %v1780_v3, %v1780_v3  ;;  %v2475_v26 = vpack.c.bf16 %v1781_v32, %v1781_v32  ;;  %v1782_v22 = vsel %vm1654_vm7, %v1590_v62, %v1718_v59  ;;  %v1783_v38 = vsel %vm1655_vm8, %v1591_v56, %v1719_v4 }
 0x216   : > { %v2476_v30 = vpack.c.bf16 %v1782_v22, %v1782_v22  ;;  %v2477_v1 = vpack.c.bf16 %v1783_v38, %v1783_v38  ;;  %v1784_v16 = vsel %vm1656_vm9, %v1592_v43, %v1720_v36  ;;  %vm1657_vm10 = vcmp.gt.f32.partialorder %v1593_v29, 0.0 }
 0x217   : > { %2101 = vst.msk [vmem:[%s4316_s4] sm:$0xf] %vm2100_vm4, %v2474_v6  ;;  %2102 = vst.msk [vmem:[%s4316_s4 + $0x4] sm:$0xf] %vm2100_vm4, %v2475_v26  ;;  %v2478_v31 = vpack.c.bf16 %v1784_v16, %v1784_v16  ;;  %v1721_v17 = vmul.f32 0.2, %v1593_v29  ;;  %v1596_v47 = vadd.f32 %v3861_v42, %v1526_v40  ;;  %v1597_v2 = vadd.f32 %v3861_v42, %v1527_v44 }
 0x218   : > { %vm1658_vm11 = vcmp.gt.f32.partialorder %v1594_v61, 0.0  ;;  %v1722_v45 = vmul.f32 0.2, %v1594_v61  ;;  %2103 = vst.msk [vmem:[%s4316_s4 + $0x8] sm:$0xf] %vm2100_vm4, %v2476_v30  ;;  %vm1659_vm12 = vcmp.gt.f32.partialorder %v1595_v60, 0.0  ;;  %v1598_v41 = vadd.f32 %v3861_v42, %v1528_v50 }
 0x219   : > { %2104 = vst.msk [vmem:[%s4316_s4 + $0xc] sm:$0xf] %vm2100_vm4, %v2477_v1  ;;  %v1723_v5 = vmul.f32 0.2, %v1595_v60  ;;  %2105 = vst.msk [vmem:[%s4316_s4 + $0x10] sm:$0xf] %vm2100_vm4, %v2478_v31  ;;  %v1785_v8 = vsel %vm1657_vm10, %v1593_v29, %v1721_v17  ;;  %v1599_v0 = vadd.f32 %v3861_v42, %v1529_v54  ;;  %v1600_v33 = vadd.f32 %v3861_v42, %v3875_v48 }
 0x21a   : > { %v1786_v21 = vsel %vm1658_vm11, %v1594_v61, %v1722_v45  ;;  %v2479_v53 = vpack.c.bf16 %v1785_v8, %v1785_v8  ;;  %vm1660_vm13 = vcmp.gt.f32.partialorder %v1596_v47, 0.0  ;;  %v1724_v49 = vmul.f32 0.2, %v1596_v47  ;;  %v4497_v44 = vld [vmem:[#allocation18_spill] sm:$0xff] }
 0x21b   : > { %v2480_v25 = vpack.c.bf16 %v1786_v21, %v1786_v21  ;;  %v1787_v7 = vsel %vm1659_vm12, %v1595_v60, %v1723_v5  ;;  %vm1661_vm14 = vcmp.gt.f32.partialorder %v1597_v2, 0.0  ;;  %v1725_v12 = vmul.f32 0.2, %v1597_v2  ;;  %v4498_v50 = vld [vmem:[#allocation22_spill] sm:$0xff]  ;;  %v4504_v21 = vld [vmem:[#allocation40_spill] sm:$0xff] }
 0x21c   : > { %v2481_v28 = vpack.c.bf16 %v1787_v7, %v1787_v7  ;;  %2106 = vst.msk [vmem:[%s4316_s4 + $0x14] sm:$0xf] %vm2100_vm4, %v2479_v53  ;;  %vm1662_vm15 = vcmp.gt.f32.partialorder %v1598_v41, 0.0  ;;  %v1726_v35 = vmul.f32 0.2, %v1598_v41  ;;  %vm1663_vm0 = vcmp.gt.f32.partialorder %v1599_v0, 0.0 }
 0x21d   : > { %2107 = vst.msk [vmem:[%s4316_s4 + $0x18] sm:$0xf] %vm2100_vm4, %v2480_v25  ;;  %v1727_v27 = vmul.f32 0.2, %v1599_v0  ;;  %v1788_v51 = vsel %vm1660_vm13, %v1596_v47, %v1724_v49  ;;  %v1789_v19 = vsel %vm1661_vm14, %v1597_v2, %v1725_v12  ;;  %v1601_v18 = vadd.f32 %v3861_v42, %v3879_v57  ;;  %v4502_v45 = vld [vmem:[#allocation30_spill] sm:$0xff]  ;;  %v4503_v2 = vld [vmem:[#allocation36_spill] sm:$0xff] }
 0x21e   : > { %2108 = vst.msk [vmem:[%s4316_s4 + $0x1c] sm:$0xf] %vm2100_vm4, %v2481_v28  ;;  %v2482_v39 = vpack.c.bf16 %v1788_v51, %v1788_v51  ;;  %v2483_v10 = vpack.c.bf16 %v1789_v19, %v1789_v19  ;;  %v1790_v63 = vsel %vm1662_vm15, %v1598_v41, %v1726_v35  ;;  %vm1664_vm1 = vcmp.gt.f32.partialorder %v1600_v33, 0.0  ;;  %v4506_v7 = vld [vmem:[#allocation38_spill] sm:$0xff]  ;;  %v4507_v49 = vld [vmem:[#allocation44_spill] sm:$0xff] }
 0x21f   : > { %v1791_v20 = vsel %vm1663_vm0, %v1599_v0, %v1727_v27  ;;  %v2484_v37 = vpack.c.bf16 %v1790_v63, %v1790_v63  ;;  %v1728_v46 = vmul.f32 0.2, %v1600_v33  ;;  %vm1665_vm2 = vcmp.gt.f32.partialorder %v1601_v18, 0.0  ;;  %v4505_v0 = vld [vmem:[#allocation34_spill] sm:$0xff]  ;;  %v4508_v35 = vld [vmem:[#allocation48_spill] sm:$0xff] }
 0x220   : > { %v2485_v11 = vpack.c.bf16 %v1791_v20, %v1791_v20  ;;  %2109 = vst.msk [vmem:[%s4316_s4 + $0x20] sm:$0xf] %vm2100_vm4, %v2482_v39  ;;  %2110 = vst.msk [vmem:[%s4316_s4 + $0x24] sm:$0xf] %vm2100_vm4, %v2483_v10  ;;  %v1729_v40 = vmul.f32 0.2, %v1601_v18  ;;  %v1532_v55 = vmul.f32 %v4497_v44, %v3845_v14  ;;  %v1533_v23 = vmul.f32 %v4498_v50, %v3845_v14 }
 0x221   : > { %2111 = vst.msk [vmem:[%s4316_s4 + $0x28] sm:$0xf] %vm2100_vm4, %v2484_v37  ;;  %v1792_v54 = vsel %vm1664_vm1, %v1600_v33, %v1728_v46  ;;  %v1534_v48 = vmul.f32 %v3845_v14, %v4499_v24  ;;  %v1535_v57 = vmul.f32 %v3845_v14, %v4500_v9  ;;  %v1536_v58 = vmul.f32 %v4501_v52, %v3845_v14 }
 0x222   : > { %2112 = vst.msk [vmem:[%s4316_s4 + $0x2c] sm:$0xf] %vm2100_vm4, %v2485_v11  ;;  %v2486_v62 = vpack.c.bf16 %v1792_v54, %v1792_v54  ;;  %v1793_v56 = vsel %vm1665_vm2, %v1601_v18, %v1729_v40  ;;  %v1602_v43 = vadd.f32 %v3861_v42, %v1532_v55  ;;  %v1603_v29 = vadd.f32 %v3861_v42, %v1533_v23  ;;  %v4509_v18 = vld [vmem:[#allocation42_spill] sm:$0xff] }
 0x223   : > { %v2487_v61 = vpack.c.bf16 %v1793_v56, %v1793_v56  ;;  %v1604_v60 = vadd.f32 %v3861_v42, %v1534_v48  ;;  %v1605_v13 = vadd.f32 %v3861_v42, %v1535_v57  ;;  %v1606_v15 = vadd.f32 %v3861_v42, %v1536_v58 }
 0x224   : > { %2113 = vst.msk [vmem:[%s4316_s4 + $0x30] sm:$0xf] %vm2100_vm4, %v2486_v62  ;;  %vm1666_vm3 = vcmp.gt.f32.partialorder %v1602_v43, 0.0  ;;  %v1730_v59 = vmul.f32 0.2, %v1602_v43  ;;  %vm1667_vm5 = vcmp.gt.f32.partialorder %v1603_v29, 0.0  ;;  %v1537_v5 = vmul.f32 %v4502_v45, %v3845_v14 }
 0x225   : > { %v1731_v4 = vmul.f32 0.2, %v1603_v29  ;;  %2114 = vst.msk [vmem:[%s4316_s4 + $0x34] sm:$0xf] %vm2100_vm4, %v2487_v61  ;;  %vm1668_vm6 = vcmp.gt.f32.partialorder %v1604_v60, 0.0  ;;  %vm1669_vm7 = vcmp.gt.f32.partialorder %v1605_v13, 0.0  ;;  %v1538_v8 = vmul.f32 %v3845_v14, %v4503_v2 }
 0x226   : > { %v1732_v3 = vmul.f32 0.2, %v1604_v60  ;;  %v1733_v32 = vmul.f32 0.2, %v1605_v13  ;;  %v1794_v36 = vsel %vm1666_vm3, %v1602_v43, %v1730_v59  ;;  %vm1670_vm8 = vcmp.gt.f32.partialorder %v1606_v15, 0.0  ;;  %v4510_v43 = vld [vmem:[#allocation46_spill] sm:$0xff] }
 0x227   : > { %v1795_v6 = vsel %vm1667_vm5, %v1603_v29, %v1731_v4  ;;  %v1734_v26 = vmul.f32 0.2, %v1606_v15  ;;  %v2488_v22 = vpack.c.bf16 %v1794_v36, %v1794_v36  ;;  %v1539_v41 = vmul.f32 %v3845_v14, %v4504_v21 }
 0x228   : > { %v2489_v38 = vpack.c.bf16 %v1795_v6, %v1795_v6  ;;  %v1796_v30 = vsel %vm1668_vm6, %v1604_v60, %v1732_v3  ;;  %v1797_v1 = vsel %vm1669_vm7, %v1605_v13, %v1733_v32  ;;  %v1540_v53 = vmul.f32 %v4505_v0, %v3845_v14 }
 0x229   : > { %v2490_v16 = vpack.c.bf16 %v1796_v30, %v1796_v30  ;;  %v2491_v31 = vpack.c.bf16 %v1797_v1, %v1797_v1  ;;  %v1798_v17 = vsel %vm1670_vm8, %v1606_v15, %v1734_v26  ;;  %2115 = vst.msk [vmem:[%s4316_s4 + $0x38] sm:$0xf] %vm2100_vm4, %v2488_v22  ;;  %v1607_v25 = vadd.f32 %v3861_v42, %v1537_v5  ;;  %v4511_v15 = vld [vmem:[#allocation55_spill] sm:$0xff]  ;;  %v4512_v26 = vld [vmem:[#allocation50_spill] sm:$0xff] }
 0x22a   : > { %2116 = vst.msk [vmem:[%s4316_s4 + $0x3c] sm:$0xf] %vm2100_vm4, %v2489_v38  ;;  %v2492_v47 = vpack.c.bf16 %v1798_v17, %v1798_v17  ;;  %v1541_v28 = vmul.f32 %v4506_v7, %v3845_v14  ;;  %v1542_v12 = vmul.f32 %v3845_v14, %v4507_v49  ;;  %v1543_v27 = vmul.f32 %v3845_v14, %v4508_v35 }
 0x22b   : > { %2117 = vst.msk [vmem:[%s4316_s4 + $0x40] sm:$0xf] %vm2100_vm4, %v2490_v16  ;;  %2118 = vst.msk [vmem:[%s4316_s4 + $0x44] sm:$0xf] %vm2100_vm4, %v2491_v31  ;;  %v1608_v51 = vadd.f32 %v3861_v42, %v1538_v8  ;;  %v1609_v19 = vadd.f32 %v3861_v42, %v1539_v41  ;;  %v1610_v33 = vadd.f32 %v3861_v42, %v1540_v53  ;;  %vm1671_vm9 = vcmp.gt.f32.partialorder %v1607_v25, 0.0  ;;  %v4514_v41 = vld [vmem:[#allocation5_spill] sm:$0xff] }
 0x22c   : > { %2119 = vst.msk [vmem:[%s4316_s4 + $0x48] sm:$0xf] %vm2100_vm4, %v2492_v47  ;;  %v1544_v39 = vmul.f32 %v4509_v18, %v3845_v14  ;;  %v1735_v10 = vmul.f32 0.2, %v1607_v25  ;;  %v1611_v63 = vadd.f32 %v3861_v42, %v1541_v28  ;;  %v1612_v20 = vadd.f32 %v3861_v42, %v1542_v12  ;;  %v4513_v47 = vld [vmem:[#allocation53_spill] sm:$0xff]  ;;  %v4515_v53 = vld [vmem:[#allocation7_spill] sm:$0xff] }
 0x22d   : > { %vm1672_vm10 = vcmp.gt.f32.partialorder %v1608_v51, 0.0  ;;  %v1736_v37 = vmul.f32 0.2, %v1608_v51  ;;  %vm1673_vm11 = vcmp.gt.f32.partialorder %v1609_v19, 0.0  ;;  %v1737_v11 = vmul.f32 0.2, %v1609_v19 }
 0x22e   : > { %v1799_v46 = vsel %vm1671_vm9, %v1607_v25, %v1735_v10  ;;  %vm1674_vm12 = vcmp.gt.f32.partialorder %v1610_v33, 0.0  ;;  %v1738_v40 = vmul.f32 0.2, %v1610_v33  ;;  %vm1675_vm13 = vcmp.gt.f32.partialorder %v1611_v63, 0.0 }
 0x22f   : > { %v2493_v44 = vpack.c.bf16 %v1799_v46, %v1799_v46  ;;  %v1800_v55 = vsel %vm1672_vm10, %v1608_v51, %v1736_v37  ;;  %v1801_v50 = vsel %vm1673_vm11, %v1609_v19, %v1737_v11  ;;  %v1739_v23 = vmul.f32 0.2, %v1611_v63 }
 0x230   : > { %v2494_v54 = vpack.c.bf16 %v1800_v55, %v1800_v55  ;;  %v2495_v24 = vpack.c.bf16 %v1801_v50, %v1801_v50  ;;  %v1802_v48 = vsel %vm1674_vm12, %v1610_v33, %v1738_v40  ;;  %vm1676_vm14 = vcmp.gt.f32.partialorder %v1612_v20, 0.0  ;;  %v4516_v33 = vld [vmem:[#allocation4_spill] sm:$0xff] }
 0x231   : > { %2120 = vst.msk [vmem:[%s4316_s4 + $0x4c] sm:$0xf] %vm2100_vm4, %v2493_v44  ;;  %v2496_v9 = vpack.c.bf16 %v1802_v48, %v1802_v48  ;;  %v1803_v57 = vsel %vm1675_vm13, %v1611_v63, %v1739_v23  ;;  %v1740_v52 = vmul.f32 0.2, %v1612_v20  ;;  %v1613_v58 = vadd.f32 %v3861_v42, %v1543_v27  ;;  %v4518_v63 = vld [vmem:[#allocation9_spill] sm:$0xff] }
 0x232   : > { %2121 = vst.msk [vmem:[%s4316_s4 + $0x50] sm:$0xf] %vm2100_vm4, %v2494_v54  ;;  %2122 = vst.msk [vmem:[%s4316_s4 + $0x54] sm:$0xf] %vm2100_vm4, %v2495_v24  ;;  %v2497_v62 = vpack.c.bf16 %v1803_v57, %v1803_v57  ;;  %v1614_v56 = vadd.f32 %v3861_v42, %v1544_v39  ;;  %v1545_v29 = vmul.f32 %v4510_v43, %v3845_v14  ;;  %v4517_v39 = vld [vmem:[#allocation6_spill] sm:$0xff]  ;;  %v4519_v54 = vld [vmem:[#allocation11_spill] sm:$0xff] }
 0x233   : > { %v1546_v61 = vmul.f32 %v3845_v14, %v3048_v34  ;;  %2123 = vst.msk [vmem:[%s4316_s4 + $0x58] sm:$0xf] %vm2100_vm4, %v2496_v9  ;;  %v1804_v60 = vsel %vm1676_vm14, %v1612_v20, %v1740_v52  ;;  %vm1677_vm15 = vcmp.gt.f32.partialorder %v1613_v58, 0.0  ;;  %v1741_v13 = vmul.f32 0.2, %v1613_v58 }
 0x234   : > { %v1547_v59 = vmul.f32 %v3845_v14, %v4511_v15  ;;  %2124 = vst.msk [vmem:[%s4316_s4 + $0x5c] sm:$0xf] %vm2100_vm4, %v2497_v62  ;;  %v2498_v4 = vpack.c.bf16 %v1804_v60, %v1804_v60  ;;  %vm1678_vm0 = vcmp.gt.f32.partialorder %v1614_v56, 0.0  ;;  %v1742_v3 = vmul.f32 0.2, %v1614_v56  ;;  %v4520_v60 = vld [vmem:[#allocation8_spill] sm:$0xff] }
 0x235   : > { %v1615_v34 = vadd.f32 %v3861_v42, %v1545_v29  ;;  %v1805_v32 = vsel %vm1677_vm15, %v1613_v58, %v1741_v13  ;;  %v1616_v36 = vadd.f32 %v3861_v42, %v1546_v61  ;;  %v1548_v22 = vmul.f32 %v4512_v26, %v3845_v14  ;;  %v4521_v15 = vld [vmem:[#allocation10_spill] sm:$0xff] }
 0x236   : > { %v1617_v6 = vadd.f32 %v3861_v42, %v1547_v59  ;;  %2125 = vst.msk [vmem:[%s4316_s4 + $0x60] sm:$0xf] %vm2100_vm4, %v2498_v4  ;;  %v2499_v38 = vpack.c.bf16 %v1805_v32, %v1805_v32  ;;  %v1806_v30 = vsel %vm1678_vm0, %v1614_v56, %v1742_v3  ;;  %v1549_v2 = vmul.f32 %v4513_v47, %v3845_v14  ;;  %v4522_v4 = vld [vmem:[#allocation14_spill] sm:$0xff] }
 0x237   : > { %vm1679_vm1 = vcmp.gt.f32.partialorder %v1615_v34, 0.0  ;;  %v1743_v1 = vmul.f32 0.2, %v1615_v34  ;;  %v2500_v16 = vpack.c.bf16 %v1806_v30, %v1806_v30  ;;  %vm1680_vm2 = vcmp.gt.f32.partialorder %v1616_v36, 0.0 }
 0x238   : > { %v1744_v31 = vmul.f32 0.2, %v1616_v36  ;;  %vm1681_vm3 = vcmp.gt.f32.partialorder %v1617_v6, 0.0  ;;  %2126 = vst.msk [vmem:[%s4316_s4 + $0x64] sm:$0xf] %vm2100_vm4, %v2499_v38  ;;  %v1618_v5 = vadd.f32 %v3861_v42, %v1548_v22  ;;  %v1550_v0 = vmul.f32 %v3845_v14, %v4514_v41 }
 0x239   : > { %v1807_v17 = vsel %vm1679_vm1, %v1615_v34, %v1743_v1  ;;  %v1745_v45 = vmul.f32 0.2, %v1617_v6  ;;  %2127 = vst.msk [vmem:[%s4316_s4 + $0x68] sm:$0xf] %vm2100_vm4, %v2500_v16  ;;  %v1551_v25 = vmul.f32 %v3845_v14, %v4515_v53  ;;  %v1619_v35 = vadd.f32 %v3861_v42, %v1549_v2  ;;  %v4523_v16 = vld [vmem:[#allocation17_spill] sm:$0xff]  ;;  %v4525_v2 = vld [vmem:[#allocation16_spill] sm:$0xff] }
 0x23a   : > { %v2501_v8 = vpack.c.bf16 %v1807_v17, %v1807_v17  ;;  %v1808_v21 = vsel %vm1680_vm2, %v1616_v36, %v1744_v31  ;;  %vm1682_vm5 = vcmp.gt.f32.partialorder %v1618_v5, 0.0  ;;  %v1746_v49 = vmul.f32 0.2, %v1618_v5  ;;  %v4524_v17 = vld [vmem:[#allocation13_spill] sm:$0xff] }
 0x23b   : > { %v2502_v7 = vpack.c.bf16 %v1808_v21, %v1808_v21  ;;  %v1809_v28 = vsel %vm1681_vm3, %v1617_v6, %v1745_v45  ;;  %v1620_v27 = vadd.f32 %v3861_v42, %v1550_v0  ;;  %v1621_v51 = vadd.f32 %v3861_v42, %v1551_v25 }
 0x23c   : > { %2128 = vst.msk [vmem:[%s4316_s4 + $0x6c] sm:$0xf] %vm2100_vm4, %v2501_v8  ;;  %v2503_v12 = vpack.c.bf16 %v1809_v28, %v1809_v28  ;;  %v1810_v19 = vsel %vm1682_vm5, %v1618_v5, %v1746_v49  ;;  %v1552_v18 = vmul.f32 %v4516_v33, %v3845_v14  ;;  %v1553_v10 = vmul.f32 %v4517_v39, %v3845_v14 }
 0x23d   : > { %2129 = vst.msk [vmem:[%s4316_s4 + $0x70] sm:$0xf] %vm2100_vm4, %v2502_v7  ;;  %v1554_v20 = vmul.f32 %v3845_v14, %v4518_v63  ;;  %v2504_v37 = vpack.c.bf16 %v1810_v19, %v1810_v19  ;;  %vm1683_vm6 = vcmp.gt.f32.partialorder %v1619_v35, 0.0  ;;  %v1747_v11 = vmul.f32 0.2, %v1619_v35 }
 0x23e   : > { %2130 = vst.msk [vmem:[%s4316_s4 + $0x74] sm:$0xf] %vm2100_vm4, %v2503_v12  ;;  %vm1684_vm7 = vcmp.gt.f32.partialorder %v1620_v27, 0.0  ;;  %v1748_v46 = vmul.f32 0.2, %v1620_v27  ;;  %vm1685_vm8 = vcmp.gt.f32.partialorder %v1621_v51, 0.0  ;;  %v1622_v44 = vadd.f32 %v3861_v42, %v1552_v18 }
 0x23f   : > { %v1749_v40 = vmul.f32 0.2, %v1621_v51  ;;  %2131 = vst.msk [vmem:[%s4316_s4 + $0x78] sm:$0xf] %vm2100_vm4, %v2504_v37  ;;  %v1811_v55 = vsel %vm1683_vm6, %v1619_v35, %v1747_v11  ;;  %v1623_v50 = vadd.f32 %v3861_v42, %v1553_v10  ;;  %v1624_v23 = vadd.f32 %v3861_v42, %v1554_v20  ;;  %v4526_v35 = vld [vmem:[#allocation21_spill] sm:$0xff] }
 0x240   : > { %v1555_v24 = vmul.f32 %v3845_v14, %v4519_v54  ;;  %v2505_v48 = vpack.c.bf16 %v1811_v55, %v1811_v55  ;;  %v1812_v9 = vsel %vm1684_vm7, %v1620_v27, %v1748_v46  ;;  %vm1686_vm9 = vcmp.gt.f32.partialorder %v1622_v44, 0.0  ;;  %v4527_v37 = vld [vmem:[#allocation25_spill] sm:$0xff] }
 0x241   : > { %v1813_v57 = vsel %vm1685_vm8, %v1621_v51, %v1749_v40  ;;  %v2506_v52 = vpack.c.bf16 %v1812_v9, %v1812_v9  ;;  %v1750_v62 = vmul.f32 0.2, %v1622_v44  ;;  %vm1687_vm10 = vcmp.gt.f32.partialorder %v1623_v50, 0.0 }
 0x242   : > { %v2507_v58 = vpack.c.bf16 %v1813_v57, %v1813_v57  ;;  %2132 = vst.msk [vmem:[%s4316_s4 + $0x7c] sm:$0xf] %vm2100_vm4, %v2505_v48  ;;  %v1751_v56 = vmul.f32 0.2, %v1623_v50  ;;  %vm1688_vm11 = vcmp.gt.f32.partialorder %v1624_v23, 0.0  ;;  %v1625_v29 = vadd.f32 %v3861_v42, %v1555_v24 }
 0x243   : > { %v1752_v43 = vmul.f32 0.2, %v1624_v23  ;;  %2133 = vst.msk [vmem:[%s4316_s4 + $0x80] sm:$0xf] %vm2100_vm4, %v2506_v52  ;;  %v1814_v61 = vsel %vm1686_vm9, %v1622_v44, %v1750_v62  ;;  %v1556_v13 = vmul.f32 %v4520_v60, %v3845_v14  ;;  %v1557_v59 = vmul.f32 %v4521_v15, %v3845_v14  ;;  %v4528_v44 = vld [vmem:[#allocation19_spill] sm:$0xff] }
 0x244   : > { %2134 = vst.msk [vmem:[%s4316_s4 + $0x84] sm:$0xf] %vm2100_vm4, %v2507_v58  ;;  %v1558_v3 = vmul.f32 %v3845_v14, %v4522_v4  ;;  %v2508_v34 = vpack.c.bf16 %v1814_v61, %v1814_v61  ;;  %v1815_v32 = vsel %vm1687_vm10, %v1623_v50, %v1751_v56  ;;  %vm1689_vm12 = vcmp.gt.f32.partialorder %v1625_v29, 0.0  ;;  %v4529_v50 = vld [vmem:[#allocation23_spill] sm:$0xff]  ;;  %v4530_v56 = vld [vmem:[#allocation29_spill] sm:$0xff] }
 0x245   : > { %v1816_v36 = vsel %vm1688_vm11, %v1624_v23, %v1752_v43  ;;  %v2509_v6 = vpack.c.bf16 %v1815_v32, %v1815_v32  ;;  %v1753_v22 = vmul.f32 0.2, %v1625_v29  ;;  %v1626_v38 = vadd.f32 %v3861_v42, %v1556_v13  ;;  %v4532_v60 = vld [vmem:[#allocation27_spill] sm:$0xff] }
 0x246   : > { %v2510_v26 = vpack.c.bf16 %v1816_v36, %v1816_v36  ;;  %2135 = vst.msk [vmem:[%s4316_s4 + $0x88] sm:$0xf] %vm2100_vm4, %v2508_v34  ;;  %v1627_v30 = vadd.f32 %v3861_v42, %v1557_v59  ;;  %v1628_v1 = vadd.f32 %v3861_v42, %v1558_v3  ;;  %v1559_v31 = vmul.f32 %v3845_v14, %v4523_v16 }
 0x247   : > { %v1560_v45 = vmul.f32 %v4524_v17, %v3845_v14  ;;  %2136 = vst.msk [vmem:[%s4316_s4 + $0x8c] sm:$0xf] %vm2100_vm4, %v2509_v6  ;;  %v1817_v5 = vsel %vm1689_vm12, %v1625_v29, %v1753_v22  ;;  %vm1690_vm13 = vcmp.gt.f32.partialorder %v1626_v38, 0.0  ;;  %v1754_v47 = vmul.f32 0.2, %v1626_v38  ;;  %v4531_v29 = vld [vmem:[#allocation33_spill] sm:$0xff] }
 0x248   : > { %2137 = vst.msk [vmem:[%s4316_s4 + $0x90] sm:$0xf] %vm2100_vm4, %v2510_v26  ;;  %v1561_v8 = vmul.f32 %v4525_v2, %v3845_v14  ;;  %v2511_v21 = vpack.c.bf16 %v1817_v5, %v1817_v5  ;;  %vm1691_vm14 = vcmp.gt.f32.partialorder %v1627_v30, 0.0  ;;  %v1755_v41 = vmul.f32 0.2, %v1627_v30  ;;  %v4533_v26 = vld [vmem:[#allocation31_spill] sm:$0xff] }
 0x249   : > { %vm1692_vm15 = vcmp.gt.f32.partialorder %v1628_v1, 0.0  ;;  %v1818_v0 = vsel %vm1690_vm13, %v1626_v38, %v1754_v47  ;;  %v1756_v53 = vmul.f32 0.2, %v1628_v1  ;;  %v1629_v25 = vadd.f32 %v3861_v42, %v1559_v31 }
 0x24a   : > { %v1630_v7 = vadd.f32 %v3861_v42, %v1560_v45  ;;  %2138 = vst.msk [vmem:[%s4316_s4 + $0x94] sm:$0xf] %vm2100_vm4, %v2511_v21  ;;  %v2512_v28 = vpack.c.bf16 %v1818_v0, %v1818_v0  ;;  %v1819_v49 = vsel %vm1691_vm14, %v1627_v30, %v1755_v41  ;;  %v1631_v12 = vadd.f32 %v3861_v42, %v1561_v8  ;;  %v4534_v8 = vld [vmem:[#allocation37_spill] sm:$0xff] }
 0x24b   : > { %v1562_v27 = vmul.f32 %v3845_v14, %v4526_v35  ;;  %v2513_v51 = vpack.c.bf16 %v1819_v49, %v1819_v49  ;;  %v1820_v19 = vsel %vm1692_vm15, %v1628_v1, %v1756_v53  ;;  %vm1693_vm0 = vcmp.gt.f32.partialorder %v1629_v25, 0.0  ;;  %v4535_v41 = vld [vmem:[#allocation41_spill] sm:$0xff]  ;;  %v4536_v53 = vld [vmem:[#allocation35_spill] sm:$0xff] }
 0x24c   : > { %v1757_v33 = vmul.f32 0.2, %v1629_v25  ;;  %2139 = vst.msk [vmem:[%s4316_s4 + $0x98] sm:$0xf] %vm2100_vm4, %v2512_v28  ;;  %v2514_v18 = vpack.c.bf16 %v1820_v19, %v1820_v19  ;;  %vm1694_vm1 = vcmp.gt.f32.partialorder %v1630_v7, 0.0  ;;  %vm1695_vm2 = vcmp.gt.f32.partialorder %v1631_v12, 0.0 }
 0x24d   : > { %v1758_v39 = vmul.f32 0.2, %v1630_v7  ;;  %2140 = vst.msk [vmem:[%s4316_s4 + $0x9c] sm:$0xf] %vm2100_vm4, %v2513_v51  ;;  %v1759_v63 = vmul.f32 0.2, %v1631_v12  ;;  %v1632_v20 = vadd.f32 %v3861_v42, %v1562_v27  ;;  %v1563_v11 = vmul.f32 %v3845_v14, %v4527_v37 }
 0x24e   : > { %v1821_v10 = vsel %vm1693_vm0, %v1629_v25, %v1757_v33  ;;  %2141 = vst.msk [vmem:[%s4316_s4 + $0xa0] sm:$0xf] %vm2100_vm4, %v2514_v18  ;;  %v1564_v55 = vmul.f32 %v4528_v44, %v3845_v14  ;;  %v1565_v23 = vmul.f32 %v4529_v50, %v3845_v14  ;;  %v1566_v43 = vmul.f32 %v3845_v14, %v4530_v56  ;;  %v4537_v18 = vld [vmem:[#allocation39_spill] sm:$0xff] }
 0x24f   : > { %v2515_v46 = vpack.c.bf16 %v1821_v10, %v1821_v10  ;;  %v1822_v40 = vsel %vm1694_vm1, %v1630_v7, %v1758_v39  ;;  %v1823_v24 = vsel %vm1695_vm2, %v1631_v12, %v1759_v63  ;;  %vm1696_vm3 = vcmp.gt.f32.partialorder %v1632_v20, 0.0  ;;  %v4538_v10 = vld [vmem:[#allocation45_spill] sm:$0xff] }
 0x250   : > { %v2516_v54 = vpack.c.bf16 %v1822_v40, %v1822_v40  ;;  %v1760_v48 = vmul.f32 0.2, %v1632_v20  ;;  %v2517_v9 = vpack.c.bf16 %v1823_v24, %v1823_v24  ;;  %v1633_v57 = vadd.f32 %v3861_v42, %v1563_v11  ;;  %v4539_v11 = vld [vmem:[#allocation49_spill] sm:$0xff] }
 0x251   : > { %2142 = vst.msk [vmem:[%s4316_s4 + $0xa4] sm:$0xf] %vm2100_vm4, %v2515_v46  ;;  %v1634_v52 = vadd.f32 %v3861_v42, %v1564_v55  ;;  %v1635_v58 = vadd.f32 %v3861_v42, %v1565_v23  ;;  %v1567_v61 = vmul.f32 %v3845_v14, %v4531_v29  ;;  %v1568_v13 = vmul.f32 %v4532_v60, %v3845_v14 }
 0x252   : > { %2143 = vst.msk [vmem:[%s4316_s4 + $0xa8] sm:$0xf] %vm2100_vm4, %v2516_v54  ;;  %v1824_v62 = vsel %vm1696_vm3, %v1632_v20, %v1760_v48  ;;  %2144 = vst.msk [vmem:[%s4316_s4 + $0xac] sm:$0xf] %vm2100_vm4, %v2517_v9  ;;  %vm1697_vm5 = vcmp.gt.f32.partialorder %v1633_v57, 0.0  ;;  %v1636_v34 = vadd.f32 %v3861_v42, %v1566_v43  ;;  %v1569_v22 = vmul.f32 %v4533_v26, %v3845_v14 }
 0x253   : > { %v2518_v15 = vpack.c.bf16 %v1824_v62, %v1824_v62  ;;  %v1761_v59 = vmul.f32 0.2, %v1633_v57  ;;  %vm1698_vm6 = vcmp.gt.f32.partialorder %v1634_v52, 0.0  ;;  %v1762_v4 = vmul.f32 0.2, %v1634_v52 }
 0x254   : > { %vm1699_vm7 = vcmp.gt.f32.partialorder %v1635_v58, 0.0  ;;  %v1763_v3 = vmul.f32 0.2, %v1635_v58  ;;  %v1637_v36 = vadd.f32 %v3861_v42, %v1567_v61  ;;  %v1638_v6 = vadd.f32 %v3861_v42, %v1568_v13 }
 0x255   : > { %2145 = vst.msk [vmem:[%s4316_s4 + $0xb0] sm:$0xf] %vm2100_vm4, %v2518_v15  ;;  %v1825_v32 = vsel %vm1697_vm5, %v1633_v57, %v1761_v59  ;;  %v1826_v30 = vsel %vm1698_vm6, %v1634_v52, %v1762_v4  ;;  %vm1700_vm8 = vcmp.gt.f32.partialorder %v1636_v34, 0.0  ;;  %v1764_v17 = vmul.f32 0.2, %v1636_v34  ;;  %v4540_v57 = vld [vmem:[#allocation43_spill] sm:$0xff] }
 0x256   : > { %v2519_v38 = vpack.c.bf16 %v1825_v32, %v1825_v32  ;;  %v1827_v1 = vsel %vm1699_vm7, %v1635_v58, %v1763_v3  ;;  %v2520_v16 = vpack.c.bf16 %v1826_v30, %v1826_v30  ;;  %vm1701_vm9 = vcmp.gt.f32.partialorder %v1637_v36, 0.0  ;;  %v4541_v15 = vld [vmem:[#allocation47_spill] sm:$0xff] }
 0x257   : > { %v2521_v31 = vpack.c.bf16 %v1827_v1, %v1827_v1  ;;  %v1765_v45 = vmul.f32 0.2, %v1637_v36  ;;  %vm1702_vm10 = vcmp.gt.f32.partialorder %v1638_v6, 0.0  ;;  %v1766_v5 = vmul.f32 0.2, %v1638_v6 }
 0x258   : > { %2146 = vst.msk [vmem:[%s4316_s4 + $0xb4] sm:$0xf] %vm2100_vm4, %v2519_v38  ;;  %v1639_v47 = vadd.f32 %v3861_v42, %v1569_v22  ;;  %2147 = vst.msk [vmem:[%s4316_s4 + $0xb8] sm:$0xf] %vm2100_vm4, %v2520_v16  ;;  %v1828_v2 = vsel %vm1700_vm8, %v1636_v34, %v1764_v17  ;;  %v1570_v21 = vmul.f32 %v3845_v14, %v4534_v8  ;;  %v4542_v34 = vld [vmem:[#allocation52_spill] sm:$0xff] }
 0x259   : > { %2148 = vst.msk [vmem:[%s4316_s4 + $0xbc] sm:$0xf] %vm2100_vm4, %v2521_v31  ;;  %v1571_v0 = vmul.f32 %v3845_v14, %v4535_v41  ;;  %v1572_v25 = vmul.f32 %v4536_v53, %v3845_v14  ;;  %v2522_v7 = vpack.c.bf16 %v1828_v2, %v1828_v2  ;;  %v1829_v28 = vsel %vm1701_vm9, %v1637_v36, %v1765_v45  ;;  %v4543_v36 = vld [vmem:[#allocation56_spill] sm:$0xff]  ;;  %v4544_v45 = vld [vmem:[#allocation51_spill] sm:$0xff] }
 0x25a   : > { %v1830_v49 = vsel %vm1702_vm10, %v1638_v6, %v1766_v5  ;;  %vm1703_vm11 = vcmp.gt.f32.partialorder %v1639_v47, 0.0  ;;  %v2523_v12 = vpack.c.bf16 %v1829_v28, %v1829_v28  ;;  %v1767_v27 = vmul.f32 0.2, %v1639_v47 }
 0x25b   : > { %v2524_v35 = vpack.c.bf16 %v1830_v49, %v1830_v49  ;;  %v1640_v51 = vadd.f32 %v3861_v42, %v1570_v21  ;;  %2149 = vst.msk [vmem:[%s4316_s4 + $0xc0] sm:$0xf] %vm2100_vm4, %v2522_v7  ;;  %v1641_v19 = vadd.f32 %v3861_v42, %v1571_v0  ;;  %v1642_v33 = vadd.f32 %v3861_v42, %v1572_v25 }
 0x25c   : > { %v1573_v39 = vmul.f32 %v4537_v18, %v3845_v14  ;;  %v1574_v63 = vmul.f32 %v3845_v14, %v4538_v10  ;;  %2150 = vst.msk [vmem:[%s4316_s4 + $0xc4] sm:$0xf] %vm2100_vm4, %v2523_v12  ;;  %v1831_v20 = vsel %vm1703_vm11, %v1639_v47, %v1767_v27  ;;  %v1575_v46 = vmul.f32 %v3845_v14, %v4539_v11  ;;  %v4545_v47 = vld [vmem:[#allocation54_spill] sm:$0xff] }
 0x25d   : > { %2151 = vst.msk [vmem:[%s4316_s4 + $0xc8] sm:$0xf] %vm2100_vm4, %v2524_v35  ;;  %vm1704_vm12 = vcmp.gt.f32.partialorder %v1640_v51, 0.0  ;;  %v1768_v37 = vmul.f32 0.2, %v1640_v51  ;;  %v2525_v40 = vpack.c.bf16 %v1831_v20, %v1831_v20  ;;  %vm1705_vm13 = vcmp.gt.f32.partialorder %v1641_v19, 0.0 }
 0x25e   : > { %v1769_v44 = vmul.f32 0.2, %v1641_v19  ;;  %vm1706_vm14 = vcmp.gt.f32.partialorder %v1642_v33, 0.0  ;;  %v1770_v50 = vmul.f32 0.2, %v1642_v33  ;;  %v1643_v23 = vadd.f32 %v3861_v42, %v1573_v39 }
 0x25f   : > { %v1832_v55 = vsel %vm1704_vm12, %v1640_v51, %v1768_v37  ;;  %v1644_v54 = vadd.f32 %v3861_v42, %v1574_v63  ;;  %2152 = vst.msk [vmem:[%s4316_s4 + $0xcc] sm:$0xf] %vm2100_vm4, %v2525_v40  ;;  %v1645_v9 = vadd.f32 %v3861_v42, %v1575_v46  ;;  %v1576_v52 = vmul.f32 %v4540_v57, %v3845_v14 }
 0x260   : > { %v2526_v24 = vpack.c.bf16 %v1832_v55, %v1832_v55  ;;  %v1833_v48 = vsel %vm1705_vm13, %v1641_v19, %v1769_v44  ;;  %v1834_v62 = vsel %vm1706_vm14, %v1642_v33, %v1770_v50  ;;  %vm1707_vm15 = vcmp.gt.f32.partialorder %v1643_v23, 0.0 }
 0x261   : > { %v2527_v58 = vpack.c.bf16 %v1833_v48, %v1833_v48  ;;  %v1771_v56 = vmul.f32 0.2, %v1643_v23  ;;  %v2528_v43 = vpack.c.bf16 %v1834_v62, %v1834_v62  ;;  %vm1708_vm0 = vcmp.gt.f32.partialorder %v1644_v54, 0.0 }
 0x262   : > { %2153 = vst.msk [vmem:[%s4316_s4 + $0xd0] sm:$0xf] %vm2100_vm4, %v2526_v24  ;;  %v1772_v29 = vmul.f32 0.2, %v1644_v54  ;;  %vm1709_vm1 = vcmp.gt.f32.partialorder %v1645_v9, 0.0  ;;  %v1646_v13 = vadd.f32 %v3861_v42, %v1576_v52  ;;  %v1577_v59 = vmul.f32 %v4541_v15, %v3845_v14 }
 0x263   : > { %2154 = vst.msk [vmem:[%s4316_s4 + $0xd4] sm:$0xf] %vm2100_vm4, %v2527_v58  ;;  %v1835_v61 = vsel %vm1707_vm15, %v1643_v23, %v1771_v56  ;;  %v1773_v60 = vmul.f32 0.2, %v1645_v9  ;;  %2155 = vst.msk [vmem:[%s4316_s4 + $0xd8] sm:$0xf] %vm2100_vm4, %v2528_v43  ;;  %v1578_v32 = vmul.f32 %v3845_v14, %v4542_v34  ;;  %v1579_v6 = vmul.f32 %v3845_v14, %v4543_v36 }
 0x264   : > { %v2529_v4 = vpack.c.bf16 %v1835_v61, %v1835_v61  ;;  %v1836_v3 = vsel %vm1708_vm0, %v1644_v54, %v1772_v29  ;;  %vm1710_vm2 = vcmp.gt.f32.partialorder %v1646_v13, 0.0  ;;  %v1774_v38 = vmul.f32 0.2, %v1646_v13 }
 0x265   : > { %v2530_v26 = vpack.c.bf16 %v1836_v3, %v1836_v3  ;;  %v1837_v22 = vsel %vm1709_vm1, %v1645_v9, %v1773_v60  ;;  %v1647_v1 = vadd.f32 %v3861_v42, %v1577_v59  ;;  %v1648_v16 = vadd.f32 %v3861_v42, %v1578_v32 }
 0x266   : > { %2156 = vst.msk [vmem:[%s4316_s4 + $0xdc] sm:$0xf] %vm2100_vm4, %v2529_v4  ;;  %v2531_v30 = vpack.c.bf16 %v1837_v22, %v1837_v22  ;;  %v1649_v31 = vadd.f32 %v3861_v42, %v1579_v6  ;;  %v1838_v17 = vsel %vm1710_vm2, %v1646_v13, %v1774_v38  ;;  %v1580_v5 = vmul.f32 %v4544_v45, %v3845_v14 }
 0x267   : > { %2157 = vst.msk [vmem:[%s4316_s4 + $0xe0] sm:$0xf] %vm2100_vm4, %v2530_v26  ;;  %v1581_v2 = vmul.f32 %v4545_v47, %v3845_v14  ;;  %v2532_v8 = vpack.c.bf16 %v1838_v17, %v1838_v17  ;;  %vm1711_vm3 = vcmp.gt.f32.partialorder %v1647_v1, 0.0  ;;  %v1775_v21 = vmul.f32 0.2, %v1647_v1 }
 0x268   : > { %2158 = vst.msk [vmem:[%s4316_s4 + $0xe4] sm:$0xf] %vm2100_vm4, %v2531_v30  ;;  %vm1712_vm5 = vcmp.gt.f32.partialorder %v1648_v16, 0.0  ;;  %v1776_v41 = vmul.f32 0.2, %v1648_v16  ;;  %vm1713_vm6 = vcmp.gt.f32.partialorder %v1649_v31, 0.0  ;;  %v1650_v53 = vadd.f32 %v3861_v42, %v1580_v5 }
 0x269   : > { %v1777_v0 = vmul.f32 0.2, %v1649_v31  ;;  %2159 = vst.msk [vmem:[%s4316_s4 + $0xe8] sm:$0xf] %vm2100_vm4, %v2532_v8  ;;  %v1839_v14 = vsel %vm1711_vm3, %v1647_v1, %v1775_v21  ;;  %v1651_v25 = vadd.f32 %v3861_v42, %v1581_v2 }
 0x26a   : > { %v2533_v7 = vpack.c.bf16 %v1839_v14, %v1839_v14  ;;  %v1840_v28 = vsel %vm1712_vm5, %v1648_v16, %v1776_v41  ;;  %vm1714_vm7 = vcmp.gt.f32.partialorder %v1650_v53, 0.0  ;;  %v1778_v27 = vmul.f32 0.2, %v1650_v53 }
 0x26b   : > { %v1841_v49 = vsel %vm1713_vm6, %v1649_v31, %v1777_v0  ;;  %v2534_v12 = vpack.c.bf16 %v1840_v28, %v1840_v28  ;;  %vm1715_vm8 = vcmp.gt.f32.partialorder %v1651_v25, 0.0  ;;  %v1779_v51 = vmul.f32 0.2, %v1651_v25 }
 0x26c   : > { %v2535_v35 = vpack.c.bf16 %v1841_v49, %v1841_v49  ;;  %2160 = vst.msk [vmem:[%s4316_s4 + $0xec] sm:$0xf] %vm2100_vm4, %v2533_v7  ;;  %v1842_v42 = vsel %vm1714_vm7, %v1650_v53, %v1778_v27 }
 0x26d   : > { %2161 = vst.msk [vmem:[%s4316_s4 + $0xf0] sm:$0xf] %vm2100_vm4, %v2534_v12  ;;  %v2536_v19 = vpack.c.bf16 %v1842_v42, %v1842_v42  ;;  %v1843_v33 = vsel %vm1715_vm8, %v1651_v25, %v1779_v51 }
 0x26e   : > { %2162 = vst.msk [vmem:[%s4316_s4 + $0xf4] sm:$0xf] %vm2100_vm4, %v2535_v35  ;;  %v2537_v18 = vpack.c.bf16 %v1843_v33, %v1843_v33 }
 0x26f   : > { %2163 = vst.msk [vmem:[%s4316_s4 + $0xf8] sm:$0xf] %vm2100_vm4, %v2536_v19 }
 0x270   : > { %2164 = vst.msk [vmem:[%s4316_s4 + $0xfc] sm:$0xf] %vm2100_vm4, %v2537_v18 }
 0x271 PF: > { %s14_s17 = sadd.s32 1, %s2763_s17   ;;  %s4546_s15 = smov %s2759_s16 }
 0x272   : > { %p11_p7 = scmp.ge.s32.totalorder %s14_s17, 4   ;;  %s4547_s16 = smov %s4549_s18 }
 0x274   :  { %13 = sbr.rel (!%p11_p7) target bundleno = 2 (0x2), region = 78 }

// kernel: discriminator_forward.7
= control target key start
LH: loop header
LB: loop body
LE: loop exit
PB: predicated region body
PF: predicated region fallthrough
CT: control target
= control target key end

     0   :  { %s1290_s15 = smov 0   ;;  %s1292_s16 = smov 0   ;;  %s1756_s0 = inlined_call_operand.vmem [shape: bf16[128,256], index: 0, kind: input, shape index: {}]   ;;  %s1757_s1 = inlined_call_operand.vmem [shape: bf16[256,32], index: 1, kind: input, shape index: {}]   ;;  %s1758_s2 = inlined_call_operand.vmem [shape: f32[1,32], index: 2, kind: input, shape index: {}]   ;;  %s1759_s3 = inlined_call_operand.vmem [shape: f32[1,32], index: 3, kind: input, shape index: {}]   ;;  %s1760_s4 = inlined_call_operand.vmem [shape: bf16[128,32], index: 4, kind: output, shape index: {}]  }
   0x1   :  { %s1294_s17 = smov 0  }
   0x2 LB: > { %s26_s18 = sadd.s32 1, %s1258_s16  ;;  %p988_p0 = scmp.ge.s32.totalorder %s1262_s17, 1  ;;  %s1262_s17 = sphi %s1294_s17, %s14_s17   ;;  %s1258_s16 = sphi %s1292_s16, %s1762_s16   ;;  %s1254_s15 = sphi %s1290_s15, %s1761_s15  }
   0x3   : > { %p28_p1 = scmp.ge.s32.totalorder %s26_s18, 2  ;;  %p176_p2 = scmp.lt.s32.totalorder %s1262_s17, 3 }
   0x5   : > { %s1764_s18 = smov (%p28_p1, %s26_s18), 0  ;;  %p177_p3 = pnand %p988_p0, %p176_p2 }
   0x6   : > { %p538_p4 = scmp.eq.s32.totalorder (!%p177_p3), %s1254_s15, 0 }
   0x7   : > { %180 = sbr.rel (%p177_p3) target bundleno = 393 (0x189), region = 36 }
   0xc   : > { %v1198_v0 = vld [vmem:[%s1757_s1 + $0x78] sm:$0xff]   ;;  %v1200_v2 = vld [vmem:[%s1757_s1 + $0x70] sm:$0xff]   ;;  %v1202_v4 = vld [vmem:[%s1757_s1 + $0x68] sm:$0xff]   ;;  %vm544_vm0 = vcmask (%p538_p4), 253952  }
   0xd   : > { %v1199_v1 = vld [vmem:[%s1757_s1 + $0x38] sm:$0xff]   ;;  %1093 = vmatprep.subr.bf16.mxu0 %v1198_v0  ;;  %1157 = vmatprep.subr.bf16.mxu1 %v1198_v0  ;;  %v1201_v3 = vld [vmem:[%s1757_s1 + $0x30] sm:$0xff]   ;;  %v1203_v5 = vld [vmem:[%s1757_s1 + $0x28] sm:$0xff]  }
   0xe   : > { %1094 = vmatpush3.bf16.msra.mxu0 %v1199_v1  ;;  %1165 = vmatpush3.bf16.msra.mxu1 %v1199_v1  ;;  %v1204_v6 = vld [vmem:[%s1757_s1 + $0x60] sm:$0xff]   ;;  %v1206_v8 = vld [vmem:[%s1757_s1 + $0x58] sm:$0xff]   ;;  %v1208_v10 = vld [vmem:[%s1757_s1 + $0x50] sm:$0xff]  }
   0xf   : > { %1095 = vmatprep.subr.bf16.mxu0 %v1200_v2  ;;  %1158 = vmatprep.subr.bf16.mxu1 %v1200_v2  ;;  %v1205_v7 = vld [vmem:[%s1757_s1 + $0x20] sm:$0xff]   ;;  %v1207_v9 = vld [vmem:[%s1757_s1 + $0x18] sm:$0xff]   ;;  %v1209_v13 = vld [vmem:[%s1757_s1 + $0x10] sm:$0xff]  }
  0x10   : > { %v1216_v11 = vld [vmem:[%s1756_s0 + $0x4] ss:$8 sps:$4 sm:$0xff]   ;;  %v1214_v18 = vld [vmem:[%s1756_s0] ss:$8 sps:$4 sm:$0xff]   ;;  %v1220_v20 = vld [vmem:[%s1756_s0 + $0x14] ss:$8 sps:$4 sm:$0xff]  }
  0x11   : > { %v1219_v12 = vld [vmem:[%s1756_s0 + $0x44] ss:$8 sps:$4 sm:$0xff]   ;;  %473 = vmatprep.mubr.bf16.mxu0 %v1216_v11  ;;  %v1217_v19 = vld [vmem:[%s1756_s0 + $0x40] ss:$8 sps:$4 sm:$0xff]   ;;  %v1222_v21 = vld [vmem:[%s1756_s0 + $0x54] ss:$8 sps:$4 sm:$0xff]  }
  0x12   : > { %1096 = vmatpush3.bf16.msra.mxu0 %v1201_v3  ;;  %1166 = vmatpush3.bf16.msra.mxu1 %v1201_v3  ;;  %v1210_v14 = vld [vmem:[%s1757_s1 + $0x48] sm:$0xff]   ;;  %v1212_v16 = vld [vmem:[%s1757_s1 + $0x40] sm:$0xff]   ;;  %v1224_v22 = vld [vmem:[%s1756_s0 + $0x10] ss:$8 sps:$4 sm:$0xff]  }
  0x13   : > { %1097 = vmatprep.subr.bf16.mxu0 %v1202_v4  ;;  %1159 = vmatprep.subr.bf16.mxu1 %v1202_v4  ;;  %v1211_v15 = vld [vmem:[%s1757_s1 + $0x8] sm:$0xff]   ;;  %v1213_v17 = vld [vmem:[%s1757_s1] sm:$0xff]   ;;  %v1225_v23 = vld [vmem:[%s1756_s0 + $0x50] ss:$8 sps:$4 sm:$0xff]  }
  0x14   : > { %505 = vmatprep.mubr.bf16.mxu1 %v1219_v12  ;;  %v1226_v24 = vld [vmem:[%s1756_s0 + $0x24] ss:$8 sps:$4 sm:$0xff]   ;;  %v1230_v26 = vld [vmem:[%s1756_s0 + $0x20] ss:$8 sps:$4 sm:$0xff]   ;;  %v1232_v28 = vld [vmem:[%s1756_s0 + $0x34] ss:$8 sps:$4 sm:$0xff]  }
  0x15   : > { %v1228_v25 = vld [vmem:[%s1756_s0 + $0x64] ss:$8 sps:$4 sm:$0xff]   ;;  %v1231_v27 = vld [vmem:[%s1756_s0 + $0x60] ss:$8 sps:$4 sm:$0xff]   ;;  %v1234_v29 = vld [vmem:[%s1756_s0 + $0x74] ss:$8 sps:$4 sm:$0xff]  }
  0x16   : > { %1098 = vmatpush3.bf16.msra.mxu0 %v1203_v5  ;;  %1167 = vmatpush3.bf16.msra.mxu1 %v1203_v5  ;;  %v1236_v30 = vld [vmem:[%s1756_s0 + $0x30] ss:$8 sps:$4 sm:$0xff]  }
  0x17   : > { %1099 = vmatprep.subr.bf16.mxu0 %v1204_v6  ;;  %1160 = vmatprep.subr.bf16.mxu1 %v1204_v6  ;;  %v1237_v31 = vld [vmem:[%s1756_s0 + $0x70] ss:$8 sps:$4 sm:$0xff]  }
  0x1a   : > { %1100 = vmatpush3.bf16.msra.mxu0 %v1205_v7  ;;  %1168 = vmatpush3.bf16.msra.mxu1 %v1205_v7 }
  0x1b   : > { %1101 = vmatprep.subr.bf16.mxu0 %v1206_v8  ;;  %1161 = vmatprep.subr.bf16.mxu1 %v1206_v8 }
  0x1e   : > { %1102 = vmatpush3.bf16.msra.mxu0 %v1207_v9  ;;  %1169 = vmatpush3.bf16.msra.mxu1 %v1207_v9 }
  0x1f   : > { %1103 = vmatprep.subr.bf16.mxu0 %v1208_v10  ;;  %1162 = vmatprep.subr.bf16.mxu1 %v1208_v10 }
  0x22   : > { %1104 = vmatpush3.bf16.msra.mxu0 %v1209_v13  ;;  %1170 = vmatpush3.bf16.msra.mxu1 %v1209_v13 }
  0x23   : > { %1105 = vmatprep.subr.bf16.mxu0 %v1210_v14  ;;  %1163 = vmatprep.subr.bf16.mxu1 %v1210_v14 }
  0x26   : > { %1106 = vmatpush3.bf16.msra.mxu0 %v1211_v15  ;;  %1171 = vmatpush3.bf16.msra.mxu1 %v1211_v15 }
  0x27   : > { %1107 = vmatprep.subr.bf16.mxu0 %v1212_v16  ;;  %1164 = vmatprep.subr.bf16.mxu1 %v1212_v16  ;;  %v1264_v16 = vmov (%p538_p4), 0.0  }
  0x28   : > { %545 = vst.msk [vmem:[#allocation2] sm:$0x1] (%p538_p4), %vm544_vm0, %v1264_v16  ;;  %546 = vst.msk [vmem:[#allocation3] sm:$0x1] (%p538_p4), %vm544_vm0, %v1264_v16 }
  0x2a   : > { %1108 = vmatpush3.bf16.msra.mxu0 %v1213_v17  ;;  %1172 = vmatpush3.bf16.msra.mxu1 %v1213_v17 }
  0x2d   : > { %474 = vmatmul.mubr.bf16.vlgmr.msra.gmra.mxu0 %v1214_v18  ;;  %506 = vmatmul.mubr.bf16.vlgmr.msra.gmra.mxu1 %v1217_v19 }
  0x2e   : > { %481 = vmatprep.mubr.bf16.mxu0 %v1220_v20  ;;  %513 = vmatprep.mubr.bf16.mxu1 %v1222_v21 }
  0x35   : > { %482 = vmatmul.mubr.bf16.gmra.mxu0 %v1224_v22  ;;  %514 = vmatmul.mubr.bf16.gmra.mxu1 %v1225_v23 }
  0x36   : > { %489 = vmatprep.mubr.bf16.mxu0 %v1226_v24  ;;  %521 = vmatprep.mubr.bf16.mxu1 %v1228_v25 }
  0x3d   : > { %490 = vmatmul.mubr.bf16.gmra.mxu0 %v1230_v26  ;;  %522 = vmatmul.mubr.bf16.gmra.mxu1 %v1231_v27 }
  0x3e   : > { %497 = vmatprep.mubr.bf16.mxu0 %v1232_v28  ;;  %529 = vmatprep.mubr.bf16.mxu1 %v1234_v29 }
  0x45   : > { %498 = vmatmul.mubr.bf16.gmra.mxu0 %v1236_v30  ;;  %530 = vmatmul.mubr.bf16.gmra.mxu1 %v1237_v31 }
  0xed   : > { %v1109_v32 = vpop.f32.mrf.mxu0  ;;  %v1133_v33 = vpop.f32.mrf.mxu1 }
  0xef   : > { %v1110_v34 = vpop.f32.mrf.mxu0  ;;  %v1134_v35 = vpop.f32.mrf.mxu1 }
  0xf0   : > { %v1407_v36 = vadd.f32 %v1110_v34, %v1109_v32  ;;  %v1409_v37 = vadd.f32 %v1134_v35, %v1133_v33 }
  0xf1   : > { %v1112_v38 = vpop.f32.mrf.mxu0  ;;  %v1136_v39 = vpop.f32.mrf.mxu1 }
  0xf3   : > { %v1113_v40 = vpop.f32.mrf.mxu0  ;;  %v1137_v41 = vpop.f32.mrf.mxu1 }
  0xf4   : > { %v1411_v42 = vadd.f32 %v1113_v40, %v1112_v38  ;;  %v1413_v43 = vadd.f32 %v1137_v41, %v1136_v39 }
  0xf5   : > { %v1115_v44 = vpop.f32.mrf.mxu0  ;;  %v1139_v45 = vpop.f32.mrf.mxu1 }
  0xf7   : > { %v1116_v46 = vpop.f32.mrf.mxu0  ;;  %v1140_v47 = vpop.f32.mrf.mxu1 }
  0xf8   : > { %v1415_v48 = vadd.f32 %v1116_v46, %v1115_v44  ;;  %v1417_v49 = vadd.f32 %v1140_v47, %v1139_v45 }
  0xf9   : > { %v1118_v50 = vpop.f32.mrf.mxu0  ;;  %v1142_v51 = vpop.f32.mrf.mxu1 }
  0xfb   : > { %v1119_v52 = vpop.f32.mrf.mxu0  ;;  %v1143_v53 = vpop.f32.mrf.mxu1 }
  0xfc   : > { %v1419_v54 = vadd.f32 %v1119_v52, %v1118_v50  ;;  %v1421_v55 = vadd.f32 %v1143_v53, %v1142_v51 }
  0xfd   : > { %v1121_v56 = vpop.f32.mrf.mxu0  ;;  %v1145_v57 = vpop.f32.mrf.mxu1 }
  0xff   : > { %v1122_v58 = vpop.f32.mrf.mxu0  ;;  %v1146_v59 = vpop.f32.mrf.mxu1 }
 0x100   : > { %v1423_v60 = vadd.f32 %v1122_v58, %v1121_v56  ;;  %v1425_v61 = vadd.f32 %v1146_v59, %v1145_v57 }
 0x101   : > { %v1124_v62 = vpop.f32.mrf.mxu0  ;;  %v1148_v63 = vpop.f32.mrf.mxu1 }
 0x103   : > { %v1125_v0 = vpop.f32.mrf.mxu0  ;;  %v1149_v1 = vpop.f32.mrf.mxu1 }
 0x104   : > { %v1427_v2 = vadd.f32 %v1125_v0, %v1124_v62  ;;  %v1429_v3 = vadd.f32 %v1149_v1, %v1148_v63 }
 0x105   : > { %v1127_v4 = vpop.f32.mrf.mxu0  ;;  %v1151_v5 = vpop.f32.mrf.mxu1 }
 0x107   : > { %v1128_v6 = vpop.f32.mrf.mxu0  ;;  %v1152_v7 = vpop.f32.mrf.mxu1 }
 0x108   : > { %v1431_v8 = vadd.f32 %v1128_v6, %v1127_v4  ;;  %v1433_v9 = vadd.f32 %v1152_v7, %v1151_v5  ;;  %543 = sbr.rel (!%p538_p4) target bundleno = 269 (0x10d), region = 40 }
 0x109   : > { %v1130_v10 = vpop.f32.mrf.mxu0  ;;  %v1154_v11 = vpop.f32.mrf.mxu1 }
 0x10b   : > { %v1131_v12 = vpop.f32.mrf.mxu0  ;;  %v1155_v13 = vpop.f32.mrf.mxu1 }
 0x10c   : > { %v1435_v14 = vadd.f32 %v1131_v12, %v1130_v10  ;;  %v1437_v15 = vadd.f32 %v1155_v13, %v1154_v11 }
 0x10d PF: > { %p1022_p5 = scmp.ne.s32.totalorder %s1254_s15, 0 }
 0x10f   : > { %549 = sbr.rel (%p1022_p5) target bundleno = 326 (0x146), region = 44 }
 0x114   : > { %vm551_vm1 = vcmask 261120   ;;  %v593_v24 = vmul.f32 %v1407_v36, %v1407_v36  ;;  %v594_v25 = vmul.f32 %v1411_v42, %v1411_v42  ;;  %v595_v27 = vmul.f32 %v1415_v48, %v1415_v48 }
 0x115   : > { %v552_v17 = vsel %vm551_vm1, %v1407_v36, 0.0  ;;  %v553_v18 = vsel %vm551_vm1, %v1411_v42, 0.0  ;;  %v555_v19 = vsel %vm551_vm1, %v1415_v48, 0.0  ;;  %v557_v21 = vsel %vm551_vm1, %v1419_v54, 0.0 }
 0x116   : > { %v554_v20 = vadd.f32 %v553_v18, %v552_v17  ;;  %v559_v23 = vsel %vm551_vm1, %v1423_v60, 0.0  ;;  %v561_v28 = vsel %vm551_vm1, %v1427_v2, 0.0  ;;  %v596_v29 = vmul.f32 %v1419_v54, %v1419_v54 }
 0x117   : > { %v563_v31 = vsel %vm551_vm1, %v1431_v8, 0.0  ;;  %v597_v32 = vmul.f32 %v1423_v60, %v1423_v60  ;;  %v598_v33 = vmul.f32 %v1427_v2, %v1427_v2  ;;  %v599_v34 = vmul.f32 %v1431_v8, %v1431_v8 }
 0x118   : > { %v556_v22 = vadd.f32 %v555_v19, %v554_v20  ;;  %v609_v35 = vsel %vm551_vm1, %v593_v24, 0.0  ;;  %v610_v38 = vsel %vm551_vm1, %v594_v25, 0.0  ;;  %v600_v40 = vmul.f32 %v1435_v14, %v1435_v14 }
 0x119   : > { %v611_v41 = vadd.f32 %v610_v38, %v609_v35  ;;  %v612_v44 = vsel %vm551_vm1, %v595_v27, 0.0  ;;  %v565_v45 = vsel %vm551_vm1, %v1435_v14, 0.0  ;;  %v567_v46 = vsel %vm551_vm1, %v1409_v37, 0.0 }
 0x11a   : > { %v558_v26 = vadd.f32 %v557_v21, %v556_v22  ;;  %v569_v47 = vsel %vm551_vm1, %v1413_v43, 0.0  ;;  %v614_v50 = vsel %vm551_vm1, %v596_v29, 0.0  ;;  %v571_v52 = vsel %vm551_vm1, %v1417_v49, 0.0 }
 0x11b   : > { %v573_v53 = vsel %vm551_vm1, %v1421_v55, 0.0  ;;  %v613_v56 = vadd.f32 %v612_v44, %v611_v41  ;;  %v601_v57 = vmul.f32 %v1409_v37, %v1409_v37  ;;  %v602_v58 = vmul.f32 %v1413_v43, %v1413_v43 }
 0x11c   : > { %v560_v30 = vadd.f32 %v559_v23, %v558_v26  ;;  %v616_v59 = vsel %vm551_vm1, %v597_v32, 0.0  ;;  %v618_v62 = vsel %vm551_vm1, %v598_v33, 0.0  ;;  %v620_v1 = vsel %vm551_vm1, %v599_v34, 0.0 }
 0x11d   : > { %v615_v0 = vadd.f32 %v614_v50, %v613_v56  ;;  %v622_v4 = vsel %vm551_vm1, %v600_v40, 0.0  ;;  %v1061_v5 = vpack.c.bf16 %v1407_v36, %v1407_v36  ;;  %vm712_vm2 = vcmask 257024  }
 0x11e   : > { %v562_v39 = vadd.f32 %v561_v28, %v560_v30  ;;  %v1062_v6 = vpack.c.bf16 %v1411_v42, %v1411_v42  ;;  %v1063_v7 = vpack.c.bf16 %v1415_v48, %v1415_v48  ;;  %v1064_v12 = vpack.c.bf16 %v1419_v54, %v1419_v54 }
 0x11f   : > { %v617_v11 = vadd.f32 %v616_v59, %v615_v0  ;;  %v1065_v13 = vpack.c.bf16 %v1423_v60, %v1423_v60  ;;  %713 = vst.msk [vmem:[%s1760_s4] sm:$0xf] %vm712_vm2, %v1061_v5  ;;  %v1066_v16 = vpack.c.bf16 %v1427_v2, %v1427_v2  ;;  %v1067_v17 = vpack.c.bf16 %v1431_v8, %v1431_v8 }
 0x120   : > { %v564_v51 = vadd.f32 %v563_v31, %v562_v39  ;;  %714 = vst.msk [vmem:[%s1760_s4 + $0x4] sm:$0xf] %vm712_vm2, %v1062_v6  ;;  %715 = vst.msk [vmem:[%s1760_s4 + $0x8] sm:$0xf] %vm712_vm2, %v1063_v7  ;;  %v1068_v18 = vpack.c.bf16 %v1435_v14, %v1435_v14  ;;  %v1069_v19 = vpack.c.bf16 %v1409_v37, %v1409_v37  ;;  %v575_v31 = vsel %vm551_vm1, %v1425_v61, 0.0 }
 0x121   : > { %v619_v21 = vadd.f32 %v618_v62, %v617_v11  ;;  %716 = vst.msk [vmem:[%s1760_s4 + $0xc] sm:$0xf] %vm712_vm2, %v1064_v12  ;;  %717 = vst.msk [vmem:[%s1760_s4 + $0x10] sm:$0xf] %vm712_vm2, %v1065_v13  ;;  %v1070_v22 = vpack.c.bf16 %v1413_v43, %v1413_v43  ;;  %v1071_v23 = vpack.c.bf16 %v1417_v49, %v1417_v49  ;;  %v624_v33 = vsel %vm551_vm1, %v601_v57, 0.0 }
 0x122   : > { %v566_v63 = vadd.f32 %v565_v45, %v564_v51  ;;  %718 = vst.msk [vmem:[%s1760_s4 + $0x14] sm:$0xf] %vm712_vm2, %v1066_v16  ;;  %719 = vst.msk [vmem:[%s1760_s4 + $0x18] sm:$0xf] %vm712_vm2, %v1067_v17  ;;  %v1072_v24 = vpack.c.bf16 %v1421_v55, %v1421_v55  ;;  %v1073_v25 = vpack.c.bf16 %v1425_v61, %v1425_v61  ;;  %v577_v38 = vsel %vm551_vm1, %v1429_v3, 0.0 }
 0x123   : > { %720 = vst.msk [vmem:[%s1760_s4 + $0x1c] sm:$0xf] %vm712_vm2, %v1068_v18  ;;  %721 = vst.msk [vmem:[%s1760_s4 + $0x20] sm:$0xf] %vm712_vm2, %v1069_v19  ;;  %v1074_v26 = vpack.c.bf16 %v1429_v3, %v1429_v3  ;;  %v1075_v27 = vpack.c.bf16 %v1433_v9, %v1433_v9  ;;  %v621_v29 = vadd.f32 %v620_v1, %v619_v21  ;;  %v626_v40 = vsel %vm551_vm1, %v602_v58, 0.0 }
 0x124   : > { %v568_v10 = vadd.f32 %v567_v46, %v566_v63  ;;  %722 = vst.msk [vmem:[%s1760_s4 + $0x24] sm:$0xf] %vm712_vm2, %v1070_v22  ;;  %723 = vst.msk [vmem:[%s1760_s4 + $0x28] sm:$0xf] %vm712_vm2, %v1071_v23  ;;  %v1076_v30 = vpack.c.bf16 %v1437_v15, %v1437_v15  ;;  %v603_v32 = vmul.f32 %v1417_v49, %v1417_v49  ;;  %v579_v45 = vsel %vm551_vm1, %v1433_v9, 0.0 }
 0x125   : > { %724 = vst.msk [vmem:[%s1760_s4 + $0x2c] sm:$0xf] %vm712_vm2, %v1072_v24  ;;  %725 = vst.msk [vmem:[%s1760_s4 + $0x30] sm:$0xf] %vm712_vm2, %v1073_v25  ;;  %v623_v35 = vadd.f32 %v622_v4, %v621_v29  ;;  %v604_v39 = vmul.f32 %v1421_v55, %v1421_v55  ;;  %v605_v46 = vmul.f32 %v1425_v61, %v1425_v61  ;;  %v550_v21 = vld [vmem:[#allocation2] sm:$0x1] }
 0x126   : > { %v570_v20 = vadd.f32 %v569_v47, %v568_v10  ;;  %726 = vst.msk [vmem:[%s1760_s4 + $0x34] sm:$0xf] %vm712_vm2, %v1074_v26  ;;  %727 = vst.msk [vmem:[%s1760_s4 + $0x38] sm:$0xf] %vm712_vm2, %v1075_v27  ;;  %v628_v47 = vsel %vm551_vm1, %v603_v32, 0.0  ;;  %v607_v59 = vmul.f32 %v1433_v9, %v1433_v9  ;;  %v608_v1 = vmul.f32 %v1437_v15, %v1437_v15 }
 0x127   : > { %728 = vst.msk [vmem:[%s1760_s4 + $0x3c] sm:$0xf] %vm712_vm2, %v1076_v30  ;;  %v625_v44 = vadd.f32 %v624_v33, %v623_v35  ;;  %v630_v56 = vsel %vm551_vm1, %v604_v39, 0.0  ;;  %v632_v62 = vsel %vm551_vm1, %v605_v46, 0.0  ;;  %vm590_vm3 = vcmask 253952  }
 0x128   : > { %v572_v28 = vadd.f32 %v571_v52, %v570_v20  ;;  %v581_v52 = vsel %vm551_vm1, %v1437_v15, 0.0  ;;  %v636_v7 = vsel %vm551_vm1, %v607_v59, 0.0  ;;  %v638_v12 = vsel %vm551_vm1, %v608_v1, 0.0 }
 0x129   : > { %v627_v51 = vadd.f32 %v626_v40, %v625_v44 }
 0x12a   : > { %v574_v34 = vadd.f32 %v573_v53, %v572_v28  ;;  %v606_v53 = vmul.f32 %v1429_v3, %v1429_v3  ;;  %v592_v28 = vld [vmem:[#allocation3] sm:$0x1] }
 0x12b   : > { %v629_v58 = vadd.f32 %v628_v47, %v627_v51 }
 0x12c   : > { %v576_v41 = vadd.f32 %v575_v31, %v574_v34  ;;  %v634_v4 = vsel %vm551_vm1, %v606_v53, 0.0 }
 0x12d   : > { %v631_v0 = vadd.f32 %v630_v56, %v629_v58 }
 0x12e   : > { %v578_v50 = vadd.f32 %v577_v38, %v576_v41 }
 0x12f   : > { %v633_v6 = vadd.f32 %v632_v62, %v631_v0 }
 0x130   : > { %v580_v57 = vadd.f32 %v579_v45, %v578_v50 }
 0x131   : > { %v635_v11 = vadd.f32 %v634_v4, %v633_v6 }
 0x132   : > { %v582_v63 = vadd.f32 %v581_v52, %v580_v57 }
 0x133   : > { %v637_v16 = vadd.f32 %v636_v7, %v635_v11 }
 0x134   : > { %v583_v5 = vrot.slane %v582_v63, 4 }
 0x135   : > { %v639_v18 = vadd.f32 %v638_v12, %v637_v16 }
 0x136   : > { %v584_v10 = vadd.f32 %v583_v5, %v582_v63 }
 0x137   : > { %v640_v20 = vrot.slane %v639_v18, 4 }
 0x138   : > { %v585_v13 = vrot.slane %v584_v10, 2 }
 0x139   : > { %v641_v23 = vadd.f32 %v640_v20, %v639_v18 }
 0x13a   : > { %v586_v17 = vadd.f32 %v585_v13, %v584_v10 }
 0x13b   : > { %v642_v25 = vrot.slane %v641_v23, 2 }
 0x13c   : > { %v587_v19 = vrot.slane %v586_v17, 1 }
 0x13d   : > { %v643_v26 = vadd.f32 %v642_v25, %v641_v23 }
 0x13e   : > { %v588_v22 = vadd.f32 %v587_v19, %v586_v17 }
 0x13f   : > { %v644_v27 = vrot.slane %v643_v26, 1 }
 0x140   : > { %v589_v24 = vadd.f32 %v588_v22, %v550_v21 }
 0x141   : > { %v645_v29 = vadd.f32 %v644_v27, %v643_v26 }
 0x142   : > { %591 = vst.msk [vmem:[#allocation2] sm:$0x1] %vm590_vm3, %v589_v24 }
 0x143   : > { %v646_v30 = vadd.f32 %v645_v29, %v592_v28 }
 0x145   : > { %647 = vst.msk [vmem:[#allocation3] sm:$0x1] %vm590_vm3, %v646_v30 }
 0x146 PF: > { %p1039_p6 = scmp.ne.s32.totalorder %s1254_s15, 1 }
 0x148   : > { %732 = sbr.rel (%p1039_p6) target bundleno = 393 (0x189), region = 48 }
 0x14d   : > { %v733_v31 = vld [vmem:[#allocation2] sm:$0x1]  ;;  %v735_v32 = vld [vmem:[#allocation3] sm:$0x1]  ;;  %v748_v41 = vlaneseq  ;;  %vm903_vm4 = vcmask 257024  }
 0x14e   : > { %v734_v33 = vmul.f32 0.0078125, %v733_v31  ;;  %v736_v34 = vmul.f32 0.0078125, %v735_v32  ;;  %v740_v45 = vld [vmem:[%s1758_s2] sm:$0x1] }
 0x14f   : > { %v749_v44 = vshrl.u32 %v748_v41, 7  ;;  %v744_v51 = vld [vmem:[%s1759_s3] sm:$0x1] }
 0x150   : > { %v737_v35 = vmul.f32 %v734_v33, %v734_v33 }
 0x151   : > { %v750_v46 = vsub.s32 0, %v749_v44 }
 0x152   : > { %v738_v38 = vsub.f32 %v736_v34, %v737_v35 }
 0x154   : > { %v739_v39 = vmax.f32 %v738_v38, 0.0 }
 0x156   : > { %v741_v40 = vadd.f32 1e-05, %v739_v39 }
 0x158   : > { %1238 = vrsqrt.f32 %v741_v40 }
 0x165   : > { %v1239_v47 = vpop.eup %1238 }
 0x166   : > { %v743_v50 = vmul.f32 %v1239_v47, %v740_v45 }
 0x168   : > { %v745_v52 = vmul.f32 %v743_v50, %v734_v33  ;;  %v1625_v53 = vrot.slane %v743_v50, %v750_v46 }
 0x16a   : > { %v746_v56 = vsub.f32 %v744_v51, %v745_v52  ;;  %v753_v57 = vmul.f32 %v1407_v36, %v1625_v53  ;;  %v754_v58 = vmul.f32 %v1411_v42, %v1625_v53  ;;  %v755_v59 = vmul.f32 %v1415_v48, %v1625_v53 }
 0x16b   : > { %v756_v62 = vmul.f32 %v1419_v54, %v1625_v53  ;;  %v757_v63 = vmul.f32 %v1423_v60, %v1625_v53  ;;  %v758_v0 = vmul.f32 %v1427_v2, %v1625_v53  ;;  %v759_v1 = vmul.f32 %v1431_v8, %v1625_v53 }
 0x16c   : > { %v1641_v36 = vrot.slane %v746_v56, %v750_v46  ;;  %v760_v42 = vmul.f32 %v1435_v14, %v1625_v53  ;;  %v761_v48 = vmul.f32 %v1409_v37, %v1625_v53  ;;  %v762_v54 = vmul.f32 %v1413_v43, %v1625_v53 }
 0x16d   : > { %v763_v60 = vmul.f32 %v1417_v49, %v1625_v53  ;;  %v764_v2 = vmul.f32 %v1421_v55, %v1625_v53  ;;  %v1655_v8 = vmul.f32 %v1425_v61, %v1625_v53  ;;  %v1659_v4 = vmul.f32 %v1429_v3, %v1625_v53 }
 0x16e   : > { %v775_v14 = vadd.f32 %v1641_v36, %v753_v57  ;;  %v776_v37 = vadd.f32 %v1641_v36, %v754_v58  ;;  %v777_v43 = vadd.f32 %v1641_v36, %v755_v59  ;;  %v778_v5 = vadd.f32 %v1641_v36, %v756_v62 }
 0x16f   : > { %v779_v49 = vadd.f32 %v1641_v36, %v757_v63  ;;  %v780_v55 = vadd.f32 %v1641_v36, %v758_v0  ;;  %v781_v6 = vadd.f32 %v1641_v36, %v759_v1  ;;  %v782_v61 = vadd.f32 %v1641_v36, %v760_v42 }
 0x170   : > { %vm791_vm5 = vcmp.gt.f32.partialorder %v775_v14, 0.0  ;;  %v807_v7 = vmul.f32 0.2, %v775_v14  ;;  %vm792_vm6 = vcmp.gt.f32.partialorder %v776_v37, 0.0  ;;  %v808_v3 = vmul.f32 0.2, %v776_v37 }
 0x171   : > { %vm793_vm7 = vcmp.gt.f32.partialorder %v777_v43, 0.0  ;;  %v809_v10 = vmul.f32 0.2, %v777_v43  ;;  %vm794_vm8 = vcmp.gt.f32.partialorder %v778_v5, 0.0  ;;  %v810_v11 = vmul.f32 0.2, %v778_v5 }
 0x172   : > { %v823_v12 = vsel %vm791_vm5, %v775_v14, %v807_v7  ;;  %v824_v13 = vsel %vm792_vm6, %v776_v37, %v808_v3  ;;  %vm795_vm9 = vcmp.gt.f32.partialorder %v779_v49, 0.0  ;;  %v811_v16 = vmul.f32 0.2, %v779_v49 }
 0x173   : > { %v1077_v17 = vpack.c.bf16 %v823_v12, %v823_v12  ;;  %v1078_v18 = vpack.c.bf16 %v824_v13, %v824_v13  ;;  %v825_v19 = vsel %vm793_vm7, %v777_v43, %v809_v10  ;;  %v826_v20 = vsel %vm794_vm8, %v778_v5, %v810_v11 }
 0x174   : > { %v1079_v21 = vpack.c.bf16 %v825_v19, %v825_v19  ;;  %v1080_v22 = vpack.c.bf16 %v826_v20, %v826_v20  ;;  %v827_v23 = vsel %vm795_vm9, %v779_v49, %v811_v16  ;;  %vm796_vm10 = vcmp.gt.f32.partialorder %v780_v55, 0.0 }
 0x175   : > { %904 = vst.msk [vmem:[%s1760_s4] sm:$0xf] %vm903_vm4, %v1077_v17  ;;  %905 = vst.msk [vmem:[%s1760_s4 + $0x4] sm:$0xf] %vm903_vm4, %v1078_v18  ;;  %v1081_v24 = vpack.c.bf16 %v827_v23, %v827_v23  ;;  %v812_v25 = vmul.f32 0.2, %v780_v55  ;;  %v783_v28 = vadd.f32 %v1641_v36, %v761_v48  ;;  %v784_v29 = vadd.f32 %v1641_v36, %v762_v54 }
 0x176   : > { %vm797_vm11 = vcmp.gt.f32.partialorder %v781_v6, 0.0  ;;  %v813_v26 = vmul.f32 0.2, %v781_v6  ;;  %906 = vst.msk [vmem:[%s1760_s4 + $0x8] sm:$0xf] %vm903_vm4, %v1079_v21  ;;  %vm798_vm12 = vcmp.gt.f32.partialorder %v782_v61, 0.0  ;;  %v785_v32 = vadd.f32 %v1641_v36, %v763_v60 }
 0x177   : > { %907 = vst.msk [vmem:[%s1760_s4 + $0xc] sm:$0xf] %vm903_vm4, %v1080_v22  ;;  %v814_v27 = vmul.f32 0.2, %v782_v61  ;;  %908 = vst.msk [vmem:[%s1760_s4 + $0x10] sm:$0xf] %vm903_vm4, %v1081_v24  ;;  %v828_v30 = vsel %vm796_vm10, %v780_v55, %v812_v25  ;;  %v786_v33 = vadd.f32 %v1641_v36, %v764_v2  ;;  %v787_v50 = vadd.f32 %v1641_v36, %v1655_v8 }
 0x178   : > { %v829_v31 = vsel %vm797_vm11, %v781_v6, %v813_v26  ;;  %v1082_v34 = vpack.c.bf16 %v828_v30, %v828_v30  ;;  %vm799_vm13 = vcmp.gt.f32.partialorder %v783_v28, 0.0  ;;  %v815_v40 = vmul.f32 0.2, %v783_v28 }
 0x179   : > { %v1083_v35 = vpack.c.bf16 %v829_v31, %v829_v31  ;;  %v830_v38 = vsel %vm798_vm12, %v782_v61, %v814_v27  ;;  %vm800_vm14 = vcmp.gt.f32.partialorder %v784_v29, 0.0  ;;  %v816_v41 = vmul.f32 0.2, %v784_v29 }
 0x17a   : > { %v1084_v39 = vpack.c.bf16 %v830_v38, %v830_v38  ;;  %909 = vst.msk [vmem:[%s1760_s4 + $0x14] sm:$0xf] %vm903_vm4, %v1082_v34  ;;  %vm801_vm15 = vcmp.gt.f32.partialorder %v785_v32, 0.0  ;;  %v817_v44 = vmul.f32 0.2, %v785_v32  ;;  %vm802_vm0 = vcmp.gt.f32.partialorder %v786_v33, 0.0 }
 0x17b   : > { %910 = vst.msk [vmem:[%s1760_s4 + $0x18] sm:$0xf] %vm903_vm4, %v1083_v35  ;;  %v818_v45 = vmul.f32 0.2, %v786_v33  ;;  %v831_v46 = vsel %vm799_vm13, %v783_v28, %v815_v40  ;;  %v832_v47 = vsel %vm800_vm14, %v784_v29, %v816_v41  ;;  %v788_v51 = vadd.f32 %v1641_v36, %v1659_v4 }
 0x17c   : > { %911 = vst.msk [vmem:[%s1760_s4 + $0x1c] sm:$0xf] %vm903_vm4, %v1084_v39  ;;  %v1085_v52 = vpack.c.bf16 %v831_v46, %v831_v46  ;;  %v1086_v56 = vpack.c.bf16 %v832_v47, %v832_v47  ;;  %v833_v57 = vsel %vm801_vm15, %v785_v32, %v817_v44  ;;  %vm803_vm1 = vcmp.gt.f32.partialorder %v787_v50, 0.0 }
 0x17d   : > { %v834_v58 = vsel %vm802_vm0, %v786_v33, %v818_v45  ;;  %v1087_v59 = vpack.c.bf16 %v833_v57, %v833_v57  ;;  %v819_v63 = vmul.f32 0.2, %v787_v50  ;;  %vm804_vm2 = vcmp.gt.f32.partialorder %v788_v51, 0.0 }
 0x17e   : > { %v1088_v62 = vpack.c.bf16 %v834_v58, %v834_v58  ;;  %912 = vst.msk [vmem:[%s1760_s4 + $0x20] sm:$0xf] %vm903_vm4, %v1085_v52  ;;  %913 = vst.msk [vmem:[%s1760_s4 + $0x24] sm:$0xf] %vm903_vm4, %v1086_v56  ;;  %v820_v0 = vmul.f32 0.2, %v788_v51  ;;  %v767_v1 = vmul.f32 %v1433_v9, %v1625_v53  ;;  %v768_v42 = vmul.f32 %v1437_v15, %v1625_v53 }
 0x17f   : > { %914 = vst.msk [vmem:[%s1760_s4 + $0x28] sm:$0xf] %vm903_vm4, %v1087_v59  ;;  %v835_v48 = vsel %vm803_vm1, %v787_v50, %v819_v63 }
 0x180   : > { %915 = vst.msk [vmem:[%s1760_s4 + $0x2c] sm:$0xf] %vm903_vm4, %v1088_v62  ;;  %v1089_v54 = vpack.c.bf16 %v835_v48, %v835_v48  ;;  %v836_v60 = vsel %vm804_vm2, %v788_v51, %v820_v0  ;;  %v789_v2 = vadd.f32 %v1641_v36, %v767_v1  ;;  %v790_v9 = vadd.f32 %v1641_v36, %v768_v42 }
 0x181   : > { %v1090_v8 = vpack.c.bf16 %v836_v60, %v836_v60 }
 0x182   : > { %916 = vst.msk [vmem:[%s1760_s4 + $0x30] sm:$0xf] %vm903_vm4, %v1089_v54  ;;  %vm805_vm3 = vcmp.gt.f32.partialorder %v789_v2, 0.0  ;;  %v821_v15 = vmul.f32 0.2, %v789_v2  ;;  %vm806_vm5 = vcmp.gt.f32.partialorder %v790_v9, 0.0 }
 0x183   : > { %v822_v53 = vmul.f32 0.2, %v790_v9  ;;  %917 = vst.msk [vmem:[%s1760_s4 + $0x34] sm:$0xf] %vm903_vm4, %v1090_v8 }
 0x184   : > { %v837_v4 = vsel %vm805_vm3, %v789_v2, %v821_v15 }
 0x185   : > { %v838_v14 = vsel %vm806_vm5, %v790_v9, %v822_v53  ;;  %v1091_v37 = vpack.c.bf16 %v837_v4, %v837_v4 }
 0x186   : > { %v1092_v43 = vpack.c.bf16 %v838_v14, %v838_v14 }
 0x187   : > { %918 = vst.msk [vmem:[%s1760_s4 + $0x38] sm:$0xf] %vm903_vm4, %v1091_v37 }
 0x188   : > { %919 = vst.msk [vmem:[%s1760_s4 + $0x3c] sm:$0xf] %vm903_vm4, %v1092_v43 }
 0x189 PF: > { %s14_s17 = sadd.s32 1, %s1262_s17   ;;  %s1761_s15 = smov %s1258_s16 }
 0x18a   : > { %p11_p7 = scmp.ge.s32.totalorder %s14_s17, 4   ;;  %s1762_s16 = smov %s1764_s18 }
 0x18c   :  { %13 = sbr.rel (!%p11_p7) target bundleno = 2 (0x2), region = 78 }

// kernel: discriminator_forward.8
= control target key start
LH: loop header
LB: loop body
LE: loop exit
PB: predicated region body
PF: predicated region fallthrough
CT: control target
= control target key end

     0   :  { %s1071_s15 = smov 0   ;;  %s1073_s16 = smov 0   ;;  %s1295_s0 = inlined_call_operand.vmem [shape: bf16[32,512], index: 0, kind: input, shape index: {}]   ;;  %s1296_s1 = inlined_call_operand.vmem [shape: bf16[512,64], index: 1, kind: input, shape index: {}]   ;;  %s1297_s2 = inlined_call_operand.vmem [shape: f32[1,64], index: 2, kind: input, shape index: {}]   ;;  %s1298_s3 = inlined_call_operand.vmem [shape: f32[1,64], index: 3, kind: input, shape index: {}]   ;;  %s1299_s4 = inlined_call_operand.vmem [shape: bf16[32,64], index: 4, kind: output, shape index: {}]  }
   0x1   :  { %s1075_s17 = smov 0  }
   0x2 LB: > { %s26_s18 = sadd.s32 1, %s1039_s16  ;;  %p829_p0 = scmp.ge.s32.totalorder %s1043_s17, 1  ;;  %s1043_s17 = sphi %s1075_s17, %s14_s17   ;;  %s1039_s16 = sphi %s1073_s16, %s1301_s16   ;;  %s1035_s15 = sphi %s1071_s15, %s1300_s15  }
   0x3   : > { %p28_p1 = scmp.ge.s32.totalorder %s26_s18, 2  ;;  %p176_p2 = scmp.lt.s32.totalorder %s1043_s17, 3 }
   0x5   : > { %s1303_s18 = smov (%p28_p1, %s26_s18), 0  ;;  %p177_p3 = pnand %p829_p0, %p176_p2 }
   0x6   : > { %p619_p4 = scmp.eq.s32.totalorder (!%p177_p3), %s1035_s15, 0 }
   0x7   : > { %180 = sbr.rel (%p177_p3) target bundleno = 337 (0x151), region = 36 }
   0xc   : > { %v975_v0 = vld [vmem:[%s1296_s1 + $0x78] sm:$0xff]   ;;  %v979_v4 = vld [vmem:[%s1296_s1 + $0x70] sm:$0xff]   ;;  %v983_v8 = vld [vmem:[%s1296_s1 + $0x68] sm:$0xff]   ;;  %vm625_vm0 = vcmask (%p619_p4), 516096  }
   0xd   : > { %v976_v1 = vld [vmem:[%s1296_s1 + $0xf8] sm:$0xff]   ;;  %894 = vmatprep.subr.bf16.mxu0 %v975_v0  ;;  %v980_v5 = vld [vmem:[%s1296_s1 + $0xf0] sm:$0xff]   ;;  %v984_v9 = vld [vmem:[%s1296_s1 + $0xe8] sm:$0xff]  }
   0xe   : > { %v977_v2 = vld [vmem:[%s1296_s1 + $0x38] sm:$0xff]   ;;  %922 = vmatprep.subr.bf16.mxu1 %v976_v1  ;;  %v981_v6 = vld [vmem:[%s1296_s1 + $0x30] sm:$0xff]   ;;  %v985_v10 = vld [vmem:[%s1296_s1 + $0x28] sm:$0xff]  }
   0xf   : > { %v978_v3 = vld [vmem:[%s1296_s1 + $0xb8] sm:$0xff]   ;;  %895 = vmatpush3.bf16.msra.mxu0 %v977_v2  ;;  %v982_v7 = vld [vmem:[%s1296_s1 + $0xb0] sm:$0xff]   ;;  %v986_v11 = vld [vmem:[%s1296_s1 + $0xa8] sm:$0xff]  }
  0x10   : > { %923 = vmatpush3.bf16.msra.mxu1 %v978_v3  ;;  %896 = vmatprep.subr.bf16.mxu0 %v979_v4  ;;  %v987_v12 = vld [vmem:[%s1296_s1 + $0x60] sm:$0xff]   ;;  %v991_v16 = vld [vmem:[%s1296_s1 + $0x58] sm:$0xff]   ;;  %v995_v20 = vld [vmem:[%s1296_s1 + $0x50] sm:$0xff]   ;;  %v1045_v4 = vmov (%p619_p4), 0.0  }
  0x11   : > { %924 = vmatprep.subr.bf16.mxu1 %v980_v5  ;;  %v988_v13 = vld [vmem:[%s1296_s1 + $0xe0] sm:$0xff]   ;;  %v992_v17 = vld [vmem:[%s1296_s1 + $0xd8] sm:$0xff]   ;;  %v996_v21 = vld [vmem:[%s1296_s1 + $0xd0] sm:$0xff]   ;;  %626 = vst.msk [vmem:[#allocation2] sm:$0x1] (%p619_p4), %vm625_vm0, %v1045_v4 }
  0x12   : > { %v989_v14 = vld [vmem:[%s1296_s1 + $0x20] sm:$0xff]   ;;  %v993_v18 = vld [vmem:[%s1296_s1 + $0x18] sm:$0xff]   ;;  %v997_v22 = vld [vmem:[%s1296_s1 + $0x10] sm:$0xff]   ;;  %627 = vst.msk [vmem:[#allocation3] sm:$0x1] (%p619_p4), %vm625_vm0, %v1045_v4 }
  0x13   : > { %897 = vmatpush3.bf16.msra.mxu0 %v981_v6  ;;  %v990_v15 = vld [vmem:[%s1296_s1 + $0xa0] sm:$0xff]   ;;  %v994_v19 = vld [vmem:[%s1296_s1 + $0x98] sm:$0xff]   ;;  %v998_v23 = vld [vmem:[%s1296_s1 + $0x90] sm:$0xff]  }
  0x14   : > { %925 = vmatpush3.bf16.msra.mxu1 %v982_v7  ;;  %898 = vmatprep.subr.bf16.mxu0 %v983_v8  ;;  %v999_v24 = vld [vmem:[%s1296_s1 + $0x48] sm:$0xff]   ;;  %v1003_v28 = vld [vmem:[%s1296_s1 + $0x40] sm:$0xff]  }
  0x15   : > { %926 = vmatprep.subr.bf16.mxu1 %v984_v9  ;;  %v1000_v25 = vld [vmem:[%s1296_s1 + $0xc8] sm:$0xff]   ;;  %v1004_v29 = vld [vmem:[%s1296_s1 + $0xc0] sm:$0xff]  }
  0x16   : > { %v1001_v26 = vld [vmem:[%s1296_s1 + $0x8] sm:$0xff]   ;;  %v1005_v30 = vld [vmem:[%s1296_s1] sm:$0xff]  }
  0x17   : > { %899 = vmatpush3.bf16.msra.mxu0 %v985_v10  ;;  %v1002_v27 = vld [vmem:[%s1296_s1 + $0x88] sm:$0xff]   ;;  %v1006_v31 = vld [vmem:[%s1296_s1 + $0x80] sm:$0xff]  }
  0x18   : > { %927 = vmatpush3.bf16.msra.mxu1 %v986_v11  ;;  %900 = vmatprep.subr.bf16.mxu0 %v987_v12  ;;  %v1007_v32 = vld [vmem:[%s1295_s0] ss:$16 sps:$4 sm:$0xff]   ;;  %v1009_v33 = vld [vmem:[%s1295_s0 + $0x4] ss:$16 sps:$4 sm:$0xff]   ;;  %v1010_v34 = vld [vmem:[%s1295_s0 + $0x8] ss:$16 sps:$4 sm:$0xff]  }
  0x19   : > { %928 = vmatprep.subr.bf16.mxu1 %v988_v13  ;;  %v1012_v35 = vld [vmem:[%s1295_s0 + $0xc] ss:$16 sps:$4 sm:$0xff]   ;;  %553 = vmatprep.mubr.bf16.mxu0 %v1009_v33  ;;  %v1013_v36 = vld [vmem:[%s1295_s0 + $0x24] ss:$16 sps:$4 sm:$0xff]   ;;  %v1017_v38 = vld [vmem:[%s1295_s0 + $0x20] ss:$16 sps:$4 sm:$0xff]  }
  0x1a   : > { %602 = vmatprep.mubr.bf16.mxu1 %v1012_v35  ;;  %v1015_v37 = vld [vmem:[%s1295_s0 + $0x2c] ss:$16 sps:$4 sm:$0xff]   ;;  %v1018_v39 = vld [vmem:[%s1295_s0 + $0x28] ss:$16 sps:$4 sm:$0xff]  }
  0x1b   : > { %901 = vmatpush3.bf16.msra.mxu0 %v989_v14 }
  0x1c   : > { %929 = vmatpush3.bf16.msra.mxu1 %v990_v15  ;;  %902 = vmatprep.subr.bf16.mxu0 %v991_v16 }
  0x1d   : > { %930 = vmatprep.subr.bf16.mxu1 %v992_v17 }
  0x1f   : > { %903 = vmatpush3.bf16.msra.mxu0 %v993_v18 }
  0x20   : > { %931 = vmatpush3.bf16.msra.mxu1 %v994_v19  ;;  %904 = vmatprep.subr.bf16.mxu0 %v995_v20 }
  0x21   : > { %932 = vmatprep.subr.bf16.mxu1 %v996_v21 }
  0x23   : > { %905 = vmatpush3.bf16.msra.mxu0 %v997_v22 }
  0x24   : > { %933 = vmatpush3.bf16.msra.mxu1 %v998_v23  ;;  %906 = vmatprep.subr.bf16.mxu0 %v999_v24 }
  0x25   : > { %934 = vmatprep.subr.bf16.mxu1 %v1000_v25 }
  0x27   : > { %907 = vmatpush3.bf16.msra.mxu0 %v1001_v26 }
  0x28   : > { %935 = vmatpush3.bf16.msra.mxu1 %v1002_v27  ;;  %908 = vmatprep.subr.bf16.mxu0 %v1003_v28 }
  0x29   : > { %936 = vmatprep.subr.bf16.mxu1 %v1004_v29 }
  0x2b   : > { %909 = vmatpush3.bf16.msra.mxu0 %v1005_v30 }
  0x2c   : > { %937 = vmatpush3.bf16.msra.mxu1 %v1006_v31 }
  0x2e   : > { %554 = vmatmul.mubr.bf16.vlgmr.msra.gmra.mxu0 %v1007_v32 }
  0x2f   : > { %603 = vmatmul.mubr.bf16.vlgmr.msra.gmra.mxu1 %v1010_v34  ;;  %561 = vmatprep.mubr.bf16.mxu0 %v1013_v36 }
  0x30   : > { %610 = vmatprep.mubr.bf16.mxu1 %v1015_v37 }
  0x36   : > { %562 = vmatmul.mubr.bf16.gmra.mxu0 %v1017_v38 }
  0x37   : > { %611 = vmatmul.mubr.bf16.gmra.mxu1 %v1018_v39 }
  0xee   : > { %v910_v40 = vpop.f32.mrf.mxu0 }
  0xef   : > { %v938_v41 = vpop.f32.mrf.mxu1 }
  0xf0   : > { %v911_v42 = vpop.f32.mrf.mxu0 }
  0xf1   : > { %v912_v43 = vadd.f32 %v911_v42, %v910_v40  ;;  %v939_v44 = vpop.f32.mrf.mxu1 }
  0xf2   : > { %v940_v45 = vadd.f32 %v939_v44, %v938_v41  ;;  %v913_v46 = vpop.f32.mrf.mxu0 }
  0xf3   : > { %v941_v47 = vpop.f32.mrf.mxu1 }
  0xf4   : > { %v1212_v48 = vadd.f32 %v940_v45, %v912_v43  ;;  %v914_v49 = vpop.f32.mrf.mxu0 }
  0xf5   : > { %v915_v50 = vadd.f32 %v914_v49, %v913_v46  ;;  %v942_v51 = vpop.f32.mrf.mxu1 }
  0xf6   : > { %v943_v52 = vadd.f32 %v942_v51, %v941_v47  ;;  %v916_v53 = vpop.f32.mrf.mxu0 }
  0xf7   : > { %v944_v54 = vpop.f32.mrf.mxu1 }
  0xf8   : > { %v1214_v55 = vadd.f32 %v943_v52, %v915_v50  ;;  %v917_v56 = vpop.f32.mrf.mxu0 }
  0xf9   : > { %v918_v57 = vadd.f32 %v917_v56, %v916_v53  ;;  %v945_v58 = vpop.f32.mrf.mxu1 }
  0xfa   : > { %v946_v59 = vadd.f32 %v945_v58, %v944_v54  ;;  %v919_v60 = vpop.f32.mrf.mxu0 }
  0xfb   : > { %v947_v61 = vpop.f32.mrf.mxu1 }
  0xfc   : > { %v1216_v62 = vadd.f32 %v946_v59, %v918_v57  ;;  %v920_v63 = vpop.f32.mrf.mxu0  ;;  %624 = sbr.rel (!%p619_p4) target bundleno = 257 (0x101), region = 40 }
  0xfd   : > { %v921_v0 = vadd.f32 %v920_v63, %v919_v60  ;;  %v948_v1 = vpop.f32.mrf.mxu1 }
  0xfe   : > { %v949_v2 = vadd.f32 %v948_v1, %v947_v61 }
 0x100   : > { %v1218_v3 = vadd.f32 %v949_v2, %v921_v0 }
 0x101 PF: > { %p871_p5 = scmp.ne.s32.totalorder %s1035_s15, 0 }
 0x103   : > { %630 = sbr.rel (%p871_p5) target bundleno = 288 (0x120), region = 44 }
 0x108   : > { %vm632_vm1 = vcmask 523264   ;;  %v650_v5 = vmul.f32 %v1212_v48, %v1212_v48  ;;  %v651_v6 = vmul.f32 %v1214_v55, %v1214_v55  ;;  %v652_v12 = vmul.f32 %v1216_v62, %v1216_v62  ;;  %v631_v36 = vld [vmem:[#allocation2] sm:$0x1]  ;;  %v649_v39 = vld [vmem:[#allocation3] sm:$0x1] }
 0x109   : > { %v633_v7 = vsel %vm632_vm1, %v1212_v48, 0.0  ;;  %v634_v8 = vsel %vm632_vm1, %v1214_v55, 0.0  ;;  %v636_v9 = vsel %vm632_vm1, %v1216_v62, 0.0  ;;  %v638_v10 = vsel %vm632_vm1, %v1218_v3, 0.0 }
 0x10a   : > { %v635_v11 = vadd.f32 %v634_v8, %v633_v7  ;;  %v653_v13 = vmul.f32 %v1218_v3, %v1218_v3  ;;  %v654_v14 = vsel %vm632_vm1, %v650_v5, 0.0  ;;  %v655_v15 = vsel %vm632_vm1, %v651_v6, 0.0 }
 0x10b   : > { %v886_v16 = vpack.c.bf16 %v1212_v48, %v1212_v48  ;;  %vm685_vm2 = vcmask 519168   ;;  %v887_v17 = vpack.c.bf16 %v1214_v55, %v1214_v55  ;;  %v656_v19 = vadd.f32 %v655_v15, %v654_v14 }
 0x10c   : > { %v637_v18 = vadd.f32 %v636_v9, %v635_v11  ;;  %v657_v20 = vsel %vm632_vm1, %v652_v12, 0.0  ;;  %v659_v21 = vsel %vm632_vm1, %v653_v13, 0.0  ;;  %v888_v22 = vpack.c.bf16 %v1216_v62, %v1216_v62 }
 0x10d   : > { %686 = vst.msk [vmem:[%s1299_s4] sm:$0xf] %vm685_vm2, %v886_v16  ;;  %687 = vst.msk [vmem:[%s1299_s4 + $0x4] sm:$0xf] %vm685_vm2, %v887_v17  ;;  %v889_v23 = vpack.c.bf16 %v1218_v3, %v1218_v3  ;;  %v658_v25 = vadd.f32 %v657_v20, %v656_v19  ;;  %vm647_vm3 = vcmask 516096  }
 0x10e   : > { %v639_v24 = vadd.f32 %v638_v10, %v637_v18  ;;  %688 = vst.msk [vmem:[%s1299_s4 + $0x8] sm:$0xf] %vm685_vm2, %v888_v22 }
 0x10f   : > { %689 = vst.msk [vmem:[%s1299_s4 + $0xc] sm:$0xf] %vm685_vm2, %v889_v23  ;;  %v660_v27 = vadd.f32 %v659_v21, %v658_v25 }
 0x110   : > { %v640_v26 = vrot.slane %v639_v24, 4 }
 0x111   : > { %v661_v29 = vrot.slane %v660_v27, 4 }
 0x112   : > { %v641_v28 = vadd.f32 %v640_v26, %v639_v24 }
 0x113   : > { %v662_v31 = vadd.f32 %v661_v29, %v660_v27 }
 0x114   : > { %v642_v30 = vrot.slane %v641_v28, 2 }
 0x115   : > { %v663_v33 = vrot.slane %v662_v31, 2 }
 0x116   : > { %v643_v32 = vadd.f32 %v642_v30, %v641_v28 }
 0x117   : > { %v664_v35 = vadd.f32 %v663_v33, %v662_v31 }
 0x118   : > { %v644_v34 = vrot.slane %v643_v32, 1 }
 0x119   : > { %v665_v38 = vrot.slane %v664_v35, 1 }
 0x11a   : > { %v645_v37 = vadd.f32 %v644_v34, %v643_v32 }
 0x11b   : > { %v666_v41 = vadd.f32 %v665_v38, %v664_v35 }
 0x11c   : > { %v646_v40 = vadd.f32 %v645_v37, %v631_v36 }
 0x11d   : > { %v667_v42 = vadd.f32 %v666_v41, %v649_v39 }
 0x11e   : > { %648 = vst.msk [vmem:[#allocation2] sm:$0x1] %vm647_vm3, %v646_v40 }
 0x11f   : > { %668 = vst.msk [vmem:[#allocation3] sm:$0x1] %vm647_vm3, %v667_v42 }
 0x120 PF: > { %p876_p6 = scmp.ne.s32.totalorder %s1035_s15, 1 }
 0x122   : > { %693 = sbr.rel (%p876_p6) target bundleno = 337 (0x151), region = 48 }
 0x127   : > { %v694_v43 = vld [vmem:[#allocation2] sm:$0x1]  ;;  %v696_v44 = vld [vmem:[#allocation3] sm:$0x1]  ;;  %v709_v52 = vlaneseq  ;;  %vm756_vm8 = vcmask 519168  }
 0x128   : > { %v695_v45 = vmul.f32 0.03125, %v694_v43  ;;  %v697_v46 = vmul.f32 0.03125, %v696_v44  ;;  %v701_v54 = vld [vmem:[%s1297_s2] sm:$0x1] }
 0x129   : > { %v710_v53 = vshrl.u32 %v709_v52, 7  ;;  %v705_v59 = vld [vmem:[%s1298_s3] sm:$0x1] }
 0x12a   : > { %v698_v47 = vmul.f32 %v695_v45, %v695_v45 }
 0x12b   : > { %v711_v56 = vsub.s32 0, %v710_v53 }
 0x12c   : > { %v699_v49 = vsub.f32 %v697_v46, %v698_v47 }
 0x12e   : > { %v700_v50 = vmax.f32 %v699_v49, 0.0 }
 0x130   : > { %v702_v51 = vadd.f32 1e-05, %v700_v50 }
 0x132   : > { %1019 = vrsqrt.f32 %v702_v51 }
 0x13f   : > { %v1020_v57 = vpop.eup %1019 }
 0x140   : > { %v704_v58 = vmul.f32 %v1020_v57, %v701_v54 }
 0x142   : > { %v706_v60 = vmul.f32 %v704_v58, %v695_v45  ;;  %v712_v61 = vrot.slane %v704_v58, %v711_v56 }
 0x144   : > { %v707_v63 = vsub.f32 %v705_v59, %v706_v60  ;;  %v714_v0 = vmul.f32 %v712_v61, %v1212_v48  ;;  %v715_v1 = vmul.f32 %v712_v61, %v1214_v55  ;;  %v716_v2 = vmul.f32 %v712_v61, %v1216_v62 }
 0x145   : > { %v717_v4 = vmul.f32 %v712_v61, %v1218_v3 }
 0x146   : > { %v722_v5 = vrot.slane %v707_v63, %v711_v56 }
 0x148   : > { %v724_v6 = vadd.f32 %v722_v5, %v714_v0  ;;  %v725_v7 = vadd.f32 %v722_v5, %v715_v1  ;;  %v726_v8 = vadd.f32 %v722_v5, %v716_v2  ;;  %v727_v9 = vadd.f32 %v722_v5, %v717_v4 }
 0x14a   : > { %vm728_vm4 = vcmp.gt.f32.partialorder %v724_v6, 0.0  ;;  %v732_v10 = vmul.f32 0.2, %v724_v6  ;;  %vm729_vm5 = vcmp.gt.f32.partialorder %v725_v7, 0.0  ;;  %v733_v11 = vmul.f32 0.2, %v725_v7 }
 0x14b   : > { %vm730_vm6 = vcmp.gt.f32.partialorder %v726_v8, 0.0  ;;  %v734_v12 = vmul.f32 0.2, %v726_v8  ;;  %vm731_vm7 = vcmp.gt.f32.partialorder %v727_v9, 0.0  ;;  %v735_v13 = vmul.f32 0.2, %v727_v9 }
 0x14c   : > { %v736_v48 = vsel %vm728_vm4, %v724_v6, %v732_v10  ;;  %v737_v55 = vsel %vm729_vm5, %v725_v7, %v733_v11 }
 0x14d   : > { %v890_v14 = vpack.c.bf16 %v736_v48, %v736_v48  ;;  %v891_v62 = vpack.c.bf16 %v737_v55, %v737_v55  ;;  %v738_v15 = vsel %vm730_vm6, %v726_v8, %v734_v12  ;;  %v739_v3 = vsel %vm731_vm7, %v727_v9, %v735_v13 }
 0x14e   : > { %v892_v16 = vpack.c.bf16 %v738_v15, %v738_v15  ;;  %v893_v17 = vpack.c.bf16 %v739_v3, %v739_v3 }
 0x14f   : > { %757 = vst.msk [vmem:[%s1299_s4] sm:$0xf] %vm756_vm8, %v890_v14  ;;  %758 = vst.msk [vmem:[%s1299_s4 + $0x4] sm:$0xf] %vm756_vm8, %v891_v62 }
 0x150   : > { %759 = vst.msk [vmem:[%s1299_s4 + $0x8] sm:$0xf] %vm756_vm8, %v892_v16  ;;  %760 = vst.msk [vmem:[%s1299_s4 + $0xc] sm:$0xf] %vm756_vm8, %v893_v17 }
 0x151 PF: > { %s14_s17 = sadd.s32 1, %s1043_s17   ;;  %s1300_s15 = smov %s1039_s16 }
 0x152   : > { %p11_p7 = scmp.ge.s32.totalorder %s14_s17, 4   ;;  %s1301_s16 = smov %s1303_s18 }
 0x154   :  { %13 = sbr.rel (!%p11_p7) target bundleno = 2 (0x2), region = 78 }

// kernel: discriminator_forward.9
= control target key start
LH: loop header
LB: loop body
LE: loop exit
PB: predicated region body
PF: predicated region fallthrough
CT: control target
= control target key end

     0   :  { %s1203_s1 = inlined_call_operand.vmem [shape: bf16[1024,128], index: 1, kind: input, shape index: {}]   ;;  %s1204_s0 = inlined_call_operand.vmem [shape: bf16[8,1024], index: 0, kind: input, shape index: {}]   ;;  %s1205_s2 = inlined_call_operand.vmem [shape: f32[1,128], index: 2, kind: input, shape index: {}]   ;;  %s1206_s3 = inlined_call_operand.vmem [shape: f32[8,128], index: 3, kind: output, shape index: {}]  }
   0x1   :  { %v897_v0 = vld [vmem:[%s1203_s1 + $0x78] sm:$0xff]   ;;  %v901_v4 = vld [vmem:[%s1203_s1 + $0x70] sm:$0xff]   ;;  %v905_v8 = vld [vmem:[%s1203_s1 + $0x68] sm:$0xff]  }
   0x2   :  { %v898_v1 = vld [vmem:[%s1203_s1 + $0xf8] sm:$0xff]   ;;  %809 = vmatprep.subr.bf16.mxu0 %v897_v0  ;;  %v902_v5 = vld [vmem:[%s1203_s1 + $0xf0] sm:$0xff]   ;;  %v906_v9 = vld [vmem:[%s1203_s1 + $0xe8] sm:$0xff]  }
   0x3   :  { %v899_v2 = vld [vmem:[%s1203_s1 + $0x38] sm:$0xff]   ;;  %831 = vmatprep.subr.bf16.mxu1 %v898_v1  ;;  %v903_v6 = vld [vmem:[%s1203_s1 + $0x30] sm:$0xff]   ;;  %v907_v10 = vld [vmem:[%s1203_s1 + $0x28] sm:$0xff]  }
   0x4   :  { %v900_v3 = vld [vmem:[%s1203_s1 + $0xb8] sm:$0xff]   ;;  %810 = vmatpush3.bf16.msra.mxu0 %v899_v2  ;;  %v904_v7 = vld [vmem:[%s1203_s1 + $0xb0] sm:$0xff]   ;;  %v908_v11 = vld [vmem:[%s1203_s1 + $0xa8] sm:$0xff]  }
   0x5   :  { %832 = vmatpush3.bf16.msra.mxu1 %v900_v3  ;;  %811 = vmatprep.subr.bf16.mxu0 %v901_v4  ;;  %v909_v12 = vld [vmem:[%s1203_s1 + $0x60] sm:$0xff]   ;;  %v913_v16 = vld [vmem:[%s1203_s1 + $0x58] sm:$0xff]   ;;  %v917_v20 = vld [vmem:[%s1203_s1 + $0x50] sm:$0xff]  }
   0x6   :  { %833 = vmatprep.subr.bf16.mxu1 %v902_v5  ;;  %v910_v13 = vld [vmem:[%s1203_s1 + $0xe0] sm:$0xff]   ;;  %v914_v17 = vld [vmem:[%s1203_s1 + $0xd8] sm:$0xff]   ;;  %v918_v21 = vld [vmem:[%s1203_s1 + $0xd0] sm:$0xff]  }
   0x7   :  { %v911_v14 = vld [vmem:[%s1203_s1 + $0x20] sm:$0xff]   ;;  %v915_v18 = vld [vmem:[%s1203_s1 + $0x18] sm:$0xff]   ;;  %v919_v22 = vld [vmem:[%s1203_s1 + $0x10] sm:$0xff]  }
   0x8   :  { %812 = vmatpush3.bf16.msra.mxu0 %v903_v6  ;;  %v912_v15 = vld [vmem:[%s1203_s1 + $0xa0] sm:$0xff]   ;;  %v916_v19 = vld [vmem:[%s1203_s1 + $0x98] sm:$0xff]   ;;  %v920_v23 = vld [vmem:[%s1203_s1 + $0x90] sm:$0xff]  }
   0x9   :  { %834 = vmatpush3.bf16.msra.mxu1 %v904_v7  ;;  %813 = vmatprep.subr.bf16.mxu0 %v905_v8  ;;  %v921_v24 = vld [vmem:[%s1203_s1 + $0x48] sm:$0xff]   ;;  %v925_v28 = vld [vmem:[%s1203_s1 + $0x40] sm:$0xff]   ;;  %v933_v38 = vld [vmem:[%s1203_s1 + $0x178] sm:$0xff]  }
   0xa   :  { %835 = vmatprep.subr.bf16.mxu1 %v906_v9  ;;  %v922_v25 = vld [vmem:[%s1203_s1 + $0xc8] sm:$0xff]   ;;  %v926_v29 = vld [vmem:[%s1203_s1 + $0xc0] sm:$0xff]   ;;  %v934_v39 = vld [vmem:[%s1203_s1 + $0x1f8] sm:$0xff]  }
   0xb   :  { %v923_v26 = vld [vmem:[%s1203_s1 + $0x8] sm:$0xff]   ;;  %v927_v30 = vld [vmem:[%s1203_s1] sm:$0xff]   ;;  %v935_v40 = vld [vmem:[%s1203_s1 + $0x138] sm:$0xff]  }
   0xc   :  { %814 = vmatpush3.bf16.msra.mxu0 %v907_v10  ;;  %v924_v27 = vld [vmem:[%s1203_s1 + $0x88] sm:$0xff]   ;;  %v928_v31 = vld [vmem:[%s1203_s1 + $0x80] sm:$0xff]   ;;  %v936_v41 = vld [vmem:[%s1203_s1 + $0x1b8] sm:$0xff]  }
   0xd   :  { %836 = vmatpush3.bf16.msra.mxu1 %v908_v11  ;;  %815 = vmatprep.subr.bf16.mxu0 %v909_v12  ;;  %v15_v32 = vld [vmem:[%s1204_s0] sm:$0xff]  ;;  %v16_v33 = vld [vmem:[%s1204_s0 + $0x8] sm:$0xff]  ;;  %v937_v42 = vld [vmem:[%s1203_s1 + $0x170] sm:$0xff]  }
   0xe   :  { %837 = vmatprep.subr.bf16.mxu1 %v910_v13  ;;  %v737_v34 = vcombine.low %v15_v32, %v15_v32  ;;  %v738_v35 = vcombine.high %v15_v32, %v15_v32  ;;  %v739_v36 = vcombine.low %v16_v33, %v16_v33  ;;  %v740_v37 = vcombine.high %v16_v33, %v16_v33  ;;  %v938_v43 = vld [vmem:[%s1203_s1 + $0x1f0] sm:$0xff]   ;;  %v941_v46 = vld [vmem:[%s1203_s1 + $0x168] sm:$0xff]   ;;  %v945_v50 = vld [vmem:[%s1203_s1 + $0x160] sm:$0xff]  }
   0xf   :  { %v939_v44 = vld [vmem:[%s1203_s1 + $0x130] sm:$0xff]   ;;  %v942_v47 = vld [vmem:[%s1203_s1 + $0x1e8] sm:$0xff]   ;;  %v946_v51 = vld [vmem:[%s1203_s1 + $0x1e0] sm:$0xff]  }
  0x10   :  { %816 = vmatpush3.bf16.msra.mxu0 %v911_v14  ;;  %598 = vmatprep.mubr.bf16.mxu0 %v738_v35  ;;  %v940_v45 = vld [vmem:[%s1203_s1 + $0x1b0] sm:$0xff]   ;;  %v943_v48 = vld [vmem:[%s1203_s1 + $0x128] sm:$0xff]   ;;  %v947_v52 = vld [vmem:[%s1203_s1 + $0x120] sm:$0xff]  }
  0x11   :  { %838 = vmatpush3.bf16.msra.mxu1 %v912_v15  ;;  %817 = vmatprep.subr.bf16.mxu0 %v913_v16  ;;  %v944_v49 = vld [vmem:[%s1203_s1 + $0x1a8] sm:$0xff]   ;;  %v948_v53 = vld [vmem:[%s1203_s1 + $0x1a0] sm:$0xff]   ;;  %v949_v54 = vld [vmem:[%s1203_s1 + $0x158] sm:$0xff]  }
  0x12   :  { %839 = vmatprep.subr.bf16.mxu1 %v914_v17  ;;  %638 = vmatprep.mubr.bf16.mxu1 %v740_v37  ;;  %v950_v55 = vld [vmem:[%s1203_s1 + $0x1d8] sm:$0xff]   ;;  %v953_v58 = vld [vmem:[%s1203_s1 + $0x150] sm:$0xff]   ;;  %v957_v62 = vld [vmem:[%s1203_s1 + $0x148] sm:$0xff]  }
  0x13   :  { %v951_v56 = vld [vmem:[%s1203_s1 + $0x118] sm:$0xff]   ;;  %v954_v59 = vld [vmem:[%s1203_s1 + $0x1d0] sm:$0xff]   ;;  %v958_v63 = vld [vmem:[%s1203_s1 + $0x1c8] sm:$0xff]  }
  0x14   :  { %818 = vmatpush3.bf16.msra.mxu0 %v915_v18  ;;  %v952_v57 = vld [vmem:[%s1203_s1 + $0x198] sm:$0xff]   ;;  %v955_v60 = vld [vmem:[%s1203_s1 + $0x110] sm:$0xff]   ;;  %v959_v0 = vld [vmem:[%s1203_s1 + $0x108] sm:$0xff]  }
  0x15   :  { %840 = vmatpush3.bf16.msra.mxu1 %v916_v19  ;;  %819 = vmatprep.subr.bf16.mxu0 %v917_v20  ;;  %v956_v61 = vld [vmem:[%s1203_s1 + $0x190] sm:$0xff]   ;;  %v960_v1 = vld [vmem:[%s1203_s1 + $0x188] sm:$0xff]   ;;  %v961_v2 = vld [vmem:[%s1203_s1 + $0x140] sm:$0xff]  }
  0x16   :  { %841 = vmatprep.subr.bf16.mxu1 %v918_v21  ;;  %v962_v3 = vld [vmem:[%s1203_s1 + $0x1c0] sm:$0xff]   ;;  %v17_v6 = vld [vmem:[%s1204_s0 + $0x10] sm:$0xff]  ;;  %v18_v9 = vld [vmem:[%s1204_s0 + $0x18] sm:$0xff] }
  0x17   :  { %v963_v4 = vld [vmem:[%s1203_s1 + $0x100] sm:$0xff]   ;;  %v741_v7 = vcombine.low %v17_v6, %v17_v6  ;;  %v742_v8 = vcombine.high %v17_v6, %v17_v6  ;;  %v743_v10 = vcombine.low %v18_v9, %v18_v9  ;;  %v744_v11 = vcombine.high %v18_v9, %v18_v9 }
  0x18   :  { %820 = vmatpush3.bf16.msra.mxu0 %v919_v22  ;;  %v964_v5 = vld [vmem:[%s1203_s1 + $0x180] sm:$0xff]  }
  0x19   :  { %842 = vmatpush3.bf16.msra.mxu1 %v920_v23  ;;  %821 = vmatprep.subr.bf16.mxu0 %v921_v24  ;;  %v736_v21 = vld [vmem:[%s1205_s2] ss:$0 sm:$0xff] }
  0x1a   :  { %843 = vmatprep.subr.bf16.mxu1 %v922_v25 }
  0x1c   :  { %822 = vmatpush3.bf16.msra.mxu0 %v923_v26 }
  0x1d   :  { %844 = vmatpush3.bf16.msra.mxu1 %v924_v27  ;;  %823 = vmatprep.subr.bf16.mxu0 %v925_v28 }
  0x1e   :  { %845 = vmatprep.subr.bf16.mxu1 %v926_v29 }
  0x20   :  { %824 = vmatpush3.bf16.msra.mxu0 %v927_v30 }
  0x21   :  { %846 = vmatpush3.bf16.msra.mxu1 %v928_v31  ;;  %853 = vmatprep.subr.bf16.mxu0 %v933_v38 }
  0x22   :  { %875 = vmatprep.subr.bf16.mxu1 %v934_v39 }
  0x23   :  { %599 = vmatmul.mubr.bf16.vlgmr.msra.gmra.mxu0 %v737_v34 }
  0x24   :  { %639 = vmatmul.mubr.bf16.vlgmr.msra.gmra.mxu1 %v739_v36  ;;  %854 = vmatpush3.bf16.msra.mxu0 %v935_v40 }
  0x25   :  { %876 = vmatpush3.bf16.msra.mxu1 %v936_v41  ;;  %855 = vmatprep.subr.bf16.mxu0 %v937_v42 }
  0x26   :  { %877 = vmatprep.subr.bf16.mxu1 %v938_v43  ;;  %678 = vmatprep.mubr.bf16.mxu0 %v742_v8 }
  0x27   :  { %718 = vmatprep.mubr.bf16.mxu1 %v744_v11 }
  0x28   :  { %856 = vmatpush3.bf16.msra.mxu0 %v939_v44 }
  0x29   :  { %878 = vmatpush3.bf16.msra.mxu1 %v940_v45  ;;  %857 = vmatprep.subr.bf16.mxu0 %v941_v46 }
  0x2a   :  { %879 = vmatprep.subr.bf16.mxu1 %v942_v47 }
  0x2c   :  { %858 = vmatpush3.bf16.msra.mxu0 %v943_v48 }
  0x2d   :  { %880 = vmatpush3.bf16.msra.mxu1 %v944_v49  ;;  %859 = vmatprep.subr.bf16.mxu0 %v945_v50 }
  0x2e   :  { %881 = vmatprep.subr.bf16.mxu1 %v946_v51 }
  0x30   :  { %860 = vmatpush3.bf16.msra.mxu0 %v947_v52 }
  0x31   :  { %882 = vmatpush3.bf16.msra.mxu1 %v948_v53  ;;  %861 = vmatprep.subr.bf16.mxu0 %v949_v54 }
  0x32   :  { %883 = vmatprep.subr.bf16.mxu1 %v950_v55 }
  0x34   :  { %862 = vmatpush3.bf16.msra.mxu0 %v951_v56 }
  0x35   :  { %884 = vmatpush3.bf16.msra.mxu1 %v952_v57  ;;  %863 = vmatprep.subr.bf16.mxu0 %v953_v58 }
  0x36   :  { %885 = vmatprep.subr.bf16.mxu1 %v954_v59 }
  0x38   :  { %864 = vmatpush3.bf16.msra.mxu0 %v955_v60 }
  0x39   :  { %886 = vmatpush3.bf16.msra.mxu1 %v956_v61  ;;  %865 = vmatprep.subr.bf16.mxu0 %v957_v62 }
  0x3a   :  { %887 = vmatprep.subr.bf16.mxu1 %v958_v63 }
  0x3c   :  { %866 = vmatpush3.bf16.msra.mxu0 %v959_v0 }
  0x3d   :  { %888 = vmatpush3.bf16.msra.mxu1 %v960_v1  ;;  %867 = vmatprep.subr.bf16.mxu0 %v961_v2 }
  0x3e   :  { %889 = vmatprep.subr.bf16.mxu1 %v962_v3 }
  0x40   :  { %868 = vmatpush3.bf16.msra.mxu0 %v963_v4 }
  0x41   :  { %890 = vmatpush3.bf16.msra.mxu1 %v964_v5 }
  0x43   :  { %679 = vmatmul.mubr.bf16.vlgmr.msra.gmra.mxu0 %v741_v7 }
  0x44   :  { %719 = vmatmul.mubr.bf16.vlgmr.msra.gmra.mxu1 %v743_v10 }
  0xe3   :  { %v825_v12 = vpop.f32.mrf.mxu0 }
  0xe4   :  { %v847_v13 = vpop.f32.mrf.mxu1 }
  0xe5   :  { %v826_v14 = vpop.f32.mrf.mxu0 }
  0xe6   :  { %v848_v15 = vpop.f32.mrf.mxu1  ;;  %v827_v20 = vadd.f32 %v826_v14, %v825_v12 }
  0xe7   :  { %v828_v16 = vpop.f32.mrf.mxu0  ;;  %v849_v23 = vadd.f32 %v848_v15, %v847_v13 }
  0xe8   :  { %v850_v17 = vpop.f32.mrf.mxu1  ;;  %v601_v22 = vadd.f32 %v827_v20, %v736_v21 }
  0xe9   :  { %v829_v18 = vpop.f32.mrf.mxu0 }
  0xea   :  { %v851_v19 = vpop.f32.mrf.mxu1  ;;  %v641_v28 = vadd.f32 %v849_v23, %v601_v22 }
 0x103   :  { %v869_v24 = vpop.f32.mrf.mxu0 }
 0x104   :  { %v891_v25 = vpop.f32.mrf.mxu1 }
 0x105   :  { %v870_v26 = vpop.f32.mrf.mxu0 }
 0x106   :  { %v892_v27 = vpop.f32.mrf.mxu1  ;;  %v871_v29 = vadd.f32 %v870_v26, %v869_v24 }
 0x107   :  { %v872_v30 = vpop.f32.mrf.mxu0  ;;  %v893_v33 = vadd.f32 %v892_v27, %v891_v25 }
 0x108   :  { %v894_v31 = vpop.f32.mrf.mxu1  ;;  %v681_v32 = vadd.f32 %v871_v29, %v641_v28 }
 0x109   :  { %v873_v34 = vpop.f32.mrf.mxu0 }
 0x10a   :  { %v895_v35 = vpop.f32.mrf.mxu1  ;;  %v721_v36 = vadd.f32 %v893_v33, %v681_v32 }
 0x10c   :  { %v726_v37 = vsub.f32 0.0, %v721_v36 }
 0x10e   :  { %v727_v38 = vmul.f32 1.442695, %v726_v37 }
 0x110   :  { %969 = vpow2.f32 %v727_v38 }
 0x11d   :  { %v970_v39 = vpop.eup %969 }
 0x11e   :  { %v729_v40 = vadd.f32 1.0, %v970_v39 }
 0x120   :  { %971 = vrcp.f32 %v729_v40 }
 0x12d   :  { %v972_v41 = vpop.eup %971 }
 0x12e   :  { %731 = vst [vmem:[%s1206_s3] sm:$0xff] %v972_v41 }

</bundles_post_ra>
